<compile_context>
chip_gen: v7x
topology: tpu7x:2x2x1
jax: 0.10.0
libtpu: 0.0.40
codegen_flags: <defaults>
</compile_context>

<pallas_src>
import jax
import jax.numpy as jnp
from jax.experimental import pallas as pl
from jax.experimental.pallas import tpu as pltpu


def _round_up(x, m):
    return ((x + m - 1) // m) * m


def _conv1x1_kernel(x_ref, w_ref, b_ref, o_ref):
    """One (image, HW-tile) step of the 1x1-conv matmul.

    x_ref: (Cin, thw)   activations tile (one image, one HW slab), f32 or bf16
    w_ref: (Cout, Cin)  bf16 full weight, VMEM-resident across the grid
    b_ref: (Cout, 1)    f32 bias column, resident
    o_ref: (Cout, thw)  output tile
    """
    # In-register cast, hidden under MXU/DMA; no-op if features already bf16.
    x_bf16 = x_ref[...].astype(jnp.bfloat16)
    acc = jnp.dot(w_ref[...], x_bf16, preferred_element_type=jnp.float32)
    o_ref[...] = (acc + b_ref[...]).astype(o_ref.dtype)


def _pick_thw(n, hw):
    """Lane-axis (HW) tile size.

    * Target 512 lanes (measured ~85% of HBM roofline vs ~29% at 128).
    * Never exceed hw: a block equal to the full ragged dim is always legal.
    * v7x megacore: if the grid would collapse to a single step, halve the HW
      axis (128-aligned) so both TensorCores get work.
    """
    thw = min(hw, 512)
    total_steps = n * (-(-hw // thw))
    if total_steps < 2 and hw > 128:
        thw = min(thw, _round_up(-(-hw // 2), 128))
    return thw


def conv1x1_pallas(x3, w_bf16, b_col, *, thw, out_dtype):
    """x3: (N, Cin, HW), w: (Cout, Cin) bf16, b: (Cout, 1) f32 -> (N, Cout, HW)."""
    n, cin, hw = x3.shape
    cout = w_bf16.shape[0]

    # Ragged HW: cdiv grid; Pallas masks the partial last block's writes.
    grid = (n, pl.cdiv(hw, thw))

    flops = 2 * n * hw * cin * cout
    bytes_accessed = (
        n * cin * hw * x3.dtype.itemsize          # activations
        + cout * cin * 2 + cout * 4               # weight (bf16) + bias
        + n * cout * hw * jnp.dtype(out_dtype).itemsize  # output
    )

    return pl.pallas_call(
        _conv1x1_kernel,
        out_shape=jax.ShapeDtypeStruct((n, cout, hw), out_dtype),
        grid_spec=pltpu.PrefetchScalarGridSpec(
            num_scalar_prefetch=0,
            grid=grid,
            in_specs=[
                # activations: one image, one HW slab per step
                pl.BlockSpec((None, cin, thw), lambda i, j: (i, 0, j)),
                # weight: full, constant index_map -> DMA'd once, stays resident
                pl.BlockSpec((cout, cin), lambda i, j: (0, 0)),
                # bias column: resident
                pl.BlockSpec((cout, 1), lambda i, j: (0, 0)),
            ],
            out_specs=pl.BlockSpec((None, cout, thw), lambda i, j: (i, 0, j)),
        ),
        compiler_params=pltpu.CompilerParams(
            dimension_semantics=("parallel", "parallel"),
            vmem_limit_bytes=32 * 1024 * 1024,
        ),
        cost_estimate=pl.CostEstimate(
            flops=flops, transcendentals=0, bytes_accessed=bytes_accessed
        ),
    )(x3, w_bf16, b_col)


def encoder_forward(features_nchw, w_oc_ic, bias, *, out_dtype=None):
    """Pallas implementation of Encoder.conv on backbone features.

    features_nchw : (N, Cin, H, W)  -- NCHW, as PyTorch produces (f32 or bf16;
                                       bf16 features halve activation HBM bytes)
    w_oc_ic       : (Cout, Cin)     -- Conv2d(Cin, Cout, 1).weight squeezed
    bias          : (Cout,)
    out_dtype     : defaults to the feature dtype; pass jnp.bfloat16 if the
                    downstream decoder tolerates it (halves output HBM bytes)
    returns       : (N, Cout, H, W) -- NCHW, matching the PyTorch module
    """
    n, cin, h, wd = features_nchw.shape
    cout = w_oc_ic.shape[0]
    hw = h * wd
    if out_dtype is None:
        out_dtype = features_nchw.dtype

    # NCHW-native flatten: pure reshape, no transpose, no pad, no extra HBM pass.
    x3 = features_nchw.reshape(n, cin, hw)

    # bf16 MXU with f32 accumulation (K=2048 contraction; ~1e-2 rel. error vs
    # the f32 PyTorch conv -- accepted per review).
    w_bf16 = w_oc_ic.astype(jnp.bfloat16)             # 1 MiB, cast once
    b_col = bias.reshape(cout, 1).astype(jnp.float32)

    thw = _pick_thw(n, hw)
    out3 = conv1x1_pallas(x3, w_bf16, b_col, thw=thw, out_dtype=out_dtype)
    return out3.reshape(n, cout, h, wd)


if __name__ == "__main__":
    embed_size = 256
    cin = 2048                      # ResNet-101 backbone output channels
    batch, hh, ww = 2, 24, 24       # HW = 576: one dense 512-lane tile plus a
                                    # ragged 64-lane tail per image, exercising
                                    # the masked partial-block path (no pad).

    key = jax.random.PRNGKey(0)
    k_feat, k_w, k_b = jax.random.split(key, 3)

    # Backbone features stand in as the kernel input (see TODO above).
    features = jax.random.normal(k_feat, (batch, cin, hh, ww), dtype=jnp.float32)

    # Deterministic Conv2d(2048, embed_size, 1) params (PyTorch-style uniform init).
    bound = float(cin) ** -0.5
    w_conv = jax.random.uniform(k_w, (embed_size, cin), jnp.float32, -bound, bound)
    b_conv = jax.random.uniform(k_b, (embed_size,), jnp.float32, -bound, bound)

    out = encoder_forward(features, w_conv, b_conv)
    out = jax.block_until_ready(out)

    # Reference check (plain JAX, full-precision 1x1 conv semantics).
    ref = jnp.einsum(
        "nchw,oc->nohw", features, w_conv, precision=jax.lax.Precision.HIGHEST
    ) + b_conv[None, :, None, None]
    assert out.shape == (batch, embed_size, hh, ww)
    # bf16 MXU inputs with f32 accumulation -> loosened tolerance.
    assert jnp.allclose(out, ref, rtol=2e-2, atol=2e-2), float(
        jnp.max(jnp.abs(out - ref))
    )

    print("KERNEL_OK")
</pallas_src>

<mosaic_0001>
module attributes {stable_mosaic.version = 11 : i64} {
  func.func @_conv1x1_kernel(%arg0: i32, %arg1: i32, %arg2: memref<1x2048x512xf32, #tpu.memory_space<vmem>>, %arg3: memref<256x2048xbf16, #tpu.memory_space<vmem>>, %arg4: memref<256x1xf32, #tpu.memory_space<vmem>>, %arg5: memref<1x256x512xf32, #tpu.memory_space<vmem>>) attributes {dimension_semantics = [#tpu.dimension_semantics<parallel>, #tpu.dimension_semantics<parallel>], iteration_bounds = array<i64: 2, 2>, scalar_prefetch = 0 : i64, scratch_operands = 0 : i64, tpu.core_type = #tpu.core_type<tc>, window_params = [{transform_indices = @transform_0, window_bounds = array<i64: 1, 2048, 512>}, {pipeline_mode = #tpu.pipeline_mode<synchronous>, transform_indices = @transform_1, window_bounds = array<i64: 256, 2048>}, {pipeline_mode = #tpu.pipeline_mode<synchronous>, transform_indices = @transform_2, window_bounds = array<i64: 256, 1>}, {transform_indices = @transform_3, window_bounds = array<i64: 1, 256, 512>}]} {
    %c0 = arith.constant 0 : index
    %c0_0 = arith.constant 0 : index
    %c0_1 = arith.constant 0 : index
    %0 = vector.load %arg2[%c0, %c0_0, %c0_1] : memref<1x2048x512xf32, #tpu.memory_space<vmem>>, vector<1x2048x512xf32>
    %1 = vector.shape_cast %0 : vector<1x2048x512xf32> to vector<2048x512xf32>
    %2 = arith.truncf %1 : vector<2048x512xf32> to vector<2048x512xbf16>
    %c0_2 = arith.constant 0 : index
    %c0_3 = arith.constant 0 : index
    %3 = vector.load %arg3[%c0_2, %c0_3] : memref<256x2048xbf16, #tpu.memory_space<vmem>>, vector<256x2048xbf16>
    %cst = arith.constant dense<0.000000e+00> : vector<256x512xf32>
    %4 = tpu.matmul %3, %2, %cst {dimension_numbers = #tpu.dot_dimension_numbers<[1], [0], [0], [1], [0, 0, 1, 1], [], []>} : vector<256x2048xbf16>, vector<2048x512xbf16>, vector<256x512xf32> -> vector<256x512xf32>
    %c0_4 = arith.constant 0 : index
    %c0_5 = arith.constant 0 : index
    %5 = vector.load %arg4[%c0_4, %c0_5] : memref<256x1xf32, #tpu.memory_space<vmem>>, vector<256x1xf32>
    %6 = vector.broadcast %5 : vector<256x1xf32> to vector<256x512xf32>
    %7 = arith.addf %4, %6 : vector<256x512xf32>
    %c0_6 = arith.constant 0 : index
    %c0_7 = arith.constant 0 : index
    %c0_8 = arith.constant 0 : index
    %8 = vector.load %arg5[%c0_6, %c0_7, %c0_8] : memref<1x256x512xf32, #tpu.memory_space<vmem>>, vector<1x256x512xf32>
    %9 = vector.shape_cast %8 : vector<1x256x512xf32> to vector<256x512xf32>
    %10 = vector.shape_cast %7 : vector<256x512xf32> to vector<1x256x512xf32>
    tpu.vector_store %arg5[%c0_6, %c0_7, %c0_8], %10 {strides = array<i32>} : memref<1x256x512xf32, #tpu.memory_space<vmem>>, vector<1x256x512xf32>,
    return
  }
  func.func @transform_0(%arg0: i32, %arg1: i32) -> (i32, i32, i32) {
    %c0_i32 = arith.constant 0 : i32
    %c0_i32_0 = arith.constant 0 : i32
    return %arg0, %c0_i32, %arg1 : i32, i32, i32
  }
  func.func @transform_1(%arg0: i32, %arg1: i32) -> (i32, i32) {
    %c0_i32 = arith.constant 0 : i32
    %c0_i32_0 = arith.constant 0 : i32
    %c0_i32_1 = arith.constant 0 : i32
    return %c0_i32, %c0_i32_0 : i32, i32
  }
  func.func @transform_2(%arg0: i32, %arg1: i32) -> (i32, i32) {
    %c0_i32 = arith.constant 0 : i32
    %c0_i32_0 = arith.constant 0 : i32
    %c0_i32_1 = arith.constant 0 : i32
    return %c0_i32, %c0_i32_0 : i32, i32
  }
  func.func @transform_3(%arg0: i32, %arg1: i32) -> (i32, i32, i32) {
    %c0_i32 = arith.constant 0 : i32
    %c0_i32_0 = arith.constant 0 : i32
    return %arg0, %c0_i32, %arg1 : i32, i32, i32
  }
}

</mosaic_0001>

<bundles_post_ra>
// kernel: tpu_custom_call.1
= control target key start
LH: loop header
LB: loop body
LE: loop exit
PB: predicated region body
PF: predicated region fallthrough
CT: control target
= control target key end

     0   :  { %s11541_s12 = smov 0   ;;  %s11543_s13 = smov 0   ;;  %s17727_s0 = inlined_call_operand.vmem [shape: f32[2,2048,576], index: 0, kind: input, shape index: {}]   ;;  %s17728_s1 = inlined_call_operand.vmem [shape: bf16[256,2048], index: 1, kind: input, shape index: {}]   ;;  %s17729_s2 = inlined_call_operand.vmem [shape: f32[256,1], index: 2, kind: input, shape index: {}]   ;;  %s17730_s3 = inlined_call_operand.vmem [shape: f32[2,256,576], index: 3, kind: output, shape index: {}]  }
   0x1   :  { %s11545_s14 = smov 0   ;;  %s11547_s15 = smov 0  }
   0x2   :  { %s11549_s16 = smov 0   ;;  %s11551_s17 = smov 0  }
   0x3   :  { %s11553_s18 = smov 0  }
   0x4 LB: > { %s22_s19 = sadd.s32 1, %s11410_s16  ;;  %s25_s20 = sadd.s32 1, %s11414_s17  ;;  %s11418_s18 = sphi %s11553_s18, %s13_s18   ;;  %s11414_s17 = sphi %s11551_s17, %s17767_s17   ;;  %s11410_s16 = sphi %s11549_s16, %s17766_s16   ;;  %s11406_s15 = sphi %s11547_s15, %s17765_s15   ;;  %s11402_s14 = sphi %s11545_s14, %s17764_s14   ;;  %s11398_s13 = sphi %s11543_s13, %s17763_s13   ;;  %s11394_s12 = sphi %s11541_s12, %s17762_s12  }
   0x5   : > { %p23_p0 = scmp.ge.s32.totalorder %s22_s19, 2  ;;  %s9674_s21 = sadd.s32 4294967295, %s11418_s18  }
   0x6   : > { %p41_p1 = scmp.ne.s32.totalorder %s11398_s13, %s11394_s12  ;;  %p42_p2 = scmp.eq.s32.totalorder %s11418_s18, 0 }
   0x7   : > { %s17769_s19 = smov (%p23_p0, %s22_s19), 0  ;;  %s17771_s20 = smov (!%p23_p0, %s25_s20), %s11414_s17 }
   0x8   : > { %p27_p3 = scmp.ge.s32.totalorder %s17771_s20, 2  ;;  %p115_p4 = scmp.eq.s32.totalorder %s9674_s21, 3 }
   0x9   : > { %s30_s22 = ssub.s32 %s11410_s16, %s17769_s19  ;;  %p43_p5 = por %p42_p2, %p41_p1 }
   0xa   : > { %s17773_s20 = smov (%p27_p3, %s17771_s20), 0  ;;  %p11589_p6 = por %p115_p4, %p41_p1 }
   0xb   : > { %s29_s24 = ssub.s32 %s11414_s17, %s17773_s20  ;;  %s34_s26 = sadd.s32 1, %s11398_s13 }
   0xc   : > { %s31_s25 = sor.u32 %s30_s22, %s29_s24  ;;  %p9677_p8 = scmp.ge.s32.totalorder %s11418_s18, 4 }
   0xd   : > { %p32_p7 = scmp.eq.s32.totalorder %s31_s25, 0 }
   0xe   : > { %143 = sbr.rel (%p9677_p8) target bundleno = 833 (0x341), region = 24 }
   0xf   : > { %s11597_s27 = scalar_select %p32_p7, %s11398_s13, %s34_s26  }
  0x15   : > { %146 = sbr.rel (!%p43_p5) target bundleno = 833 (0x341), region = 28  ;;  %s148_s28 = sand.u32 (%p43_p5), 1, %s11398_s13  }
  0x16   : > { %s9679_s29 = sshll.u32 (%p43_p5), %s11410_s16, 2  ;;  %s9678_s30 = sshll.u32 (%p43_p5), %s148_s28, 13 }
  0x17   : > { %s152_s4 = ssub.s32 (%p43_p5), 5, %s9679_s29  ;;  %s11009_s5 = smul.u32 (%p43_p5), 1280, %s11414_s17 }
  0x18   : > { %p153_p9 = scmp.lt.s32.totalorder (%p43_p5), %s152_s4, 4  ;;  %s11610_s22 = scalar_lea.vmem (%p43_p5), [#allocation2], %s9678_s30  }
  0x19   : > { %s158_s6 = sadd.s32 (%p43_p5), %s11009_s5, %s9679_s29 }
  0x1a   : > { %s9682_s8 = sshll.u32 (%p43_p5), %s158_s6, 3 }
  0x1b   : > { %s11606_s11 = scalar_lea.vmem (%p43_p5), %s17727_s0, %s9682_s8  }
  0x1c   : > { %s17775_s4 = smov (!%p153_p9, %s152_s4), 4 }
  0x1d   : > { %s9680_s7 = sshll.u32 %s17775_s4, 15  ;;  %s11608_s21 = sshll.u32 %s17775_s4, 3 }
  0x1e   : > { %p9684_p10 = scmp.eq.s32.totalorder %s9680_s7, 0 }
  0x1f   : > { %p165_p11 = scmp.lt.u32.totalorder (!%p9684_p10), %s11608_s21, 8 }
  0x20   : > { %164 = sbr.rel (%p9684_p10) target bundleno = 833 (0x341), region = 32 }
  0x27   : > { %168 = sbr.rel (%p165_p11) target bundleno = 574 (0x23e), region = 36  ;;  %s11614_s24 = sand.u32 (!%p165_p11), 7, %s11608_s21  }
  0x28   : > { %p694_p12 = scmp.eq.s32.totalorder (!%p165_p11), %s11614_s24, 0  ;;  %p9685_p13 = scmp.ne.s32.totalorder (!%p165_p11), %s11614_s24, 0 }
  0x2e   : > { %697 = sbr.rel (%p9685_p13) target bundleno = 182 (0xb6), region = 51  ;;  %s698_s25 = sshrl.u32 (!%p9685_p13), %s11608_s21, 3 }
  0x2f   : > { %s17732_s26 = smov (!%p9685_p13), %s11610_s22  ;;  %s17733_s28 = smov (!%p9685_p13), %s11606_s11 }
  0x30   : > { %s11625_s29 = smov (!%p9685_p13), 0   ;;  %s11627_s30 = smov (!%p9685_p13), 0  }
  0x35 LB: >> { %v710_v0 = vld [vmem:[%s11426_s28] sm:$0xff]  ;;  %v712_v1 = vld [vmem:[%s11426_s28 + $0x28] sm:$0xff]  ;;  %v714_v2 = vld [vmem:[%s11426_s28 + $0x50] sm:$0xff]  ;;  %s1222_s4 = sadd.s32 1, %s11430_s29  ;;  %s704_s30 = sadd.s32 1, %s11434_s30   ;;  %s11434_s30 = sphi %s11627_s30, %s704_s30   ;;  %s11430_s29 = sphi %s11625_s29, %s17736_s29   ;;  %s11426_s28 = sphi %s17733_s28, %s17735_s28   ;;  %s11422_s26 = sphi %s17732_s26, %s17734_s26  }
  0x36   : >> { %711 = vst [vmem:[%s11422_s26] sm:$0xff] %v710_v0  ;;  %713 = vst [vmem:[%s11422_s26 + $0x20] sm:$0xff] %v712_v1  ;;  %v716_v3 = vld [vmem:[%s11426_s28 + $0x78] sm:$0xff]  ;;  %v718_v4 = vld [vmem:[%s11426_s28 + $0xa0] sm:$0xff]  ;;  %p1223_p0 = scmp.ge.s32.totalorder %s1222_s4, %s698_s25  ;;  %p703_p1 = scmp.ge.s32.totalorder %s704_s30, %s698_s25 }
  0x37   : >> { %715 = vst [vmem:[%s11422_s26 + $0x40] sm:$0xff] %v714_v2  ;;  %v720_v5 = vld [vmem:[%s11426_s28 + $0xc8] sm:$0xff]  ;;  %717 = vst [vmem:[%s11422_s26 + $0x60] sm:$0xff] %v716_v3  ;;  %v722_v6 = vld [vmem:[%s11426_s28 + $0xf0] sm:$0xff] }
  0x38   : >> { %719 = vst [vmem:[%s11422_s26 + $0x80] sm:$0xff] %v718_v4  ;;  %721 = vst [vmem:[%s11422_s26 + $0xa0] sm:$0xff] %v720_v5  ;;  %v724_v7 = vld [vmem:[%s11426_s28 + $0x118] sm:$0xff]  ;;  %v726_v8 = vld [vmem:[%s11426_s28 + $0x140] sm:$0xff]  ;;  %s17777_s4 = smov (%p1223_p0, %s1222_s4), 0 }
  0x39   : >> { %723 = vst [vmem:[%s11422_s26 + $0xc0] sm:$0xff] %v722_v6  ;;  %725 = vst [vmem:[%s11422_s26 + $0xe0] sm:$0xff] %v724_v7  ;;  %v728_v9 = vld [vmem:[%s11426_s28 + $0x168] sm:$0xff]  ;;  %v730_v10 = vld [vmem:[%s11426_s28 + $0x190] sm:$0xff]  ;;  %s9687_s5 = sshll.u32 %s17777_s4, 3  ;;  %s17736_s29 = smov %s17777_s4 }
  0x3a   : >> { %727 = vst [vmem:[%s11422_s26 + $0x100] sm:$0xff] %v726_v8  ;;  %v732_v11 = vld [vmem:[%s11426_s28 + $0x1b8] sm:$0xff]  ;;  %729 = vst [vmem:[%s11422_s26 + $0x120] sm:$0xff] %v728_v9  ;;  %v734_v12 = vld [vmem:[%s11426_s28 + $0x1e0] sm:$0xff]  ;;  %s11684_s6 = scalar_lea.vmem %s11606_s11, %s9687_s5   ;;  %s11687_s7 = scalar_lea.vmem %s11610_s22, %s9687_s5 [#allocation2]  }
  0x3b   : >> { %731 = vst [vmem:[%s11422_s26 + $0x140] sm:$0xff] %v730_v10  ;;  %733 = vst [vmem:[%s11422_s26 + $0x160] sm:$0xff] %v732_v11  ;;  %v736_v13 = vld [vmem:[%s11426_s28 + $0x208] sm:$0xff]  ;;  %v738_v14 = vld [vmem:[%s11426_s28 + $0x230] sm:$0xff] }
  0x3c   : >> { %735 = vst [vmem:[%s11422_s26 + $0x180] sm:$0xff] %v734_v12  ;;  %737 = vst [vmem:[%s11422_s26 + $0x1a0] sm:$0xff] %v736_v13  ;;  %v740_v15 = vld [vmem:[%s11426_s28 + $0x258] sm:$0xff]  ;;  %v742_v16 = vld [vmem:[%s11426_s28 + $0x280] sm:$0xff] }
  0x3d   : >> { %739 = vst [vmem:[%s11422_s26 + $0x1c0] sm:$0xff] %v738_v14  ;;  %v744_v17 = vld [vmem:[%s11426_s28 + $0x2a8] sm:$0xff]  ;;  %741 = vst [vmem:[%s11422_s26 + $0x1e0] sm:$0xff] %v740_v15  ;;  %v746_v18 = vld [vmem:[%s11426_s28 + $0x2d0] sm:$0xff] }
  0x3e   : >> { %743 = vst [vmem:[%s11422_s26 + $0x200] sm:$0xff] %v742_v16  ;;  %745 = vst [vmem:[%s11422_s26 + $0x220] sm:$0xff] %v744_v17  ;;  %v748_v19 = vld [vmem:[%s11426_s28 + $0x2f8] sm:$0xff]  ;;  %v750_v20 = vld [vmem:[%s11426_s28 + $0x320] sm:$0xff] }
  0x3f   : >> { %747 = vst [vmem:[%s11422_s26 + $0x240] sm:$0xff] %v746_v18  ;;  %749 = vst [vmem:[%s11422_s26 + $0x260] sm:$0xff] %v748_v19  ;;  %v752_v21 = vld [vmem:[%s11426_s28 + $0x348] sm:$0xff]  ;;  %v754_v22 = vld [vmem:[%s11426_s28 + $0x370] sm:$0xff] }
  0x40   : >> { %751 = vst [vmem:[%s11422_s26 + $0x280] sm:$0xff] %v750_v20  ;;  %v756_v23 = vld [vmem:[%s11426_s28 + $0x398] sm:$0xff]  ;;  %753 = vst [vmem:[%s11422_s26 + $0x2a0] sm:$0xff] %v752_v21  ;;  %v758_v24 = vld [vmem:[%s11426_s28 + $0x3c0] sm:$0xff] }
  0x41   : >> { %755 = vst [vmem:[%s11422_s26 + $0x2c0] sm:$0xff] %v754_v22  ;;  %757 = vst [vmem:[%s11422_s26 + $0x2e0] sm:$0xff] %v756_v23  ;;  %v760_v25 = vld [vmem:[%s11426_s28 + $0x3e8] sm:$0xff]  ;;  %v762_v26 = vld [vmem:[%s11426_s28 + $0x410] sm:$0xff] }
  0x42   : >> { %759 = vst [vmem:[%s11422_s26 + $0x300] sm:$0xff] %v758_v24  ;;  %761 = vst [vmem:[%s11422_s26 + $0x320] sm:$0xff] %v760_v25  ;;  %v764_v27 = vld [vmem:[%s11426_s28 + $0x438] sm:$0xff]  ;;  %v766_v28 = vld [vmem:[%s11426_s28 + $0x460] sm:$0xff] }
  0x43   : >> { %763 = vst [vmem:[%s11422_s26 + $0x340] sm:$0xff] %v762_v26  ;;  %v768_v29 = vld [vmem:[%s11426_s28 + $0x488] sm:$0xff]  ;;  %765 = vst [vmem:[%s11422_s26 + $0x360] sm:$0xff] %v764_v27  ;;  %v770_v30 = vld [vmem:[%s11426_s28 + $0x4b0] sm:$0xff] }
  0x44   : >> { %767 = vst [vmem:[%s11422_s26 + $0x380] sm:$0xff] %v766_v28  ;;  %769 = vst [vmem:[%s11422_s26 + $0x3a0] sm:$0xff] %v768_v29  ;;  %v772_v31 = vld [vmem:[%s11426_s28 + $0x4d8] sm:$0xff]  ;;  %v774_v32 = vld [vmem:[%s11426_s28 + $0x500] sm:$0xff] }
  0x45   : >> { %771 = vst [vmem:[%s11422_s26 + $0x3c0] sm:$0xff] %v770_v30  ;;  %773 = vst [vmem:[%s11422_s26 + $0x3e0] sm:$0xff] %v772_v31  ;;  %v776_v33 = vld [vmem:[%s11426_s28 + $0x528] sm:$0xff]  ;;  %v778_v34 = vld [vmem:[%s11426_s28 + $0x550] sm:$0xff] }
  0x46   : >> { %775 = vst [vmem:[%s11422_s26 + $0x400] sm:$0xff] %v774_v32  ;;  %v780_v35 = vld [vmem:[%s11426_s28 + $0x578] sm:$0xff]  ;;  %777 = vst [vmem:[%s11422_s26 + $0x420] sm:$0xff] %v776_v33  ;;  %v782_v36 = vld [vmem:[%s11426_s28 + $0x5a0] sm:$0xff] }
  0x47   : >> { %779 = vst [vmem:[%s11422_s26 + $0x440] sm:$0xff] %v778_v34  ;;  %781 = vst [vmem:[%s11422_s26 + $0x460] sm:$0xff] %v780_v35  ;;  %v784_v37 = vld [vmem:[%s11426_s28 + $0x5c8] sm:$0xff]  ;;  %v786_v38 = vld [vmem:[%s11426_s28 + $0x5f0] sm:$0xff] }
  0x48   : >> { %783 = vst [vmem:[%s11422_s26 + $0x480] sm:$0xff] %v782_v36  ;;  %785 = vst [vmem:[%s11422_s26 + $0x4a0] sm:$0xff] %v784_v37  ;;  %v788_v39 = vld [vmem:[%s11426_s28 + $0x618] sm:$0xff]  ;;  %v790_v40 = vld [vmem:[%s11426_s28 + $0x640] sm:$0xff] }
  0x49   : >> { %787 = vst [vmem:[%s11422_s26 + $0x4c0] sm:$0xff] %v786_v38  ;;  %v792_v41 = vld [vmem:[%s11426_s28 + $0x668] sm:$0xff]  ;;  %789 = vst [vmem:[%s11422_s26 + $0x4e0] sm:$0xff] %v788_v39  ;;  %v794_v42 = vld [vmem:[%s11426_s28 + $0x690] sm:$0xff] }
  0x4a   : >> { %791 = vst [vmem:[%s11422_s26 + $0x500] sm:$0xff] %v790_v40  ;;  %793 = vst [vmem:[%s11422_s26 + $0x520] sm:$0xff] %v792_v41  ;;  %v796_v43 = vld [vmem:[%s11426_s28 + $0x6b8] sm:$0xff]  ;;  %v798_v44 = vld [vmem:[%s11426_s28 + $0x6e0] sm:$0xff] }
  0x4b   : >> { %795 = vst [vmem:[%s11422_s26 + $0x540] sm:$0xff] %v794_v42  ;;  %797 = vst [vmem:[%s11422_s26 + $0x560] sm:$0xff] %v796_v43  ;;  %v800_v45 = vld [vmem:[%s11426_s28 + $0x708] sm:$0xff]  ;;  %v802_v46 = vld [vmem:[%s11426_s28 + $0x730] sm:$0xff] }
  0x4c   : >> { %799 = vst [vmem:[%s11422_s26 + $0x580] sm:$0xff] %v798_v44  ;;  %v804_v47 = vld [vmem:[%s11426_s28 + $0x758] sm:$0xff]  ;;  %801 = vst [vmem:[%s11422_s26 + $0x5a0] sm:$0xff] %v800_v45  ;;  %v806_v48 = vld [vmem:[%s11426_s28 + $0x780] sm:$0xff] }
  0x4d   : >> { %803 = vst [vmem:[%s11422_s26 + $0x5c0] sm:$0xff] %v802_v46  ;;  %805 = vst [vmem:[%s11422_s26 + $0x5e0] sm:$0xff] %v804_v47  ;;  %v808_v49 = vld [vmem:[%s11426_s28 + $0x7a8] sm:$0xff]  ;;  %v810_v50 = vld [vmem:[%s11426_s28 + $0x7d0] sm:$0xff] }
  0x4e   : >> { %807 = vst [vmem:[%s11422_s26 + $0x600] sm:$0xff] %v806_v48  ;;  %809 = vst [vmem:[%s11422_s26 + $0x620] sm:$0xff] %v808_v49  ;;  %v812_v51 = vld [vmem:[%s11426_s28 + $0x7f8] sm:$0xff]  ;;  %v814_v52 = vld [vmem:[%s11426_s28 + $0x820] sm:$0xff] }
  0x4f   : >> { %811 = vst [vmem:[%s11422_s26 + $0x640] sm:$0xff] %v810_v50  ;;  %v816_v53 = vld [vmem:[%s11426_s28 + $0x848] sm:$0xff]  ;;  %813 = vst [vmem:[%s11422_s26 + $0x660] sm:$0xff] %v812_v51  ;;  %v818_v54 = vld [vmem:[%s11426_s28 + $0x870] sm:$0xff] }
  0x50   : >> { %815 = vst [vmem:[%s11422_s26 + $0x680] sm:$0xff] %v814_v52  ;;  %817 = vst [vmem:[%s11422_s26 + $0x6a0] sm:$0xff] %v816_v53  ;;  %v820_v55 = vld [vmem:[%s11426_s28 + $0x898] sm:$0xff]  ;;  %v822_v56 = vld [vmem:[%s11426_s28 + $0x8c0] sm:$0xff] }
  0x51   : >> { %819 = vst [vmem:[%s11422_s26 + $0x6c0] sm:$0xff] %v818_v54  ;;  %821 = vst [vmem:[%s11422_s26 + $0x6e0] sm:$0xff] %v820_v55  ;;  %v824_v57 = vld [vmem:[%s11426_s28 + $0x8e8] sm:$0xff]  ;;  %v826_v58 = vld [vmem:[%s11426_s28 + $0x910] sm:$0xff] }
  0x52   : >> { %823 = vst [vmem:[%s11422_s26 + $0x700] sm:$0xff] %v822_v56  ;;  %v828_v59 = vld [vmem:[%s11426_s28 + $0x938] sm:$0xff]  ;;  %825 = vst [vmem:[%s11422_s26 + $0x720] sm:$0xff] %v824_v57  ;;  %v830_v60 = vld [vmem:[%s11426_s28 + $0x960] sm:$0xff] }
  0x53   : >> { %827 = vst [vmem:[%s11422_s26 + $0x740] sm:$0xff] %v826_v58  ;;  %829 = vst [vmem:[%s11422_s26 + $0x760] sm:$0xff] %v828_v59  ;;  %v832_v61 = vld [vmem:[%s11426_s28 + $0x988] sm:$0xff]  ;;  %v834_v62 = vld [vmem:[%s11426_s28 + $0x9b0] sm:$0xff] }
  0x54   : >> { %831 = vst [vmem:[%s11422_s26 + $0x780] sm:$0xff] %v830_v60  ;;  %833 = vst [vmem:[%s11422_s26 + $0x7a0] sm:$0xff] %v832_v61  ;;  %v836_v63 = vld [vmem:[%s11426_s28 + $0x9d8] sm:$0xff]  ;;  %v838_v0 = vld [vmem:[%s11426_s28 + $0xa00] sm:$0xff] }
  0x55   : >> { %835 = vst [vmem:[%s11422_s26 + $0x7c0] sm:$0xff] %v834_v62  ;;  %v840_v1 = vld [vmem:[%s11426_s28 + $0xa28] sm:$0xff]  ;;  %837 = vst [vmem:[%s11422_s26 + $0x7e0] sm:$0xff] %v836_v63  ;;  %v842_v2 = vld [vmem:[%s11426_s28 + $0xa50] sm:$0xff] }
  0x56   : >> { %839 = vst [vmem:[%s11422_s26 + $0x800] sm:$0xff] %v838_v0  ;;  %841 = vst [vmem:[%s11422_s26 + $0x820] sm:$0xff] %v840_v1  ;;  %v844_v3 = vld [vmem:[%s11426_s28 + $0xa78] sm:$0xff]  ;;  %v846_v4 = vld [vmem:[%s11426_s28 + $0xaa0] sm:$0xff] }
  0x57   : >> { %843 = vst [vmem:[%s11422_s26 + $0x840] sm:$0xff] %v842_v2  ;;  %845 = vst [vmem:[%s11422_s26 + $0x860] sm:$0xff] %v844_v3  ;;  %v848_v5 = vld [vmem:[%s11426_s28 + $0xac8] sm:$0xff]  ;;  %v850_v6 = vld [vmem:[%s11426_s28 + $0xaf0] sm:$0xff] }
  0x58   : >> { %847 = vst [vmem:[%s11422_s26 + $0x880] sm:$0xff] %v846_v4  ;;  %v852_v7 = vld [vmem:[%s11426_s28 + $0xb18] sm:$0xff]  ;;  %849 = vst [vmem:[%s11422_s26 + $0x8a0] sm:$0xff] %v848_v5  ;;  %v854_v8 = vld [vmem:[%s11426_s28 + $0xb40] sm:$0xff] }
  0x59   : >> { %851 = vst [vmem:[%s11422_s26 + $0x8c0] sm:$0xff] %v850_v6  ;;  %853 = vst [vmem:[%s11422_s26 + $0x8e0] sm:$0xff] %v852_v7  ;;  %v856_v9 = vld [vmem:[%s11426_s28 + $0xb68] sm:$0xff]  ;;  %v858_v10 = vld [vmem:[%s11426_s28 + $0xb90] sm:$0xff] }
  0x5a   : >> { %855 = vst [vmem:[%s11422_s26 + $0x900] sm:$0xff] %v854_v8  ;;  %857 = vst [vmem:[%s11422_s26 + $0x920] sm:$0xff] %v856_v9  ;;  %v860_v11 = vld [vmem:[%s11426_s28 + $0xbb8] sm:$0xff]  ;;  %v862_v12 = vld [vmem:[%s11426_s28 + $0xbe0] sm:$0xff] }
  0x5b   : >> { %859 = vst [vmem:[%s11422_s26 + $0x940] sm:$0xff] %v858_v10  ;;  %v864_v13 = vld [vmem:[%s11426_s28 + $0xc08] sm:$0xff]  ;;  %861 = vst [vmem:[%s11422_s26 + $0x960] sm:$0xff] %v860_v11  ;;  %v866_v14 = vld [vmem:[%s11426_s28 + $0xc30] sm:$0xff] }
  0x5c   : >> { %863 = vst [vmem:[%s11422_s26 + $0x980] sm:$0xff] %v862_v12  ;;  %865 = vst [vmem:[%s11422_s26 + $0x9a0] sm:$0xff] %v864_v13  ;;  %v868_v15 = vld [vmem:[%s11426_s28 + $0xc58] sm:$0xff]  ;;  %v870_v16 = vld [vmem:[%s11426_s28 + $0xc80] sm:$0xff] }
  0x5d   : >> { %867 = vst [vmem:[%s11422_s26 + $0x9c0] sm:$0xff] %v866_v14  ;;  %869 = vst [vmem:[%s11422_s26 + $0x9e0] sm:$0xff] %v868_v15  ;;  %v872_v17 = vld [vmem:[%s11426_s28 + $0xca8] sm:$0xff]  ;;  %v874_v18 = vld [vmem:[%s11426_s28 + $0xcd0] sm:$0xff] }
  0x5e   : >> { %871 = vst [vmem:[%s11422_s26 + $0xa00] sm:$0xff] %v870_v16  ;;  %v876_v19 = vld [vmem:[%s11426_s28 + $0xcf8] sm:$0xff]  ;;  %873 = vst [vmem:[%s11422_s26 + $0xa20] sm:$0xff] %v872_v17  ;;  %v878_v20 = vld [vmem:[%s11426_s28 + $0xd20] sm:$0xff] }
  0x5f   : >> { %875 = vst [vmem:[%s11422_s26 + $0xa40] sm:$0xff] %v874_v18  ;;  %877 = vst [vmem:[%s11422_s26 + $0xa60] sm:$0xff] %v876_v19  ;;  %v880_v21 = vld [vmem:[%s11426_s28 + $0xd48] sm:$0xff]  ;;  %v882_v22 = vld [vmem:[%s11426_s28 + $0xd70] sm:$0xff] }
  0x60   : >> { %879 = vst [vmem:[%s11422_s26 + $0xa80] sm:$0xff] %v878_v20  ;;  %881 = vst [vmem:[%s11422_s26 + $0xaa0] sm:$0xff] %v880_v21  ;;  %v884_v23 = vld [vmem:[%s11426_s28 + $0xd98] sm:$0xff]  ;;  %v886_v24 = vld [vmem:[%s11426_s28 + $0xdc0] sm:$0xff] }
  0x61   : >> { %883 = vst [vmem:[%s11422_s26 + $0xac0] sm:$0xff] %v882_v22  ;;  %v888_v25 = vld [vmem:[%s11426_s28 + $0xde8] sm:$0xff]  ;;  %885 = vst [vmem:[%s11422_s26 + $0xae0] sm:$0xff] %v884_v23  ;;  %v890_v26 = vld [vmem:[%s11426_s28 + $0xe10] sm:$0xff] }
  0x62   : >> { %887 = vst [vmem:[%s11422_s26 + $0xb00] sm:$0xff] %v886_v24  ;;  %889 = vst [vmem:[%s11422_s26 + $0xb20] sm:$0xff] %v888_v25  ;;  %v892_v27 = vld [vmem:[%s11426_s28 + $0xe38] sm:$0xff]  ;;  %v894_v28 = vld [vmem:[%s11426_s28 + $0xe60] sm:$0xff] }
  0x63   : >> { %891 = vst [vmem:[%s11422_s26 + $0xb40] sm:$0xff] %v890_v26  ;;  %893 = vst [vmem:[%s11422_s26 + $0xb60] sm:$0xff] %v892_v27  ;;  %v896_v29 = vld [vmem:[%s11426_s28 + $0xe88] sm:$0xff]  ;;  %v898_v30 = vld [vmem:[%s11426_s28 + $0xeb0] sm:$0xff] }
  0x64   : >> { %895 = vst [vmem:[%s11422_s26 + $0xb80] sm:$0xff] %v894_v28  ;;  %v900_v31 = vld [vmem:[%s11426_s28 + $0xed8] sm:$0xff]  ;;  %897 = vst [vmem:[%s11422_s26 + $0xba0] sm:$0xff] %v896_v29  ;;  %v902_v32 = vld [vmem:[%s11426_s28 + $0xf00] sm:$0xff] }
  0x65   : >> { %899 = vst [vmem:[%s11422_s26 + $0xbc0] sm:$0xff] %v898_v30  ;;  %901 = vst [vmem:[%s11422_s26 + $0xbe0] sm:$0xff] %v900_v31  ;;  %v904_v33 = vld [vmem:[%s11426_s28 + $0xf28] sm:$0xff]  ;;  %v906_v34 = vld [vmem:[%s11426_s28 + $0xf50] sm:$0xff] }
  0x66   : >> { %903 = vst [vmem:[%s11422_s26 + $0xc00] sm:$0xff] %v902_v32  ;;  %905 = vst [vmem:[%s11422_s26 + $0xc20] sm:$0xff] %v904_v33  ;;  %v908_v35 = vld [vmem:[%s11426_s28 + $0xf78] sm:$0xff]  ;;  %v910_v36 = vld [vmem:[%s11426_s28 + $0xfa0] sm:$0xff] }
  0x67   : >> { %907 = vst [vmem:[%s11422_s26 + $0xc40] sm:$0xff] %v906_v34  ;;  %v912_v37 = vld [vmem:[%s11426_s28 + $0xfc8] sm:$0xff]  ;;  %909 = vst [vmem:[%s11422_s26 + $0xc60] sm:$0xff] %v908_v35  ;;  %v914_v38 = vld [vmem:[%s11426_s28 + $0xff0] sm:$0xff] }
  0x68   : >> { %911 = vst [vmem:[%s11422_s26 + $0xc80] sm:$0xff] %v910_v36  ;;  %913 = vst [vmem:[%s11422_s26 + $0xca0] sm:$0xff] %v912_v37  ;;  %v916_v39 = vld [vmem:[%s11426_s28 + $0x1018] sm:$0xff]  ;;  %v918_v40 = vld [vmem:[%s11426_s28 + $0x1040] sm:$0xff] }
  0x69   : >> { %915 = vst [vmem:[%s11422_s26 + $0xcc0] sm:$0xff] %v914_v38  ;;  %917 = vst [vmem:[%s11422_s26 + $0xce0] sm:$0xff] %v916_v39  ;;  %v920_v41 = vld [vmem:[%s11426_s28 + $0x1068] sm:$0xff]  ;;  %v922_v42 = vld [vmem:[%s11426_s28 + $0x1090] sm:$0xff] }
  0x6a   : >> { %919 = vst [vmem:[%s11422_s26 + $0xd00] sm:$0xff] %v918_v40  ;;  %v924_v43 = vld [vmem:[%s11426_s28 + $0x10b8] sm:$0xff]  ;;  %921 = vst [vmem:[%s11422_s26 + $0xd20] sm:$0xff] %v920_v41  ;;  %v926_v44 = vld [vmem:[%s11426_s28 + $0x10e0] sm:$0xff] }
  0x6b   : >> { %923 = vst [vmem:[%s11422_s26 + $0xd40] sm:$0xff] %v922_v42  ;;  %925 = vst [vmem:[%s11422_s26 + $0xd60] sm:$0xff] %v924_v43  ;;  %v928_v45 = vld [vmem:[%s11426_s28 + $0x1108] sm:$0xff]  ;;  %v930_v46 = vld [vmem:[%s11426_s28 + $0x1130] sm:$0xff] }
  0x6c   : >> { %927 = vst [vmem:[%s11422_s26 + $0xd80] sm:$0xff] %v926_v44  ;;  %929 = vst [vmem:[%s11422_s26 + $0xda0] sm:$0xff] %v928_v45  ;;  %v932_v47 = vld [vmem:[%s11426_s28 + $0x1158] sm:$0xff]  ;;  %v934_v48 = vld [vmem:[%s11426_s28 + $0x1180] sm:$0xff] }
  0x6d   : >> { %931 = vst [vmem:[%s11422_s26 + $0xdc0] sm:$0xff] %v930_v46  ;;  %v936_v49 = vld [vmem:[%s11426_s28 + $0x11a8] sm:$0xff]  ;;  %933 = vst [vmem:[%s11422_s26 + $0xde0] sm:$0xff] %v932_v47  ;;  %v938_v50 = vld [vmem:[%s11426_s28 + $0x11d0] sm:$0xff] }
  0x6e   : >> { %935 = vst [vmem:[%s11422_s26 + $0xe00] sm:$0xff] %v934_v48  ;;  %937 = vst [vmem:[%s11422_s26 + $0xe20] sm:$0xff] %v936_v49  ;;  %v940_v51 = vld [vmem:[%s11426_s28 + $0x11f8] sm:$0xff]  ;;  %v942_v52 = vld [vmem:[%s11426_s28 + $0x1220] sm:$0xff] }
  0x6f   : >> { %939 = vst [vmem:[%s11422_s26 + $0xe40] sm:$0xff] %v938_v50  ;;  %941 = vst [vmem:[%s11422_s26 + $0xe60] sm:$0xff] %v940_v51  ;;  %v944_v53 = vld [vmem:[%s11426_s28 + $0x1248] sm:$0xff]  ;;  %v946_v54 = vld [vmem:[%s11426_s28 + $0x1270] sm:$0xff] }
  0x70   : >> { %943 = vst [vmem:[%s11422_s26 + $0xe80] sm:$0xff] %v942_v52  ;;  %v948_v55 = vld [vmem:[%s11426_s28 + $0x1298] sm:$0xff]  ;;  %945 = vst [vmem:[%s11422_s26 + $0xea0] sm:$0xff] %v944_v53  ;;  %v950_v56 = vld [vmem:[%s11426_s28 + $0x12c0] sm:$0xff] }
  0x71   : >> { %947 = vst [vmem:[%s11422_s26 + $0xec0] sm:$0xff] %v946_v54  ;;  %949 = vst [vmem:[%s11422_s26 + $0xee0] sm:$0xff] %v948_v55  ;;  %v952_v57 = vld [vmem:[%s11426_s28 + $0x12e8] sm:$0xff]  ;;  %v954_v58 = vld [vmem:[%s11426_s28 + $0x1310] sm:$0xff] }
  0x72   : >> { %951 = vst [vmem:[%s11422_s26 + $0xf00] sm:$0xff] %v950_v56  ;;  %953 = vst [vmem:[%s11422_s26 + $0xf20] sm:$0xff] %v952_v57  ;;  %v956_v59 = vld [vmem:[%s11426_s28 + $0x1338] sm:$0xff]  ;;  %v958_v60 = vld [vmem:[%s11426_s28 + $0x1360] sm:$0xff] }
  0x73   : >> { %955 = vst [vmem:[%s11422_s26 + $0xf40] sm:$0xff] %v954_v58  ;;  %v960_v61 = vld [vmem:[%s11426_s28 + $0x1388] sm:$0xff]  ;;  %957 = vst [vmem:[%s11422_s26 + $0xf60] sm:$0xff] %v956_v59  ;;  %v962_v62 = vld [vmem:[%s11426_s28 + $0x13b0] sm:$0xff] }
  0x74   : >> { %959 = vst [vmem:[%s11422_s26 + $0xf80] sm:$0xff] %v958_v60  ;;  %961 = vst [vmem:[%s11422_s26 + $0xfa0] sm:$0xff] %v960_v61  ;;  %v964_v63 = vld [vmem:[%s11426_s28 + $0x13d8] sm:$0xff]  ;;  %v966_v0 = vld [vmem:[%s11426_s28 + $0x1400] sm:$0xff] }
  0x75   : >> { %963 = vst [vmem:[%s11422_s26 + $0xfc0] sm:$0xff] %v962_v62  ;;  %965 = vst [vmem:[%s11422_s26 + $0xfe0] sm:$0xff] %v964_v63  ;;  %v968_v1 = vld [vmem:[%s11426_s28 + $0x1428] sm:$0xff]  ;;  %v970_v2 = vld [vmem:[%s11426_s28 + $0x1450] sm:$0xff] }
  0x76   : >> { %967 = vst [vmem:[%s11422_s26 + $0x1000] sm:$0xff] %v966_v0  ;;  %v972_v3 = vld [vmem:[%s11426_s28 + $0x1478] sm:$0xff]  ;;  %969 = vst [vmem:[%s11422_s26 + $0x1020] sm:$0xff] %v968_v1  ;;  %v974_v4 = vld [vmem:[%s11426_s28 + $0x14a0] sm:$0xff] }
  0x77   : >> { %971 = vst [vmem:[%s11422_s26 + $0x1040] sm:$0xff] %v970_v2  ;;  %973 = vst [vmem:[%s11422_s26 + $0x1060] sm:$0xff] %v972_v3  ;;  %v976_v5 = vld [vmem:[%s11426_s28 + $0x14c8] sm:$0xff]  ;;  %v978_v6 = vld [vmem:[%s11426_s28 + $0x14f0] sm:$0xff] }
  0x78   : >> { %975 = vst [vmem:[%s11422_s26 + $0x1080] sm:$0xff] %v974_v4  ;;  %977 = vst [vmem:[%s11422_s26 + $0x10a0] sm:$0xff] %v976_v5  ;;  %v980_v7 = vld [vmem:[%s11426_s28 + $0x1518] sm:$0xff]  ;;  %v982_v8 = vld [vmem:[%s11426_s28 + $0x1540] sm:$0xff] }
  0x79   : >> { %979 = vst [vmem:[%s11422_s26 + $0x10c0] sm:$0xff] %v978_v6  ;;  %v984_v9 = vld [vmem:[%s11426_s28 + $0x1568] sm:$0xff]  ;;  %981 = vst [vmem:[%s11422_s26 + $0x10e0] sm:$0xff] %v980_v7  ;;  %v986_v10 = vld [vmem:[%s11426_s28 + $0x1590] sm:$0xff] }
  0x7a   : >> { %983 = vst [vmem:[%s11422_s26 + $0x1100] sm:$0xff] %v982_v8  ;;  %985 = vst [vmem:[%s11422_s26 + $0x1120] sm:$0xff] %v984_v9  ;;  %v988_v11 = vld [vmem:[%s11426_s28 + $0x15b8] sm:$0xff]  ;;  %v990_v12 = vld [vmem:[%s11426_s28 + $0x15e0] sm:$0xff] }
  0x7b   : >> { %987 = vst [vmem:[%s11422_s26 + $0x1140] sm:$0xff] %v986_v10  ;;  %989 = vst [vmem:[%s11422_s26 + $0x1160] sm:$0xff] %v988_v11  ;;  %v992_v13 = vld [vmem:[%s11426_s28 + $0x1608] sm:$0xff]  ;;  %v994_v14 = vld [vmem:[%s11426_s28 + $0x1630] sm:$0xff] }
  0x7c   : >> { %991 = vst [vmem:[%s11422_s26 + $0x1180] sm:$0xff] %v990_v12  ;;  %v996_v15 = vld [vmem:[%s11426_s28 + $0x1658] sm:$0xff]  ;;  %993 = vst [vmem:[%s11422_s26 + $0x11a0] sm:$0xff] %v992_v13  ;;  %v998_v16 = vld [vmem:[%s11426_s28 + $0x1680] sm:$0xff] }
  0x7d   : >> { %995 = vst [vmem:[%s11422_s26 + $0x11c0] sm:$0xff] %v994_v14  ;;  %997 = vst [vmem:[%s11422_s26 + $0x11e0] sm:$0xff] %v996_v15  ;;  %v1000_v17 = vld [vmem:[%s11426_s28 + $0x16a8] sm:$0xff]  ;;  %v1002_v18 = vld [vmem:[%s11426_s28 + $0x16d0] sm:$0xff] }
  0x7e   : >> { %999 = vst [vmem:[%s11422_s26 + $0x1200] sm:$0xff] %v998_v16  ;;  %1001 = vst [vmem:[%s11422_s26 + $0x1220] sm:$0xff] %v1000_v17  ;;  %v1004_v19 = vld [vmem:[%s11426_s28 + $0x16f8] sm:$0xff]  ;;  %v1006_v20 = vld [vmem:[%s11426_s28 + $0x1720] sm:$0xff] }
  0x7f   : >> { %1003 = vst [vmem:[%s11422_s26 + $0x1240] sm:$0xff] %v1002_v18  ;;  %v1008_v21 = vld [vmem:[%s11426_s28 + $0x1748] sm:$0xff]  ;;  %1005 = vst [vmem:[%s11422_s26 + $0x1260] sm:$0xff] %v1004_v19  ;;  %v1010_v22 = vld [vmem:[%s11426_s28 + $0x1770] sm:$0xff] }
  0x80   : >> { %1007 = vst [vmem:[%s11422_s26 + $0x1280] sm:$0xff] %v1006_v20  ;;  %1009 = vst [vmem:[%s11422_s26 + $0x12a0] sm:$0xff] %v1008_v21  ;;  %v1012_v23 = vld [vmem:[%s11426_s28 + $0x1798] sm:$0xff]  ;;  %v1014_v24 = vld [vmem:[%s11426_s28 + $0x17c0] sm:$0xff] }
  0x81   : >> { %1011 = vst [vmem:[%s11422_s26 + $0x12c0] sm:$0xff] %v1010_v22  ;;  %1013 = vst [vmem:[%s11422_s26 + $0x12e0] sm:$0xff] %v1012_v23  ;;  %v1016_v25 = vld [vmem:[%s11426_s28 + $0x17e8] sm:$0xff]  ;;  %v1018_v26 = vld [vmem:[%s11426_s28 + $0x1810] sm:$0xff] }
  0x82   : >> { %1015 = vst [vmem:[%s11422_s26 + $0x1300] sm:$0xff] %v1014_v24  ;;  %v1020_v27 = vld [vmem:[%s11426_s28 + $0x1838] sm:$0xff]  ;;  %1017 = vst [vmem:[%s11422_s26 + $0x1320] sm:$0xff] %v1016_v25  ;;  %v1022_v28 = vld [vmem:[%s11426_s28 + $0x1860] sm:$0xff] }
  0x83   : >> { %1019 = vst [vmem:[%s11422_s26 + $0x1340] sm:$0xff] %v1018_v26  ;;  %1021 = vst [vmem:[%s11422_s26 + $0x1360] sm:$0xff] %v1020_v27  ;;  %v1024_v29 = vld [vmem:[%s11426_s28 + $0x1888] sm:$0xff]  ;;  %v1026_v30 = vld [vmem:[%s11426_s28 + $0x18b0] sm:$0xff] }
  0x84   : >> { %1023 = vst [vmem:[%s11422_s26 + $0x1380] sm:$0xff] %v1022_v28  ;;  %1025 = vst [vmem:[%s11422_s26 + $0x13a0] sm:$0xff] %v1024_v29  ;;  %v1028_v31 = vld [vmem:[%s11426_s28 + $0x18d8] sm:$0xff]  ;;  %v1030_v32 = vld [vmem:[%s11426_s28 + $0x1900] sm:$0xff] }
  0x85   : >> { %1027 = vst [vmem:[%s11422_s26 + $0x13c0] sm:$0xff] %v1026_v30  ;;  %v1032_v33 = vld [vmem:[%s11426_s28 + $0x1928] sm:$0xff]  ;;  %1029 = vst [vmem:[%s11422_s26 + $0x13e0] sm:$0xff] %v1028_v31  ;;  %v1034_v34 = vld [vmem:[%s11426_s28 + $0x1950] sm:$0xff] }
  0x86   : >> { %1031 = vst [vmem:[%s11422_s26 + $0x1400] sm:$0xff] %v1030_v32  ;;  %1033 = vst [vmem:[%s11422_s26 + $0x1420] sm:$0xff] %v1032_v33  ;;  %v1036_v35 = vld [vmem:[%s11426_s28 + $0x1978] sm:$0xff]  ;;  %v1038_v36 = vld [vmem:[%s11426_s28 + $0x19a0] sm:$0xff] }
  0x87   : >> { %1035 = vst [vmem:[%s11422_s26 + $0x1440] sm:$0xff] %v1034_v34  ;;  %1037 = vst [vmem:[%s11422_s26 + $0x1460] sm:$0xff] %v1036_v35  ;;  %v1040_v37 = vld [vmem:[%s11426_s28 + $0x19c8] sm:$0xff]  ;;  %v1042_v38 = vld [vmem:[%s11426_s28 + $0x19f0] sm:$0xff] }
  0x88   : >> { %1039 = vst [vmem:[%s11422_s26 + $0x1480] sm:$0xff] %v1038_v36  ;;  %v1044_v39 = vld [vmem:[%s11426_s28 + $0x1a18] sm:$0xff]  ;;  %1041 = vst [vmem:[%s11422_s26 + $0x14a0] sm:$0xff] %v1040_v37  ;;  %v1046_v40 = vld [vmem:[%s11426_s28 + $0x1a40] sm:$0xff] }
  0x89   : >> { %1043 = vst [vmem:[%s11422_s26 + $0x14c0] sm:$0xff] %v1042_v38  ;;  %1045 = vst [vmem:[%s11422_s26 + $0x14e0] sm:$0xff] %v1044_v39  ;;  %v1048_v41 = vld [vmem:[%s11426_s28 + $0x1a68] sm:$0xff]  ;;  %v1050_v42 = vld [vmem:[%s11426_s28 + $0x1a90] sm:$0xff] }
  0x8a   : >> { %1047 = vst [vmem:[%s11422_s26 + $0x1500] sm:$0xff] %v1046_v40  ;;  %1049 = vst [vmem:[%s11422_s26 + $0x1520] sm:$0xff] %v1048_v41  ;;  %v1052_v43 = vld [vmem:[%s11426_s28 + $0x1ab8] sm:$0xff]  ;;  %v1054_v44 = vld [vmem:[%s11426_s28 + $0x1ae0] sm:$0xff] }
  0x8b   : >> { %1051 = vst [vmem:[%s11422_s26 + $0x1540] sm:$0xff] %v1050_v42  ;;  %v1056_v45 = vld [vmem:[%s11426_s28 + $0x1b08] sm:$0xff]  ;;  %1053 = vst [vmem:[%s11422_s26 + $0x1560] sm:$0xff] %v1052_v43  ;;  %v1058_v46 = vld [vmem:[%s11426_s28 + $0x1b30] sm:$0xff] }
  0x8c   : >> { %1055 = vst [vmem:[%s11422_s26 + $0x1580] sm:$0xff] %v1054_v44  ;;  %1057 = vst [vmem:[%s11422_s26 + $0x15a0] sm:$0xff] %v1056_v45  ;;  %v1060_v47 = vld [vmem:[%s11426_s28 + $0x1b58] sm:$0xff]  ;;  %v1062_v48 = vld [vmem:[%s11426_s28 + $0x1b80] sm:$0xff] }
  0x8d   : >> { %1059 = vst [vmem:[%s11422_s26 + $0x15c0] sm:$0xff] %v1058_v46  ;;  %1061 = vst [vmem:[%s11422_s26 + $0x15e0] sm:$0xff] %v1060_v47  ;;  %v1064_v49 = vld [vmem:[%s11426_s28 + $0x1ba8] sm:$0xff]  ;;  %v1066_v50 = vld [vmem:[%s11426_s28 + $0x1bd0] sm:$0xff] }
  0x8e   : >> { %1063 = vst [vmem:[%s11422_s26 + $0x1600] sm:$0xff] %v1062_v48  ;;  %v1068_v51 = vld [vmem:[%s11426_s28 + $0x1bf8] sm:$0xff]  ;;  %1065 = vst [vmem:[%s11422_s26 + $0x1620] sm:$0xff] %v1064_v49  ;;  %v1070_v52 = vld [vmem:[%s11426_s28 + $0x1c20] sm:$0xff] }
  0x8f   : >> { %1067 = vst [vmem:[%s11422_s26 + $0x1640] sm:$0xff] %v1066_v50  ;;  %1069 = vst [vmem:[%s11422_s26 + $0x1660] sm:$0xff] %v1068_v51  ;;  %v1072_v53 = vld [vmem:[%s11426_s28 + $0x1c48] sm:$0xff]  ;;  %v1074_v54 = vld [vmem:[%s11426_s28 + $0x1c70] sm:$0xff] }
  0x90   : >> { %1071 = vst [vmem:[%s11422_s26 + $0x1680] sm:$0xff] %v1070_v52  ;;  %1073 = vst [vmem:[%s11422_s26 + $0x16a0] sm:$0xff] %v1072_v53  ;;  %v1076_v55 = vld [vmem:[%s11426_s28 + $0x1c98] sm:$0xff]  ;;  %v1078_v56 = vld [vmem:[%s11426_s28 + $0x1cc0] sm:$0xff] }
  0x91   : >> { %1075 = vst [vmem:[%s11422_s26 + $0x16c0] sm:$0xff] %v1074_v54  ;;  %v1080_v57 = vld [vmem:[%s11426_s28 + $0x1ce8] sm:$0xff]  ;;  %1077 = vst [vmem:[%s11422_s26 + $0x16e0] sm:$0xff] %v1076_v55  ;;  %v1082_v58 = vld [vmem:[%s11426_s28 + $0x1d10] sm:$0xff] }
  0x92   : >> { %1079 = vst [vmem:[%s11422_s26 + $0x1700] sm:$0xff] %v1078_v56  ;;  %1081 = vst [vmem:[%s11422_s26 + $0x1720] sm:$0xff] %v1080_v57  ;;  %v1084_v59 = vld [vmem:[%s11426_s28 + $0x1d38] sm:$0xff]  ;;  %v1086_v60 = vld [vmem:[%s11426_s28 + $0x1d60] sm:$0xff] }
  0x93   : >> { %1083 = vst [vmem:[%s11422_s26 + $0x1740] sm:$0xff] %v1082_v58  ;;  %1085 = vst [vmem:[%s11422_s26 + $0x1760] sm:$0xff] %v1084_v59  ;;  %v1088_v61 = vld [vmem:[%s11426_s28 + $0x1d88] sm:$0xff]  ;;  %v1090_v62 = vld [vmem:[%s11426_s28 + $0x1db0] sm:$0xff] }
  0x94   : >> { %1087 = vst [vmem:[%s11422_s26 + $0x1780] sm:$0xff] %v1086_v60  ;;  %v1092_v63 = vld [vmem:[%s11426_s28 + $0x1dd8] sm:$0xff]  ;;  %1089 = vst [vmem:[%s11422_s26 + $0x17a0] sm:$0xff] %v1088_v61  ;;  %v1094_v0 = vld [vmem:[%s11426_s28 + $0x1e00] sm:$0xff] }
  0x95   : >> { %1091 = vst [vmem:[%s11422_s26 + $0x17c0] sm:$0xff] %v1090_v62  ;;  %1093 = vst [vmem:[%s11422_s26 + $0x17e0] sm:$0xff] %v1092_v63  ;;  %v1096_v1 = vld [vmem:[%s11426_s28 + $0x1e28] sm:$0xff]  ;;  %v1098_v2 = vld [vmem:[%s11426_s28 + $0x1e50] sm:$0xff] }
  0x96   : >> { %1095 = vst [vmem:[%s11422_s26 + $0x1800] sm:$0xff] %v1094_v0  ;;  %1097 = vst [vmem:[%s11422_s26 + $0x1820] sm:$0xff] %v1096_v1  ;;  %v1100_v3 = vld [vmem:[%s11426_s28 + $0x1e78] sm:$0xff]  ;;  %v1102_v4 = vld [vmem:[%s11426_s28 + $0x1ea0] sm:$0xff] }
  0x97   : >> { %1099 = vst [vmem:[%s11422_s26 + $0x1840] sm:$0xff] %v1098_v2  ;;  %v1104_v5 = vld [vmem:[%s11426_s28 + $0x1ec8] sm:$0xff]  ;;  %1101 = vst [vmem:[%s11422_s26 + $0x1860] sm:$0xff] %v1100_v3  ;;  %v1106_v6 = vld [vmem:[%s11426_s28 + $0x1ef0] sm:$0xff] }
  0x98   : >> { %1103 = vst [vmem:[%s11422_s26 + $0x1880] sm:$0xff] %v1102_v4  ;;  %1105 = vst [vmem:[%s11422_s26 + $0x18a0] sm:$0xff] %v1104_v5  ;;  %v1108_v7 = vld [vmem:[%s11426_s28 + $0x1f18] sm:$0xff]  ;;  %v1110_v8 = vld [vmem:[%s11426_s28 + $0x1f40] sm:$0xff] }
  0x99   : >> { %1107 = vst [vmem:[%s11422_s26 + $0x18c0] sm:$0xff] %v1106_v6  ;;  %1109 = vst [vmem:[%s11422_s26 + $0x18e0] sm:$0xff] %v1108_v7  ;;  %v1112_v9 = vld [vmem:[%s11426_s28 + $0x1f68] sm:$0xff]  ;;  %v1114_v10 = vld [vmem:[%s11426_s28 + $0x1f90] sm:$0xff] }
  0x9a   : >> { %1111 = vst [vmem:[%s11422_s26 + $0x1900] sm:$0xff] %v1110_v8  ;;  %v1116_v11 = vld [vmem:[%s11426_s28 + $0x1fb8] sm:$0xff]  ;;  %1113 = vst [vmem:[%s11422_s26 + $0x1920] sm:$0xff] %v1112_v9  ;;  %v1118_v12 = vld [vmem:[%s11426_s28 + $0x1fe0] sm:$0xff] }
  0x9b   : >> { %1115 = vst [vmem:[%s11422_s26 + $0x1940] sm:$0xff] %v1114_v10  ;;  %1117 = vst [vmem:[%s11422_s26 + $0x1960] sm:$0xff] %v1116_v11  ;;  %v1120_v13 = vld [vmem:[%s11426_s28 + $0x2008] sm:$0xff]  ;;  %v1122_v14 = vld [vmem:[%s11426_s28 + $0x2030] sm:$0xff] }
  0x9c   : >> { %1119 = vst [vmem:[%s11422_s26 + $0x1980] sm:$0xff] %v1118_v12  ;;  %1121 = vst [vmem:[%s11422_s26 + $0x19a0] sm:$0xff] %v1120_v13  ;;  %v1124_v15 = vld [vmem:[%s11426_s28 + $0x2058] sm:$0xff]  ;;  %v1126_v16 = vld [vmem:[%s11426_s28 + $0x2080] sm:$0xff] }
  0x9d   : >> { %1123 = vst [vmem:[%s11422_s26 + $0x19c0] sm:$0xff] %v1122_v14  ;;  %v1128_v17 = vld [vmem:[%s11426_s28 + $0x20a8] sm:$0xff]  ;;  %1125 = vst [vmem:[%s11422_s26 + $0x19e0] sm:$0xff] %v1124_v15  ;;  %v1130_v18 = vld [vmem:[%s11426_s28 + $0x20d0] sm:$0xff] }
  0x9e   : >> { %1127 = vst [vmem:[%s11422_s26 + $0x1a00] sm:$0xff] %v1126_v16  ;;  %1129 = vst [vmem:[%s11422_s26 + $0x1a20] sm:$0xff] %v1128_v17  ;;  %v1132_v19 = vld [vmem:[%s11426_s28 + $0x20f8] sm:$0xff]  ;;  %v1134_v20 = vld [vmem:[%s11426_s28 + $0x2120] sm:$0xff] }
  0x9f   : >> { %1131 = vst [vmem:[%s11422_s26 + $0x1a40] sm:$0xff] %v1130_v18  ;;  %1133 = vst [vmem:[%s11422_s26 + $0x1a60] sm:$0xff] %v1132_v19  ;;  %v1136_v21 = vld [vmem:[%s11426_s28 + $0x2148] sm:$0xff]  ;;  %v1138_v22 = vld [vmem:[%s11426_s28 + $0x2170] sm:$0xff] }
  0xa0   : >> { %1135 = vst [vmem:[%s11422_s26 + $0x1a80] sm:$0xff] %v1134_v20  ;;  %v1140_v23 = vld [vmem:[%s11426_s28 + $0x2198] sm:$0xff]  ;;  %1137 = vst [vmem:[%s11422_s26 + $0x1aa0] sm:$0xff] %v1136_v21  ;;  %v1142_v24 = vld [vmem:[%s11426_s28 + $0x21c0] sm:$0xff] }
  0xa1   : >> { %1139 = vst [vmem:[%s11422_s26 + $0x1ac0] sm:$0xff] %v1138_v22  ;;  %1141 = vst [vmem:[%s11422_s26 + $0x1ae0] sm:$0xff] %v1140_v23  ;;  %v1144_v25 = vld [vmem:[%s11426_s28 + $0x21e8] sm:$0xff]  ;;  %v1146_v26 = vld [vmem:[%s11426_s28 + $0x2210] sm:$0xff] }
  0xa2   : >> { %1143 = vst [vmem:[%s11422_s26 + $0x1b00] sm:$0xff] %v1142_v24  ;;  %1145 = vst [vmem:[%s11422_s26 + $0x1b20] sm:$0xff] %v1144_v25  ;;  %v1148_v27 = vld [vmem:[%s11426_s28 + $0x2238] sm:$0xff]  ;;  %v1150_v28 = vld [vmem:[%s11426_s28 + $0x2260] sm:$0xff] }
  0xa3   : >> { %1147 = vst [vmem:[%s11422_s26 + $0x1b40] sm:$0xff] %v1146_v26  ;;  %v1152_v29 = vld [vmem:[%s11426_s28 + $0x2288] sm:$0xff]  ;;  %1149 = vst [vmem:[%s11422_s26 + $0x1b60] sm:$0xff] %v1148_v27  ;;  %v1154_v30 = vld [vmem:[%s11426_s28 + $0x22b0] sm:$0xff] }
  0xa4   : >> { %1151 = vst [vmem:[%s11422_s26 + $0x1b80] sm:$0xff] %v1150_v28  ;;  %1153 = vst [vmem:[%s11422_s26 + $0x1ba0] sm:$0xff] %v1152_v29  ;;  %v1156_v31 = vld [vmem:[%s11426_s28 + $0x22d8] sm:$0xff]  ;;  %v1158_v32 = vld [vmem:[%s11426_s28 + $0x2300] sm:$0xff] }
  0xa5   : >> { %1155 = vst [vmem:[%s11422_s26 + $0x1bc0] sm:$0xff] %v1154_v30  ;;  %1157 = vst [vmem:[%s11422_s26 + $0x1be0] sm:$0xff] %v1156_v31  ;;  %v1160_v33 = vld [vmem:[%s11426_s28 + $0x2328] sm:$0xff]  ;;  %v1162_v34 = vld [vmem:[%s11426_s28 + $0x2350] sm:$0xff] }
  0xa6   : >> { %1159 = vst [vmem:[%s11422_s26 + $0x1c00] sm:$0xff] %v1158_v32  ;;  %v1164_v35 = vld [vmem:[%s11426_s28 + $0x2378] sm:$0xff]  ;;  %1161 = vst [vmem:[%s11422_s26 + $0x1c20] sm:$0xff] %v1160_v33  ;;  %v1166_v36 = vld [vmem:[%s11426_s28 + $0x23a0] sm:$0xff] }
  0xa7   : >> { %1163 = vst [vmem:[%s11422_s26 + $0x1c40] sm:$0xff] %v1162_v34  ;;  %1165 = vst [vmem:[%s11422_s26 + $0x1c60] sm:$0xff] %v1164_v35  ;;  %v1168_v37 = vld [vmem:[%s11426_s28 + $0x23c8] sm:$0xff]  ;;  %v1170_v38 = vld [vmem:[%s11426_s28 + $0x23f0] sm:$0xff] }
  0xa8   : >> { %1167 = vst [vmem:[%s11422_s26 + $0x1c80] sm:$0xff] %v1166_v36  ;;  %1169 = vst [vmem:[%s11422_s26 + $0x1ca0] sm:$0xff] %v1168_v37  ;;  %v1172_v39 = vld [vmem:[%s11426_s28 + $0x2418] sm:$0xff]  ;;  %v1174_v40 = vld [vmem:[%s11426_s28 + $0x2440] sm:$0xff] }
  0xa9   : >> { %1171 = vst [vmem:[%s11422_s26 + $0x1cc0] sm:$0xff] %v1170_v38  ;;  %v1176_v41 = vld [vmem:[%s11426_s28 + $0x2468] sm:$0xff]  ;;  %1173 = vst [vmem:[%s11422_s26 + $0x1ce0] sm:$0xff] %v1172_v39  ;;  %v1178_v42 = vld [vmem:[%s11426_s28 + $0x2490] sm:$0xff] }
  0xaa   : >> { %1175 = vst [vmem:[%s11422_s26 + $0x1d00] sm:$0xff] %v1174_v40  ;;  %1177 = vst [vmem:[%s11422_s26 + $0x1d20] sm:$0xff] %v1176_v41  ;;  %v1180_v43 = vld [vmem:[%s11426_s28 + $0x24b8] sm:$0xff]  ;;  %v1182_v44 = vld [vmem:[%s11426_s28 + $0x24e0] sm:$0xff] }
  0xab   : >> { %1179 = vst [vmem:[%s11422_s26 + $0x1d40] sm:$0xff] %v1178_v42  ;;  %1181 = vst [vmem:[%s11422_s26 + $0x1d60] sm:$0xff] %v1180_v43  ;;  %v1184_v45 = vld [vmem:[%s11426_s28 + $0x2508] sm:$0xff]  ;;  %v1186_v46 = vld [vmem:[%s11426_s28 + $0x2530] sm:$0xff] }
  0xac   : >> { %1183 = vst [vmem:[%s11422_s26 + $0x1d80] sm:$0xff] %v1182_v44  ;;  %v1188_v47 = vld [vmem:[%s11426_s28 + $0x2558] sm:$0xff]  ;;  %1185 = vst [vmem:[%s11422_s26 + $0x1da0] sm:$0xff] %v1184_v45  ;;  %v1190_v48 = vld [vmem:[%s11426_s28 + $0x2580] sm:$0xff] }
  0xad   : >> { %1187 = vst [vmem:[%s11422_s26 + $0x1dc0] sm:$0xff] %v1186_v46  ;;  %1189 = vst [vmem:[%s11422_s26 + $0x1de0] sm:$0xff] %v1188_v47  ;;  %v1192_v49 = vld [vmem:[%s11426_s28 + $0x25a8] sm:$0xff]  ;;  %v1194_v50 = vld [vmem:[%s11426_s28 + $0x25d0] sm:$0xff] }
  0xae   : >> { %1191 = vst [vmem:[%s11422_s26 + $0x1e00] sm:$0xff] %v1190_v48  ;;  %1193 = vst [vmem:[%s11422_s26 + $0x1e20] sm:$0xff] %v1192_v49  ;;  %v1196_v51 = vld [vmem:[%s11426_s28 + $0x25f8] sm:$0xff]  ;;  %v1198_v52 = vld [vmem:[%s11426_s28 + $0x2620] sm:$0xff] }
  0xaf   : >> { %1195 = vst [vmem:[%s11422_s26 + $0x1e40] sm:$0xff] %v1194_v50  ;;  %v1200_v53 = vld [vmem:[%s11426_s28 + $0x2648] sm:$0xff]  ;;  %1197 = vst [vmem:[%s11422_s26 + $0x1e60] sm:$0xff] %v1196_v51  ;;  %v1202_v54 = vld [vmem:[%s11426_s28 + $0x2670] sm:$0xff]  ;;  %706 = sbr.rel (!%p703_p1) target bundleno = 53 (0x35), region = 213 }
  0xb0   : >> { %1199 = vst [vmem:[%s11422_s26 + $0x1e80] sm:$0xff] %v1198_v52  ;;  %1201 = vst [vmem:[%s11422_s26 + $0x1ea0] sm:$0xff] %v1200_v53  ;;  %v1204_v55 = vld [vmem:[%s11426_s28 + $0x2698] sm:$0xff]  ;;  %v1206_v56 = vld [vmem:[%s11426_s28 + $0x26c0] sm:$0xff] }
  0xb1   : >> { %1203 = vst [vmem:[%s11422_s26 + $0x1ec0] sm:$0xff] %v1202_v54  ;;  %1205 = vst [vmem:[%s11422_s26 + $0x1ee0] sm:$0xff] %v1204_v55  ;;  %v1208_v57 = vld [vmem:[%s11426_s28 + $0x26e8] sm:$0xff]  ;;  %v1210_v58 = vld [vmem:[%s11426_s28 + $0x2710] sm:$0xff] }
  0xb2   : >> { %1207 = vst [vmem:[%s11422_s26 + $0x1f00] sm:$0xff] %v1206_v56  ;;  %v1212_v59 = vld [vmem:[%s11426_s28 + $0x2738] sm:$0xff]  ;;  %1209 = vst [vmem:[%s11422_s26 + $0x1f20] sm:$0xff] %v1208_v57  ;;  %v1214_v60 = vld [vmem:[%s11426_s28 + $0x2760] sm:$0xff] }
  0xb3   : >> { %1211 = vst [vmem:[%s11422_s26 + $0x1f40] sm:$0xff] %v1210_v58  ;;  %1213 = vst [vmem:[%s11422_s26 + $0x1f60] sm:$0xff] %v1212_v59  ;;  %v1216_v61 = vld [vmem:[%s11426_s28 + $0x2788] sm:$0xff]  ;;  %v1218_v62 = vld [vmem:[%s11426_s28 + $0x27b0] sm:$0xff] }
  0xb4   : >> { %1215 = vst [vmem:[%s11422_s26 + $0x1f80] sm:$0xff] %v1214_v60  ;;  %1217 = vst [vmem:[%s11422_s26 + $0x1fa0] sm:$0xff] %v1216_v61  ;;  %v1220_v63 = vld [vmem:[%s11426_s28 + $0x27d8] sm:$0xff]  ;;  %s17735_s28 = smov %s11684_s6 }
  0xb5   : >> { %1219 = vst [vmem:[%s11422_s26 + $0x1fc0] sm:$0xff] %v1218_v62  ;;  %1221 = vst [vmem:[%s11422_s26 + $0x1fe0] sm:$0xff] %v1220_v63  ;;  %s17734_s26 = smov %s11687_s7 }
  0xb6 PF: > { %1231 = sbr.rel (%p694_p12) target bundleno = 574 (0x23e), region = 62  ;;  %s1233_s8 = ssub.s32 (!%p694_p12), %s11608_s21, %s11614_s24 }
  0xb7   : > { %s1237_s9 = sshrl.u32 (!%p694_p12), %s11608_s21, 3  ;;  %s12182_s10 = scalar_lea.vmem (!%p694_p12), %s11606_s11, %s1233_s8 }
  0xb8   : > { %s12185_s5 = scalar_lea.vmem (!%p694_p12), %s11610_s22, %s1233_s8 [#allocation2]  ;;  %s17737_s30 = smov (!%p694_p12), %s11610_s22 }
  0xb9   : > { %s17738_s25 = smov (!%p694_p12), %s11606_s11  ;;  %s12193_s26 = smov (!%p694_p12), 0  }
  0xba   : > { %s12195_s28 = smov (!%p694_p12), 0  }
  0xbd LB: >> { %v1249_v0 = vld [vmem:[%s11442_s25] sm:$0xff]  ;;  %v1251_v1 = vld [vmem:[%s11442_s25 + $0x28] sm:$0xff]  ;;  %v1253_v2 = vld [vmem:[%s11442_s25 + $0x50] sm:$0xff]  ;;  %s1761_s29 = sadd.s32 1, %s11446_s26  ;;  %s1243_s28 = sadd.s32 1, %s11450_s28   ;;  %s11450_s28 = sphi %s12195_s28, %s1243_s28   ;;  %s11446_s26 = sphi %s12193_s26, %s17741_s26   ;;  %s11442_s25 = sphi %s17738_s25, %s17740_s25   ;;  %s11438_s30 = sphi %s17737_s30, %s17739_s30  }
  0xbe   : >> { %1250 = vst [vmem:[%s11438_s30] sm:$0xff] %v1249_v0  ;;  %1252 = vst [vmem:[%s11438_s30 + $0x20] sm:$0xff] %v1251_v1  ;;  %v1255_v3 = vld [vmem:[%s11442_s25 + $0x78] sm:$0xff]  ;;  %v1257_v4 = vld [vmem:[%s11442_s25 + $0xa0] sm:$0xff]  ;;  %p1762_p2 = scmp.ge.s32.totalorder %s1761_s29, %s1237_s9  ;;  %p1242_p3 = scmp.ge.s32.totalorder %s1243_s28, %s1237_s9 }
  0xbf   : >> { %1254 = vst [vmem:[%s11438_s30 + $0x40] sm:$0xff] %v1253_v2  ;;  %v1259_v5 = vld [vmem:[%s11442_s25 + $0xc8] sm:$0xff]  ;;  %1256 = vst [vmem:[%s11438_s30 + $0x60] sm:$0xff] %v1255_v3  ;;  %v1261_v6 = vld [vmem:[%s11442_s25 + $0xf0] sm:$0xff]  ;;  %s11516_s8 = smov (%p1242_p3), 0  }
  0xc0   : >> { %1258 = vst [vmem:[%s11438_s30 + $0x80] sm:$0xff] %v1257_v4  ;;  %1260 = vst [vmem:[%s11438_s30 + $0xa0] sm:$0xff] %v1259_v5  ;;  %v1263_v7 = vld [vmem:[%s11442_s25 + $0x118] sm:$0xff]  ;;  %v1265_v8 = vld [vmem:[%s11442_s25 + $0x140] sm:$0xff]  ;;  %s17779_s29 = smov (%p1762_p2, %s1761_s29), 0 }
  0xc1   : >> { %1262 = vst [vmem:[%s11438_s30 + $0xc0] sm:$0xff] %v1261_v6  ;;  %1264 = vst [vmem:[%s11438_s30 + $0xe0] sm:$0xff] %v1263_v7  ;;  %v1267_v9 = vld [vmem:[%s11442_s25 + $0x168] sm:$0xff]  ;;  %v1269_v10 = vld [vmem:[%s11442_s25 + $0x190] sm:$0xff]  ;;  %s9690_s4 = sshll.u32 %s17779_s29, 3  ;;  %s17741_s26 = smov %s17779_s29 }
  0xc2   : >> { %1266 = vst [vmem:[%s11438_s30 + $0x100] sm:$0xff] %v1265_v8  ;;  %v1271_v11 = vld [vmem:[%s11442_s25 + $0x1b8] sm:$0xff]  ;;  %1268 = vst [vmem:[%s11438_s30 + $0x120] sm:$0xff] %v1267_v9  ;;  %v1273_v12 = vld [vmem:[%s11442_s25 + $0x1e0] sm:$0xff]  ;;  %s12252_s6 = scalar_lea.vmem %s11606_s11, %s9690_s4   ;;  %s12255_s7 = scalar_lea.vmem %s11610_s22, %s9690_s4 [#allocation2]  }
  0xc3   : >> { %1270 = vst [vmem:[%s11438_s30 + $0x140] sm:$0xff] %v1269_v10  ;;  %1272 = vst [vmem:[%s11438_s30 + $0x160] sm:$0xff] %v1271_v11  ;;  %v1275_v13 = vld [vmem:[%s11442_s25 + $0x208] sm:$0xff]  ;;  %v1277_v14 = vld [vmem:[%s11442_s25 + $0x230] sm:$0xff]  ;;  %s12745_s29 = sshllo.u32 (%p1242_p3), %s11516_s8, %s11614_s24 }
  0xc4   : >> { %1274 = vst [vmem:[%s11438_s30 + $0x180] sm:$0xff] %v1273_v12  ;;  %1276 = vst [vmem:[%s11438_s30 + $0x1a0] sm:$0xff] %v1275_v13  ;;  %v1279_v15 = vld [vmem:[%s11442_s25 + $0x258] sm:$0xff]  ;;  %v1281_v16 = vld [vmem:[%s11442_s25 + $0x280] sm:$0xff] }
  0xc5   : >> { %1278 = vst [vmem:[%s11438_s30 + $0x1c0] sm:$0xff] %v1277_v14  ;;  %v1283_v17 = vld [vmem:[%s11442_s25 + $0x2a8] sm:$0xff]  ;;  %1280 = vst [vmem:[%s11438_s30 + $0x1e0] sm:$0xff] %v1279_v15  ;;  %v1285_v18 = vld [vmem:[%s11442_s25 + $0x2d0] sm:$0xff] }
  0xc6   : >> { %1282 = vst [vmem:[%s11438_s30 + $0x200] sm:$0xff] %v1281_v16  ;;  %1284 = vst [vmem:[%s11438_s30 + $0x220] sm:$0xff] %v1283_v17  ;;  %v1287_v19 = vld [vmem:[%s11442_s25 + $0x2f8] sm:$0xff]  ;;  %v1289_v20 = vld [vmem:[%s11442_s25 + $0x320] sm:$0xff] }
  0xc7   : >> { %1286 = vst [vmem:[%s11438_s30 + $0x240] sm:$0xff] %v1285_v18  ;;  %1288 = vst [vmem:[%s11438_s30 + $0x260] sm:$0xff] %v1287_v19  ;;  %v1291_v21 = vld [vmem:[%s11442_s25 + $0x348] sm:$0xff]  ;;  %v1293_v22 = vld [vmem:[%s11442_s25 + $0x370] sm:$0xff] }
  0xc8   : >> { %1290 = vst [vmem:[%s11438_s30 + $0x280] sm:$0xff] %v1289_v20  ;;  %v1295_v23 = vld [vmem:[%s11442_s25 + $0x398] sm:$0xff]  ;;  %1292 = vst [vmem:[%s11438_s30 + $0x2a0] sm:$0xff] %v1291_v21  ;;  %v1297_v24 = vld [vmem:[%s11442_s25 + $0x3c0] sm:$0xff] }
  0xc9   : >> { %1294 = vst [vmem:[%s11438_s30 + $0x2c0] sm:$0xff] %v1293_v22  ;;  %1296 = vst [vmem:[%s11438_s30 + $0x2e0] sm:$0xff] %v1295_v23  ;;  %v1299_v25 = vld [vmem:[%s11442_s25 + $0x3e8] sm:$0xff]  ;;  %v1301_v26 = vld [vmem:[%s11442_s25 + $0x410] sm:$0xff] }
  0xca   : >> { %1298 = vst [vmem:[%s11438_s30 + $0x300] sm:$0xff] %v1297_v24  ;;  %1300 = vst [vmem:[%s11438_s30 + $0x320] sm:$0xff] %v1299_v25  ;;  %v1303_v27 = vld [vmem:[%s11442_s25 + $0x438] sm:$0xff]  ;;  %v1305_v28 = vld [vmem:[%s11442_s25 + $0x460] sm:$0xff] }
  0xcb   : >> { %1302 = vst [vmem:[%s11438_s30 + $0x340] sm:$0xff] %v1301_v26  ;;  %v1307_v29 = vld [vmem:[%s11442_s25 + $0x488] sm:$0xff]  ;;  %1304 = vst [vmem:[%s11438_s30 + $0x360] sm:$0xff] %v1303_v27  ;;  %v1309_v30 = vld [vmem:[%s11442_s25 + $0x4b0] sm:$0xff] }
  0xcc   : >> { %1306 = vst [vmem:[%s11438_s30 + $0x380] sm:$0xff] %v1305_v28  ;;  %1308 = vst [vmem:[%s11438_s30 + $0x3a0] sm:$0xff] %v1307_v29  ;;  %v1311_v31 = vld [vmem:[%s11442_s25 + $0x4d8] sm:$0xff]  ;;  %v1313_v32 = vld [vmem:[%s11442_s25 + $0x500] sm:$0xff] }
  0xcd   : >> { %1310 = vst [vmem:[%s11438_s30 + $0x3c0] sm:$0xff] %v1309_v30  ;;  %1312 = vst [vmem:[%s11438_s30 + $0x3e0] sm:$0xff] %v1311_v31  ;;  %v1315_v33 = vld [vmem:[%s11442_s25 + $0x528] sm:$0xff]  ;;  %v1317_v34 = vld [vmem:[%s11442_s25 + $0x550] sm:$0xff] }
  0xce   : >> { %1314 = vst [vmem:[%s11438_s30 + $0x400] sm:$0xff] %v1313_v32  ;;  %v1319_v35 = vld [vmem:[%s11442_s25 + $0x578] sm:$0xff]  ;;  %1316 = vst [vmem:[%s11438_s30 + $0x420] sm:$0xff] %v1315_v33  ;;  %v1321_v36 = vld [vmem:[%s11442_s25 + $0x5a0] sm:$0xff] }
  0xcf   : >> { %1318 = vst [vmem:[%s11438_s30 + $0x440] sm:$0xff] %v1317_v34  ;;  %1320 = vst [vmem:[%s11438_s30 + $0x460] sm:$0xff] %v1319_v35  ;;  %v1323_v37 = vld [vmem:[%s11442_s25 + $0x5c8] sm:$0xff]  ;;  %v1325_v38 = vld [vmem:[%s11442_s25 + $0x5f0] sm:$0xff] }
  0xd0   : >> { %1322 = vst [vmem:[%s11438_s30 + $0x480] sm:$0xff] %v1321_v36  ;;  %1324 = vst [vmem:[%s11438_s30 + $0x4a0] sm:$0xff] %v1323_v37  ;;  %v1327_v39 = vld [vmem:[%s11442_s25 + $0x618] sm:$0xff]  ;;  %v1329_v40 = vld [vmem:[%s11442_s25 + $0x640] sm:$0xff] }
  0xd1   : >> { %1326 = vst [vmem:[%s11438_s30 + $0x4c0] sm:$0xff] %v1325_v38  ;;  %v1331_v41 = vld [vmem:[%s11442_s25 + $0x668] sm:$0xff]  ;;  %1328 = vst [vmem:[%s11438_s30 + $0x4e0] sm:$0xff] %v1327_v39  ;;  %v1333_v42 = vld [vmem:[%s11442_s25 + $0x690] sm:$0xff] }
  0xd2   : >> { %1330 = vst [vmem:[%s11438_s30 + $0x500] sm:$0xff] %v1329_v40  ;;  %1332 = vst [vmem:[%s11438_s30 + $0x520] sm:$0xff] %v1331_v41  ;;  %v1335_v43 = vld [vmem:[%s11442_s25 + $0x6b8] sm:$0xff]  ;;  %v1337_v44 = vld [vmem:[%s11442_s25 + $0x6e0] sm:$0xff] }
  0xd3   : >> { %1334 = vst [vmem:[%s11438_s30 + $0x540] sm:$0xff] %v1333_v42  ;;  %1336 = vst [vmem:[%s11438_s30 + $0x560] sm:$0xff] %v1335_v43  ;;  %v1339_v45 = vld [vmem:[%s11442_s25 + $0x708] sm:$0xff]  ;;  %v1341_v46 = vld [vmem:[%s11442_s25 + $0x730] sm:$0xff] }
  0xd4   : >> { %1338 = vst [vmem:[%s11438_s30 + $0x580] sm:$0xff] %v1337_v44  ;;  %v1343_v47 = vld [vmem:[%s11442_s25 + $0x758] sm:$0xff]  ;;  %1340 = vst [vmem:[%s11438_s30 + $0x5a0] sm:$0xff] %v1339_v45  ;;  %v1345_v48 = vld [vmem:[%s11442_s25 + $0x780] sm:$0xff] }
  0xd5   : >> { %1342 = vst [vmem:[%s11438_s30 + $0x5c0] sm:$0xff] %v1341_v46  ;;  %1344 = vst [vmem:[%s11438_s30 + $0x5e0] sm:$0xff] %v1343_v47  ;;  %v1347_v49 = vld [vmem:[%s11442_s25 + $0x7a8] sm:$0xff]  ;;  %v1349_v50 = vld [vmem:[%s11442_s25 + $0x7d0] sm:$0xff] }
  0xd6   : >> { %1346 = vst [vmem:[%s11438_s30 + $0x600] sm:$0xff] %v1345_v48  ;;  %1348 = vst [vmem:[%s11438_s30 + $0x620] sm:$0xff] %v1347_v49  ;;  %v1351_v51 = vld [vmem:[%s11442_s25 + $0x7f8] sm:$0xff]  ;;  %v1353_v52 = vld [vmem:[%s11442_s25 + $0x820] sm:$0xff] }
  0xd7   : >> { %1350 = vst [vmem:[%s11438_s30 + $0x640] sm:$0xff] %v1349_v50  ;;  %v1355_v53 = vld [vmem:[%s11442_s25 + $0x848] sm:$0xff]  ;;  %1352 = vst [vmem:[%s11438_s30 + $0x660] sm:$0xff] %v1351_v51  ;;  %v1357_v54 = vld [vmem:[%s11442_s25 + $0x870] sm:$0xff] }
  0xd8   : >> { %1354 = vst [vmem:[%s11438_s30 + $0x680] sm:$0xff] %v1353_v52  ;;  %1356 = vst [vmem:[%s11438_s30 + $0x6a0] sm:$0xff] %v1355_v53  ;;  %v1359_v55 = vld [vmem:[%s11442_s25 + $0x898] sm:$0xff]  ;;  %v1361_v56 = vld [vmem:[%s11442_s25 + $0x8c0] sm:$0xff] }
  0xd9   : >> { %1358 = vst [vmem:[%s11438_s30 + $0x6c0] sm:$0xff] %v1357_v54  ;;  %1360 = vst [vmem:[%s11438_s30 + $0x6e0] sm:$0xff] %v1359_v55  ;;  %v1363_v57 = vld [vmem:[%s11442_s25 + $0x8e8] sm:$0xff]  ;;  %v1365_v58 = vld [vmem:[%s11442_s25 + $0x910] sm:$0xff] }
  0xda   : >> { %1362 = vst [vmem:[%s11438_s30 + $0x700] sm:$0xff] %v1361_v56  ;;  %v1367_v59 = vld [vmem:[%s11442_s25 + $0x938] sm:$0xff]  ;;  %1364 = vst [vmem:[%s11438_s30 + $0x720] sm:$0xff] %v1363_v57  ;;  %v1369_v60 = vld [vmem:[%s11442_s25 + $0x960] sm:$0xff] }
  0xdb   : >> { %1366 = vst [vmem:[%s11438_s30 + $0x740] sm:$0xff] %v1365_v58  ;;  %1368 = vst [vmem:[%s11438_s30 + $0x760] sm:$0xff] %v1367_v59  ;;  %v1371_v61 = vld [vmem:[%s11442_s25 + $0x988] sm:$0xff]  ;;  %v1373_v62 = vld [vmem:[%s11442_s25 + $0x9b0] sm:$0xff] }
  0xdc   : >> { %1370 = vst [vmem:[%s11438_s30 + $0x780] sm:$0xff] %v1369_v60  ;;  %1372 = vst [vmem:[%s11438_s30 + $0x7a0] sm:$0xff] %v1371_v61  ;;  %v1375_v63 = vld [vmem:[%s11442_s25 + $0x9d8] sm:$0xff]  ;;  %v1377_v0 = vld [vmem:[%s11442_s25 + $0xa00] sm:$0xff] }
  0xdd   : >> { %1374 = vst [vmem:[%s11438_s30 + $0x7c0] sm:$0xff] %v1373_v62  ;;  %v1379_v1 = vld [vmem:[%s11442_s25 + $0xa28] sm:$0xff]  ;;  %1376 = vst [vmem:[%s11438_s30 + $0x7e0] sm:$0xff] %v1375_v63  ;;  %v1381_v2 = vld [vmem:[%s11442_s25 + $0xa50] sm:$0xff] }
  0xde   : >> { %1378 = vst [vmem:[%s11438_s30 + $0x800] sm:$0xff] %v1377_v0  ;;  %1380 = vst [vmem:[%s11438_s30 + $0x820] sm:$0xff] %v1379_v1  ;;  %v1383_v3 = vld [vmem:[%s11442_s25 + $0xa78] sm:$0xff]  ;;  %v1385_v4 = vld [vmem:[%s11442_s25 + $0xaa0] sm:$0xff] }
  0xdf   : >> { %1382 = vst [vmem:[%s11438_s30 + $0x840] sm:$0xff] %v1381_v2  ;;  %1384 = vst [vmem:[%s11438_s30 + $0x860] sm:$0xff] %v1383_v3  ;;  %v1387_v5 = vld [vmem:[%s11442_s25 + $0xac8] sm:$0xff]  ;;  %v1389_v6 = vld [vmem:[%s11442_s25 + $0xaf0] sm:$0xff] }
  0xe0   : >> { %1386 = vst [vmem:[%s11438_s30 + $0x880] sm:$0xff] %v1385_v4  ;;  %v1391_v7 = vld [vmem:[%s11442_s25 + $0xb18] sm:$0xff]  ;;  %1388 = vst [vmem:[%s11438_s30 + $0x8a0] sm:$0xff] %v1387_v5  ;;  %v1393_v8 = vld [vmem:[%s11442_s25 + $0xb40] sm:$0xff] }
  0xe1   : >> { %1390 = vst [vmem:[%s11438_s30 + $0x8c0] sm:$0xff] %v1389_v6  ;;  %1392 = vst [vmem:[%s11438_s30 + $0x8e0] sm:$0xff] %v1391_v7  ;;  %v1395_v9 = vld [vmem:[%s11442_s25 + $0xb68] sm:$0xff]  ;;  %v1397_v10 = vld [vmem:[%s11442_s25 + $0xb90] sm:$0xff] }
  0xe2   : >> { %1394 = vst [vmem:[%s11438_s30 + $0x900] sm:$0xff] %v1393_v8  ;;  %1396 = vst [vmem:[%s11438_s30 + $0x920] sm:$0xff] %v1395_v9  ;;  %v1399_v11 = vld [vmem:[%s11442_s25 + $0xbb8] sm:$0xff]  ;;  %v1401_v12 = vld [vmem:[%s11442_s25 + $0xbe0] sm:$0xff] }
  0xe3   : >> { %1398 = vst [vmem:[%s11438_s30 + $0x940] sm:$0xff] %v1397_v10  ;;  %v1403_v13 = vld [vmem:[%s11442_s25 + $0xc08] sm:$0xff]  ;;  %1400 = vst [vmem:[%s11438_s30 + $0x960] sm:$0xff] %v1399_v11  ;;  %v1405_v14 = vld [vmem:[%s11442_s25 + $0xc30] sm:$0xff] }
  0xe4   : >> { %1402 = vst [vmem:[%s11438_s30 + $0x980] sm:$0xff] %v1401_v12  ;;  %1404 = vst [vmem:[%s11438_s30 + $0x9a0] sm:$0xff] %v1403_v13  ;;  %v1407_v15 = vld [vmem:[%s11442_s25 + $0xc58] sm:$0xff]  ;;  %v1409_v16 = vld [vmem:[%s11442_s25 + $0xc80] sm:$0xff] }
  0xe5   : >> { %1406 = vst [vmem:[%s11438_s30 + $0x9c0] sm:$0xff] %v1405_v14  ;;  %1408 = vst [vmem:[%s11438_s30 + $0x9e0] sm:$0xff] %v1407_v15  ;;  %v1411_v17 = vld [vmem:[%s11442_s25 + $0xca8] sm:$0xff]  ;;  %v1413_v18 = vld [vmem:[%s11442_s25 + $0xcd0] sm:$0xff] }
  0xe6   : >> { %1410 = vst [vmem:[%s11438_s30 + $0xa00] sm:$0xff] %v1409_v16  ;;  %v1415_v19 = vld [vmem:[%s11442_s25 + $0xcf8] sm:$0xff]  ;;  %1412 = vst [vmem:[%s11438_s30 + $0xa20] sm:$0xff] %v1411_v17  ;;  %v1417_v20 = vld [vmem:[%s11442_s25 + $0xd20] sm:$0xff] }
  0xe7   : >> { %1414 = vst [vmem:[%s11438_s30 + $0xa40] sm:$0xff] %v1413_v18  ;;  %1416 = vst [vmem:[%s11438_s30 + $0xa60] sm:$0xff] %v1415_v19  ;;  %v1419_v21 = vld [vmem:[%s11442_s25 + $0xd48] sm:$0xff]  ;;  %v1421_v22 = vld [vmem:[%s11442_s25 + $0xd70] sm:$0xff] }
  0xe8   : >> { %1418 = vst [vmem:[%s11438_s30 + $0xa80] sm:$0xff] %v1417_v20  ;;  %1420 = vst [vmem:[%s11438_s30 + $0xaa0] sm:$0xff] %v1419_v21  ;;  %v1423_v23 = vld [vmem:[%s11442_s25 + $0xd98] sm:$0xff]  ;;  %v1425_v24 = vld [vmem:[%s11442_s25 + $0xdc0] sm:$0xff] }
  0xe9   : >> { %1422 = vst [vmem:[%s11438_s30 + $0xac0] sm:$0xff] %v1421_v22  ;;  %v1427_v25 = vld [vmem:[%s11442_s25 + $0xde8] sm:$0xff]  ;;  %1424 = vst [vmem:[%s11438_s30 + $0xae0] sm:$0xff] %v1423_v23  ;;  %v1429_v26 = vld [vmem:[%s11442_s25 + $0xe10] sm:$0xff] }
  0xea   : >> { %1426 = vst [vmem:[%s11438_s30 + $0xb00] sm:$0xff] %v1425_v24  ;;  %1428 = vst [vmem:[%s11438_s30 + $0xb20] sm:$0xff] %v1427_v25  ;;  %v1431_v27 = vld [vmem:[%s11442_s25 + $0xe38] sm:$0xff]  ;;  %v1433_v28 = vld [vmem:[%s11442_s25 + $0xe60] sm:$0xff] }
  0xeb   : >> { %1430 = vst [vmem:[%s11438_s30 + $0xb40] sm:$0xff] %v1429_v26  ;;  %1432 = vst [vmem:[%s11438_s30 + $0xb60] sm:$0xff] %v1431_v27  ;;  %v1435_v29 = vld [vmem:[%s11442_s25 + $0xe88] sm:$0xff]  ;;  %v1437_v30 = vld [vmem:[%s11442_s25 + $0xeb0] sm:$0xff] }
  0xec   : >> { %1434 = vst [vmem:[%s11438_s30 + $0xb80] sm:$0xff] %v1433_v28  ;;  %v1439_v31 = vld [vmem:[%s11442_s25 + $0xed8] sm:$0xff]  ;;  %1436 = vst [vmem:[%s11438_s30 + $0xba0] sm:$0xff] %v1435_v29  ;;  %v1441_v32 = vld [vmem:[%s11442_s25 + $0xf00] sm:$0xff] }
  0xed   : >> { %1438 = vst [vmem:[%s11438_s30 + $0xbc0] sm:$0xff] %v1437_v30  ;;  %1440 = vst [vmem:[%s11438_s30 + $0xbe0] sm:$0xff] %v1439_v31  ;;  %v1443_v33 = vld [vmem:[%s11442_s25 + $0xf28] sm:$0xff]  ;;  %v1445_v34 = vld [vmem:[%s11442_s25 + $0xf50] sm:$0xff] }
  0xee   : >> { %1442 = vst [vmem:[%s11438_s30 + $0xc00] sm:$0xff] %v1441_v32  ;;  %1444 = vst [vmem:[%s11438_s30 + $0xc20] sm:$0xff] %v1443_v33  ;;  %v1447_v35 = vld [vmem:[%s11442_s25 + $0xf78] sm:$0xff]  ;;  %v1449_v36 = vld [vmem:[%s11442_s25 + $0xfa0] sm:$0xff] }
  0xef   : >> { %1446 = vst [vmem:[%s11438_s30 + $0xc40] sm:$0xff] %v1445_v34  ;;  %v1451_v37 = vld [vmem:[%s11442_s25 + $0xfc8] sm:$0xff]  ;;  %1448 = vst [vmem:[%s11438_s30 + $0xc60] sm:$0xff] %v1447_v35  ;;  %v1453_v38 = vld [vmem:[%s11442_s25 + $0xff0] sm:$0xff] }
  0xf0   : >> { %1450 = vst [vmem:[%s11438_s30 + $0xc80] sm:$0xff] %v1449_v36  ;;  %1452 = vst [vmem:[%s11438_s30 + $0xca0] sm:$0xff] %v1451_v37  ;;  %v1455_v39 = vld [vmem:[%s11442_s25 + $0x1018] sm:$0xff]  ;;  %v1457_v40 = vld [vmem:[%s11442_s25 + $0x1040] sm:$0xff] }
  0xf1   : >> { %1454 = vst [vmem:[%s11438_s30 + $0xcc0] sm:$0xff] %v1453_v38  ;;  %1456 = vst [vmem:[%s11438_s30 + $0xce0] sm:$0xff] %v1455_v39  ;;  %v1459_v41 = vld [vmem:[%s11442_s25 + $0x1068] sm:$0xff]  ;;  %v1461_v42 = vld [vmem:[%s11442_s25 + $0x1090] sm:$0xff] }
  0xf2   : >> { %1458 = vst [vmem:[%s11438_s30 + $0xd00] sm:$0xff] %v1457_v40  ;;  %v1463_v43 = vld [vmem:[%s11442_s25 + $0x10b8] sm:$0xff]  ;;  %1460 = vst [vmem:[%s11438_s30 + $0xd20] sm:$0xff] %v1459_v41  ;;  %v1465_v44 = vld [vmem:[%s11442_s25 + $0x10e0] sm:$0xff] }
  0xf3   : >> { %1462 = vst [vmem:[%s11438_s30 + $0xd40] sm:$0xff] %v1461_v42  ;;  %1464 = vst [vmem:[%s11438_s30 + $0xd60] sm:$0xff] %v1463_v43  ;;  %v1467_v45 = vld [vmem:[%s11442_s25 + $0x1108] sm:$0xff]  ;;  %v1469_v46 = vld [vmem:[%s11442_s25 + $0x1130] sm:$0xff] }
  0xf4   : >> { %1466 = vst [vmem:[%s11438_s30 + $0xd80] sm:$0xff] %v1465_v44  ;;  %1468 = vst [vmem:[%s11438_s30 + $0xda0] sm:$0xff] %v1467_v45  ;;  %v1471_v47 = vld [vmem:[%s11442_s25 + $0x1158] sm:$0xff]  ;;  %v1473_v48 = vld [vmem:[%s11442_s25 + $0x1180] sm:$0xff] }
  0xf5   : >> { %1470 = vst [vmem:[%s11438_s30 + $0xdc0] sm:$0xff] %v1469_v46  ;;  %v1475_v49 = vld [vmem:[%s11442_s25 + $0x11a8] sm:$0xff]  ;;  %1472 = vst [vmem:[%s11438_s30 + $0xde0] sm:$0xff] %v1471_v47  ;;  %v1477_v50 = vld [vmem:[%s11442_s25 + $0x11d0] sm:$0xff] }
  0xf6   : >> { %1474 = vst [vmem:[%s11438_s30 + $0xe00] sm:$0xff] %v1473_v48  ;;  %1476 = vst [vmem:[%s11438_s30 + $0xe20] sm:$0xff] %v1475_v49  ;;  %v1479_v51 = vld [vmem:[%s11442_s25 + $0x11f8] sm:$0xff]  ;;  %v1481_v52 = vld [vmem:[%s11442_s25 + $0x1220] sm:$0xff] }
  0xf7   : >> { %1478 = vst [vmem:[%s11438_s30 + $0xe40] sm:$0xff] %v1477_v50  ;;  %1480 = vst [vmem:[%s11438_s30 + $0xe60] sm:$0xff] %v1479_v51  ;;  %v1483_v53 = vld [vmem:[%s11442_s25 + $0x1248] sm:$0xff]  ;;  %v1485_v54 = vld [vmem:[%s11442_s25 + $0x1270] sm:$0xff] }
  0xf8   : >> { %1482 = vst [vmem:[%s11438_s30 + $0xe80] sm:$0xff] %v1481_v52  ;;  %v1487_v55 = vld [vmem:[%s11442_s25 + $0x1298] sm:$0xff]  ;;  %1484 = vst [vmem:[%s11438_s30 + $0xea0] sm:$0xff] %v1483_v53  ;;  %v1489_v56 = vld [vmem:[%s11442_s25 + $0x12c0] sm:$0xff] }
  0xf9   : >> { %1486 = vst [vmem:[%s11438_s30 + $0xec0] sm:$0xff] %v1485_v54  ;;  %1488 = vst [vmem:[%s11438_s30 + $0xee0] sm:$0xff] %v1487_v55  ;;  %v1491_v57 = vld [vmem:[%s11442_s25 + $0x12e8] sm:$0xff]  ;;  %v1493_v58 = vld [vmem:[%s11442_s25 + $0x1310] sm:$0xff] }
  0xfa   : >> { %1490 = vst [vmem:[%s11438_s30 + $0xf00] sm:$0xff] %v1489_v56  ;;  %1492 = vst [vmem:[%s11438_s30 + $0xf20] sm:$0xff] %v1491_v57  ;;  %v1495_v59 = vld [vmem:[%s11442_s25 + $0x1338] sm:$0xff]  ;;  %v1497_v60 = vld [vmem:[%s11442_s25 + $0x1360] sm:$0xff] }
  0xfb   : >> { %1494 = vst [vmem:[%s11438_s30 + $0xf40] sm:$0xff] %v1493_v58  ;;  %v1499_v61 = vld [vmem:[%s11442_s25 + $0x1388] sm:$0xff]  ;;  %1496 = vst [vmem:[%s11438_s30 + $0xf60] sm:$0xff] %v1495_v59  ;;  %v1501_v62 = vld [vmem:[%s11442_s25 + $0x13b0] sm:$0xff] }
  0xfc   : >> { %1498 = vst [vmem:[%s11438_s30 + $0xf80] sm:$0xff] %v1497_v60  ;;  %1500 = vst [vmem:[%s11438_s30 + $0xfa0] sm:$0xff] %v1499_v61  ;;  %v1503_v63 = vld [vmem:[%s11442_s25 + $0x13d8] sm:$0xff]  ;;  %v1505_v0 = vld [vmem:[%s11442_s25 + $0x1400] sm:$0xff] }
  0xfd   : >> { %1502 = vst [vmem:[%s11438_s30 + $0xfc0] sm:$0xff] %v1501_v62  ;;  %1504 = vst [vmem:[%s11438_s30 + $0xfe0] sm:$0xff] %v1503_v63  ;;  %v1507_v1 = vld [vmem:[%s11442_s25 + $0x1428] sm:$0xff]  ;;  %v1509_v2 = vld [vmem:[%s11442_s25 + $0x1450] sm:$0xff] }
  0xfe   : >> { %1506 = vst [vmem:[%s11438_s30 + $0x1000] sm:$0xff] %v1505_v0  ;;  %v1511_v3 = vld [vmem:[%s11442_s25 + $0x1478] sm:$0xff]  ;;  %1508 = vst [vmem:[%s11438_s30 + $0x1020] sm:$0xff] %v1507_v1  ;;  %v1513_v4 = vld [vmem:[%s11442_s25 + $0x14a0] sm:$0xff] }
  0xff   : >> { %1510 = vst [vmem:[%s11438_s30 + $0x1040] sm:$0xff] %v1509_v2  ;;  %1512 = vst [vmem:[%s11438_s30 + $0x1060] sm:$0xff] %v1511_v3  ;;  %v1515_v5 = vld [vmem:[%s11442_s25 + $0x14c8] sm:$0xff]  ;;  %v1517_v6 = vld [vmem:[%s11442_s25 + $0x14f0] sm:$0xff] }
 0x100   : >> { %1514 = vst [vmem:[%s11438_s30 + $0x1080] sm:$0xff] %v1513_v4  ;;  %1516 = vst [vmem:[%s11438_s30 + $0x10a0] sm:$0xff] %v1515_v5  ;;  %v1519_v7 = vld [vmem:[%s11442_s25 + $0x1518] sm:$0xff]  ;;  %v1521_v8 = vld [vmem:[%s11442_s25 + $0x1540] sm:$0xff] }
 0x101   : >> { %1518 = vst [vmem:[%s11438_s30 + $0x10c0] sm:$0xff] %v1517_v6  ;;  %v1523_v9 = vld [vmem:[%s11442_s25 + $0x1568] sm:$0xff]  ;;  %1520 = vst [vmem:[%s11438_s30 + $0x10e0] sm:$0xff] %v1519_v7  ;;  %v1525_v10 = vld [vmem:[%s11442_s25 + $0x1590] sm:$0xff] }
 0x102   : >> { %1522 = vst [vmem:[%s11438_s30 + $0x1100] sm:$0xff] %v1521_v8  ;;  %1524 = vst [vmem:[%s11438_s30 + $0x1120] sm:$0xff] %v1523_v9  ;;  %v1527_v11 = vld [vmem:[%s11442_s25 + $0x15b8] sm:$0xff]  ;;  %v1529_v12 = vld [vmem:[%s11442_s25 + $0x15e0] sm:$0xff] }
 0x103   : >> { %1526 = vst [vmem:[%s11438_s30 + $0x1140] sm:$0xff] %v1525_v10  ;;  %1528 = vst [vmem:[%s11438_s30 + $0x1160] sm:$0xff] %v1527_v11  ;;  %v1531_v13 = vld [vmem:[%s11442_s25 + $0x1608] sm:$0xff]  ;;  %v1533_v14 = vld [vmem:[%s11442_s25 + $0x1630] sm:$0xff] }
 0x104   : >> { %1530 = vst [vmem:[%s11438_s30 + $0x1180] sm:$0xff] %v1529_v12  ;;  %v1535_v15 = vld [vmem:[%s11442_s25 + $0x1658] sm:$0xff]  ;;  %1532 = vst [vmem:[%s11438_s30 + $0x11a0] sm:$0xff] %v1531_v13  ;;  %v1537_v16 = vld [vmem:[%s11442_s25 + $0x1680] sm:$0xff] }
 0x105   : >> { %1534 = vst [vmem:[%s11438_s30 + $0x11c0] sm:$0xff] %v1533_v14  ;;  %1536 = vst [vmem:[%s11438_s30 + $0x11e0] sm:$0xff] %v1535_v15  ;;  %v1539_v17 = vld [vmem:[%s11442_s25 + $0x16a8] sm:$0xff]  ;;  %v1541_v18 = vld [vmem:[%s11442_s25 + $0x16d0] sm:$0xff] }
 0x106   : >> { %1538 = vst [vmem:[%s11438_s30 + $0x1200] sm:$0xff] %v1537_v16  ;;  %1540 = vst [vmem:[%s11438_s30 + $0x1220] sm:$0xff] %v1539_v17  ;;  %v1543_v19 = vld [vmem:[%s11442_s25 + $0x16f8] sm:$0xff]  ;;  %v1545_v20 = vld [vmem:[%s11442_s25 + $0x1720] sm:$0xff] }
 0x107   : >> { %1542 = vst [vmem:[%s11438_s30 + $0x1240] sm:$0xff] %v1541_v18  ;;  %v1547_v21 = vld [vmem:[%s11442_s25 + $0x1748] sm:$0xff]  ;;  %1544 = vst [vmem:[%s11438_s30 + $0x1260] sm:$0xff] %v1543_v19  ;;  %v1549_v22 = vld [vmem:[%s11442_s25 + $0x1770] sm:$0xff] }
 0x108   : >> { %1546 = vst [vmem:[%s11438_s30 + $0x1280] sm:$0xff] %v1545_v20  ;;  %1548 = vst [vmem:[%s11438_s30 + $0x12a0] sm:$0xff] %v1547_v21  ;;  %v1551_v23 = vld [vmem:[%s11442_s25 + $0x1798] sm:$0xff]  ;;  %v1553_v24 = vld [vmem:[%s11442_s25 + $0x17c0] sm:$0xff] }
 0x109   : >> { %1550 = vst [vmem:[%s11438_s30 + $0x12c0] sm:$0xff] %v1549_v22  ;;  %1552 = vst [vmem:[%s11438_s30 + $0x12e0] sm:$0xff] %v1551_v23  ;;  %v1555_v25 = vld [vmem:[%s11442_s25 + $0x17e8] sm:$0xff]  ;;  %v1557_v26 = vld [vmem:[%s11442_s25 + $0x1810] sm:$0xff] }
 0x10a   : >> { %1554 = vst [vmem:[%s11438_s30 + $0x1300] sm:$0xff] %v1553_v24  ;;  %v1559_v27 = vld [vmem:[%s11442_s25 + $0x1838] sm:$0xff]  ;;  %1556 = vst [vmem:[%s11438_s30 + $0x1320] sm:$0xff] %v1555_v25  ;;  %v1561_v28 = vld [vmem:[%s11442_s25 + $0x1860] sm:$0xff] }
 0x10b   : >> { %1558 = vst [vmem:[%s11438_s30 + $0x1340] sm:$0xff] %v1557_v26  ;;  %1560 = vst [vmem:[%s11438_s30 + $0x1360] sm:$0xff] %v1559_v27  ;;  %v1563_v29 = vld [vmem:[%s11442_s25 + $0x1888] sm:$0xff]  ;;  %v1565_v30 = vld [vmem:[%s11442_s25 + $0x18b0] sm:$0xff] }
 0x10c   : >> { %1562 = vst [vmem:[%s11438_s30 + $0x1380] sm:$0xff] %v1561_v28  ;;  %1564 = vst [vmem:[%s11438_s30 + $0x13a0] sm:$0xff] %v1563_v29  ;;  %v1567_v31 = vld [vmem:[%s11442_s25 + $0x18d8] sm:$0xff]  ;;  %v1569_v32 = vld [vmem:[%s11442_s25 + $0x1900] sm:$0xff] }
 0x10d   : >> { %1566 = vst [vmem:[%s11438_s30 + $0x13c0] sm:$0xff] %v1565_v30  ;;  %v1571_v33 = vld [vmem:[%s11442_s25 + $0x1928] sm:$0xff]  ;;  %1568 = vst [vmem:[%s11438_s30 + $0x13e0] sm:$0xff] %v1567_v31  ;;  %v1573_v34 = vld [vmem:[%s11442_s25 + $0x1950] sm:$0xff] }
 0x10e   : >> { %1570 = vst [vmem:[%s11438_s30 + $0x1400] sm:$0xff] %v1569_v32  ;;  %1572 = vst [vmem:[%s11438_s30 + $0x1420] sm:$0xff] %v1571_v33  ;;  %v1575_v35 = vld [vmem:[%s11442_s25 + $0x1978] sm:$0xff]  ;;  %v1577_v36 = vld [vmem:[%s11442_s25 + $0x19a0] sm:$0xff] }
 0x10f   : >> { %1574 = vst [vmem:[%s11438_s30 + $0x1440] sm:$0xff] %v1573_v34  ;;  %1576 = vst [vmem:[%s11438_s30 + $0x1460] sm:$0xff] %v1575_v35  ;;  %v1579_v37 = vld [vmem:[%s11442_s25 + $0x19c8] sm:$0xff]  ;;  %v1581_v38 = vld [vmem:[%s11442_s25 + $0x19f0] sm:$0xff] }
 0x110   : >> { %1578 = vst [vmem:[%s11438_s30 + $0x1480] sm:$0xff] %v1577_v36  ;;  %v1583_v39 = vld [vmem:[%s11442_s25 + $0x1a18] sm:$0xff]  ;;  %1580 = vst [vmem:[%s11438_s30 + $0x14a0] sm:$0xff] %v1579_v37  ;;  %v1585_v40 = vld [vmem:[%s11442_s25 + $0x1a40] sm:$0xff] }
 0x111   : >> { %1582 = vst [vmem:[%s11438_s30 + $0x14c0] sm:$0xff] %v1581_v38  ;;  %1584 = vst [vmem:[%s11438_s30 + $0x14e0] sm:$0xff] %v1583_v39  ;;  %v1587_v41 = vld [vmem:[%s11442_s25 + $0x1a68] sm:$0xff]  ;;  %v1589_v42 = vld [vmem:[%s11442_s25 + $0x1a90] sm:$0xff] }
 0x112   : >> { %1586 = vst [vmem:[%s11438_s30 + $0x1500] sm:$0xff] %v1585_v40  ;;  %1588 = vst [vmem:[%s11438_s30 + $0x1520] sm:$0xff] %v1587_v41  ;;  %v1591_v43 = vld [vmem:[%s11442_s25 + $0x1ab8] sm:$0xff]  ;;  %v1593_v44 = vld [vmem:[%s11442_s25 + $0x1ae0] sm:$0xff] }
 0x113   : >> { %1590 = vst [vmem:[%s11438_s30 + $0x1540] sm:$0xff] %v1589_v42  ;;  %v1595_v45 = vld [vmem:[%s11442_s25 + $0x1b08] sm:$0xff]  ;;  %1592 = vst [vmem:[%s11438_s30 + $0x1560] sm:$0xff] %v1591_v43  ;;  %v1597_v46 = vld [vmem:[%s11442_s25 + $0x1b30] sm:$0xff] }
 0x114   : >> { %1594 = vst [vmem:[%s11438_s30 + $0x1580] sm:$0xff] %v1593_v44  ;;  %1596 = vst [vmem:[%s11438_s30 + $0x15a0] sm:$0xff] %v1595_v45  ;;  %v1599_v47 = vld [vmem:[%s11442_s25 + $0x1b58] sm:$0xff]  ;;  %v1601_v48 = vld [vmem:[%s11442_s25 + $0x1b80] sm:$0xff] }
 0x115   : >> { %1598 = vst [vmem:[%s11438_s30 + $0x15c0] sm:$0xff] %v1597_v46  ;;  %1600 = vst [vmem:[%s11438_s30 + $0x15e0] sm:$0xff] %v1599_v47  ;;  %v1603_v49 = vld [vmem:[%s11442_s25 + $0x1ba8] sm:$0xff]  ;;  %v1605_v50 = vld [vmem:[%s11442_s25 + $0x1bd0] sm:$0xff] }
 0x116   : >> { %1602 = vst [vmem:[%s11438_s30 + $0x1600] sm:$0xff] %v1601_v48  ;;  %v1607_v51 = vld [vmem:[%s11442_s25 + $0x1bf8] sm:$0xff]  ;;  %1604 = vst [vmem:[%s11438_s30 + $0x1620] sm:$0xff] %v1603_v49  ;;  %v1609_v52 = vld [vmem:[%s11442_s25 + $0x1c20] sm:$0xff] }
 0x117   : >> { %1606 = vst [vmem:[%s11438_s30 + $0x1640] sm:$0xff] %v1605_v50  ;;  %1608 = vst [vmem:[%s11438_s30 + $0x1660] sm:$0xff] %v1607_v51  ;;  %v1611_v53 = vld [vmem:[%s11442_s25 + $0x1c48] sm:$0xff]  ;;  %v1613_v54 = vld [vmem:[%s11442_s25 + $0x1c70] sm:$0xff] }
 0x118   : >> { %1610 = vst [vmem:[%s11438_s30 + $0x1680] sm:$0xff] %v1609_v52  ;;  %1612 = vst [vmem:[%s11438_s30 + $0x16a0] sm:$0xff] %v1611_v53  ;;  %v1615_v55 = vld [vmem:[%s11442_s25 + $0x1c98] sm:$0xff]  ;;  %v1617_v56 = vld [vmem:[%s11442_s25 + $0x1cc0] sm:$0xff] }
 0x119   : >> { %1614 = vst [vmem:[%s11438_s30 + $0x16c0] sm:$0xff] %v1613_v54  ;;  %v1619_v57 = vld [vmem:[%s11442_s25 + $0x1ce8] sm:$0xff]  ;;  %1616 = vst [vmem:[%s11438_s30 + $0x16e0] sm:$0xff] %v1615_v55  ;;  %v1621_v58 = vld [vmem:[%s11442_s25 + $0x1d10] sm:$0xff] }
 0x11a   : >> { %1618 = vst [vmem:[%s11438_s30 + $0x1700] sm:$0xff] %v1617_v56  ;;  %1620 = vst [vmem:[%s11438_s30 + $0x1720] sm:$0xff] %v1619_v57  ;;  %v1623_v59 = vld [vmem:[%s11442_s25 + $0x1d38] sm:$0xff]  ;;  %v1625_v60 = vld [vmem:[%s11442_s25 + $0x1d60] sm:$0xff] }
 0x11b   : >> { %1622 = vst [vmem:[%s11438_s30 + $0x1740] sm:$0xff] %v1621_v58  ;;  %1624 = vst [vmem:[%s11438_s30 + $0x1760] sm:$0xff] %v1623_v59  ;;  %v1627_v61 = vld [vmem:[%s11442_s25 + $0x1d88] sm:$0xff]  ;;  %v1629_v62 = vld [vmem:[%s11442_s25 + $0x1db0] sm:$0xff] }
 0x11c   : >> { %1626 = vst [vmem:[%s11438_s30 + $0x1780] sm:$0xff] %v1625_v60  ;;  %v1631_v63 = vld [vmem:[%s11442_s25 + $0x1dd8] sm:$0xff]  ;;  %1628 = vst [vmem:[%s11438_s30 + $0x17a0] sm:$0xff] %v1627_v61  ;;  %v1633_v0 = vld [vmem:[%s11442_s25 + $0x1e00] sm:$0xff] }
 0x11d   : >> { %1630 = vst [vmem:[%s11438_s30 + $0x17c0] sm:$0xff] %v1629_v62  ;;  %1632 = vst [vmem:[%s11438_s30 + $0x17e0] sm:$0xff] %v1631_v63  ;;  %v1635_v1 = vld [vmem:[%s11442_s25 + $0x1e28] sm:$0xff]  ;;  %v1637_v2 = vld [vmem:[%s11442_s25 + $0x1e50] sm:$0xff] }
 0x11e   : >> { %1634 = vst [vmem:[%s11438_s30 + $0x1800] sm:$0xff] %v1633_v0  ;;  %1636 = vst [vmem:[%s11438_s30 + $0x1820] sm:$0xff] %v1635_v1  ;;  %v1639_v3 = vld [vmem:[%s11442_s25 + $0x1e78] sm:$0xff]  ;;  %v1641_v4 = vld [vmem:[%s11442_s25 + $0x1ea0] sm:$0xff] }
 0x11f   : >> { %1638 = vst [vmem:[%s11438_s30 + $0x1840] sm:$0xff] %v1637_v2  ;;  %v1643_v5 = vld [vmem:[%s11442_s25 + $0x1ec8] sm:$0xff]  ;;  %1640 = vst [vmem:[%s11438_s30 + $0x1860] sm:$0xff] %v1639_v3  ;;  %v1645_v6 = vld [vmem:[%s11442_s25 + $0x1ef0] sm:$0xff] }
 0x120   : >> { %1642 = vst [vmem:[%s11438_s30 + $0x1880] sm:$0xff] %v1641_v4  ;;  %1644 = vst [vmem:[%s11438_s30 + $0x18a0] sm:$0xff] %v1643_v5  ;;  %v1647_v7 = vld [vmem:[%s11442_s25 + $0x1f18] sm:$0xff]  ;;  %v1649_v8 = vld [vmem:[%s11442_s25 + $0x1f40] sm:$0xff] }
 0x121   : >> { %1646 = vst [vmem:[%s11438_s30 + $0x18c0] sm:$0xff] %v1645_v6  ;;  %1648 = vst [vmem:[%s11438_s30 + $0x18e0] sm:$0xff] %v1647_v7  ;;  %v1651_v9 = vld [vmem:[%s11442_s25 + $0x1f68] sm:$0xff]  ;;  %v1653_v10 = vld [vmem:[%s11442_s25 + $0x1f90] sm:$0xff] }
 0x122   : >> { %1650 = vst [vmem:[%s11438_s30 + $0x1900] sm:$0xff] %v1649_v8  ;;  %v1655_v11 = vld [vmem:[%s11442_s25 + $0x1fb8] sm:$0xff]  ;;  %1652 = vst [vmem:[%s11438_s30 + $0x1920] sm:$0xff] %v1651_v9  ;;  %v1657_v12 = vld [vmem:[%s11442_s25 + $0x1fe0] sm:$0xff] }
 0x123   : >> { %1654 = vst [vmem:[%s11438_s30 + $0x1940] sm:$0xff] %v1653_v10  ;;  %1656 = vst [vmem:[%s11438_s30 + $0x1960] sm:$0xff] %v1655_v11  ;;  %v1659_v13 = vld [vmem:[%s11442_s25 + $0x2008] sm:$0xff]  ;;  %v1661_v14 = vld [vmem:[%s11442_s25 + $0x2030] sm:$0xff] }
 0x124   : >> { %1658 = vst [vmem:[%s11438_s30 + $0x1980] sm:$0xff] %v1657_v12  ;;  %1660 = vst [vmem:[%s11438_s30 + $0x19a0] sm:$0xff] %v1659_v13  ;;  %v1663_v15 = vld [vmem:[%s11442_s25 + $0x2058] sm:$0xff]  ;;  %v1665_v16 = vld [vmem:[%s11442_s25 + $0x2080] sm:$0xff] }
 0x125   : >> { %1662 = vst [vmem:[%s11438_s30 + $0x19c0] sm:$0xff] %v1661_v14  ;;  %v1667_v17 = vld [vmem:[%s11442_s25 + $0x20a8] sm:$0xff]  ;;  %1664 = vst [vmem:[%s11438_s30 + $0x19e0] sm:$0xff] %v1663_v15  ;;  %v1669_v18 = vld [vmem:[%s11442_s25 + $0x20d0] sm:$0xff] }
 0x126   : >> { %1666 = vst [vmem:[%s11438_s30 + $0x1a00] sm:$0xff] %v1665_v16  ;;  %1668 = vst [vmem:[%s11438_s30 + $0x1a20] sm:$0xff] %v1667_v17  ;;  %v1671_v19 = vld [vmem:[%s11442_s25 + $0x20f8] sm:$0xff]  ;;  %v1673_v20 = vld [vmem:[%s11442_s25 + $0x2120] sm:$0xff] }
 0x127   : >> { %1670 = vst [vmem:[%s11438_s30 + $0x1a40] sm:$0xff] %v1669_v18  ;;  %1672 = vst [vmem:[%s11438_s30 + $0x1a60] sm:$0xff] %v1671_v19  ;;  %v1675_v21 = vld [vmem:[%s11442_s25 + $0x2148] sm:$0xff]  ;;  %v1677_v22 = vld [vmem:[%s11442_s25 + $0x2170] sm:$0xff] }
 0x128   : >> { %1674 = vst [vmem:[%s11438_s30 + $0x1a80] sm:$0xff] %v1673_v20  ;;  %v1679_v23 = vld [vmem:[%s11442_s25 + $0x2198] sm:$0xff]  ;;  %1676 = vst [vmem:[%s11438_s30 + $0x1aa0] sm:$0xff] %v1675_v21  ;;  %v1681_v24 = vld [vmem:[%s11442_s25 + $0x21c0] sm:$0xff] }
 0x129   : >> { %1678 = vst [vmem:[%s11438_s30 + $0x1ac0] sm:$0xff] %v1677_v22  ;;  %1680 = vst [vmem:[%s11438_s30 + $0x1ae0] sm:$0xff] %v1679_v23  ;;  %v1683_v25 = vld [vmem:[%s11442_s25 + $0x21e8] sm:$0xff]  ;;  %v1685_v26 = vld [vmem:[%s11442_s25 + $0x2210] sm:$0xff] }
 0x12a   : >> { %1682 = vst [vmem:[%s11438_s30 + $0x1b00] sm:$0xff] %v1681_v24  ;;  %1684 = vst [vmem:[%s11438_s30 + $0x1b20] sm:$0xff] %v1683_v25  ;;  %v1687_v27 = vld [vmem:[%s11442_s25 + $0x2238] sm:$0xff]  ;;  %v1689_v28 = vld [vmem:[%s11442_s25 + $0x2260] sm:$0xff] }
 0x12b   : >> { %1686 = vst [vmem:[%s11438_s30 + $0x1b40] sm:$0xff] %v1685_v26  ;;  %v1691_v29 = vld [vmem:[%s11442_s25 + $0x2288] sm:$0xff]  ;;  %1688 = vst [vmem:[%s11438_s30 + $0x1b60] sm:$0xff] %v1687_v27  ;;  %v1693_v30 = vld [vmem:[%s11442_s25 + $0x22b0] sm:$0xff] }
 0x12c   : >> { %1690 = vst [vmem:[%s11438_s30 + $0x1b80] sm:$0xff] %v1689_v28  ;;  %1692 = vst [vmem:[%s11438_s30 + $0x1ba0] sm:$0xff] %v1691_v29  ;;  %v1695_v31 = vld [vmem:[%s11442_s25 + $0x22d8] sm:$0xff]  ;;  %v1697_v32 = vld [vmem:[%s11442_s25 + $0x2300] sm:$0xff] }
 0x12d   : >> { %1694 = vst [vmem:[%s11438_s30 + $0x1bc0] sm:$0xff] %v1693_v30  ;;  %1696 = vst [vmem:[%s11438_s30 + $0x1be0] sm:$0xff] %v1695_v31  ;;  %v1699_v33 = vld [vmem:[%s11442_s25 + $0x2328] sm:$0xff]  ;;  %v1701_v34 = vld [vmem:[%s11442_s25 + $0x2350] sm:$0xff] }
 0x12e   : >> { %1698 = vst [vmem:[%s11438_s30 + $0x1c00] sm:$0xff] %v1697_v32  ;;  %v1703_v35 = vld [vmem:[%s11442_s25 + $0x2378] sm:$0xff]  ;;  %1700 = vst [vmem:[%s11438_s30 + $0x1c20] sm:$0xff] %v1699_v33  ;;  %v1705_v36 = vld [vmem:[%s11442_s25 + $0x23a0] sm:$0xff] }
 0x12f   : >> { %1702 = vst [vmem:[%s11438_s30 + $0x1c40] sm:$0xff] %v1701_v34  ;;  %1704 = vst [vmem:[%s11438_s30 + $0x1c60] sm:$0xff] %v1703_v35  ;;  %v1707_v37 = vld [vmem:[%s11442_s25 + $0x23c8] sm:$0xff]  ;;  %v1709_v38 = vld [vmem:[%s11442_s25 + $0x23f0] sm:$0xff] }
 0x130   : >> { %1706 = vst [vmem:[%s11438_s30 + $0x1c80] sm:$0xff] %v1705_v36  ;;  %1708 = vst [vmem:[%s11438_s30 + $0x1ca0] sm:$0xff] %v1707_v37  ;;  %v1711_v39 = vld [vmem:[%s11442_s25 + $0x2418] sm:$0xff]  ;;  %v1713_v40 = vld [vmem:[%s11442_s25 + $0x2440] sm:$0xff] }
 0x131   : >> { %1710 = vst [vmem:[%s11438_s30 + $0x1cc0] sm:$0xff] %v1709_v38  ;;  %v1715_v41 = vld [vmem:[%s11442_s25 + $0x2468] sm:$0xff]  ;;  %1712 = vst [vmem:[%s11438_s30 + $0x1ce0] sm:$0xff] %v1711_v39  ;;  %v1717_v42 = vld [vmem:[%s11442_s25 + $0x2490] sm:$0xff] }
 0x132   : >> { %1714 = vst [vmem:[%s11438_s30 + $0x1d00] sm:$0xff] %v1713_v40  ;;  %1716 = vst [vmem:[%s11438_s30 + $0x1d20] sm:$0xff] %v1715_v41  ;;  %v1719_v43 = vld [vmem:[%s11442_s25 + $0x24b8] sm:$0xff]  ;;  %v1721_v44 = vld [vmem:[%s11442_s25 + $0x24e0] sm:$0xff] }
 0x133   : >> { %1718 = vst [vmem:[%s11438_s30 + $0x1d40] sm:$0xff] %v1717_v42  ;;  %1720 = vst [vmem:[%s11438_s30 + $0x1d60] sm:$0xff] %v1719_v43  ;;  %v1723_v45 = vld [vmem:[%s11442_s25 + $0x2508] sm:$0xff]  ;;  %v1725_v46 = vld [vmem:[%s11442_s25 + $0x2530] sm:$0xff] }
 0x134   : >> { %1722 = vst [vmem:[%s11438_s30 + $0x1d80] sm:$0xff] %v1721_v44  ;;  %v1727_v47 = vld [vmem:[%s11442_s25 + $0x2558] sm:$0xff]  ;;  %1724 = vst [vmem:[%s11438_s30 + $0x1da0] sm:$0xff] %v1723_v45  ;;  %v1729_v48 = vld [vmem:[%s11442_s25 + $0x2580] sm:$0xff] }
 0x135   : >> { %1726 = vst [vmem:[%s11438_s30 + $0x1dc0] sm:$0xff] %v1725_v46  ;;  %1728 = vst [vmem:[%s11438_s30 + $0x1de0] sm:$0xff] %v1727_v47  ;;  %v1731_v49 = vld [vmem:[%s11442_s25 + $0x25a8] sm:$0xff]  ;;  %v1733_v50 = vld [vmem:[%s11442_s25 + $0x25d0] sm:$0xff] }
 0x136   : >> { %1730 = vst [vmem:[%s11438_s30 + $0x1e00] sm:$0xff] %v1729_v48  ;;  %1732 = vst [vmem:[%s11438_s30 + $0x1e20] sm:$0xff] %v1731_v49  ;;  %v1735_v51 = vld [vmem:[%s11442_s25 + $0x25f8] sm:$0xff]  ;;  %v1737_v52 = vld [vmem:[%s11442_s25 + $0x2620] sm:$0xff] }
 0x137   : >> { %1734 = vst [vmem:[%s11438_s30 + $0x1e40] sm:$0xff] %v1733_v50  ;;  %v1739_v53 = vld [vmem:[%s11442_s25 + $0x2648] sm:$0xff]  ;;  %1736 = vst [vmem:[%s11438_s30 + $0x1e60] sm:$0xff] %v1735_v51  ;;  %v1741_v54 = vld [vmem:[%s11442_s25 + $0x2670] sm:$0xff]  ;;  %1245 = sbr.rel (!%p1242_p3) target bundleno = 189 (0xbd), region = 224 }
 0x138   : >> { %1738 = vst [vmem:[%s11438_s30 + $0x1e80] sm:$0xff] %v1737_v52  ;;  %1740 = vst [vmem:[%s11438_s30 + $0x1ea0] sm:$0xff] %v1739_v53  ;;  %v1743_v55 = vld [vmem:[%s11442_s25 + $0x2698] sm:$0xff]  ;;  %v1745_v56 = vld [vmem:[%s11442_s25 + $0x26c0] sm:$0xff] }
 0x139   : >> { %1742 = vst [vmem:[%s11438_s30 + $0x1ec0] sm:$0xff] %v1741_v54  ;;  %1744 = vst [vmem:[%s11438_s30 + $0x1ee0] sm:$0xff] %v1743_v55  ;;  %v1747_v57 = vld [vmem:[%s11442_s25 + $0x26e8] sm:$0xff]  ;;  %v1749_v58 = vld [vmem:[%s11442_s25 + $0x2710] sm:$0xff] }
 0x13a   : >> { %1746 = vst [vmem:[%s11438_s30 + $0x1f00] sm:$0xff] %v1745_v56  ;;  %v1751_v59 = vld [vmem:[%s11442_s25 + $0x2738] sm:$0xff]  ;;  %1748 = vst [vmem:[%s11438_s30 + $0x1f20] sm:$0xff] %v1747_v57  ;;  %v1753_v60 = vld [vmem:[%s11442_s25 + $0x2760] sm:$0xff] }
 0x13b   : >> { %1750 = vst [vmem:[%s11438_s30 + $0x1f40] sm:$0xff] %v1749_v58  ;;  %1752 = vst [vmem:[%s11438_s30 + $0x1f60] sm:$0xff] %v1751_v59  ;;  %v1755_v61 = vld [vmem:[%s11442_s25 + $0x2788] sm:$0xff]  ;;  %v1757_v62 = vld [vmem:[%s11442_s25 + $0x27b0] sm:$0xff] }
 0x13c   : >> { %1754 = vst [vmem:[%s11438_s30 + $0x1f80] sm:$0xff] %v1753_v60  ;;  %1756 = vst [vmem:[%s11438_s30 + $0x1fa0] sm:$0xff] %v1755_v61  ;;  %v1759_v63 = vld [vmem:[%s11442_s25 + $0x27d8] sm:$0xff]  ;;  %s17740_s25 = smov %s12252_s6 }
 0x13d   : >> { %1758 = vst [vmem:[%s11438_s30 + $0x1fc0] sm:$0xff] %v1757_v62  ;;  %1760 = vst [vmem:[%s11438_s30 + $0x1fe0] sm:$0xff] %v1759_v63  ;;  %s17739_s30 = smov %s12255_s7  ;;  %v1777_v0 = vld [vmem:[%s12182_s10] sm:%s12745_s29] (%p1242_p3) }
 0x13e   : > { %v1779_v1 = vld [vmem:[%s12182_s10 + $0x28] sm:%s12745_s29]  ;;  %1778 = vst [vmem:[%s12185_s5] sm:%s12745_s29] %v1777_v0 }
 0x13f   : > { %1780 = vst [vmem:[%s12185_s5 + $0x20] sm:%s12745_s29] %v1779_v1  ;;  %v1781_v2 = vld [vmem:[%s12182_s10 + $0x50] sm:%s12745_s29] }
 0x140   : > { %v1783_v3 = vld [vmem:[%s12182_s10 + $0x78] sm:%s12745_s29]  ;;  %1782 = vst [vmem:[%s12185_s5 + $0x40] sm:%s12745_s29] %v1781_v2 }
 0x141   : > { %1784 = vst [vmem:[%s12185_s5 + $0x60] sm:%s12745_s29] %v1783_v3  ;;  %v1785_v4 = vld [vmem:[%s12182_s10 + $0xa0] sm:%s12745_s29] }
 0x142   : > { %v1787_v5 = vld [vmem:[%s12182_s10 + $0xc8] sm:%s12745_s29]  ;;  %1786 = vst [vmem:[%s12185_s5 + $0x80] sm:%s12745_s29] %v1785_v4 }
 0x143   : > { %1788 = vst [vmem:[%s12185_s5 + $0xa0] sm:%s12745_s29] %v1787_v5  ;;  %v1789_v6 = vld [vmem:[%s12182_s10 + $0xf0] sm:%s12745_s29] }
 0x144   : > { %v1791_v7 = vld [vmem:[%s12182_s10 + $0x118] sm:%s12745_s29]  ;;  %1790 = vst [vmem:[%s12185_s5 + $0xc0] sm:%s12745_s29] %v1789_v6 }
 0x145   : > { %1792 = vst [vmem:[%s12185_s5 + $0xe0] sm:%s12745_s29] %v1791_v7  ;;  %v1793_v8 = vld [vmem:[%s12182_s10 + $0x140] sm:%s12745_s29] }
 0x146   : > { %v1795_v9 = vld [vmem:[%s12182_s10 + $0x168] sm:%s12745_s29]  ;;  %1794 = vst [vmem:[%s12185_s5 + $0x100] sm:%s12745_s29] %v1793_v8 }
 0x147   : > { %1796 = vst [vmem:[%s12185_s5 + $0x120] sm:%s12745_s29] %v1795_v9  ;;  %v1797_v10 = vld [vmem:[%s12182_s10 + $0x190] sm:%s12745_s29] }
 0x148   : > { %v1799_v11 = vld [vmem:[%s12182_s10 + $0x1b8] sm:%s12745_s29]  ;;  %1798 = vst [vmem:[%s12185_s5 + $0x140] sm:%s12745_s29] %v1797_v10 }
 0x149   : > { %1800 = vst [vmem:[%s12185_s5 + $0x160] sm:%s12745_s29] %v1799_v11  ;;  %v1801_v12 = vld [vmem:[%s12182_s10 + $0x1e0] sm:%s12745_s29] }
 0x14a   : > { %v1803_v13 = vld [vmem:[%s12182_s10 + $0x208] sm:%s12745_s29]  ;;  %1802 = vst [vmem:[%s12185_s5 + $0x180] sm:%s12745_s29] %v1801_v12 }
 0x14b   : > { %1804 = vst [vmem:[%s12185_s5 + $0x1a0] sm:%s12745_s29] %v1803_v13  ;;  %v1805_v14 = vld [vmem:[%s12182_s10 + $0x230] sm:%s12745_s29] }
 0x14c   : > { %v1807_v15 = vld [vmem:[%s12182_s10 + $0x258] sm:%s12745_s29]  ;;  %1806 = vst [vmem:[%s12185_s5 + $0x1c0] sm:%s12745_s29] %v1805_v14 }
 0x14d   : > { %1808 = vst [vmem:[%s12185_s5 + $0x1e0] sm:%s12745_s29] %v1807_v15  ;;  %v1809_v16 = vld [vmem:[%s12182_s10 + $0x280] sm:%s12745_s29] }
 0x14e   : > { %v1811_v17 = vld [vmem:[%s12182_s10 + $0x2a8] sm:%s12745_s29]  ;;  %1810 = vst [vmem:[%s12185_s5 + $0x200] sm:%s12745_s29] %v1809_v16 }
 0x14f   : > { %1812 = vst [vmem:[%s12185_s5 + $0x220] sm:%s12745_s29] %v1811_v17  ;;  %v1813_v18 = vld [vmem:[%s12182_s10 + $0x2d0] sm:%s12745_s29] }
 0x150   : > { %v1815_v19 = vld [vmem:[%s12182_s10 + $0x2f8] sm:%s12745_s29]  ;;  %1814 = vst [vmem:[%s12185_s5 + $0x240] sm:%s12745_s29] %v1813_v18 }
 0x151   : > { %1816 = vst [vmem:[%s12185_s5 + $0x260] sm:%s12745_s29] %v1815_v19  ;;  %v1817_v20 = vld [vmem:[%s12182_s10 + $0x320] sm:%s12745_s29] }
 0x152   : > { %v1819_v21 = vld [vmem:[%s12182_s10 + $0x348] sm:%s12745_s29]  ;;  %1818 = vst [vmem:[%s12185_s5 + $0x280] sm:%s12745_s29] %v1817_v20 }
 0x153   : > { %1820 = vst [vmem:[%s12185_s5 + $0x2a0] sm:%s12745_s29] %v1819_v21  ;;  %v1821_v22 = vld [vmem:[%s12182_s10 + $0x370] sm:%s12745_s29] }
 0x154   : > { %v1823_v23 = vld [vmem:[%s12182_s10 + $0x398] sm:%s12745_s29]  ;;  %1822 = vst [vmem:[%s12185_s5 + $0x2c0] sm:%s12745_s29] %v1821_v22 }
 0x155   : > { %1824 = vst [vmem:[%s12185_s5 + $0x2e0] sm:%s12745_s29] %v1823_v23  ;;  %v1825_v24 = vld [vmem:[%s12182_s10 + $0x3c0] sm:%s12745_s29] }
 0x156   : > { %v1827_v25 = vld [vmem:[%s12182_s10 + $0x3e8] sm:%s12745_s29]  ;;  %1826 = vst [vmem:[%s12185_s5 + $0x300] sm:%s12745_s29] %v1825_v24 }
 0x157   : > { %1828 = vst [vmem:[%s12185_s5 + $0x320] sm:%s12745_s29] %v1827_v25  ;;  %v1829_v26 = vld [vmem:[%s12182_s10 + $0x410] sm:%s12745_s29] }
 0x158   : > { %v1831_v27 = vld [vmem:[%s12182_s10 + $0x438] sm:%s12745_s29]  ;;  %1830 = vst [vmem:[%s12185_s5 + $0x340] sm:%s12745_s29] %v1829_v26 }
 0x159   : > { %1832 = vst [vmem:[%s12185_s5 + $0x360] sm:%s12745_s29] %v1831_v27  ;;  %v1833_v28 = vld [vmem:[%s12182_s10 + $0x460] sm:%s12745_s29] }
 0x15a   : > { %v1835_v29 = vld [vmem:[%s12182_s10 + $0x488] sm:%s12745_s29]  ;;  %1834 = vst [vmem:[%s12185_s5 + $0x380] sm:%s12745_s29] %v1833_v28 }
 0x15b   : > { %1836 = vst [vmem:[%s12185_s5 + $0x3a0] sm:%s12745_s29] %v1835_v29  ;;  %v1837_v30 = vld [vmem:[%s12182_s10 + $0x4b0] sm:%s12745_s29] }
 0x15c   : > { %v1839_v31 = vld [vmem:[%s12182_s10 + $0x4d8] sm:%s12745_s29]  ;;  %1838 = vst [vmem:[%s12185_s5 + $0x3c0] sm:%s12745_s29] %v1837_v30 }
 0x15d   : > { %1840 = vst [vmem:[%s12185_s5 + $0x3e0] sm:%s12745_s29] %v1839_v31  ;;  %v1841_v32 = vld [vmem:[%s12182_s10 + $0x500] sm:%s12745_s29] }
 0x15e   : > { %v1843_v33 = vld [vmem:[%s12182_s10 + $0x528] sm:%s12745_s29]  ;;  %1842 = vst [vmem:[%s12185_s5 + $0x400] sm:%s12745_s29] %v1841_v32 }
 0x15f   : > { %1844 = vst [vmem:[%s12185_s5 + $0x420] sm:%s12745_s29] %v1843_v33  ;;  %v1845_v34 = vld [vmem:[%s12182_s10 + $0x550] sm:%s12745_s29] }
 0x160   : > { %v1847_v35 = vld [vmem:[%s12182_s10 + $0x578] sm:%s12745_s29]  ;;  %1846 = vst [vmem:[%s12185_s5 + $0x440] sm:%s12745_s29] %v1845_v34 }
 0x161   : > { %1848 = vst [vmem:[%s12185_s5 + $0x460] sm:%s12745_s29] %v1847_v35  ;;  %v1849_v36 = vld [vmem:[%s12182_s10 + $0x5a0] sm:%s12745_s29] }
 0x162   : > { %v1851_v37 = vld [vmem:[%s12182_s10 + $0x5c8] sm:%s12745_s29]  ;;  %1850 = vst [vmem:[%s12185_s5 + $0x480] sm:%s12745_s29] %v1849_v36 }
 0x163   : > { %1852 = vst [vmem:[%s12185_s5 + $0x4a0] sm:%s12745_s29] %v1851_v37  ;;  %v1853_v38 = vld [vmem:[%s12182_s10 + $0x5f0] sm:%s12745_s29] }
 0x164   : > { %v1855_v39 = vld [vmem:[%s12182_s10 + $0x618] sm:%s12745_s29]  ;;  %1854 = vst [vmem:[%s12185_s5 + $0x4c0] sm:%s12745_s29] %v1853_v38 }
 0x165   : > { %1856 = vst [vmem:[%s12185_s5 + $0x4e0] sm:%s12745_s29] %v1855_v39  ;;  %v1857_v40 = vld [vmem:[%s12182_s10 + $0x640] sm:%s12745_s29] }
 0x166   : > { %v1859_v41 = vld [vmem:[%s12182_s10 + $0x668] sm:%s12745_s29]  ;;  %1858 = vst [vmem:[%s12185_s5 + $0x500] sm:%s12745_s29] %v1857_v40 }
 0x167   : > { %1860 = vst [vmem:[%s12185_s5 + $0x520] sm:%s12745_s29] %v1859_v41  ;;  %v1861_v42 = vld [vmem:[%s12182_s10 + $0x690] sm:%s12745_s29] }
 0x168   : > { %v1863_v43 = vld [vmem:[%s12182_s10 + $0x6b8] sm:%s12745_s29]  ;;  %1862 = vst [vmem:[%s12185_s5 + $0x540] sm:%s12745_s29] %v1861_v42 }
 0x169   : > { %1864 = vst [vmem:[%s12185_s5 + $0x560] sm:%s12745_s29] %v1863_v43  ;;  %v1865_v44 = vld [vmem:[%s12182_s10 + $0x6e0] sm:%s12745_s29] }
 0x16a   : > { %v1867_v45 = vld [vmem:[%s12182_s10 + $0x708] sm:%s12745_s29]  ;;  %1866 = vst [vmem:[%s12185_s5 + $0x580] sm:%s12745_s29] %v1865_v44 }
 0x16b   : > { %1868 = vst [vmem:[%s12185_s5 + $0x5a0] sm:%s12745_s29] %v1867_v45  ;;  %v1869_v46 = vld [vmem:[%s12182_s10 + $0x730] sm:%s12745_s29] }
 0x16c   : > { %v1871_v47 = vld [vmem:[%s12182_s10 + $0x758] sm:%s12745_s29]  ;;  %1870 = vst [vmem:[%s12185_s5 + $0x5c0] sm:%s12745_s29] %v1869_v46 }
 0x16d   : > { %1872 = vst [vmem:[%s12185_s5 + $0x5e0] sm:%s12745_s29] %v1871_v47  ;;  %v1873_v48 = vld [vmem:[%s12182_s10 + $0x780] sm:%s12745_s29] }
 0x16e   : > { %v1875_v49 = vld [vmem:[%s12182_s10 + $0x7a8] sm:%s12745_s29]  ;;  %1874 = vst [vmem:[%s12185_s5 + $0x600] sm:%s12745_s29] %v1873_v48 }
 0x16f   : > { %1876 = vst [vmem:[%s12185_s5 + $0x620] sm:%s12745_s29] %v1875_v49  ;;  %v1877_v50 = vld [vmem:[%s12182_s10 + $0x7d0] sm:%s12745_s29] }
 0x170   : > { %v1879_v51 = vld [vmem:[%s12182_s10 + $0x7f8] sm:%s12745_s29]  ;;  %1878 = vst [vmem:[%s12185_s5 + $0x640] sm:%s12745_s29] %v1877_v50 }
 0x171   : > { %1880 = vst [vmem:[%s12185_s5 + $0x660] sm:%s12745_s29] %v1879_v51  ;;  %v1881_v52 = vld [vmem:[%s12182_s10 + $0x820] sm:%s12745_s29] }
 0x172   : > { %v1883_v53 = vld [vmem:[%s12182_s10 + $0x848] sm:%s12745_s29]  ;;  %1882 = vst [vmem:[%s12185_s5 + $0x680] sm:%s12745_s29] %v1881_v52 }
 0x173   : > { %1884 = vst [vmem:[%s12185_s5 + $0x6a0] sm:%s12745_s29] %v1883_v53  ;;  %v1885_v54 = vld [vmem:[%s12182_s10 + $0x870] sm:%s12745_s29] }
 0x174   : > { %v1887_v55 = vld [vmem:[%s12182_s10 + $0x898] sm:%s12745_s29]  ;;  %1886 = vst [vmem:[%s12185_s5 + $0x6c0] sm:%s12745_s29] %v1885_v54 }
 0x175   : > { %1888 = vst [vmem:[%s12185_s5 + $0x6e0] sm:%s12745_s29] %v1887_v55  ;;  %v1889_v56 = vld [vmem:[%s12182_s10 + $0x8c0] sm:%s12745_s29] }
 0x176   : > { %v1891_v57 = vld [vmem:[%s12182_s10 + $0x8e8] sm:%s12745_s29]  ;;  %1890 = vst [vmem:[%s12185_s5 + $0x700] sm:%s12745_s29] %v1889_v56 }
 0x177   : > { %1892 = vst [vmem:[%s12185_s5 + $0x720] sm:%s12745_s29] %v1891_v57  ;;  %v1893_v58 = vld [vmem:[%s12182_s10 + $0x910] sm:%s12745_s29] }
 0x178   : > { %v1895_v59 = vld [vmem:[%s12182_s10 + $0x938] sm:%s12745_s29]  ;;  %1894 = vst [vmem:[%s12185_s5 + $0x740] sm:%s12745_s29] %v1893_v58 }
 0x179   : > { %1896 = vst [vmem:[%s12185_s5 + $0x760] sm:%s12745_s29] %v1895_v59  ;;  %v1897_v60 = vld [vmem:[%s12182_s10 + $0x960] sm:%s12745_s29] }
 0x17a   : > { %v1899_v61 = vld [vmem:[%s12182_s10 + $0x988] sm:%s12745_s29]  ;;  %1898 = vst [vmem:[%s12185_s5 + $0x780] sm:%s12745_s29] %v1897_v60 }
 0x17b   : > { %1900 = vst [vmem:[%s12185_s5 + $0x7a0] sm:%s12745_s29] %v1899_v61  ;;  %v1901_v62 = vld [vmem:[%s12182_s10 + $0x9b0] sm:%s12745_s29] }
 0x17c   : > { %v1903_v63 = vld [vmem:[%s12182_s10 + $0x9d8] sm:%s12745_s29]  ;;  %1902 = vst [vmem:[%s12185_s5 + $0x7c0] sm:%s12745_s29] %v1901_v62 }
 0x17d   : > { %1904 = vst [vmem:[%s12185_s5 + $0x7e0] sm:%s12745_s29] %v1903_v63  ;;  %v1905_v0 = vld [vmem:[%s12182_s10 + $0xa00] sm:%s12745_s29] }
 0x17e   : > { %v1907_v1 = vld [vmem:[%s12182_s10 + $0xa28] sm:%s12745_s29]  ;;  %1906 = vst [vmem:[%s12185_s5 + $0x800] sm:%s12745_s29] %v1905_v0 }
 0x17f   : > { %1908 = vst [vmem:[%s12185_s5 + $0x820] sm:%s12745_s29] %v1907_v1  ;;  %v1909_v2 = vld [vmem:[%s12182_s10 + $0xa50] sm:%s12745_s29] }
 0x180   : > { %v1911_v3 = vld [vmem:[%s12182_s10 + $0xa78] sm:%s12745_s29]  ;;  %1910 = vst [vmem:[%s12185_s5 + $0x840] sm:%s12745_s29] %v1909_v2 }
 0x181   : > { %1912 = vst [vmem:[%s12185_s5 + $0x860] sm:%s12745_s29] %v1911_v3  ;;  %v1913_v4 = vld [vmem:[%s12182_s10 + $0xaa0] sm:%s12745_s29] }
 0x182   : > { %v1915_v5 = vld [vmem:[%s12182_s10 + $0xac8] sm:%s12745_s29]  ;;  %1914 = vst [vmem:[%s12185_s5 + $0x880] sm:%s12745_s29] %v1913_v4 }
 0x183   : > { %1916 = vst [vmem:[%s12185_s5 + $0x8a0] sm:%s12745_s29] %v1915_v5  ;;  %v1917_v6 = vld [vmem:[%s12182_s10 + $0xaf0] sm:%s12745_s29] }
 0x184   : > { %v1919_v7 = vld [vmem:[%s12182_s10 + $0xb18] sm:%s12745_s29]  ;;  %1918 = vst [vmem:[%s12185_s5 + $0x8c0] sm:%s12745_s29] %v1917_v6 }
 0x185   : > { %1920 = vst [vmem:[%s12185_s5 + $0x8e0] sm:%s12745_s29] %v1919_v7  ;;  %v1921_v8 = vld [vmem:[%s12182_s10 + $0xb40] sm:%s12745_s29] }
 0x186   : > { %v1923_v9 = vld [vmem:[%s12182_s10 + $0xb68] sm:%s12745_s29]  ;;  %1922 = vst [vmem:[%s12185_s5 + $0x900] sm:%s12745_s29] %v1921_v8 }
 0x187   : > { %1924 = vst [vmem:[%s12185_s5 + $0x920] sm:%s12745_s29] %v1923_v9  ;;  %v1925_v10 = vld [vmem:[%s12182_s10 + $0xb90] sm:%s12745_s29] }
 0x188   : > { %v1927_v11 = vld [vmem:[%s12182_s10 + $0xbb8] sm:%s12745_s29]  ;;  %1926 = vst [vmem:[%s12185_s5 + $0x940] sm:%s12745_s29] %v1925_v10 }
 0x189   : > { %1928 = vst [vmem:[%s12185_s5 + $0x960] sm:%s12745_s29] %v1927_v11  ;;  %v1929_v12 = vld [vmem:[%s12182_s10 + $0xbe0] sm:%s12745_s29] }
 0x18a   : > { %v1931_v13 = vld [vmem:[%s12182_s10 + $0xc08] sm:%s12745_s29]  ;;  %1930 = vst [vmem:[%s12185_s5 + $0x980] sm:%s12745_s29] %v1929_v12 }
 0x18b   : > { %1932 = vst [vmem:[%s12185_s5 + $0x9a0] sm:%s12745_s29] %v1931_v13  ;;  %v1933_v14 = vld [vmem:[%s12182_s10 + $0xc30] sm:%s12745_s29] }
 0x18c   : > { %v1935_v15 = vld [vmem:[%s12182_s10 + $0xc58] sm:%s12745_s29]  ;;  %1934 = vst [vmem:[%s12185_s5 + $0x9c0] sm:%s12745_s29] %v1933_v14 }
 0x18d   : > { %1936 = vst [vmem:[%s12185_s5 + $0x9e0] sm:%s12745_s29] %v1935_v15  ;;  %v1937_v16 = vld [vmem:[%s12182_s10 + $0xc80] sm:%s12745_s29] }
 0x18e   : > { %v1939_v17 = vld [vmem:[%s12182_s10 + $0xca8] sm:%s12745_s29]  ;;  %1938 = vst [vmem:[%s12185_s5 + $0xa00] sm:%s12745_s29] %v1937_v16 }
 0x18f   : > { %1940 = vst [vmem:[%s12185_s5 + $0xa20] sm:%s12745_s29] %v1939_v17  ;;  %v1941_v18 = vld [vmem:[%s12182_s10 + $0xcd0] sm:%s12745_s29] }
 0x190   : > { %v1943_v19 = vld [vmem:[%s12182_s10 + $0xcf8] sm:%s12745_s29]  ;;  %1942 = vst [vmem:[%s12185_s5 + $0xa40] sm:%s12745_s29] %v1941_v18 }
 0x191   : > { %1944 = vst [vmem:[%s12185_s5 + $0xa60] sm:%s12745_s29] %v1943_v19  ;;  %v1945_v20 = vld [vmem:[%s12182_s10 + $0xd20] sm:%s12745_s29] }
 0x192   : > { %v1947_v21 = vld [vmem:[%s12182_s10 + $0xd48] sm:%s12745_s29]  ;;  %1946 = vst [vmem:[%s12185_s5 + $0xa80] sm:%s12745_s29] %v1945_v20 }
 0x193   : > { %1948 = vst [vmem:[%s12185_s5 + $0xaa0] sm:%s12745_s29] %v1947_v21  ;;  %v1949_v22 = vld [vmem:[%s12182_s10 + $0xd70] sm:%s12745_s29] }
 0x194   : > { %v1951_v23 = vld [vmem:[%s12182_s10 + $0xd98] sm:%s12745_s29]  ;;  %1950 = vst [vmem:[%s12185_s5 + $0xac0] sm:%s12745_s29] %v1949_v22 }
 0x195   : > { %1952 = vst [vmem:[%s12185_s5 + $0xae0] sm:%s12745_s29] %v1951_v23  ;;  %v1953_v24 = vld [vmem:[%s12182_s10 + $0xdc0] sm:%s12745_s29] }
 0x196   : > { %v1955_v25 = vld [vmem:[%s12182_s10 + $0xde8] sm:%s12745_s29]  ;;  %1954 = vst [vmem:[%s12185_s5 + $0xb00] sm:%s12745_s29] %v1953_v24 }
 0x197   : > { %1956 = vst [vmem:[%s12185_s5 + $0xb20] sm:%s12745_s29] %v1955_v25  ;;  %v1957_v26 = vld [vmem:[%s12182_s10 + $0xe10] sm:%s12745_s29] }
 0x198   : > { %v1959_v27 = vld [vmem:[%s12182_s10 + $0xe38] sm:%s12745_s29]  ;;  %1958 = vst [vmem:[%s12185_s5 + $0xb40] sm:%s12745_s29] %v1957_v26 }
 0x199   : > { %1960 = vst [vmem:[%s12185_s5 + $0xb60] sm:%s12745_s29] %v1959_v27  ;;  %v1961_v28 = vld [vmem:[%s12182_s10 + $0xe60] sm:%s12745_s29] }
 0x19a   : > { %v1963_v29 = vld [vmem:[%s12182_s10 + $0xe88] sm:%s12745_s29]  ;;  %1962 = vst [vmem:[%s12185_s5 + $0xb80] sm:%s12745_s29] %v1961_v28 }
 0x19b   : > { %1964 = vst [vmem:[%s12185_s5 + $0xba0] sm:%s12745_s29] %v1963_v29  ;;  %v1965_v30 = vld [vmem:[%s12182_s10 + $0xeb0] sm:%s12745_s29] }
 0x19c   : > { %v1967_v31 = vld [vmem:[%s12182_s10 + $0xed8] sm:%s12745_s29]  ;;  %1966 = vst [vmem:[%s12185_s5 + $0xbc0] sm:%s12745_s29] %v1965_v30 }
 0x19d   : > { %1968 = vst [vmem:[%s12185_s5 + $0xbe0] sm:%s12745_s29] %v1967_v31  ;;  %v1969_v32 = vld [vmem:[%s12182_s10 + $0xf00] sm:%s12745_s29] }
 0x19e   : > { %v1971_v33 = vld [vmem:[%s12182_s10 + $0xf28] sm:%s12745_s29]  ;;  %1970 = vst [vmem:[%s12185_s5 + $0xc00] sm:%s12745_s29] %v1969_v32 }
 0x19f   : > { %1972 = vst [vmem:[%s12185_s5 + $0xc20] sm:%s12745_s29] %v1971_v33  ;;  %v1973_v34 = vld [vmem:[%s12182_s10 + $0xf50] sm:%s12745_s29] }
 0x1a0   : > { %v1975_v35 = vld [vmem:[%s12182_s10 + $0xf78] sm:%s12745_s29]  ;;  %1974 = vst [vmem:[%s12185_s5 + $0xc40] sm:%s12745_s29] %v1973_v34 }
 0x1a1   : > { %1976 = vst [vmem:[%s12185_s5 + $0xc60] sm:%s12745_s29] %v1975_v35  ;;  %v1977_v36 = vld [vmem:[%s12182_s10 + $0xfa0] sm:%s12745_s29] }
 0x1a2   : > { %v1979_v37 = vld [vmem:[%s12182_s10 + $0xfc8] sm:%s12745_s29]  ;;  %1978 = vst [vmem:[%s12185_s5 + $0xc80] sm:%s12745_s29] %v1977_v36 }
 0x1a3   : > { %1980 = vst [vmem:[%s12185_s5 + $0xca0] sm:%s12745_s29] %v1979_v37  ;;  %v1981_v38 = vld [vmem:[%s12182_s10 + $0xff0] sm:%s12745_s29] }
 0x1a4   : > { %v1983_v39 = vld [vmem:[%s12182_s10 + $0x1018] sm:%s12745_s29]  ;;  %1982 = vst [vmem:[%s12185_s5 + $0xcc0] sm:%s12745_s29] %v1981_v38 }
 0x1a5   : > { %1984 = vst [vmem:[%s12185_s5 + $0xce0] sm:%s12745_s29] %v1983_v39  ;;  %v1985_v40 = vld [vmem:[%s12182_s10 + $0x1040] sm:%s12745_s29] }
 0x1a6   : > { %v1987_v41 = vld [vmem:[%s12182_s10 + $0x1068] sm:%s12745_s29]  ;;  %1986 = vst [vmem:[%s12185_s5 + $0xd00] sm:%s12745_s29] %v1985_v40 }
 0x1a7   : > { %1988 = vst [vmem:[%s12185_s5 + $0xd20] sm:%s12745_s29] %v1987_v41  ;;  %v1989_v42 = vld [vmem:[%s12182_s10 + $0x1090] sm:%s12745_s29] }
 0x1a8   : > { %v1991_v43 = vld [vmem:[%s12182_s10 + $0x10b8] sm:%s12745_s29]  ;;  %1990 = vst [vmem:[%s12185_s5 + $0xd40] sm:%s12745_s29] %v1989_v42 }
 0x1a9   : > { %1992 = vst [vmem:[%s12185_s5 + $0xd60] sm:%s12745_s29] %v1991_v43  ;;  %v1993_v44 = vld [vmem:[%s12182_s10 + $0x10e0] sm:%s12745_s29] }
 0x1aa   : > { %v1995_v45 = vld [vmem:[%s12182_s10 + $0x1108] sm:%s12745_s29]  ;;  %1994 = vst [vmem:[%s12185_s5 + $0xd80] sm:%s12745_s29] %v1993_v44 }
 0x1ab   : > { %1996 = vst [vmem:[%s12185_s5 + $0xda0] sm:%s12745_s29] %v1995_v45  ;;  %v1997_v46 = vld [vmem:[%s12182_s10 + $0x1130] sm:%s12745_s29] }
 0x1ac   : > { %v1999_v47 = vld [vmem:[%s12182_s10 + $0x1158] sm:%s12745_s29]  ;;  %1998 = vst [vmem:[%s12185_s5 + $0xdc0] sm:%s12745_s29] %v1997_v46 }
 0x1ad   : > { %2000 = vst [vmem:[%s12185_s5 + $0xde0] sm:%s12745_s29] %v1999_v47  ;;  %v2001_v48 = vld [vmem:[%s12182_s10 + $0x1180] sm:%s12745_s29] }
 0x1ae   : > { %v2003_v49 = vld [vmem:[%s12182_s10 + $0x11a8] sm:%s12745_s29]  ;;  %2002 = vst [vmem:[%s12185_s5 + $0xe00] sm:%s12745_s29] %v2001_v48 }
 0x1af   : > { %2004 = vst [vmem:[%s12185_s5 + $0xe20] sm:%s12745_s29] %v2003_v49  ;;  %v2005_v50 = vld [vmem:[%s12182_s10 + $0x11d0] sm:%s12745_s29] }
 0x1b0   : > { %v2007_v51 = vld [vmem:[%s12182_s10 + $0x11f8] sm:%s12745_s29]  ;;  %2006 = vst [vmem:[%s12185_s5 + $0xe40] sm:%s12745_s29] %v2005_v50 }
 0x1b1   : > { %2008 = vst [vmem:[%s12185_s5 + $0xe60] sm:%s12745_s29] %v2007_v51  ;;  %v2009_v52 = vld [vmem:[%s12182_s10 + $0x1220] sm:%s12745_s29] }
 0x1b2   : > { %v2011_v53 = vld [vmem:[%s12182_s10 + $0x1248] sm:%s12745_s29]  ;;  %2010 = vst [vmem:[%s12185_s5 + $0xe80] sm:%s12745_s29] %v2009_v52 }
 0x1b3   : > { %2012 = vst [vmem:[%s12185_s5 + $0xea0] sm:%s12745_s29] %v2011_v53  ;;  %v2013_v54 = vld [vmem:[%s12182_s10 + $0x1270] sm:%s12745_s29] }
 0x1b4   : > { %v2015_v55 = vld [vmem:[%s12182_s10 + $0x1298] sm:%s12745_s29]  ;;  %2014 = vst [vmem:[%s12185_s5 + $0xec0] sm:%s12745_s29] %v2013_v54 }
 0x1b5   : > { %2016 = vst [vmem:[%s12185_s5 + $0xee0] sm:%s12745_s29] %v2015_v55  ;;  %v2017_v56 = vld [vmem:[%s12182_s10 + $0x12c0] sm:%s12745_s29] }
 0x1b6   : > { %v2019_v57 = vld [vmem:[%s12182_s10 + $0x12e8] sm:%s12745_s29]  ;;  %2018 = vst [vmem:[%s12185_s5 + $0xf00] sm:%s12745_s29] %v2017_v56 }
 0x1b7   : > { %2020 = vst [vmem:[%s12185_s5 + $0xf20] sm:%s12745_s29] %v2019_v57  ;;  %v2021_v58 = vld [vmem:[%s12182_s10 + $0x1310] sm:%s12745_s29] }
 0x1b8   : > { %v2023_v59 = vld [vmem:[%s12182_s10 + $0x1338] sm:%s12745_s29]  ;;  %2022 = vst [vmem:[%s12185_s5 + $0xf40] sm:%s12745_s29] %v2021_v58 }
 0x1b9   : > { %2024 = vst [vmem:[%s12185_s5 + $0xf60] sm:%s12745_s29] %v2023_v59  ;;  %v2025_v60 = vld [vmem:[%s12182_s10 + $0x1360] sm:%s12745_s29] }
 0x1ba   : > { %v2027_v61 = vld [vmem:[%s12182_s10 + $0x1388] sm:%s12745_s29]  ;;  %2026 = vst [vmem:[%s12185_s5 + $0xf80] sm:%s12745_s29] %v2025_v60 }
 0x1bb   : > { %2028 = vst [vmem:[%s12185_s5 + $0xfa0] sm:%s12745_s29] %v2027_v61  ;;  %v2029_v62 = vld [vmem:[%s12182_s10 + $0x13b0] sm:%s12745_s29] }
 0x1bc   : > { %v2031_v63 = vld [vmem:[%s12182_s10 + $0x13d8] sm:%s12745_s29]  ;;  %2030 = vst [vmem:[%s12185_s5 + $0xfc0] sm:%s12745_s29] %v2029_v62 }
 0x1bd   : > { %2032 = vst [vmem:[%s12185_s5 + $0xfe0] sm:%s12745_s29] %v2031_v63  ;;  %v2033_v0 = vld [vmem:[%s12182_s10 + $0x1400] sm:%s12745_s29] }
 0x1be   : > { %v2035_v1 = vld [vmem:[%s12182_s10 + $0x1428] sm:%s12745_s29]  ;;  %2034 = vst [vmem:[%s12185_s5 + $0x1000] sm:%s12745_s29] %v2033_v0 }
 0x1bf   : > { %2036 = vst [vmem:[%s12185_s5 + $0x1020] sm:%s12745_s29] %v2035_v1  ;;  %v2037_v2 = vld [vmem:[%s12182_s10 + $0x1450] sm:%s12745_s29] }
 0x1c0   : > { %v2039_v3 = vld [vmem:[%s12182_s10 + $0x1478] sm:%s12745_s29]  ;;  %2038 = vst [vmem:[%s12185_s5 + $0x1040] sm:%s12745_s29] %v2037_v2 }
 0x1c1   : > { %2040 = vst [vmem:[%s12185_s5 + $0x1060] sm:%s12745_s29] %v2039_v3  ;;  %v2041_v4 = vld [vmem:[%s12182_s10 + $0x14a0] sm:%s12745_s29] }
 0x1c2   : > { %v2043_v5 = vld [vmem:[%s12182_s10 + $0x14c8] sm:%s12745_s29]  ;;  %2042 = vst [vmem:[%s12185_s5 + $0x1080] sm:%s12745_s29] %v2041_v4 }
 0x1c3   : > { %2044 = vst [vmem:[%s12185_s5 + $0x10a0] sm:%s12745_s29] %v2043_v5  ;;  %v2045_v6 = vld [vmem:[%s12182_s10 + $0x14f0] sm:%s12745_s29] }
 0x1c4   : > { %v2047_v7 = vld [vmem:[%s12182_s10 + $0x1518] sm:%s12745_s29]  ;;  %2046 = vst [vmem:[%s12185_s5 + $0x10c0] sm:%s12745_s29] %v2045_v6 }
 0x1c5   : > { %2048 = vst [vmem:[%s12185_s5 + $0x10e0] sm:%s12745_s29] %v2047_v7  ;;  %v2049_v8 = vld [vmem:[%s12182_s10 + $0x1540] sm:%s12745_s29] }
 0x1c6   : > { %v2051_v9 = vld [vmem:[%s12182_s10 + $0x1568] sm:%s12745_s29]  ;;  %2050 = vst [vmem:[%s12185_s5 + $0x1100] sm:%s12745_s29] %v2049_v8 }
 0x1c7   : > { %2052 = vst [vmem:[%s12185_s5 + $0x1120] sm:%s12745_s29] %v2051_v9  ;;  %v2053_v10 = vld [vmem:[%s12182_s10 + $0x1590] sm:%s12745_s29] }
 0x1c8   : > { %v2055_v11 = vld [vmem:[%s12182_s10 + $0x15b8] sm:%s12745_s29]  ;;  %2054 = vst [vmem:[%s12185_s5 + $0x1140] sm:%s12745_s29] %v2053_v10 }
 0x1c9   : > { %2056 = vst [vmem:[%s12185_s5 + $0x1160] sm:%s12745_s29] %v2055_v11  ;;  %v2057_v12 = vld [vmem:[%s12182_s10 + $0x15e0] sm:%s12745_s29] }
 0x1ca   : > { %v2059_v13 = vld [vmem:[%s12182_s10 + $0x1608] sm:%s12745_s29]  ;;  %2058 = vst [vmem:[%s12185_s5 + $0x1180] sm:%s12745_s29] %v2057_v12 }
 0x1cb   : > { %2060 = vst [vmem:[%s12185_s5 + $0x11a0] sm:%s12745_s29] %v2059_v13  ;;  %v2061_v14 = vld [vmem:[%s12182_s10 + $0x1630] sm:%s12745_s29] }
 0x1cc   : > { %v2063_v15 = vld [vmem:[%s12182_s10 + $0x1658] sm:%s12745_s29]  ;;  %2062 = vst [vmem:[%s12185_s5 + $0x11c0] sm:%s12745_s29] %v2061_v14 }
 0x1cd   : > { %2064 = vst [vmem:[%s12185_s5 + $0x11e0] sm:%s12745_s29] %v2063_v15  ;;  %v2065_v16 = vld [vmem:[%s12182_s10 + $0x1680] sm:%s12745_s29] }
 0x1ce   : > { %v2067_v17 = vld [vmem:[%s12182_s10 + $0x16a8] sm:%s12745_s29]  ;;  %2066 = vst [vmem:[%s12185_s5 + $0x1200] sm:%s12745_s29] %v2065_v16 }
 0x1cf   : > { %2068 = vst [vmem:[%s12185_s5 + $0x1220] sm:%s12745_s29] %v2067_v17  ;;  %v2069_v18 = vld [vmem:[%s12182_s10 + $0x16d0] sm:%s12745_s29] }
 0x1d0   : > { %v2071_v19 = vld [vmem:[%s12182_s10 + $0x16f8] sm:%s12745_s29]  ;;  %2070 = vst [vmem:[%s12185_s5 + $0x1240] sm:%s12745_s29] %v2069_v18 }
 0x1d1   : > { %2072 = vst [vmem:[%s12185_s5 + $0x1260] sm:%s12745_s29] %v2071_v19  ;;  %v2073_v20 = vld [vmem:[%s12182_s10 + $0x1720] sm:%s12745_s29] }
 0x1d2   : > { %v2075_v21 = vld [vmem:[%s12182_s10 + $0x1748] sm:%s12745_s29]  ;;  %2074 = vst [vmem:[%s12185_s5 + $0x1280] sm:%s12745_s29] %v2073_v20 }
 0x1d3   : > { %2076 = vst [vmem:[%s12185_s5 + $0x12a0] sm:%s12745_s29] %v2075_v21  ;;  %v2077_v22 = vld [vmem:[%s12182_s10 + $0x1770] sm:%s12745_s29] }
 0x1d4   : > { %v2079_v23 = vld [vmem:[%s12182_s10 + $0x1798] sm:%s12745_s29]  ;;  %2078 = vst [vmem:[%s12185_s5 + $0x12c0] sm:%s12745_s29] %v2077_v22 }
 0x1d5   : > { %2080 = vst [vmem:[%s12185_s5 + $0x12e0] sm:%s12745_s29] %v2079_v23  ;;  %v2081_v24 = vld [vmem:[%s12182_s10 + $0x17c0] sm:%s12745_s29] }
 0x1d6   : > { %v2083_v25 = vld [vmem:[%s12182_s10 + $0x17e8] sm:%s12745_s29]  ;;  %2082 = vst [vmem:[%s12185_s5 + $0x1300] sm:%s12745_s29] %v2081_v24 }
 0x1d7   : > { %2084 = vst [vmem:[%s12185_s5 + $0x1320] sm:%s12745_s29] %v2083_v25  ;;  %v2085_v26 = vld [vmem:[%s12182_s10 + $0x1810] sm:%s12745_s29] }
 0x1d8   : > { %v2087_v27 = vld [vmem:[%s12182_s10 + $0x1838] sm:%s12745_s29]  ;;  %2086 = vst [vmem:[%s12185_s5 + $0x1340] sm:%s12745_s29] %v2085_v26 }
 0x1d9   : > { %2088 = vst [vmem:[%s12185_s5 + $0x1360] sm:%s12745_s29] %v2087_v27  ;;  %v2089_v28 = vld [vmem:[%s12182_s10 + $0x1860] sm:%s12745_s29] }
 0x1da   : > { %v2091_v29 = vld [vmem:[%s12182_s10 + $0x1888] sm:%s12745_s29]  ;;  %2090 = vst [vmem:[%s12185_s5 + $0x1380] sm:%s12745_s29] %v2089_v28 }
 0x1db   : > { %2092 = vst [vmem:[%s12185_s5 + $0x13a0] sm:%s12745_s29] %v2091_v29  ;;  %v2093_v30 = vld [vmem:[%s12182_s10 + $0x18b0] sm:%s12745_s29] }
 0x1dc   : > { %v2095_v31 = vld [vmem:[%s12182_s10 + $0x18d8] sm:%s12745_s29]  ;;  %2094 = vst [vmem:[%s12185_s5 + $0x13c0] sm:%s12745_s29] %v2093_v30 }
 0x1dd   : > { %2096 = vst [vmem:[%s12185_s5 + $0x13e0] sm:%s12745_s29] %v2095_v31  ;;  %v2097_v32 = vld [vmem:[%s12182_s10 + $0x1900] sm:%s12745_s29] }
 0x1de   : > { %v2099_v33 = vld [vmem:[%s12182_s10 + $0x1928] sm:%s12745_s29]  ;;  %2098 = vst [vmem:[%s12185_s5 + $0x1400] sm:%s12745_s29] %v2097_v32 }
 0x1df   : > { %2100 = vst [vmem:[%s12185_s5 + $0x1420] sm:%s12745_s29] %v2099_v33  ;;  %v2101_v34 = vld [vmem:[%s12182_s10 + $0x1950] sm:%s12745_s29] }
 0x1e0   : > { %v2103_v35 = vld [vmem:[%s12182_s10 + $0x1978] sm:%s12745_s29]  ;;  %2102 = vst [vmem:[%s12185_s5 + $0x1440] sm:%s12745_s29] %v2101_v34 }
 0x1e1   : > { %2104 = vst [vmem:[%s12185_s5 + $0x1460] sm:%s12745_s29] %v2103_v35  ;;  %v2105_v36 = vld [vmem:[%s12182_s10 + $0x19a0] sm:%s12745_s29] }
 0x1e2   : > { %v2107_v37 = vld [vmem:[%s12182_s10 + $0x19c8] sm:%s12745_s29]  ;;  %2106 = vst [vmem:[%s12185_s5 + $0x1480] sm:%s12745_s29] %v2105_v36 }
 0x1e3   : > { %2108 = vst [vmem:[%s12185_s5 + $0x14a0] sm:%s12745_s29] %v2107_v37  ;;  %v2109_v38 = vld [vmem:[%s12182_s10 + $0x19f0] sm:%s12745_s29] }
 0x1e4   : > { %v2111_v39 = vld [vmem:[%s12182_s10 + $0x1a18] sm:%s12745_s29]  ;;  %2110 = vst [vmem:[%s12185_s5 + $0x14c0] sm:%s12745_s29] %v2109_v38 }
 0x1e5   : > { %2112 = vst [vmem:[%s12185_s5 + $0x14e0] sm:%s12745_s29] %v2111_v39  ;;  %v2113_v40 = vld [vmem:[%s12182_s10 + $0x1a40] sm:%s12745_s29] }
 0x1e6   : > { %v2115_v41 = vld [vmem:[%s12182_s10 + $0x1a68] sm:%s12745_s29]  ;;  %2114 = vst [vmem:[%s12185_s5 + $0x1500] sm:%s12745_s29] %v2113_v40 }
 0x1e7   : > { %2116 = vst [vmem:[%s12185_s5 + $0x1520] sm:%s12745_s29] %v2115_v41  ;;  %v2117_v42 = vld [vmem:[%s12182_s10 + $0x1a90] sm:%s12745_s29] }
 0x1e8   : > { %v2119_v43 = vld [vmem:[%s12182_s10 + $0x1ab8] sm:%s12745_s29]  ;;  %2118 = vst [vmem:[%s12185_s5 + $0x1540] sm:%s12745_s29] %v2117_v42 }
 0x1e9   : > { %2120 = vst [vmem:[%s12185_s5 + $0x1560] sm:%s12745_s29] %v2119_v43  ;;  %v2121_v44 = vld [vmem:[%s12182_s10 + $0x1ae0] sm:%s12745_s29] }
 0x1ea   : > { %v2123_v45 = vld [vmem:[%s12182_s10 + $0x1b08] sm:%s12745_s29]  ;;  %2122 = vst [vmem:[%s12185_s5 + $0x1580] sm:%s12745_s29] %v2121_v44 }
 0x1eb   : > { %2124 = vst [vmem:[%s12185_s5 + $0x15a0] sm:%s12745_s29] %v2123_v45  ;;  %v2125_v46 = vld [vmem:[%s12182_s10 + $0x1b30] sm:%s12745_s29] }
 0x1ec   : > { %v2127_v47 = vld [vmem:[%s12182_s10 + $0x1b58] sm:%s12745_s29]  ;;  %2126 = vst [vmem:[%s12185_s5 + $0x15c0] sm:%s12745_s29] %v2125_v46 }
 0x1ed   : > { %2128 = vst [vmem:[%s12185_s5 + $0x15e0] sm:%s12745_s29] %v2127_v47  ;;  %v2129_v48 = vld [vmem:[%s12182_s10 + $0x1b80] sm:%s12745_s29] }
 0x1ee   : > { %v2131_v49 = vld [vmem:[%s12182_s10 + $0x1ba8] sm:%s12745_s29]  ;;  %2130 = vst [vmem:[%s12185_s5 + $0x1600] sm:%s12745_s29] %v2129_v48 }
 0x1ef   : > { %2132 = vst [vmem:[%s12185_s5 + $0x1620] sm:%s12745_s29] %v2131_v49  ;;  %v2133_v50 = vld [vmem:[%s12182_s10 + $0x1bd0] sm:%s12745_s29] }
 0x1f0   : > { %v2135_v51 = vld [vmem:[%s12182_s10 + $0x1bf8] sm:%s12745_s29]  ;;  %2134 = vst [vmem:[%s12185_s5 + $0x1640] sm:%s12745_s29] %v2133_v50 }
 0x1f1   : > { %2136 = vst [vmem:[%s12185_s5 + $0x1660] sm:%s12745_s29] %v2135_v51  ;;  %v2137_v52 = vld [vmem:[%s12182_s10 + $0x1c20] sm:%s12745_s29] }
 0x1f2   : > { %v2139_v53 = vld [vmem:[%s12182_s10 + $0x1c48] sm:%s12745_s29]  ;;  %2138 = vst [vmem:[%s12185_s5 + $0x1680] sm:%s12745_s29] %v2137_v52 }
 0x1f3   : > { %2140 = vst [vmem:[%s12185_s5 + $0x16a0] sm:%s12745_s29] %v2139_v53  ;;  %v2141_v54 = vld [vmem:[%s12182_s10 + $0x1c70] sm:%s12745_s29] }
 0x1f4   : > { %v2143_v55 = vld [vmem:[%s12182_s10 + $0x1c98] sm:%s12745_s29]  ;;  %2142 = vst [vmem:[%s12185_s5 + $0x16c0] sm:%s12745_s29] %v2141_v54 }
 0x1f5   : > { %2144 = vst [vmem:[%s12185_s5 + $0x16e0] sm:%s12745_s29] %v2143_v55  ;;  %v2145_v56 = vld [vmem:[%s12182_s10 + $0x1cc0] sm:%s12745_s29] }
 0x1f6   : > { %v2147_v57 = vld [vmem:[%s12182_s10 + $0x1ce8] sm:%s12745_s29]  ;;  %2146 = vst [vmem:[%s12185_s5 + $0x1700] sm:%s12745_s29] %v2145_v56 }
 0x1f7   : > { %2148 = vst [vmem:[%s12185_s5 + $0x1720] sm:%s12745_s29] %v2147_v57  ;;  %v2149_v58 = vld [vmem:[%s12182_s10 + $0x1d10] sm:%s12745_s29] }
 0x1f8   : > { %v2151_v59 = vld [vmem:[%s12182_s10 + $0x1d38] sm:%s12745_s29]  ;;  %2150 = vst [vmem:[%s12185_s5 + $0x1740] sm:%s12745_s29] %v2149_v58 }
 0x1f9   : > { %2152 = vst [vmem:[%s12185_s5 + $0x1760] sm:%s12745_s29] %v2151_v59  ;;  %v2153_v60 = vld [vmem:[%s12182_s10 + $0x1d60] sm:%s12745_s29] }
 0x1fa   : > { %v2155_v61 = vld [vmem:[%s12182_s10 + $0x1d88] sm:%s12745_s29]  ;;  %2154 = vst [vmem:[%s12185_s5 + $0x1780] sm:%s12745_s29] %v2153_v60 }
 0x1fb   : > { %2156 = vst [vmem:[%s12185_s5 + $0x17a0] sm:%s12745_s29] %v2155_v61  ;;  %v2157_v62 = vld [vmem:[%s12182_s10 + $0x1db0] sm:%s12745_s29] }
 0x1fc   : > { %v2159_v63 = vld [vmem:[%s12182_s10 + $0x1dd8] sm:%s12745_s29]  ;;  %2158 = vst [vmem:[%s12185_s5 + $0x17c0] sm:%s12745_s29] %v2157_v62 }
 0x1fd   : > { %2160 = vst [vmem:[%s12185_s5 + $0x17e0] sm:%s12745_s29] %v2159_v63  ;;  %v2161_v0 = vld [vmem:[%s12182_s10 + $0x1e00] sm:%s12745_s29] }
 0x1fe   : > { %v2163_v1 = vld [vmem:[%s12182_s10 + $0x1e28] sm:%s12745_s29]  ;;  %2162 = vst [vmem:[%s12185_s5 + $0x1800] sm:%s12745_s29] %v2161_v0 }
 0x1ff   : > { %2164 = vst [vmem:[%s12185_s5 + $0x1820] sm:%s12745_s29] %v2163_v1  ;;  %v2165_v2 = vld [vmem:[%s12182_s10 + $0x1e50] sm:%s12745_s29] }
 0x200   : > { %v2167_v3 = vld [vmem:[%s12182_s10 + $0x1e78] sm:%s12745_s29]  ;;  %2166 = vst [vmem:[%s12185_s5 + $0x1840] sm:%s12745_s29] %v2165_v2 }
 0x201   : > { %2168 = vst [vmem:[%s12185_s5 + $0x1860] sm:%s12745_s29] %v2167_v3  ;;  %v2169_v4 = vld [vmem:[%s12182_s10 + $0x1ea0] sm:%s12745_s29] }
 0x202   : > { %v2171_v5 = vld [vmem:[%s12182_s10 + $0x1ec8] sm:%s12745_s29]  ;;  %2170 = vst [vmem:[%s12185_s5 + $0x1880] sm:%s12745_s29] %v2169_v4 }
 0x203   : > { %2172 = vst [vmem:[%s12185_s5 + $0x18a0] sm:%s12745_s29] %v2171_v5  ;;  %v2173_v6 = vld [vmem:[%s12182_s10 + $0x1ef0] sm:%s12745_s29] }
 0x204   : > { %v2175_v7 = vld [vmem:[%s12182_s10 + $0x1f18] sm:%s12745_s29]  ;;  %2174 = vst [vmem:[%s12185_s5 + $0x18c0] sm:%s12745_s29] %v2173_v6 }
 0x205   : > { %2176 = vst [vmem:[%s12185_s5 + $0x18e0] sm:%s12745_s29] %v2175_v7  ;;  %v2177_v8 = vld [vmem:[%s12182_s10 + $0x1f40] sm:%s12745_s29] }
 0x206   : > { %v2179_v9 = vld [vmem:[%s12182_s10 + $0x1f68] sm:%s12745_s29]  ;;  %2178 = vst [vmem:[%s12185_s5 + $0x1900] sm:%s12745_s29] %v2177_v8 }
 0x207   : > { %2180 = vst [vmem:[%s12185_s5 + $0x1920] sm:%s12745_s29] %v2179_v9  ;;  %v2181_v10 = vld [vmem:[%s12182_s10 + $0x1f90] sm:%s12745_s29] }
 0x208   : > { %v2183_v11 = vld [vmem:[%s12182_s10 + $0x1fb8] sm:%s12745_s29]  ;;  %2182 = vst [vmem:[%s12185_s5 + $0x1940] sm:%s12745_s29] %v2181_v10 }
 0x209   : > { %2184 = vst [vmem:[%s12185_s5 + $0x1960] sm:%s12745_s29] %v2183_v11  ;;  %v2185_v12 = vld [vmem:[%s12182_s10 + $0x1fe0] sm:%s12745_s29] }
 0x20a   : > { %v2187_v13 = vld [vmem:[%s12182_s10 + $0x2008] sm:%s12745_s29]  ;;  %2186 = vst [vmem:[%s12185_s5 + $0x1980] sm:%s12745_s29] %v2185_v12 }
 0x20b   : > { %2188 = vst [vmem:[%s12185_s5 + $0x19a0] sm:%s12745_s29] %v2187_v13  ;;  %v2189_v14 = vld [vmem:[%s12182_s10 + $0x2030] sm:%s12745_s29] }
 0x20c   : > { %v2191_v15 = vld [vmem:[%s12182_s10 + $0x2058] sm:%s12745_s29]  ;;  %2190 = vst [vmem:[%s12185_s5 + $0x19c0] sm:%s12745_s29] %v2189_v14 }
 0x20d   : > { %2192 = vst [vmem:[%s12185_s5 + $0x19e0] sm:%s12745_s29] %v2191_v15  ;;  %v2193_v16 = vld [vmem:[%s12182_s10 + $0x2080] sm:%s12745_s29] }
 0x20e   : > { %v2195_v17 = vld [vmem:[%s12182_s10 + $0x20a8] sm:%s12745_s29]  ;;  %2194 = vst [vmem:[%s12185_s5 + $0x1a00] sm:%s12745_s29] %v2193_v16 }
 0x20f   : > { %2196 = vst [vmem:[%s12185_s5 + $0x1a20] sm:%s12745_s29] %v2195_v17  ;;  %v2197_v18 = vld [vmem:[%s12182_s10 + $0x20d0] sm:%s12745_s29] }
 0x210   : > { %v2199_v19 = vld [vmem:[%s12182_s10 + $0x20f8] sm:%s12745_s29]  ;;  %2198 = vst [vmem:[%s12185_s5 + $0x1a40] sm:%s12745_s29] %v2197_v18 }
 0x211   : > { %2200 = vst [vmem:[%s12185_s5 + $0x1a60] sm:%s12745_s29] %v2199_v19  ;;  %v2201_v20 = vld [vmem:[%s12182_s10 + $0x2120] sm:%s12745_s29] }
 0x212   : > { %v2203_v21 = vld [vmem:[%s12182_s10 + $0x2148] sm:%s12745_s29]  ;;  %2202 = vst [vmem:[%s12185_s5 + $0x1a80] sm:%s12745_s29] %v2201_v20 }
 0x213   : > { %2204 = vst [vmem:[%s12185_s5 + $0x1aa0] sm:%s12745_s29] %v2203_v21  ;;  %v2205_v22 = vld [vmem:[%s12182_s10 + $0x2170] sm:%s12745_s29] }
 0x214   : > { %v2207_v23 = vld [vmem:[%s12182_s10 + $0x2198] sm:%s12745_s29]  ;;  %2206 = vst [vmem:[%s12185_s5 + $0x1ac0] sm:%s12745_s29] %v2205_v22 }
 0x215   : > { %2208 = vst [vmem:[%s12185_s5 + $0x1ae0] sm:%s12745_s29] %v2207_v23  ;;  %v2209_v24 = vld [vmem:[%s12182_s10 + $0x21c0] sm:%s12745_s29] }
 0x216   : > { %v2211_v25 = vld [vmem:[%s12182_s10 + $0x21e8] sm:%s12745_s29]  ;;  %2210 = vst [vmem:[%s12185_s5 + $0x1b00] sm:%s12745_s29] %v2209_v24 }
 0x217   : > { %2212 = vst [vmem:[%s12185_s5 + $0x1b20] sm:%s12745_s29] %v2211_v25  ;;  %v2213_v26 = vld [vmem:[%s12182_s10 + $0x2210] sm:%s12745_s29] }
 0x218   : > { %v2215_v27 = vld [vmem:[%s12182_s10 + $0x2238] sm:%s12745_s29]  ;;  %2214 = vst [vmem:[%s12185_s5 + $0x1b40] sm:%s12745_s29] %v2213_v26 }
 0x219   : > { %2216 = vst [vmem:[%s12185_s5 + $0x1b60] sm:%s12745_s29] %v2215_v27  ;;  %v2217_v28 = vld [vmem:[%s12182_s10 + $0x2260] sm:%s12745_s29] }
 0x21a   : > { %v2219_v29 = vld [vmem:[%s12182_s10 + $0x2288] sm:%s12745_s29]  ;;  %2218 = vst [vmem:[%s12185_s5 + $0x1b80] sm:%s12745_s29] %v2217_v28 }
 0x21b   : > { %2220 = vst [vmem:[%s12185_s5 + $0x1ba0] sm:%s12745_s29] %v2219_v29  ;;  %v2221_v30 = vld [vmem:[%s12182_s10 + $0x22b0] sm:%s12745_s29] }
 0x21c   : > { %v2223_v31 = vld [vmem:[%s12182_s10 + $0x22d8] sm:%s12745_s29]  ;;  %2222 = vst [vmem:[%s12185_s5 + $0x1bc0] sm:%s12745_s29] %v2221_v30 }
 0x21d   : > { %2224 = vst [vmem:[%s12185_s5 + $0x1be0] sm:%s12745_s29] %v2223_v31  ;;  %v2225_v32 = vld [vmem:[%s12182_s10 + $0x2300] sm:%s12745_s29] }
 0x21e   : > { %v2227_v33 = vld [vmem:[%s12182_s10 + $0x2328] sm:%s12745_s29]  ;;  %2226 = vst [vmem:[%s12185_s5 + $0x1c00] sm:%s12745_s29] %v2225_v32 }
 0x21f   : > { %2228 = vst [vmem:[%s12185_s5 + $0x1c20] sm:%s12745_s29] %v2227_v33  ;;  %v2229_v34 = vld [vmem:[%s12182_s10 + $0x2350] sm:%s12745_s29] }
 0x220   : > { %v2231_v35 = vld [vmem:[%s12182_s10 + $0x2378] sm:%s12745_s29]  ;;  %2230 = vst [vmem:[%s12185_s5 + $0x1c40] sm:%s12745_s29] %v2229_v34 }
 0x221   : > { %2232 = vst [vmem:[%s12185_s5 + $0x1c60] sm:%s12745_s29] %v2231_v35  ;;  %v2233_v36 = vld [vmem:[%s12182_s10 + $0x23a0] sm:%s12745_s29] }
 0x222   : > { %v2235_v37 = vld [vmem:[%s12182_s10 + $0x23c8] sm:%s12745_s29]  ;;  %2234 = vst [vmem:[%s12185_s5 + $0x1c80] sm:%s12745_s29] %v2233_v36 }
 0x223   : > { %2236 = vst [vmem:[%s12185_s5 + $0x1ca0] sm:%s12745_s29] %v2235_v37  ;;  %v2237_v38 = vld [vmem:[%s12182_s10 + $0x23f0] sm:%s12745_s29] }
 0x224   : > { %v2239_v39 = vld [vmem:[%s12182_s10 + $0x2418] sm:%s12745_s29]  ;;  %2238 = vst [vmem:[%s12185_s5 + $0x1cc0] sm:%s12745_s29] %v2237_v38 }
 0x225   : > { %2240 = vst [vmem:[%s12185_s5 + $0x1ce0] sm:%s12745_s29] %v2239_v39  ;;  %v2241_v40 = vld [vmem:[%s12182_s10 + $0x2440] sm:%s12745_s29] }
 0x226   : > { %v2243_v41 = vld [vmem:[%s12182_s10 + $0x2468] sm:%s12745_s29]  ;;  %2242 = vst [vmem:[%s12185_s5 + $0x1d00] sm:%s12745_s29] %v2241_v40 }
 0x227   : > { %2244 = vst [vmem:[%s12185_s5 + $0x1d20] sm:%s12745_s29] %v2243_v41  ;;  %v2245_v42 = vld [vmem:[%s12182_s10 + $0x2490] sm:%s12745_s29] }
 0x228   : > { %v2247_v43 = vld [vmem:[%s12182_s10 + $0x24b8] sm:%s12745_s29]  ;;  %2246 = vst [vmem:[%s12185_s5 + $0x1d40] sm:%s12745_s29] %v2245_v42 }
 0x229   : > { %2248 = vst [vmem:[%s12185_s5 + $0x1d60] sm:%s12745_s29] %v2247_v43  ;;  %v2249_v44 = vld [vmem:[%s12182_s10 + $0x24e0] sm:%s12745_s29] }
 0x22a   : > { %v2251_v45 = vld [vmem:[%s12182_s10 + $0x2508] sm:%s12745_s29]  ;;  %2250 = vst [vmem:[%s12185_s5 + $0x1d80] sm:%s12745_s29] %v2249_v44 }
 0x22b   : > { %2252 = vst [vmem:[%s12185_s5 + $0x1da0] sm:%s12745_s29] %v2251_v45  ;;  %v2253_v46 = vld [vmem:[%s12182_s10 + $0x2530] sm:%s12745_s29] }
 0x22c   : > { %v2255_v47 = vld [vmem:[%s12182_s10 + $0x2558] sm:%s12745_s29]  ;;  %2254 = vst [vmem:[%s12185_s5 + $0x1dc0] sm:%s12745_s29] %v2253_v46 }
 0x22d   : > { %2256 = vst [vmem:[%s12185_s5 + $0x1de0] sm:%s12745_s29] %v2255_v47  ;;  %v2257_v48 = vld [vmem:[%s12182_s10 + $0x2580] sm:%s12745_s29] }
 0x22e   : > { %v2259_v49 = vld [vmem:[%s12182_s10 + $0x25a8] sm:%s12745_s29]  ;;  %2258 = vst [vmem:[%s12185_s5 + $0x1e00] sm:%s12745_s29] %v2257_v48 }
 0x22f   : > { %2260 = vst [vmem:[%s12185_s5 + $0x1e20] sm:%s12745_s29] %v2259_v49  ;;  %v2261_v50 = vld [vmem:[%s12182_s10 + $0x25d0] sm:%s12745_s29] }
 0x230   : > { %v2263_v51 = vld [vmem:[%s12182_s10 + $0x25f8] sm:%s12745_s29]  ;;  %2262 = vst [vmem:[%s12185_s5 + $0x1e40] sm:%s12745_s29] %v2261_v50 }
 0x231   : > { %2264 = vst [vmem:[%s12185_s5 + $0x1e60] sm:%s12745_s29] %v2263_v51  ;;  %v2265_v52 = vld [vmem:[%s12182_s10 + $0x2620] sm:%s12745_s29] }
 0x232   : > { %v2267_v53 = vld [vmem:[%s12182_s10 + $0x2648] sm:%s12745_s29]  ;;  %2266 = vst [vmem:[%s12185_s5 + $0x1e80] sm:%s12745_s29] %v2265_v52 }
 0x233   : > { %2268 = vst [vmem:[%s12185_s5 + $0x1ea0] sm:%s12745_s29] %v2267_v53  ;;  %v2269_v54 = vld [vmem:[%s12182_s10 + $0x2670] sm:%s12745_s29] }
 0x234   : > { %v2271_v55 = vld [vmem:[%s12182_s10 + $0x2698] sm:%s12745_s29]  ;;  %2270 = vst [vmem:[%s12185_s5 + $0x1ec0] sm:%s12745_s29] %v2269_v54 }
 0x235   : > { %2272 = vst [vmem:[%s12185_s5 + $0x1ee0] sm:%s12745_s29] %v2271_v55  ;;  %v2273_v56 = vld [vmem:[%s12182_s10 + $0x26c0] sm:%s12745_s29] }
 0x236   : > { %v2275_v57 = vld [vmem:[%s12182_s10 + $0x26e8] sm:%s12745_s29]  ;;  %2274 = vst [vmem:[%s12185_s5 + $0x1f00] sm:%s12745_s29] %v2273_v56 }
 0x237   : > { %2276 = vst [vmem:[%s12185_s5 + $0x1f20] sm:%s12745_s29] %v2275_v57  ;;  %v2277_v58 = vld [vmem:[%s12182_s10 + $0x2710] sm:%s12745_s29] }
 0x238   : > { %v2279_v59 = vld [vmem:[%s12182_s10 + $0x2738] sm:%s12745_s29]  ;;  %2278 = vst [vmem:[%s12185_s5 + $0x1f40] sm:%s12745_s29] %v2277_v58 }
 0x239   : > { %2280 = vst [vmem:[%s12185_s5 + $0x1f60] sm:%s12745_s29] %v2279_v59  ;;  %v2281_v60 = vld [vmem:[%s12182_s10 + $0x2760] sm:%s12745_s29] }
 0x23a   : > { %v2283_v61 = vld [vmem:[%s12182_s10 + $0x2788] sm:%s12745_s29]  ;;  %2282 = vst [vmem:[%s12185_s5 + $0x1f80] sm:%s12745_s29] %v2281_v60 }
 0x23b   : > { %2284 = vst [vmem:[%s12185_s5 + $0x1fa0] sm:%s12745_s29] %v2283_v61  ;;  %v2285_v62 = vld [vmem:[%s12182_s10 + $0x27b0] sm:%s12745_s29] }
 0x23c   : > { %v2287_v63 = vld [vmem:[%s12182_s10 + $0x27d8] sm:%s12745_s29]  ;;  %2286 = vst [vmem:[%s12185_s5 + $0x1fc0] sm:%s12745_s29] %v2285_v62 }
 0x23d   : > { %2288 = vst [vmem:[%s12185_s5 + $0x1fe0] sm:%s12745_s29] %v2287_v63 }
 0x23e PF: > { %p9692_p4 = scmp.ge.u32.totalorder %s11608_s21, 8 }
 0x23f   : > { %s11517_s24 = smov (!%p9692_p4), 0  }
 0x240   : > { %171 = sbr.rel (%p9692_p4) target bundleno = 833 (0x341), region = 40  ;;  %s13773_s9 = sshllo.u32 (!%p9692_p4), %s11517_s24, %s11608_s21 }
 0x241   : > { %v181_v0 = vld [vmem:[%s11606_s11] sm:%s13773_s9] (!%p9692_p4)  ;;  %v183_v1 = vld [vmem:[%s11606_s11 + $0x28] sm:%s13773_s9] (!%p9692_p4) }
 0x242   : > { %182 = vst [vmem:[%s11610_s22] sm:%s13773_s9] (!%p9692_p4), %v181_v0  ;;  %184 = vst [vmem:[%s11610_s22 + $0x20] sm:%s13773_s9] (!%p9692_p4), %v183_v1 }
 0x243   : > { %v185_v2 = vld [vmem:[%s11606_s11 + $0x50] sm:%s13773_s9] (!%p9692_p4)  ;;  %v187_v3 = vld [vmem:[%s11606_s11 + $0x78] sm:%s13773_s9] (!%p9692_p4) }
 0x244   : > { %186 = vst [vmem:[%s11610_s22 + $0x40] sm:%s13773_s9] (!%p9692_p4), %v185_v2  ;;  %188 = vst [vmem:[%s11610_s22 + $0x60] sm:%s13773_s9] (!%p9692_p4), %v187_v3 }
 0x245   : > { %v189_v4 = vld [vmem:[%s11606_s11 + $0xa0] sm:%s13773_s9] (!%p9692_p4)  ;;  %v191_v5 = vld [vmem:[%s11606_s11 + $0xc8] sm:%s13773_s9] (!%p9692_p4) }
 0x246   : > { %190 = vst [vmem:[%s11610_s22 + $0x80] sm:%s13773_s9] (!%p9692_p4), %v189_v4  ;;  %192 = vst [vmem:[%s11610_s22 + $0xa0] sm:%s13773_s9] (!%p9692_p4), %v191_v5 }
 0x247   : > { %v193_v6 = vld [vmem:[%s11606_s11 + $0xf0] sm:%s13773_s9]  ;;  %v195_v7 = vld [vmem:[%s11606_s11 + $0x118] sm:%s13773_s9] }
 0x248   : > { %194 = vst [vmem:[%s11610_s22 + $0xc0] sm:%s13773_s9] %v193_v6  ;;  %196 = vst [vmem:[%s11610_s22 + $0xe0] sm:%s13773_s9] %v195_v7 }
 0x249   : > { %v197_v8 = vld [vmem:[%s11606_s11 + $0x140] sm:%s13773_s9]  ;;  %v199_v9 = vld [vmem:[%s11606_s11 + $0x168] sm:%s13773_s9] }
 0x24a   : > { %198 = vst [vmem:[%s11610_s22 + $0x100] sm:%s13773_s9] %v197_v8  ;;  %200 = vst [vmem:[%s11610_s22 + $0x120] sm:%s13773_s9] %v199_v9 }
 0x24b   : > { %v201_v10 = vld [vmem:[%s11606_s11 + $0x190] sm:%s13773_s9]  ;;  %v203_v11 = vld [vmem:[%s11606_s11 + $0x1b8] sm:%s13773_s9] }
 0x24c   : > { %202 = vst [vmem:[%s11610_s22 + $0x140] sm:%s13773_s9] %v201_v10  ;;  %204 = vst [vmem:[%s11610_s22 + $0x160] sm:%s13773_s9] %v203_v11 }
 0x24d   : > { %v205_v12 = vld [vmem:[%s11606_s11 + $0x1e0] sm:%s13773_s9]  ;;  %v207_v13 = vld [vmem:[%s11606_s11 + $0x208] sm:%s13773_s9] }
 0x24e   : > { %206 = vst [vmem:[%s11610_s22 + $0x180] sm:%s13773_s9] %v205_v12  ;;  %208 = vst [vmem:[%s11610_s22 + $0x1a0] sm:%s13773_s9] %v207_v13 }
 0x24f   : > { %v209_v14 = vld [vmem:[%s11606_s11 + $0x230] sm:%s13773_s9]  ;;  %v211_v15 = vld [vmem:[%s11606_s11 + $0x258] sm:%s13773_s9] }
 0x250   : > { %210 = vst [vmem:[%s11610_s22 + $0x1c0] sm:%s13773_s9] %v209_v14  ;;  %212 = vst [vmem:[%s11610_s22 + $0x1e0] sm:%s13773_s9] %v211_v15 }
 0x251   : > { %v213_v16 = vld [vmem:[%s11606_s11 + $0x280] sm:%s13773_s9]  ;;  %v215_v17 = vld [vmem:[%s11606_s11 + $0x2a8] sm:%s13773_s9] }
 0x252   : > { %214 = vst [vmem:[%s11610_s22 + $0x200] sm:%s13773_s9] %v213_v16  ;;  %216 = vst [vmem:[%s11610_s22 + $0x220] sm:%s13773_s9] %v215_v17 }
 0x253   : > { %v217_v18 = vld [vmem:[%s11606_s11 + $0x2d0] sm:%s13773_s9]  ;;  %v219_v19 = vld [vmem:[%s11606_s11 + $0x2f8] sm:%s13773_s9] }
 0x254   : > { %218 = vst [vmem:[%s11610_s22 + $0x240] sm:%s13773_s9] %v217_v18  ;;  %220 = vst [vmem:[%s11610_s22 + $0x260] sm:%s13773_s9] %v219_v19 }
 0x255   : > { %v221_v20 = vld [vmem:[%s11606_s11 + $0x320] sm:%s13773_s9]  ;;  %v223_v21 = vld [vmem:[%s11606_s11 + $0x348] sm:%s13773_s9] }
 0x256   : > { %222 = vst [vmem:[%s11610_s22 + $0x280] sm:%s13773_s9] %v221_v20  ;;  %224 = vst [vmem:[%s11610_s22 + $0x2a0] sm:%s13773_s9] %v223_v21 }
 0x257   : > { %v225_v22 = vld [vmem:[%s11606_s11 + $0x370] sm:%s13773_s9]  ;;  %v227_v23 = vld [vmem:[%s11606_s11 + $0x398] sm:%s13773_s9] }
 0x258   : > { %226 = vst [vmem:[%s11610_s22 + $0x2c0] sm:%s13773_s9] %v225_v22  ;;  %228 = vst [vmem:[%s11610_s22 + $0x2e0] sm:%s13773_s9] %v227_v23 }
 0x259   : > { %v229_v24 = vld [vmem:[%s11606_s11 + $0x3c0] sm:%s13773_s9]  ;;  %v231_v25 = vld [vmem:[%s11606_s11 + $0x3e8] sm:%s13773_s9] }
 0x25a   : > { %230 = vst [vmem:[%s11610_s22 + $0x300] sm:%s13773_s9] %v229_v24  ;;  %232 = vst [vmem:[%s11610_s22 + $0x320] sm:%s13773_s9] %v231_v25 }
 0x25b   : > { %v233_v26 = vld [vmem:[%s11606_s11 + $0x410] sm:%s13773_s9]  ;;  %v235_v27 = vld [vmem:[%s11606_s11 + $0x438] sm:%s13773_s9] }
 0x25c   : > { %234 = vst [vmem:[%s11610_s22 + $0x340] sm:%s13773_s9] %v233_v26  ;;  %236 = vst [vmem:[%s11610_s22 + $0x360] sm:%s13773_s9] %v235_v27 }
 0x25d   : > { %v237_v28 = vld [vmem:[%s11606_s11 + $0x460] sm:%s13773_s9]  ;;  %v239_v29 = vld [vmem:[%s11606_s11 + $0x488] sm:%s13773_s9] }
 0x25e   : > { %238 = vst [vmem:[%s11610_s22 + $0x380] sm:%s13773_s9] %v237_v28  ;;  %240 = vst [vmem:[%s11610_s22 + $0x3a0] sm:%s13773_s9] %v239_v29 }
 0x25f   : > { %v241_v30 = vld [vmem:[%s11606_s11 + $0x4b0] sm:%s13773_s9]  ;;  %v243_v31 = vld [vmem:[%s11606_s11 + $0x4d8] sm:%s13773_s9] }
 0x260   : > { %242 = vst [vmem:[%s11610_s22 + $0x3c0] sm:%s13773_s9] %v241_v30  ;;  %244 = vst [vmem:[%s11610_s22 + $0x3e0] sm:%s13773_s9] %v243_v31 }
 0x261   : > { %v245_v32 = vld [vmem:[%s11606_s11 + $0x500] sm:%s13773_s9]  ;;  %v247_v33 = vld [vmem:[%s11606_s11 + $0x528] sm:%s13773_s9] }
 0x262   : > { %246 = vst [vmem:[%s11610_s22 + $0x400] sm:%s13773_s9] %v245_v32  ;;  %248 = vst [vmem:[%s11610_s22 + $0x420] sm:%s13773_s9] %v247_v33 }
 0x263   : > { %v249_v34 = vld [vmem:[%s11606_s11 + $0x550] sm:%s13773_s9]  ;;  %v251_v35 = vld [vmem:[%s11606_s11 + $0x578] sm:%s13773_s9] }
 0x264   : > { %250 = vst [vmem:[%s11610_s22 + $0x440] sm:%s13773_s9] %v249_v34  ;;  %252 = vst [vmem:[%s11610_s22 + $0x460] sm:%s13773_s9] %v251_v35 }
 0x265   : > { %v253_v36 = vld [vmem:[%s11606_s11 + $0x5a0] sm:%s13773_s9]  ;;  %v255_v37 = vld [vmem:[%s11606_s11 + $0x5c8] sm:%s13773_s9] }
 0x266   : > { %254 = vst [vmem:[%s11610_s22 + $0x480] sm:%s13773_s9] %v253_v36  ;;  %256 = vst [vmem:[%s11610_s22 + $0x4a0] sm:%s13773_s9] %v255_v37 }
 0x267   : > { %v257_v38 = vld [vmem:[%s11606_s11 + $0x5f0] sm:%s13773_s9]  ;;  %v259_v39 = vld [vmem:[%s11606_s11 + $0x618] sm:%s13773_s9] }
 0x268   : > { %258 = vst [vmem:[%s11610_s22 + $0x4c0] sm:%s13773_s9] %v257_v38  ;;  %260 = vst [vmem:[%s11610_s22 + $0x4e0] sm:%s13773_s9] %v259_v39 }
 0x269   : > { %v261_v40 = vld [vmem:[%s11606_s11 + $0x640] sm:%s13773_s9]  ;;  %v263_v41 = vld [vmem:[%s11606_s11 + $0x668] sm:%s13773_s9] }
 0x26a   : > { %262 = vst [vmem:[%s11610_s22 + $0x500] sm:%s13773_s9] %v261_v40  ;;  %264 = vst [vmem:[%s11610_s22 + $0x520] sm:%s13773_s9] %v263_v41 }
 0x26b   : > { %v265_v42 = vld [vmem:[%s11606_s11 + $0x690] sm:%s13773_s9]  ;;  %v267_v43 = vld [vmem:[%s11606_s11 + $0x6b8] sm:%s13773_s9] }
 0x26c   : > { %266 = vst [vmem:[%s11610_s22 + $0x540] sm:%s13773_s9] %v265_v42  ;;  %268 = vst [vmem:[%s11610_s22 + $0x560] sm:%s13773_s9] %v267_v43 }
 0x26d   : > { %v269_v44 = vld [vmem:[%s11606_s11 + $0x6e0] sm:%s13773_s9]  ;;  %v271_v45 = vld [vmem:[%s11606_s11 + $0x708] sm:%s13773_s9] }
 0x26e   : > { %270 = vst [vmem:[%s11610_s22 + $0x580] sm:%s13773_s9] %v269_v44  ;;  %272 = vst [vmem:[%s11610_s22 + $0x5a0] sm:%s13773_s9] %v271_v45 }
 0x26f   : > { %v273_v46 = vld [vmem:[%s11606_s11 + $0x730] sm:%s13773_s9]  ;;  %v275_v47 = vld [vmem:[%s11606_s11 + $0x758] sm:%s13773_s9] }
 0x270   : > { %274 = vst [vmem:[%s11610_s22 + $0x5c0] sm:%s13773_s9] %v273_v46  ;;  %276 = vst [vmem:[%s11610_s22 + $0x5e0] sm:%s13773_s9] %v275_v47 }
 0x271   : > { %v277_v48 = vld [vmem:[%s11606_s11 + $0x780] sm:%s13773_s9]  ;;  %v279_v49 = vld [vmem:[%s11606_s11 + $0x7a8] sm:%s13773_s9] }
 0x272   : > { %278 = vst [vmem:[%s11610_s22 + $0x600] sm:%s13773_s9] %v277_v48  ;;  %280 = vst [vmem:[%s11610_s22 + $0x620] sm:%s13773_s9] %v279_v49 }
 0x273   : > { %v281_v50 = vld [vmem:[%s11606_s11 + $0x7d0] sm:%s13773_s9]  ;;  %v283_v51 = vld [vmem:[%s11606_s11 + $0x7f8] sm:%s13773_s9] }
 0x274   : > { %282 = vst [vmem:[%s11610_s22 + $0x640] sm:%s13773_s9] %v281_v50  ;;  %284 = vst [vmem:[%s11610_s22 + $0x660] sm:%s13773_s9] %v283_v51 }
 0x275   : > { %v285_v52 = vld [vmem:[%s11606_s11 + $0x820] sm:%s13773_s9]  ;;  %v287_v53 = vld [vmem:[%s11606_s11 + $0x848] sm:%s13773_s9] }
 0x276   : > { %286 = vst [vmem:[%s11610_s22 + $0x680] sm:%s13773_s9] %v285_v52  ;;  %288 = vst [vmem:[%s11610_s22 + $0x6a0] sm:%s13773_s9] %v287_v53 }
 0x277   : > { %v289_v54 = vld [vmem:[%s11606_s11 + $0x870] sm:%s13773_s9]  ;;  %v291_v55 = vld [vmem:[%s11606_s11 + $0x898] sm:%s13773_s9] }
 0x278   : > { %290 = vst [vmem:[%s11610_s22 + $0x6c0] sm:%s13773_s9] %v289_v54  ;;  %292 = vst [vmem:[%s11610_s22 + $0x6e0] sm:%s13773_s9] %v291_v55 }
 0x279   : > { %v293_v56 = vld [vmem:[%s11606_s11 + $0x8c0] sm:%s13773_s9]  ;;  %v295_v57 = vld [vmem:[%s11606_s11 + $0x8e8] sm:%s13773_s9] }
 0x27a   : > { %294 = vst [vmem:[%s11610_s22 + $0x700] sm:%s13773_s9] %v293_v56  ;;  %296 = vst [vmem:[%s11610_s22 + $0x720] sm:%s13773_s9] %v295_v57 }
 0x27b   : > { %v297_v58 = vld [vmem:[%s11606_s11 + $0x910] sm:%s13773_s9]  ;;  %v299_v59 = vld [vmem:[%s11606_s11 + $0x938] sm:%s13773_s9] }
 0x27c   : > { %298 = vst [vmem:[%s11610_s22 + $0x740] sm:%s13773_s9] %v297_v58  ;;  %300 = vst [vmem:[%s11610_s22 + $0x760] sm:%s13773_s9] %v299_v59 }
 0x27d   : > { %v301_v60 = vld [vmem:[%s11606_s11 + $0x960] sm:%s13773_s9]  ;;  %v303_v61 = vld [vmem:[%s11606_s11 + $0x988] sm:%s13773_s9] }
 0x27e   : > { %302 = vst [vmem:[%s11610_s22 + $0x780] sm:%s13773_s9] %v301_v60  ;;  %304 = vst [vmem:[%s11610_s22 + $0x7a0] sm:%s13773_s9] %v303_v61 }
 0x27f   : > { %v305_v62 = vld [vmem:[%s11606_s11 + $0x9b0] sm:%s13773_s9]  ;;  %v307_v63 = vld [vmem:[%s11606_s11 + $0x9d8] sm:%s13773_s9] }
 0x280   : > { %306 = vst [vmem:[%s11610_s22 + $0x7c0] sm:%s13773_s9] %v305_v62  ;;  %308 = vst [vmem:[%s11610_s22 + $0x7e0] sm:%s13773_s9] %v307_v63 }
 0x281   : > { %v309_v0 = vld [vmem:[%s11606_s11 + $0xa00] sm:%s13773_s9]  ;;  %v311_v1 = vld [vmem:[%s11606_s11 + $0xa28] sm:%s13773_s9] }
 0x282   : > { %310 = vst [vmem:[%s11610_s22 + $0x800] sm:%s13773_s9] %v309_v0  ;;  %312 = vst [vmem:[%s11610_s22 + $0x820] sm:%s13773_s9] %v311_v1 }
 0x283   : > { %v313_v2 = vld [vmem:[%s11606_s11 + $0xa50] sm:%s13773_s9]  ;;  %v315_v3 = vld [vmem:[%s11606_s11 + $0xa78] sm:%s13773_s9] }
 0x284   : > { %314 = vst [vmem:[%s11610_s22 + $0x840] sm:%s13773_s9] %v313_v2  ;;  %316 = vst [vmem:[%s11610_s22 + $0x860] sm:%s13773_s9] %v315_v3 }
 0x285   : > { %v317_v4 = vld [vmem:[%s11606_s11 + $0xaa0] sm:%s13773_s9]  ;;  %v319_v5 = vld [vmem:[%s11606_s11 + $0xac8] sm:%s13773_s9] }
 0x286   : > { %318 = vst [vmem:[%s11610_s22 + $0x880] sm:%s13773_s9] %v317_v4  ;;  %320 = vst [vmem:[%s11610_s22 + $0x8a0] sm:%s13773_s9] %v319_v5 }
 0x287   : > { %v321_v6 = vld [vmem:[%s11606_s11 + $0xaf0] sm:%s13773_s9]  ;;  %v323_v7 = vld [vmem:[%s11606_s11 + $0xb18] sm:%s13773_s9] }
 0x288   : > { %322 = vst [vmem:[%s11610_s22 + $0x8c0] sm:%s13773_s9] %v321_v6  ;;  %324 = vst [vmem:[%s11610_s22 + $0x8e0] sm:%s13773_s9] %v323_v7 }
 0x289   : > { %v325_v8 = vld [vmem:[%s11606_s11 + $0xb40] sm:%s13773_s9]  ;;  %v327_v9 = vld [vmem:[%s11606_s11 + $0xb68] sm:%s13773_s9] }
 0x28a   : > { %326 = vst [vmem:[%s11610_s22 + $0x900] sm:%s13773_s9] %v325_v8  ;;  %328 = vst [vmem:[%s11610_s22 + $0x920] sm:%s13773_s9] %v327_v9 }
 0x28b   : > { %v329_v10 = vld [vmem:[%s11606_s11 + $0xb90] sm:%s13773_s9]  ;;  %v331_v11 = vld [vmem:[%s11606_s11 + $0xbb8] sm:%s13773_s9] }
 0x28c   : > { %330 = vst [vmem:[%s11610_s22 + $0x940] sm:%s13773_s9] %v329_v10  ;;  %332 = vst [vmem:[%s11610_s22 + $0x960] sm:%s13773_s9] %v331_v11 }
 0x28d   : > { %v333_v12 = vld [vmem:[%s11606_s11 + $0xbe0] sm:%s13773_s9]  ;;  %v335_v13 = vld [vmem:[%s11606_s11 + $0xc08] sm:%s13773_s9] }
 0x28e   : > { %334 = vst [vmem:[%s11610_s22 + $0x980] sm:%s13773_s9] %v333_v12  ;;  %336 = vst [vmem:[%s11610_s22 + $0x9a0] sm:%s13773_s9] %v335_v13 }
 0x28f   : > { %v337_v14 = vld [vmem:[%s11606_s11 + $0xc30] sm:%s13773_s9]  ;;  %v339_v15 = vld [vmem:[%s11606_s11 + $0xc58] sm:%s13773_s9] }
 0x290   : > { %338 = vst [vmem:[%s11610_s22 + $0x9c0] sm:%s13773_s9] %v337_v14  ;;  %340 = vst [vmem:[%s11610_s22 + $0x9e0] sm:%s13773_s9] %v339_v15 }
 0x291   : > { %v341_v16 = vld [vmem:[%s11606_s11 + $0xc80] sm:%s13773_s9]  ;;  %v343_v17 = vld [vmem:[%s11606_s11 + $0xca8] sm:%s13773_s9] }
 0x292   : > { %342 = vst [vmem:[%s11610_s22 + $0xa00] sm:%s13773_s9] %v341_v16  ;;  %344 = vst [vmem:[%s11610_s22 + $0xa20] sm:%s13773_s9] %v343_v17 }
 0x293   : > { %v345_v18 = vld [vmem:[%s11606_s11 + $0xcd0] sm:%s13773_s9]  ;;  %v347_v19 = vld [vmem:[%s11606_s11 + $0xcf8] sm:%s13773_s9] }
 0x294   : > { %346 = vst [vmem:[%s11610_s22 + $0xa40] sm:%s13773_s9] %v345_v18  ;;  %348 = vst [vmem:[%s11610_s22 + $0xa60] sm:%s13773_s9] %v347_v19 }
 0x295   : > { %v349_v20 = vld [vmem:[%s11606_s11 + $0xd20] sm:%s13773_s9]  ;;  %v351_v21 = vld [vmem:[%s11606_s11 + $0xd48] sm:%s13773_s9] }
 0x296   : > { %350 = vst [vmem:[%s11610_s22 + $0xa80] sm:%s13773_s9] %v349_v20  ;;  %352 = vst [vmem:[%s11610_s22 + $0xaa0] sm:%s13773_s9] %v351_v21 }
 0x297   : > { %v353_v22 = vld [vmem:[%s11606_s11 + $0xd70] sm:%s13773_s9]  ;;  %v355_v23 = vld [vmem:[%s11606_s11 + $0xd98] sm:%s13773_s9] }
 0x298   : > { %354 = vst [vmem:[%s11610_s22 + $0xac0] sm:%s13773_s9] %v353_v22  ;;  %356 = vst [vmem:[%s11610_s22 + $0xae0] sm:%s13773_s9] %v355_v23 }
 0x299   : > { %v357_v24 = vld [vmem:[%s11606_s11 + $0xdc0] sm:%s13773_s9]  ;;  %v359_v25 = vld [vmem:[%s11606_s11 + $0xde8] sm:%s13773_s9] }
 0x29a   : > { %358 = vst [vmem:[%s11610_s22 + $0xb00] sm:%s13773_s9] %v357_v24  ;;  %360 = vst [vmem:[%s11610_s22 + $0xb20] sm:%s13773_s9] %v359_v25 }
 0x29b   : > { %v361_v26 = vld [vmem:[%s11606_s11 + $0xe10] sm:%s13773_s9]  ;;  %v363_v27 = vld [vmem:[%s11606_s11 + $0xe38] sm:%s13773_s9] }
 0x29c   : > { %362 = vst [vmem:[%s11610_s22 + $0xb40] sm:%s13773_s9] %v361_v26  ;;  %364 = vst [vmem:[%s11610_s22 + $0xb60] sm:%s13773_s9] %v363_v27 }
 0x29d   : > { %v365_v28 = vld [vmem:[%s11606_s11 + $0xe60] sm:%s13773_s9]  ;;  %v367_v29 = vld [vmem:[%s11606_s11 + $0xe88] sm:%s13773_s9] }
 0x29e   : > { %366 = vst [vmem:[%s11610_s22 + $0xb80] sm:%s13773_s9] %v365_v28  ;;  %368 = vst [vmem:[%s11610_s22 + $0xba0] sm:%s13773_s9] %v367_v29 }
 0x29f   : > { %v369_v30 = vld [vmem:[%s11606_s11 + $0xeb0] sm:%s13773_s9]  ;;  %v371_v31 = vld [vmem:[%s11606_s11 + $0xed8] sm:%s13773_s9] }
 0x2a0   : > { %370 = vst [vmem:[%s11610_s22 + $0xbc0] sm:%s13773_s9] %v369_v30  ;;  %372 = vst [vmem:[%s11610_s22 + $0xbe0] sm:%s13773_s9] %v371_v31 }
 0x2a1   : > { %v373_v32 = vld [vmem:[%s11606_s11 + $0xf00] sm:%s13773_s9]  ;;  %v375_v33 = vld [vmem:[%s11606_s11 + $0xf28] sm:%s13773_s9] }
 0x2a2   : > { %374 = vst [vmem:[%s11610_s22 + $0xc00] sm:%s13773_s9] %v373_v32  ;;  %376 = vst [vmem:[%s11610_s22 + $0xc20] sm:%s13773_s9] %v375_v33 }
 0x2a3   : > { %v377_v34 = vld [vmem:[%s11606_s11 + $0xf50] sm:%s13773_s9]  ;;  %v379_v35 = vld [vmem:[%s11606_s11 + $0xf78] sm:%s13773_s9] }
 0x2a4   : > { %378 = vst [vmem:[%s11610_s22 + $0xc40] sm:%s13773_s9] %v377_v34  ;;  %380 = vst [vmem:[%s11610_s22 + $0xc60] sm:%s13773_s9] %v379_v35 }
 0x2a5   : > { %v381_v36 = vld [vmem:[%s11606_s11 + $0xfa0] sm:%s13773_s9]  ;;  %v383_v37 = vld [vmem:[%s11606_s11 + $0xfc8] sm:%s13773_s9] }
 0x2a6   : > { %382 = vst [vmem:[%s11610_s22 + $0xc80] sm:%s13773_s9] %v381_v36  ;;  %384 = vst [vmem:[%s11610_s22 + $0xca0] sm:%s13773_s9] %v383_v37 }
 0x2a7   : > { %v385_v38 = vld [vmem:[%s11606_s11 + $0xff0] sm:%s13773_s9]  ;;  %v387_v39 = vld [vmem:[%s11606_s11 + $0x1018] sm:%s13773_s9] }
 0x2a8   : > { %386 = vst [vmem:[%s11610_s22 + $0xcc0] sm:%s13773_s9] %v385_v38  ;;  %388 = vst [vmem:[%s11610_s22 + $0xce0] sm:%s13773_s9] %v387_v39 }
 0x2a9   : > { %v389_v40 = vld [vmem:[%s11606_s11 + $0x1040] sm:%s13773_s9]  ;;  %v391_v41 = vld [vmem:[%s11606_s11 + $0x1068] sm:%s13773_s9] }
 0x2aa   : > { %390 = vst [vmem:[%s11610_s22 + $0xd00] sm:%s13773_s9] %v389_v40  ;;  %392 = vst [vmem:[%s11610_s22 + $0xd20] sm:%s13773_s9] %v391_v41 }
 0x2ab   : > { %v393_v42 = vld [vmem:[%s11606_s11 + $0x1090] sm:%s13773_s9]  ;;  %v395_v43 = vld [vmem:[%s11606_s11 + $0x10b8] sm:%s13773_s9] }
 0x2ac   : > { %394 = vst [vmem:[%s11610_s22 + $0xd40] sm:%s13773_s9] %v393_v42  ;;  %396 = vst [vmem:[%s11610_s22 + $0xd60] sm:%s13773_s9] %v395_v43 }
 0x2ad   : > { %v397_v44 = vld [vmem:[%s11606_s11 + $0x10e0] sm:%s13773_s9]  ;;  %v399_v45 = vld [vmem:[%s11606_s11 + $0x1108] sm:%s13773_s9] }
 0x2ae   : > { %398 = vst [vmem:[%s11610_s22 + $0xd80] sm:%s13773_s9] %v397_v44  ;;  %400 = vst [vmem:[%s11610_s22 + $0xda0] sm:%s13773_s9] %v399_v45 }
 0x2af   : > { %v401_v46 = vld [vmem:[%s11606_s11 + $0x1130] sm:%s13773_s9]  ;;  %v403_v47 = vld [vmem:[%s11606_s11 + $0x1158] sm:%s13773_s9] }
 0x2b0   : > { %402 = vst [vmem:[%s11610_s22 + $0xdc0] sm:%s13773_s9] %v401_v46  ;;  %404 = vst [vmem:[%s11610_s22 + $0xde0] sm:%s13773_s9] %v403_v47 }
 0x2b1   : > { %v405_v48 = vld [vmem:[%s11606_s11 + $0x1180] sm:%s13773_s9]  ;;  %v407_v49 = vld [vmem:[%s11606_s11 + $0x11a8] sm:%s13773_s9] }
 0x2b2   : > { %406 = vst [vmem:[%s11610_s22 + $0xe00] sm:%s13773_s9] %v405_v48  ;;  %408 = vst [vmem:[%s11610_s22 + $0xe20] sm:%s13773_s9] %v407_v49 }
 0x2b3   : > { %v409_v50 = vld [vmem:[%s11606_s11 + $0x11d0] sm:%s13773_s9]  ;;  %v411_v51 = vld [vmem:[%s11606_s11 + $0x11f8] sm:%s13773_s9] }
 0x2b4   : > { %410 = vst [vmem:[%s11610_s22 + $0xe40] sm:%s13773_s9] %v409_v50  ;;  %412 = vst [vmem:[%s11610_s22 + $0xe60] sm:%s13773_s9] %v411_v51 }
 0x2b5   : > { %v413_v52 = vld [vmem:[%s11606_s11 + $0x1220] sm:%s13773_s9]  ;;  %v415_v53 = vld [vmem:[%s11606_s11 + $0x1248] sm:%s13773_s9] }
 0x2b6   : > { %414 = vst [vmem:[%s11610_s22 + $0xe80] sm:%s13773_s9] %v413_v52  ;;  %416 = vst [vmem:[%s11610_s22 + $0xea0] sm:%s13773_s9] %v415_v53 }
 0x2b7   : > { %v417_v54 = vld [vmem:[%s11606_s11 + $0x1270] sm:%s13773_s9]  ;;  %v419_v55 = vld [vmem:[%s11606_s11 + $0x1298] sm:%s13773_s9] }
 0x2b8   : > { %418 = vst [vmem:[%s11610_s22 + $0xec0] sm:%s13773_s9] %v417_v54  ;;  %420 = vst [vmem:[%s11610_s22 + $0xee0] sm:%s13773_s9] %v419_v55 }
 0x2b9   : > { %v421_v56 = vld [vmem:[%s11606_s11 + $0x12c0] sm:%s13773_s9]  ;;  %v423_v57 = vld [vmem:[%s11606_s11 + $0x12e8] sm:%s13773_s9] }
 0x2ba   : > { %422 = vst [vmem:[%s11610_s22 + $0xf00] sm:%s13773_s9] %v421_v56  ;;  %424 = vst [vmem:[%s11610_s22 + $0xf20] sm:%s13773_s9] %v423_v57 }
 0x2bb   : > { %v425_v58 = vld [vmem:[%s11606_s11 + $0x1310] sm:%s13773_s9]  ;;  %v427_v59 = vld [vmem:[%s11606_s11 + $0x1338] sm:%s13773_s9] }
 0x2bc   : > { %426 = vst [vmem:[%s11610_s22 + $0xf40] sm:%s13773_s9] %v425_v58  ;;  %428 = vst [vmem:[%s11610_s22 + $0xf60] sm:%s13773_s9] %v427_v59 }
 0x2bd   : > { %v429_v60 = vld [vmem:[%s11606_s11 + $0x1360] sm:%s13773_s9]  ;;  %v431_v61 = vld [vmem:[%s11606_s11 + $0x1388] sm:%s13773_s9] }
 0x2be   : > { %430 = vst [vmem:[%s11610_s22 + $0xf80] sm:%s13773_s9] %v429_v60  ;;  %432 = vst [vmem:[%s11610_s22 + $0xfa0] sm:%s13773_s9] %v431_v61 }
 0x2bf   : > { %v433_v62 = vld [vmem:[%s11606_s11 + $0x13b0] sm:%s13773_s9]  ;;  %v435_v63 = vld [vmem:[%s11606_s11 + $0x13d8] sm:%s13773_s9] }
 0x2c0   : > { %434 = vst [vmem:[%s11610_s22 + $0xfc0] sm:%s13773_s9] %v433_v62  ;;  %436 = vst [vmem:[%s11610_s22 + $0xfe0] sm:%s13773_s9] %v435_v63 }
 0x2c1   : > { %v437_v0 = vld [vmem:[%s11606_s11 + $0x1400] sm:%s13773_s9]  ;;  %v439_v1 = vld [vmem:[%s11606_s11 + $0x1428] sm:%s13773_s9] }
 0x2c2   : > { %438 = vst [vmem:[%s11610_s22 + $0x1000] sm:%s13773_s9] %v437_v0  ;;  %440 = vst [vmem:[%s11610_s22 + $0x1020] sm:%s13773_s9] %v439_v1 }
 0x2c3   : > { %v441_v2 = vld [vmem:[%s11606_s11 + $0x1450] sm:%s13773_s9]  ;;  %v443_v3 = vld [vmem:[%s11606_s11 + $0x1478] sm:%s13773_s9] }
 0x2c4   : > { %442 = vst [vmem:[%s11610_s22 + $0x1040] sm:%s13773_s9] %v441_v2  ;;  %444 = vst [vmem:[%s11610_s22 + $0x1060] sm:%s13773_s9] %v443_v3 }
 0x2c5   : > { %v445_v4 = vld [vmem:[%s11606_s11 + $0x14a0] sm:%s13773_s9]  ;;  %v447_v5 = vld [vmem:[%s11606_s11 + $0x14c8] sm:%s13773_s9] }
 0x2c6   : > { %446 = vst [vmem:[%s11610_s22 + $0x1080] sm:%s13773_s9] %v445_v4  ;;  %448 = vst [vmem:[%s11610_s22 + $0x10a0] sm:%s13773_s9] %v447_v5 }
 0x2c7   : > { %v449_v6 = vld [vmem:[%s11606_s11 + $0x14f0] sm:%s13773_s9]  ;;  %v451_v7 = vld [vmem:[%s11606_s11 + $0x1518] sm:%s13773_s9] }
 0x2c8   : > { %450 = vst [vmem:[%s11610_s22 + $0x10c0] sm:%s13773_s9] %v449_v6  ;;  %452 = vst [vmem:[%s11610_s22 + $0x10e0] sm:%s13773_s9] %v451_v7 }
 0x2c9   : > { %v453_v8 = vld [vmem:[%s11606_s11 + $0x1540] sm:%s13773_s9]  ;;  %v455_v9 = vld [vmem:[%s11606_s11 + $0x1568] sm:%s13773_s9] }
 0x2ca   : > { %454 = vst [vmem:[%s11610_s22 + $0x1100] sm:%s13773_s9] %v453_v8  ;;  %456 = vst [vmem:[%s11610_s22 + $0x1120] sm:%s13773_s9] %v455_v9 }
 0x2cb   : > { %v457_v10 = vld [vmem:[%s11606_s11 + $0x1590] sm:%s13773_s9]  ;;  %v459_v11 = vld [vmem:[%s11606_s11 + $0x15b8] sm:%s13773_s9] }
 0x2cc   : > { %458 = vst [vmem:[%s11610_s22 + $0x1140] sm:%s13773_s9] %v457_v10  ;;  %460 = vst [vmem:[%s11610_s22 + $0x1160] sm:%s13773_s9] %v459_v11 }
 0x2cd   : > { %v461_v12 = vld [vmem:[%s11606_s11 + $0x15e0] sm:%s13773_s9]  ;;  %v463_v13 = vld [vmem:[%s11606_s11 + $0x1608] sm:%s13773_s9] }
 0x2ce   : > { %462 = vst [vmem:[%s11610_s22 + $0x1180] sm:%s13773_s9] %v461_v12  ;;  %464 = vst [vmem:[%s11610_s22 + $0x11a0] sm:%s13773_s9] %v463_v13 }
 0x2cf   : > { %v465_v14 = vld [vmem:[%s11606_s11 + $0x1630] sm:%s13773_s9]  ;;  %v467_v15 = vld [vmem:[%s11606_s11 + $0x1658] sm:%s13773_s9] }
 0x2d0   : > { %466 = vst [vmem:[%s11610_s22 + $0x11c0] sm:%s13773_s9] %v465_v14  ;;  %468 = vst [vmem:[%s11610_s22 + $0x11e0] sm:%s13773_s9] %v467_v15 }
 0x2d1   : > { %v469_v16 = vld [vmem:[%s11606_s11 + $0x1680] sm:%s13773_s9]  ;;  %v471_v17 = vld [vmem:[%s11606_s11 + $0x16a8] sm:%s13773_s9] }
 0x2d2   : > { %470 = vst [vmem:[%s11610_s22 + $0x1200] sm:%s13773_s9] %v469_v16  ;;  %472 = vst [vmem:[%s11610_s22 + $0x1220] sm:%s13773_s9] %v471_v17 }
 0x2d3   : > { %v473_v18 = vld [vmem:[%s11606_s11 + $0x16d0] sm:%s13773_s9]  ;;  %v475_v19 = vld [vmem:[%s11606_s11 + $0x16f8] sm:%s13773_s9] }
 0x2d4   : > { %474 = vst [vmem:[%s11610_s22 + $0x1240] sm:%s13773_s9] %v473_v18  ;;  %476 = vst [vmem:[%s11610_s22 + $0x1260] sm:%s13773_s9] %v475_v19 }
 0x2d5   : > { %v477_v20 = vld [vmem:[%s11606_s11 + $0x1720] sm:%s13773_s9]  ;;  %v479_v21 = vld [vmem:[%s11606_s11 + $0x1748] sm:%s13773_s9] }
 0x2d6   : > { %478 = vst [vmem:[%s11610_s22 + $0x1280] sm:%s13773_s9] %v477_v20  ;;  %480 = vst [vmem:[%s11610_s22 + $0x12a0] sm:%s13773_s9] %v479_v21 }
 0x2d7   : > { %v481_v22 = vld [vmem:[%s11606_s11 + $0x1770] sm:%s13773_s9]  ;;  %v483_v23 = vld [vmem:[%s11606_s11 + $0x1798] sm:%s13773_s9] }
 0x2d8   : > { %482 = vst [vmem:[%s11610_s22 + $0x12c0] sm:%s13773_s9] %v481_v22  ;;  %484 = vst [vmem:[%s11610_s22 + $0x12e0] sm:%s13773_s9] %v483_v23 }
 0x2d9   : > { %v485_v24 = vld [vmem:[%s11606_s11 + $0x17c0] sm:%s13773_s9]  ;;  %v487_v25 = vld [vmem:[%s11606_s11 + $0x17e8] sm:%s13773_s9] }
 0x2da   : > { %486 = vst [vmem:[%s11610_s22 + $0x1300] sm:%s13773_s9] %v485_v24  ;;  %488 = vst [vmem:[%s11610_s22 + $0x1320] sm:%s13773_s9] %v487_v25 }
 0x2db   : > { %v489_v26 = vld [vmem:[%s11606_s11 + $0x1810] sm:%s13773_s9]  ;;  %v491_v27 = vld [vmem:[%s11606_s11 + $0x1838] sm:%s13773_s9] }
 0x2dc   : > { %490 = vst [vmem:[%s11610_s22 + $0x1340] sm:%s13773_s9] %v489_v26  ;;  %492 = vst [vmem:[%s11610_s22 + $0x1360] sm:%s13773_s9] %v491_v27 }
 0x2dd   : > { %v493_v28 = vld [vmem:[%s11606_s11 + $0x1860] sm:%s13773_s9]  ;;  %v495_v29 = vld [vmem:[%s11606_s11 + $0x1888] sm:%s13773_s9] }
 0x2de   : > { %494 = vst [vmem:[%s11610_s22 + $0x1380] sm:%s13773_s9] %v493_v28  ;;  %496 = vst [vmem:[%s11610_s22 + $0x13a0] sm:%s13773_s9] %v495_v29 }
 0x2df   : > { %v497_v30 = vld [vmem:[%s11606_s11 + $0x18b0] sm:%s13773_s9]  ;;  %v499_v31 = vld [vmem:[%s11606_s11 + $0x18d8] sm:%s13773_s9] }
 0x2e0   : > { %498 = vst [vmem:[%s11610_s22 + $0x13c0] sm:%s13773_s9] %v497_v30  ;;  %500 = vst [vmem:[%s11610_s22 + $0x13e0] sm:%s13773_s9] %v499_v31 }
 0x2e1   : > { %v501_v32 = vld [vmem:[%s11606_s11 + $0x1900] sm:%s13773_s9]  ;;  %v503_v33 = vld [vmem:[%s11606_s11 + $0x1928] sm:%s13773_s9] }
 0x2e2   : > { %502 = vst [vmem:[%s11610_s22 + $0x1400] sm:%s13773_s9] %v501_v32  ;;  %504 = vst [vmem:[%s11610_s22 + $0x1420] sm:%s13773_s9] %v503_v33 }
 0x2e3   : > { %v505_v34 = vld [vmem:[%s11606_s11 + $0x1950] sm:%s13773_s9]  ;;  %v507_v35 = vld [vmem:[%s11606_s11 + $0x1978] sm:%s13773_s9] }
 0x2e4   : > { %506 = vst [vmem:[%s11610_s22 + $0x1440] sm:%s13773_s9] %v505_v34  ;;  %508 = vst [vmem:[%s11610_s22 + $0x1460] sm:%s13773_s9] %v507_v35 }
 0x2e5   : > { %v509_v36 = vld [vmem:[%s11606_s11 + $0x19a0] sm:%s13773_s9]  ;;  %v511_v37 = vld [vmem:[%s11606_s11 + $0x19c8] sm:%s13773_s9] }
 0x2e6   : > { %510 = vst [vmem:[%s11610_s22 + $0x1480] sm:%s13773_s9] %v509_v36  ;;  %512 = vst [vmem:[%s11610_s22 + $0x14a0] sm:%s13773_s9] %v511_v37 }
 0x2e7   : > { %v513_v38 = vld [vmem:[%s11606_s11 + $0x19f0] sm:%s13773_s9]  ;;  %v515_v39 = vld [vmem:[%s11606_s11 + $0x1a18] sm:%s13773_s9] }
 0x2e8   : > { %514 = vst [vmem:[%s11610_s22 + $0x14c0] sm:%s13773_s9] %v513_v38  ;;  %516 = vst [vmem:[%s11610_s22 + $0x14e0] sm:%s13773_s9] %v515_v39 }
 0x2e9   : > { %v517_v40 = vld [vmem:[%s11606_s11 + $0x1a40] sm:%s13773_s9]  ;;  %v519_v41 = vld [vmem:[%s11606_s11 + $0x1a68] sm:%s13773_s9] }
 0x2ea   : > { %518 = vst [vmem:[%s11610_s22 + $0x1500] sm:%s13773_s9] %v517_v40  ;;  %520 = vst [vmem:[%s11610_s22 + $0x1520] sm:%s13773_s9] %v519_v41 }
 0x2eb   : > { %v521_v42 = vld [vmem:[%s11606_s11 + $0x1a90] sm:%s13773_s9]  ;;  %v523_v43 = vld [vmem:[%s11606_s11 + $0x1ab8] sm:%s13773_s9] }
 0x2ec   : > { %522 = vst [vmem:[%s11610_s22 + $0x1540] sm:%s13773_s9] %v521_v42  ;;  %524 = vst [vmem:[%s11610_s22 + $0x1560] sm:%s13773_s9] %v523_v43 }
 0x2ed   : > { %v525_v44 = vld [vmem:[%s11606_s11 + $0x1ae0] sm:%s13773_s9]  ;;  %v527_v45 = vld [vmem:[%s11606_s11 + $0x1b08] sm:%s13773_s9] }
 0x2ee   : > { %526 = vst [vmem:[%s11610_s22 + $0x1580] sm:%s13773_s9] %v525_v44  ;;  %528 = vst [vmem:[%s11610_s22 + $0x15a0] sm:%s13773_s9] %v527_v45 }
 0x2ef   : > { %v529_v46 = vld [vmem:[%s11606_s11 + $0x1b30] sm:%s13773_s9]  ;;  %v531_v47 = vld [vmem:[%s11606_s11 + $0x1b58] sm:%s13773_s9] }
 0x2f0   : > { %530 = vst [vmem:[%s11610_s22 + $0x15c0] sm:%s13773_s9] %v529_v46  ;;  %532 = vst [vmem:[%s11610_s22 + $0x15e0] sm:%s13773_s9] %v531_v47 }
 0x2f1   : > { %v533_v48 = vld [vmem:[%s11606_s11 + $0x1b80] sm:%s13773_s9]  ;;  %v535_v49 = vld [vmem:[%s11606_s11 + $0x1ba8] sm:%s13773_s9] }
 0x2f2   : > { %534 = vst [vmem:[%s11610_s22 + $0x1600] sm:%s13773_s9] %v533_v48  ;;  %536 = vst [vmem:[%s11610_s22 + $0x1620] sm:%s13773_s9] %v535_v49 }
 0x2f3   : > { %v537_v50 = vld [vmem:[%s11606_s11 + $0x1bd0] sm:%s13773_s9]  ;;  %v539_v51 = vld [vmem:[%s11606_s11 + $0x1bf8] sm:%s13773_s9] }
 0x2f4   : > { %538 = vst [vmem:[%s11610_s22 + $0x1640] sm:%s13773_s9] %v537_v50  ;;  %540 = vst [vmem:[%s11610_s22 + $0x1660] sm:%s13773_s9] %v539_v51 }
 0x2f5   : > { %v541_v52 = vld [vmem:[%s11606_s11 + $0x1c20] sm:%s13773_s9]  ;;  %v543_v53 = vld [vmem:[%s11606_s11 + $0x1c48] sm:%s13773_s9] }
 0x2f6   : > { %542 = vst [vmem:[%s11610_s22 + $0x1680] sm:%s13773_s9] %v541_v52  ;;  %544 = vst [vmem:[%s11610_s22 + $0x16a0] sm:%s13773_s9] %v543_v53 }
 0x2f7   : > { %v545_v54 = vld [vmem:[%s11606_s11 + $0x1c70] sm:%s13773_s9]  ;;  %v547_v55 = vld [vmem:[%s11606_s11 + $0x1c98] sm:%s13773_s9] }
 0x2f8   : > { %546 = vst [vmem:[%s11610_s22 + $0x16c0] sm:%s13773_s9] %v545_v54  ;;  %548 = vst [vmem:[%s11610_s22 + $0x16e0] sm:%s13773_s9] %v547_v55 }
 0x2f9   : > { %v549_v56 = vld [vmem:[%s11606_s11 + $0x1cc0] sm:%s13773_s9]  ;;  %v551_v57 = vld [vmem:[%s11606_s11 + $0x1ce8] sm:%s13773_s9] }
 0x2fa   : > { %550 = vst [vmem:[%s11610_s22 + $0x1700] sm:%s13773_s9] %v549_v56  ;;  %552 = vst [vmem:[%s11610_s22 + $0x1720] sm:%s13773_s9] %v551_v57 }
 0x2fb   : > { %v553_v58 = vld [vmem:[%s11606_s11 + $0x1d10] sm:%s13773_s9]  ;;  %v555_v59 = vld [vmem:[%s11606_s11 + $0x1d38] sm:%s13773_s9] }
 0x2fc   : > { %554 = vst [vmem:[%s11610_s22 + $0x1740] sm:%s13773_s9] %v553_v58  ;;  %556 = vst [vmem:[%s11610_s22 + $0x1760] sm:%s13773_s9] %v555_v59 }
 0x2fd   : > { %v557_v60 = vld [vmem:[%s11606_s11 + $0x1d60] sm:%s13773_s9]  ;;  %v559_v61 = vld [vmem:[%s11606_s11 + $0x1d88] sm:%s13773_s9] }
 0x2fe   : > { %558 = vst [vmem:[%s11610_s22 + $0x1780] sm:%s13773_s9] %v557_v60  ;;  %560 = vst [vmem:[%s11610_s22 + $0x17a0] sm:%s13773_s9] %v559_v61 }
 0x2ff   : > { %v561_v62 = vld [vmem:[%s11606_s11 + $0x1db0] sm:%s13773_s9]  ;;  %v563_v63 = vld [vmem:[%s11606_s11 + $0x1dd8] sm:%s13773_s9] }
 0x300   : > { %562 = vst [vmem:[%s11610_s22 + $0x17c0] sm:%s13773_s9] %v561_v62  ;;  %564 = vst [vmem:[%s11610_s22 + $0x17e0] sm:%s13773_s9] %v563_v63 }
 0x301   : > { %v565_v0 = vld [vmem:[%s11606_s11 + $0x1e00] sm:%s13773_s9]  ;;  %v567_v1 = vld [vmem:[%s11606_s11 + $0x1e28] sm:%s13773_s9] }
 0x302   : > { %566 = vst [vmem:[%s11610_s22 + $0x1800] sm:%s13773_s9] %v565_v0  ;;  %568 = vst [vmem:[%s11610_s22 + $0x1820] sm:%s13773_s9] %v567_v1 }
 0x303   : > { %v569_v2 = vld [vmem:[%s11606_s11 + $0x1e50] sm:%s13773_s9]  ;;  %v571_v3 = vld [vmem:[%s11606_s11 + $0x1e78] sm:%s13773_s9] }
 0x304   : > { %570 = vst [vmem:[%s11610_s22 + $0x1840] sm:%s13773_s9] %v569_v2  ;;  %572 = vst [vmem:[%s11610_s22 + $0x1860] sm:%s13773_s9] %v571_v3 }
 0x305   : > { %v573_v4 = vld [vmem:[%s11606_s11 + $0x1ea0] sm:%s13773_s9]  ;;  %v575_v5 = vld [vmem:[%s11606_s11 + $0x1ec8] sm:%s13773_s9] }
 0x306   : > { %574 = vst [vmem:[%s11610_s22 + $0x1880] sm:%s13773_s9] %v573_v4  ;;  %576 = vst [vmem:[%s11610_s22 + $0x18a0] sm:%s13773_s9] %v575_v5 }
 0x307   : > { %v577_v6 = vld [vmem:[%s11606_s11 + $0x1ef0] sm:%s13773_s9]  ;;  %v579_v7 = vld [vmem:[%s11606_s11 + $0x1f18] sm:%s13773_s9] }
 0x308   : > { %578 = vst [vmem:[%s11610_s22 + $0x18c0] sm:%s13773_s9] %v577_v6  ;;  %580 = vst [vmem:[%s11610_s22 + $0x18e0] sm:%s13773_s9] %v579_v7 }
 0x309   : > { %v581_v8 = vld [vmem:[%s11606_s11 + $0x1f40] sm:%s13773_s9]  ;;  %v583_v9 = vld [vmem:[%s11606_s11 + $0x1f68] sm:%s13773_s9] }
 0x30a   : > { %582 = vst [vmem:[%s11610_s22 + $0x1900] sm:%s13773_s9] %v581_v8  ;;  %584 = vst [vmem:[%s11610_s22 + $0x1920] sm:%s13773_s9] %v583_v9 }
 0x30b   : > { %v585_v10 = vld [vmem:[%s11606_s11 + $0x1f90] sm:%s13773_s9]  ;;  %v587_v11 = vld [vmem:[%s11606_s11 + $0x1fb8] sm:%s13773_s9] }
 0x30c   : > { %586 = vst [vmem:[%s11610_s22 + $0x1940] sm:%s13773_s9] %v585_v10  ;;  %588 = vst [vmem:[%s11610_s22 + $0x1960] sm:%s13773_s9] %v587_v11 }
 0x30d   : > { %v589_v12 = vld [vmem:[%s11606_s11 + $0x1fe0] sm:%s13773_s9]  ;;  %v591_v13 = vld [vmem:[%s11606_s11 + $0x2008] sm:%s13773_s9] }
 0x30e   : > { %590 = vst [vmem:[%s11610_s22 + $0x1980] sm:%s13773_s9] %v589_v12  ;;  %592 = vst [vmem:[%s11610_s22 + $0x19a0] sm:%s13773_s9] %v591_v13 }
 0x30f   : > { %v593_v14 = vld [vmem:[%s11606_s11 + $0x2030] sm:%s13773_s9]  ;;  %v595_v15 = vld [vmem:[%s11606_s11 + $0x2058] sm:%s13773_s9] }
 0x310   : > { %594 = vst [vmem:[%s11610_s22 + $0x19c0] sm:%s13773_s9] %v593_v14  ;;  %596 = vst [vmem:[%s11610_s22 + $0x19e0] sm:%s13773_s9] %v595_v15 }
 0x311   : > { %v597_v16 = vld [vmem:[%s11606_s11 + $0x2080] sm:%s13773_s9]  ;;  %v599_v17 = vld [vmem:[%s11606_s11 + $0x20a8] sm:%s13773_s9] }
 0x312   : > { %598 = vst [vmem:[%s11610_s22 + $0x1a00] sm:%s13773_s9] %v597_v16  ;;  %600 = vst [vmem:[%s11610_s22 + $0x1a20] sm:%s13773_s9] %v599_v17 }
 0x313   : > { %v601_v18 = vld [vmem:[%s11606_s11 + $0x20d0] sm:%s13773_s9]  ;;  %v603_v19 = vld [vmem:[%s11606_s11 + $0x20f8] sm:%s13773_s9] }
 0x314   : > { %602 = vst [vmem:[%s11610_s22 + $0x1a40] sm:%s13773_s9] %v601_v18  ;;  %604 = vst [vmem:[%s11610_s22 + $0x1a60] sm:%s13773_s9] %v603_v19 }
 0x315   : > { %v605_v20 = vld [vmem:[%s11606_s11 + $0x2120] sm:%s13773_s9]  ;;  %v607_v21 = vld [vmem:[%s11606_s11 + $0x2148] sm:%s13773_s9] }
 0x316   : > { %606 = vst [vmem:[%s11610_s22 + $0x1a80] sm:%s13773_s9] %v605_v20  ;;  %608 = vst [vmem:[%s11610_s22 + $0x1aa0] sm:%s13773_s9] %v607_v21 }
 0x317   : > { %v609_v22 = vld [vmem:[%s11606_s11 + $0x2170] sm:%s13773_s9]  ;;  %v611_v23 = vld [vmem:[%s11606_s11 + $0x2198] sm:%s13773_s9] }
 0x318   : > { %610 = vst [vmem:[%s11610_s22 + $0x1ac0] sm:%s13773_s9] %v609_v22  ;;  %612 = vst [vmem:[%s11610_s22 + $0x1ae0] sm:%s13773_s9] %v611_v23 }
 0x319   : > { %v613_v24 = vld [vmem:[%s11606_s11 + $0x21c0] sm:%s13773_s9]  ;;  %v615_v25 = vld [vmem:[%s11606_s11 + $0x21e8] sm:%s13773_s9] }
 0x31a   : > { %614 = vst [vmem:[%s11610_s22 + $0x1b00] sm:%s13773_s9] %v613_v24  ;;  %616 = vst [vmem:[%s11610_s22 + $0x1b20] sm:%s13773_s9] %v615_v25 }
 0x31b   : > { %v617_v26 = vld [vmem:[%s11606_s11 + $0x2210] sm:%s13773_s9]  ;;  %v619_v27 = vld [vmem:[%s11606_s11 + $0x2238] sm:%s13773_s9] }
 0x31c   : > { %618 = vst [vmem:[%s11610_s22 + $0x1b40] sm:%s13773_s9] %v617_v26  ;;  %620 = vst [vmem:[%s11610_s22 + $0x1b60] sm:%s13773_s9] %v619_v27 }
 0x31d   : > { %v621_v28 = vld [vmem:[%s11606_s11 + $0x2260] sm:%s13773_s9]  ;;  %v623_v29 = vld [vmem:[%s11606_s11 + $0x2288] sm:%s13773_s9] }
 0x31e   : > { %622 = vst [vmem:[%s11610_s22 + $0x1b80] sm:%s13773_s9] %v621_v28  ;;  %624 = vst [vmem:[%s11610_s22 + $0x1ba0] sm:%s13773_s9] %v623_v29 }
 0x31f   : > { %v625_v30 = vld [vmem:[%s11606_s11 + $0x22b0] sm:%s13773_s9]  ;;  %v627_v31 = vld [vmem:[%s11606_s11 + $0x22d8] sm:%s13773_s9] }
 0x320   : > { %626 = vst [vmem:[%s11610_s22 + $0x1bc0] sm:%s13773_s9] %v625_v30  ;;  %628 = vst [vmem:[%s11610_s22 + $0x1be0] sm:%s13773_s9] %v627_v31 }
 0x321   : > { %v629_v32 = vld [vmem:[%s11606_s11 + $0x2300] sm:%s13773_s9]  ;;  %v631_v33 = vld [vmem:[%s11606_s11 + $0x2328] sm:%s13773_s9] }
 0x322   : > { %630 = vst [vmem:[%s11610_s22 + $0x1c00] sm:%s13773_s9] %v629_v32  ;;  %632 = vst [vmem:[%s11610_s22 + $0x1c20] sm:%s13773_s9] %v631_v33 }
 0x323   : > { %v633_v34 = vld [vmem:[%s11606_s11 + $0x2350] sm:%s13773_s9]  ;;  %v635_v35 = vld [vmem:[%s11606_s11 + $0x2378] sm:%s13773_s9] }
 0x324   : > { %634 = vst [vmem:[%s11610_s22 + $0x1c40] sm:%s13773_s9] %v633_v34  ;;  %636 = vst [vmem:[%s11610_s22 + $0x1c60] sm:%s13773_s9] %v635_v35 }
 0x325   : > { %v637_v36 = vld [vmem:[%s11606_s11 + $0x23a0] sm:%s13773_s9]  ;;  %v639_v37 = vld [vmem:[%s11606_s11 + $0x23c8] sm:%s13773_s9] }
 0x326   : > { %638 = vst [vmem:[%s11610_s22 + $0x1c80] sm:%s13773_s9] %v637_v36  ;;  %640 = vst [vmem:[%s11610_s22 + $0x1ca0] sm:%s13773_s9] %v639_v37 }
 0x327   : > { %v641_v38 = vld [vmem:[%s11606_s11 + $0x23f0] sm:%s13773_s9]  ;;  %v643_v39 = vld [vmem:[%s11606_s11 + $0x2418] sm:%s13773_s9] }
 0x328   : > { %642 = vst [vmem:[%s11610_s22 + $0x1cc0] sm:%s13773_s9] %v641_v38  ;;  %644 = vst [vmem:[%s11610_s22 + $0x1ce0] sm:%s13773_s9] %v643_v39 }
 0x329   : > { %v645_v40 = vld [vmem:[%s11606_s11 + $0x2440] sm:%s13773_s9]  ;;  %v647_v41 = vld [vmem:[%s11606_s11 + $0x2468] sm:%s13773_s9] }
 0x32a   : > { %646 = vst [vmem:[%s11610_s22 + $0x1d00] sm:%s13773_s9] %v645_v40  ;;  %648 = vst [vmem:[%s11610_s22 + $0x1d20] sm:%s13773_s9] %v647_v41 }
 0x32b   : > { %v649_v42 = vld [vmem:[%s11606_s11 + $0x2490] sm:%s13773_s9]  ;;  %v651_v43 = vld [vmem:[%s11606_s11 + $0x24b8] sm:%s13773_s9] }
 0x32c   : > { %650 = vst [vmem:[%s11610_s22 + $0x1d40] sm:%s13773_s9] %v649_v42  ;;  %652 = vst [vmem:[%s11610_s22 + $0x1d60] sm:%s13773_s9] %v651_v43 }
 0x32d   : > { %v653_v44 = vld [vmem:[%s11606_s11 + $0x24e0] sm:%s13773_s9]  ;;  %v655_v45 = vld [vmem:[%s11606_s11 + $0x2508] sm:%s13773_s9] }
 0x32e   : > { %654 = vst [vmem:[%s11610_s22 + $0x1d80] sm:%s13773_s9] %v653_v44  ;;  %656 = vst [vmem:[%s11610_s22 + $0x1da0] sm:%s13773_s9] %v655_v45 }
 0x32f   : > { %v657_v46 = vld [vmem:[%s11606_s11 + $0x2530] sm:%s13773_s9]  ;;  %v659_v47 = vld [vmem:[%s11606_s11 + $0x2558] sm:%s13773_s9] }
 0x330   : > { %658 = vst [vmem:[%s11610_s22 + $0x1dc0] sm:%s13773_s9] %v657_v46  ;;  %660 = vst [vmem:[%s11610_s22 + $0x1de0] sm:%s13773_s9] %v659_v47 }
 0x331   : > { %v661_v48 = vld [vmem:[%s11606_s11 + $0x2580] sm:%s13773_s9]  ;;  %v663_v49 = vld [vmem:[%s11606_s11 + $0x25a8] sm:%s13773_s9] }
 0x332   : > { %662 = vst [vmem:[%s11610_s22 + $0x1e00] sm:%s13773_s9] %v661_v48  ;;  %664 = vst [vmem:[%s11610_s22 + $0x1e20] sm:%s13773_s9] %v663_v49 }
 0x333   : > { %v665_v50 = vld [vmem:[%s11606_s11 + $0x25d0] sm:%s13773_s9]  ;;  %v667_v51 = vld [vmem:[%s11606_s11 + $0x25f8] sm:%s13773_s9] }
 0x334   : > { %666 = vst [vmem:[%s11610_s22 + $0x1e40] sm:%s13773_s9] %v665_v50  ;;  %668 = vst [vmem:[%s11610_s22 + $0x1e60] sm:%s13773_s9] %v667_v51 }
 0x335   : > { %v669_v52 = vld [vmem:[%s11606_s11 + $0x2620] sm:%s13773_s9]  ;;  %v671_v53 = vld [vmem:[%s11606_s11 + $0x2648] sm:%s13773_s9] }
 0x336   : > { %670 = vst [vmem:[%s11610_s22 + $0x1e80] sm:%s13773_s9] %v669_v52  ;;  %672 = vst [vmem:[%s11610_s22 + $0x1ea0] sm:%s13773_s9] %v671_v53 }
 0x337   : > { %v673_v54 = vld [vmem:[%s11606_s11 + $0x2670] sm:%s13773_s9]  ;;  %v675_v55 = vld [vmem:[%s11606_s11 + $0x2698] sm:%s13773_s9] }
 0x338   : > { %674 = vst [vmem:[%s11610_s22 + $0x1ec0] sm:%s13773_s9] %v673_v54  ;;  %676 = vst [vmem:[%s11610_s22 + $0x1ee0] sm:%s13773_s9] %v675_v55 }
 0x339   : > { %v677_v56 = vld [vmem:[%s11606_s11 + $0x26c0] sm:%s13773_s9]  ;;  %v679_v57 = vld [vmem:[%s11606_s11 + $0x26e8] sm:%s13773_s9] }
 0x33a   : > { %678 = vst [vmem:[%s11610_s22 + $0x1f00] sm:%s13773_s9] %v677_v56  ;;  %680 = vst [vmem:[%s11610_s22 + $0x1f20] sm:%s13773_s9] %v679_v57 }
 0x33b   : > { %v681_v58 = vld [vmem:[%s11606_s11 + $0x2710] sm:%s13773_s9]  ;;  %v683_v59 = vld [vmem:[%s11606_s11 + $0x2738] sm:%s13773_s9] }
 0x33c   : > { %682 = vst [vmem:[%s11610_s22 + $0x1f40] sm:%s13773_s9] %v681_v58  ;;  %684 = vst [vmem:[%s11610_s22 + $0x1f60] sm:%s13773_s9] %v683_v59 }
 0x33d   : > { %v685_v60 = vld [vmem:[%s11606_s11 + $0x2760] sm:%s13773_s9]  ;;  %v687_v61 = vld [vmem:[%s11606_s11 + $0x2788] sm:%s13773_s9] }
 0x33e   : > { %686 = vst [vmem:[%s11610_s22 + $0x1f80] sm:%s13773_s9] %v685_v60  ;;  %688 = vst [vmem:[%s11610_s22 + $0x1fa0] sm:%s13773_s9] %v687_v61 }
 0x33f   : > { %v689_v62 = vld [vmem:[%s11606_s11 + $0x27b0] sm:%s13773_s9]  ;;  %v691_v63 = vld [vmem:[%s11606_s11 + $0x27d8] sm:%s13773_s9] }
 0x340   : > { %690 = vst [vmem:[%s11610_s22 + $0x1fc0] sm:%s13773_s9] %v689_v62  ;;  %692 = vst [vmem:[%s11610_s22 + $0x1fe0] sm:%s13773_s9] %v691_v63 }
 0x341 PF: > { %p9693_p5 = scmp.ge.s32.totalorder %s11418_s18, 1  ;;  %p2291_p7 = scmp.lt.s32.totalorder %s11418_s18, 5 }
 0x343   : > { %p2292_p8 = pnand %p9693_p5, %p2291_p7 }
 0x344   : > { %s2298_s21 = sand.u32 (!%p2292_p8), 1, %s11394_s12   ;;  %v3866_v0 = vld [vmem:[%s17728_s1] sm:$0xff] (!%p2292_p8) }
 0x345   : > { %2295 = sbr.rel (%p2292_p8) target bundleno = 2411 (0x96b), region = 80  ;;  %v3874_v1 = vld [vmem:[%s17728_s1 + $0x40] sm:$0xff] (!%p2292_p8)  ;;  %s9694_s22 = sshll.u32 (!%p2292_p8), %s2298_s21, 13 }
 0x346   : > { %v14810_v2 = vcombine.low (!%p2292_p8), %v3866_v0, %v3874_v1  ;;  %v9697_v3 = vcombine.high (!%p2292_p8), %v3866_v0, %v3874_v1  ;;  %s14812_s25 = scalar_lea.vmem (!%p2292_p8), [#allocation2], %s9694_s22  ;;  %s9695_s28 = sshll.u32 (!%p2292_p8), %s2298_s21, 10 }
 0x347   : > { %v2331_v4 = vld [vmem:[%s14812_s25 + $0x8] sm:$0xff] (!%p2292_p8)  ;;  %v2333_v6 = vld [vmem:[%s14812_s25 + $0x18] sm:$0xff] (!%p2292_p8)  ;;  %v2330_v9 = vld [vmem:[%s14812_s25] sm:$0xff] (!%p2292_p8)  ;;  %s16700_s4 = scalar_lea.vmem (!%p2292_p8), [#allocation3], %s9695_s28  }
 0x348   : > { %v2335_v5 = vld [vmem:[%s14812_s25 + $0x28] sm:$0xff] (!%p2292_p8)  ;;  %5626 = vmatprep.mubr.bf16.mxu0 (!%p2292_p8), %v9697_v3  ;;  %7170 = vmatprep.mubr.bf16.mxu1 (!%p2292_p8), %v9697_v3  ;;  %v2337_v8 = vld [vmem:[%s14812_s25 + $0x38] sm:$0xff] (!%p2292_p8)  ;;  %v2334_v10 = vld [vmem:[%s14812_s25 + $0x20] sm:$0xff] (!%p2292_p8) }
 0x349   : > { %v3355_v7 = vpack.c.bf16 (!%p2292_p8), %v2335_v5, %v2331_v4  ;;  %v3357_v11 = vpack.c.bf16 (!%p2292_p8), %v2337_v8, %v2333_v6  ;;  %v3354_v12 = vpack.c.bf16 (!%p2292_p8), %v2334_v10, %v2330_v9  ;;  %v2332_v13 = vld [vmem:[%s14812_s25 + $0x10] sm:$0xff] (!%p2292_p8)  ;;  %v2339_v15 = vld [vmem:[%s14812_s25 + $0x48] sm:$0xff] (!%p2292_p8)  ;;  %v2341_v18 = vld [vmem:[%s14812_s25 + $0x58] sm:$0xff] (!%p2292_p8) }
 0x34a   : > { %v2336_v14 = vld [vmem:[%s14812_s25 + $0x30] sm:$0xff] (!%p2292_p8)  ;;  %v2343_v17 = vld [vmem:[%s14812_s25 + $0x68] sm:$0xff] (!%p2292_p8)  ;;  %v2345_v19 = vld [vmem:[%s14812_s25 + $0x78] sm:$0xff] (!%p2292_p8) }
 0x34b   : > { %5594 = vmatprep.subr.bf16.mxu0 (!%p2292_p8), %v3355_v7  ;;  %v3356_v16 = vpack.c.bf16 (!%p2292_p8), %v2336_v14, %v2332_v13  ;;  %7138 = vmatprep.subr.bf16.mxu1 (!%p2292_p8), %v3357_v11  ;;  %v3359_v20 = vpack.c.bf16 (!%p2292_p8), %v2343_v17, %v2339_v15  ;;  %v3361_v21 = vpack.c.bf16 (!%p2292_p8), %v2345_v19, %v2341_v18  ;;  %v2338_v22 = vld [vmem:[%s14812_s25 + $0x40] sm:$0xff] (!%p2292_p8)  ;;  %v2340_v24 = vld [vmem:[%s14812_s25 + $0x50] sm:$0xff] (!%p2292_p8)  ;;  %v2347_v27 = vld [vmem:[%s14812_s25 + $0x88] sm:$0xff] (!%p2292_p8) }
 0x34c   : > { %5595 = vmatpush1.bf16.msra.mxu0 %v3354_v12  ;;  %v2342_v23 = vld [vmem:[%s14812_s25 + $0x60] sm:$0xff]  ;;  %v2344_v26 = vld [vmem:[%s14812_s25 + $0x70] sm:$0xff]  ;;  %v2351_v28 = vld [vmem:[%s14812_s25 + $0xa8] sm:$0xff]  ;;  %s9953_s12 = sshll.u32 (%p11589_p6), %s11402_s14, 2  ;;  %s11010_s21 = smul.u32 (%p11589_p6), 160, %s11406_s15 }
 0x34d   : > { %7139 = vmatpush1.bf16.msra.mxu1 %v3356_v16  ;;  %v3358_v25 = vpack.c.bf16 %v2342_v23, %v2338_v22  ;;  %5596 = vmatprep.subr.bf16.mxu0 %v3359_v20  ;;  %v3360_v29 = vpack.c.bf16 %v2344_v26, %v2340_v24  ;;  %v3363_v30 = vpack.c.bf16 %v2351_v28, %v2347_v27  ;;  %v2349_v31 = vld [vmem:[%s14812_s25 + $0x98] sm:$0xff]  ;;  %v2346_v33 = vld [vmem:[%s14812_s25 + $0x80] sm:$0xff]  ;;  %v2348_v36 = vld [vmem:[%s14812_s25 + $0x90] sm:$0xff]  ;;  %s8818_s6 = ssub.s32 (%p11589_p6), 5, %s9953_s12 }
 0x34e   : > { %7140 = vmatprep.subr.bf16.mxu1 %v3361_v21  ;;  %v2353_v32 = vld [vmem:[%s14812_s25 + $0xb8] sm:$0xff]  ;;  %v2350_v35 = vld [vmem:[%s14812_s25 + $0xa0] sm:$0xff]  ;;  %v2352_v37 = vld [vmem:[%s14812_s25 + $0xb0] sm:$0xff]  ;;  %p8819_p9 = scmp.lt.s32.totalorder (%p11589_p6), %s8818_s6, 4  ;;  %s8824_s7 = sadd.s32 (%p11589_p6), %s11010_s21, %s9953_s12 }
 0x34f   : > { %v3365_v34 = vpack.c.bf16 %v2353_v32, %v2349_v31  ;;  %v3362_v38 = vpack.c.bf16 %v2350_v35, %v2346_v33  ;;  %v2355_v39 = vld [vmem:[%s14812_s25 + $0xc8] sm:$0xff]  ;;  %v2357_v41 = vld [vmem:[%s14812_s25 + $0xd8] sm:$0xff]  ;;  %v3364_v42 = vpack.c.bf16 %v2352_v37, %v2348_v36  ;;  %v2354_v45 = vld [vmem:[%s14812_s25 + $0xc0] sm:$0xff]  ;;  %s9956_s8 = sshll.u32 (%p11589_p6), %s8824_s7, 3 }
 0x350   : > { %5597 = vmatpush1.bf16.msra.mxu0 %v3358_v25  ;;  %v2359_v40 = vld [vmem:[%s14812_s25 + $0xe8] sm:$0xff]  ;;  %v2361_v44 = vld [vmem:[%s14812_s25 + $0xf8] sm:$0xff]  ;;  %v2358_v46 = vld [vmem:[%s14812_s25 + $0xe0] sm:$0xff]  ;;  %s16837_s9 = scalar_lea.vmem (%p11589_p6), %s17730_s3, %s9956_s8  }
 0x351   : > { %7141 = vmatpush1.bf16.msra.mxu1 %v3360_v29  ;;  %5598 = vmatprep.subr.bf16.mxu0 %v3363_v30  ;;  %v3367_v43 = vpack.c.bf16 %v2359_v40, %v2355_v39  ;;  %v3369_v47 = vpack.c.bf16 %v2361_v44, %v2357_v41  ;;  %v2356_v48 = vld [vmem:[%s14812_s25 + $0xd0] sm:$0xff]  ;;  %v2363_v50 = vld [vmem:[%s14812_s25 + $0x108] sm:$0xff]  ;;  %v2365_v52 = vld [vmem:[%s14812_s25 + $0x118] sm:$0xff]  ;;  %v3366_v54 = vpack.c.bf16 %v2358_v46, %v2354_v45 }
 0x352   : > { %7142 = vmatprep.subr.bf16.mxu1 %v3365_v34  ;;  %v2360_v49 = vld [vmem:[%s14812_s25 + $0xf0] sm:$0xff]  ;;  %v2367_v51 = vld [vmem:[%s14812_s25 + $0x128] sm:$0xff]  ;;  %v2369_v53 = vld [vmem:[%s14812_s25 + $0x138] sm:$0xff] }
 0x353   : > { %v3368_v55 = vpack.c.bf16 %v2360_v49, %v2356_v48  ;;  %v3371_v56 = vpack.c.bf16 %v2367_v51, %v2363_v50  ;;  %v2362_v57 = vld [vmem:[%s14812_s25 + $0x100] sm:$0xff]  ;;  %v2364_v59 = vld [vmem:[%s14812_s25 + $0x110] sm:$0xff]  ;;  %v3373_v60 = vpack.c.bf16 %v2369_v53, %v2365_v52  ;;  %v2371_v62 = vld [vmem:[%s14812_s25 + $0x148] sm:$0xff] }
 0x354   : > { %5599 = vmatpush1.bf16.msra.mxu0 %v3362_v38  ;;  %v2366_v58 = vld [vmem:[%s14812_s25 + $0x120] sm:$0xff]  ;;  %v2368_v61 = vld [vmem:[%s14812_s25 + $0x130] sm:$0xff]  ;;  %v2375_v63 = vld [vmem:[%s14812_s25 + $0x168] sm:$0xff] }
 0x355   : > { %7143 = vmatpush1.bf16.msra.mxu1 %v3364_v42  ;;  %5600 = vmatprep.subr.bf16.mxu0 %v3367_v43  ;;  %v2373_v0 = vld [vmem:[%s14812_s25 + $0x158] sm:$0xff]  ;;  %v3370_v3 = vpack.c.bf16 %v2366_v58, %v2362_v57  ;;  %v3372_v4 = vpack.c.bf16 %v2368_v61, %v2364_v59  ;;  %v3375_v5 = vpack.c.bf16 %v2375_v63, %v2371_v62  ;;  %v2370_v6 = vld [vmem:[%s14812_s25 + $0x140] sm:$0xff]  ;;  %v2372_v8 = vld [vmem:[%s14812_s25 + $0x150] sm:$0xff] }
 0x356   : > { %7144 = vmatprep.subr.bf16.mxu1 %v3369_v47  ;;  %v2377_v1 = vld [vmem:[%s14812_s25 + $0x178] sm:$0xff]  ;;  %v2374_v7 = vld [vmem:[%s14812_s25 + $0x160] sm:$0xff]  ;;  %v2376_v10 = vld [vmem:[%s14812_s25 + $0x170] sm:$0xff] }
 0x357   : > { %v3377_v9 = vpack.c.bf16 %v2377_v1, %v2373_v0  ;;  %v2379_v11 = vld [vmem:[%s14812_s25 + $0x188] sm:$0xff]  ;;  %v2381_v13 = vld [vmem:[%s14812_s25 + $0x198] sm:$0xff]  ;;  %v3374_v15 = vpack.c.bf16 %v2374_v7, %v2370_v6  ;;  %v3376_v16 = vpack.c.bf16 %v2376_v10, %v2372_v8  ;;  %v2378_v18 = vld [vmem:[%s14812_s25 + $0x180] sm:$0xff] }
 0x358   : > { %5601 = vmatpush1.bf16.msra.mxu0 %v3366_v54  ;;  %v2383_v12 = vld [vmem:[%s14812_s25 + $0x1a8] sm:$0xff]  ;;  %v2385_v14 = vld [vmem:[%s14812_s25 + $0x1b8] sm:$0xff]  ;;  %v2382_v19 = vld [vmem:[%s14812_s25 + $0x1a0] sm:$0xff] }
 0x359   : > { %7145 = vmatpush1.bf16.msra.mxu1 %v3368_v55  ;;  %5602 = vmatprep.subr.bf16.mxu0 %v3371_v56  ;;  %v3379_v17 = vpack.c.bf16 %v2383_v12, %v2379_v11  ;;  %v2380_v20 = vld [vmem:[%s14812_s25 + $0x190] sm:$0xff]  ;;  %v3381_v21 = vpack.c.bf16 %v2385_v14, %v2381_v13  ;;  %v2387_v23 = vld [vmem:[%s14812_s25 + $0x1c8] sm:$0xff]  ;;  %v2389_v25 = vld [vmem:[%s14812_s25 + $0x1d8] sm:$0xff]  ;;  %v3378_v27 = vpack.c.bf16 %v2382_v19, %v2378_v18 }
 0x35a   : > { %7146 = vmatprep.subr.bf16.mxu1 %v3373_v60  ;;  %v2384_v22 = vld [vmem:[%s14812_s25 + $0x1b0] sm:$0xff]  ;;  %v2391_v24 = vld [vmem:[%s14812_s25 + $0x1e8] sm:$0xff]  ;;  %v2393_v26 = vld [vmem:[%s14812_s25 + $0x1f8] sm:$0xff] }
 0x35b   : > { %v3380_v28 = vpack.c.bf16 %v2384_v22, %v2380_v20  ;;  %v3383_v29 = vpack.c.bf16 %v2391_v24, %v2387_v23  ;;  %v2386_v30 = vld [vmem:[%s14812_s25 + $0x1c0] sm:$0xff]  ;;  %v2388_v32 = vld [vmem:[%s14812_s25 + $0x1d0] sm:$0xff]  ;;  %v3385_v33 = vpack.c.bf16 %v2393_v26, %v2389_v25  ;;  %v2395_v35 = vld [vmem:[%s14812_s25 + $0x208] sm:$0xff] }
 0x35c   : > { %5603 = vmatpush1.bf16.msra.mxu0 %v3370_v3  ;;  %v2390_v31 = vld [vmem:[%s14812_s25 + $0x1e0] sm:$0xff]  ;;  %v2392_v34 = vld [vmem:[%s14812_s25 + $0x1f0] sm:$0xff]  ;;  %v2399_v36 = vld [vmem:[%s14812_s25 + $0x228] sm:$0xff] }
 0x35d   : > { %7147 = vmatpush1.bf16.msra.mxu1 %v3372_v4  ;;  %5604 = vmatprep.subr.bf16.mxu0 %v3375_v5  ;;  %v2397_v37 = vld [vmem:[%s14812_s25 + $0x218] sm:$0xff]  ;;  %v3382_v39 = vpack.c.bf16 %v2390_v31, %v2386_v30  ;;  %v3384_v40 = vpack.c.bf16 %v2392_v34, %v2388_v32  ;;  %v3387_v41 = vpack.c.bf16 %v2399_v36, %v2395_v35  ;;  %v2394_v42 = vld [vmem:[%s14812_s25 + $0x200] sm:$0xff]  ;;  %v2396_v44 = vld [vmem:[%s14812_s25 + $0x210] sm:$0xff] }
 0x35e   : > { %7148 = vmatprep.subr.bf16.mxu1 %v3377_v9  ;;  %v2401_v38 = vld [vmem:[%s14812_s25 + $0x238] sm:$0xff]  ;;  %v2398_v43 = vld [vmem:[%s14812_s25 + $0x220] sm:$0xff]  ;;  %v2400_v46 = vld [vmem:[%s14812_s25 + $0x230] sm:$0xff] }
 0x35f   : > { %v3389_v45 = vpack.c.bf16 %v2401_v38, %v2397_v37  ;;  %v2403_v47 = vld [vmem:[%s14812_s25 + $0x248] sm:$0xff]  ;;  %v2405_v49 = vld [vmem:[%s14812_s25 + $0x258] sm:$0xff]  ;;  %v3386_v51 = vpack.c.bf16 %v2398_v43, %v2394_v42  ;;  %v3388_v52 = vpack.c.bf16 %v2400_v46, %v2396_v44  ;;  %v2402_v54 = vld [vmem:[%s14812_s25 + $0x240] sm:$0xff] }
 0x360   : > { %5605 = vmatpush1.bf16.msra.mxu0 %v3374_v15  ;;  %v2407_v48 = vld [vmem:[%s14812_s25 + $0x268] sm:$0xff]  ;;  %v2409_v50 = vld [vmem:[%s14812_s25 + $0x278] sm:$0xff]  ;;  %v2406_v55 = vld [vmem:[%s14812_s25 + $0x260] sm:$0xff] }
 0x361   : > { %7149 = vmatpush1.bf16.msra.mxu1 %v3376_v16  ;;  %5606 = vmatprep.subr.bf16.mxu0 %v3379_v17  ;;  %v3391_v53 = vpack.c.bf16 %v2407_v48, %v2403_v47  ;;  %v2404_v56 = vld [vmem:[%s14812_s25 + $0x250] sm:$0xff]  ;;  %v3393_v57 = vpack.c.bf16 %v2409_v50, %v2405_v49  ;;  %v2411_v59 = vld [vmem:[%s14812_s25 + $0x288] sm:$0xff]  ;;  %v2413_v61 = vld [vmem:[%s14812_s25 + $0x298] sm:$0xff]  ;;  %v3390_v63 = vpack.c.bf16 %v2406_v55, %v2402_v54 }
 0x362   : > { %7150 = vmatprep.subr.bf16.mxu1 %v3381_v21  ;;  %v2408_v58 = vld [vmem:[%s14812_s25 + $0x270] sm:$0xff]  ;;  %v2415_v60 = vld [vmem:[%s14812_s25 + $0x2a8] sm:$0xff]  ;;  %v2417_v62 = vld [vmem:[%s14812_s25 + $0x2b8] sm:$0xff] }
 0x363   : > { %v3392_v0 = vpack.c.bf16 %v2408_v58, %v2404_v56  ;;  %v3395_v1 = vpack.c.bf16 %v2415_v60, %v2411_v59  ;;  %v2410_v3 = vld [vmem:[%s14812_s25 + $0x280] sm:$0xff]  ;;  %v2412_v5 = vld [vmem:[%s14812_s25 + $0x290] sm:$0xff]  ;;  %v3397_v6 = vpack.c.bf16 %v2417_v62, %v2413_v61  ;;  %v2419_v8 = vld [vmem:[%s14812_s25 + $0x2c8] sm:$0xff] }
 0x364   : > { %5607 = vmatpush1.bf16.msra.mxu0 %v3378_v27  ;;  %v2414_v4 = vld [vmem:[%s14812_s25 + $0x2a0] sm:$0xff]  ;;  %v2416_v7 = vld [vmem:[%s14812_s25 + $0x2b0] sm:$0xff]  ;;  %v2423_v9 = vld [vmem:[%s14812_s25 + $0x2e8] sm:$0xff] }
 0x365   : > { %7151 = vmatpush1.bf16.msra.mxu1 %v3380_v28  ;;  %5608 = vmatprep.subr.bf16.mxu0 %v3383_v29  ;;  %v2421_v10 = vld [vmem:[%s14812_s25 + $0x2d8] sm:$0xff]  ;;  %v3394_v12 = vpack.c.bf16 %v2414_v4, %v2410_v3  ;;  %v3396_v13 = vpack.c.bf16 %v2416_v7, %v2412_v5  ;;  %v3399_v14 = vpack.c.bf16 %v2423_v9, %v2419_v8  ;;  %v2418_v15 = vld [vmem:[%s14812_s25 + $0x2c0] sm:$0xff]  ;;  %v2420_v17 = vld [vmem:[%s14812_s25 + $0x2d0] sm:$0xff] }
 0x366   : > { %7152 = vmatprep.subr.bf16.mxu1 %v3385_v33  ;;  %v2425_v11 = vld [vmem:[%s14812_s25 + $0x2f8] sm:$0xff]  ;;  %v2422_v16 = vld [vmem:[%s14812_s25 + $0x2e0] sm:$0xff]  ;;  %v2424_v19 = vld [vmem:[%s14812_s25 + $0x2f0] sm:$0xff] }
 0x367   : > { %v3401_v18 = vpack.c.bf16 %v2425_v11, %v2421_v10  ;;  %v2427_v20 = vld [vmem:[%s14812_s25 + $0x308] sm:$0xff]  ;;  %v2429_v22 = vld [vmem:[%s14812_s25 + $0x318] sm:$0xff]  ;;  %v3398_v24 = vpack.c.bf16 %v2422_v16, %v2418_v15  ;;  %v3400_v25 = vpack.c.bf16 %v2424_v19, %v2420_v17  ;;  %v2426_v27 = vld [vmem:[%s14812_s25 + $0x300] sm:$0xff] }
 0x368   : > { %5609 = vmatpush1.bf16.msra.mxu0 %v3382_v39  ;;  %v2431_v21 = vld [vmem:[%s14812_s25 + $0x328] sm:$0xff]  ;;  %v2433_v23 = vld [vmem:[%s14812_s25 + $0x338] sm:$0xff]  ;;  %v2430_v28 = vld [vmem:[%s14812_s25 + $0x320] sm:$0xff] }
 0x369   : > { %7153 = vmatpush1.bf16.msra.mxu1 %v3384_v40  ;;  %5610 = vmatprep.subr.bf16.mxu0 %v3387_v41  ;;  %v3403_v26 = vpack.c.bf16 %v2431_v21, %v2427_v20  ;;  %v2428_v29 = vld [vmem:[%s14812_s25 + $0x310] sm:$0xff]  ;;  %v3405_v30 = vpack.c.bf16 %v2433_v23, %v2429_v22  ;;  %v2435_v32 = vld [vmem:[%s14812_s25 + $0x348] sm:$0xff]  ;;  %v2437_v34 = vld [vmem:[%s14812_s25 + $0x358] sm:$0xff]  ;;  %v3402_v36 = vpack.c.bf16 %v2430_v28, %v2426_v27 }
 0x36a   : > { %7154 = vmatprep.subr.bf16.mxu1 %v3389_v45  ;;  %v2432_v31 = vld [vmem:[%s14812_s25 + $0x330] sm:$0xff]  ;;  %v2439_v33 = vld [vmem:[%s14812_s25 + $0x368] sm:$0xff]  ;;  %v2441_v35 = vld [vmem:[%s14812_s25 + $0x378] sm:$0xff] }
 0x36b   : > { %v3404_v37 = vpack.c.bf16 %v2432_v31, %v2428_v29  ;;  %v3407_v38 = vpack.c.bf16 %v2439_v33, %v2435_v32  ;;  %v2434_v39 = vld [vmem:[%s14812_s25 + $0x340] sm:$0xff]  ;;  %v2436_v41 = vld [vmem:[%s14812_s25 + $0x350] sm:$0xff]  ;;  %v3409_v42 = vpack.c.bf16 %v2441_v35, %v2437_v34  ;;  %v2443_v44 = vld [vmem:[%s14812_s25 + $0x388] sm:$0xff] }
 0x36c   : > { %5611 = vmatpush1.bf16.msra.mxu0 %v3386_v51  ;;  %v2438_v40 = vld [vmem:[%s14812_s25 + $0x360] sm:$0xff]  ;;  %v2440_v43 = vld [vmem:[%s14812_s25 + $0x370] sm:$0xff]  ;;  %v2447_v45 = vld [vmem:[%s14812_s25 + $0x3a8] sm:$0xff] }
 0x36d   : > { %7155 = vmatpush1.bf16.msra.mxu1 %v3388_v52  ;;  %5612 = vmatprep.subr.bf16.mxu0 %v3391_v53  ;;  %v2445_v46 = vld [vmem:[%s14812_s25 + $0x398] sm:$0xff]  ;;  %v3406_v48 = vpack.c.bf16 %v2438_v40, %v2434_v39  ;;  %v3408_v49 = vpack.c.bf16 %v2440_v43, %v2436_v41  ;;  %v3411_v50 = vpack.c.bf16 %v2447_v45, %v2443_v44  ;;  %v2442_v51 = vld [vmem:[%s14812_s25 + $0x380] sm:$0xff]  ;;  %v2444_v53 = vld [vmem:[%s14812_s25 + $0x390] sm:$0xff] }
 0x36e   : > { %7156 = vmatprep.subr.bf16.mxu1 %v3393_v57  ;;  %v2449_v47 = vld [vmem:[%s14812_s25 + $0x3b8] sm:$0xff]  ;;  %v2446_v52 = vld [vmem:[%s14812_s25 + $0x3a0] sm:$0xff]  ;;  %v2448_v55 = vld [vmem:[%s14812_s25 + $0x3b0] sm:$0xff] }
 0x36f   : > { %v3413_v54 = vpack.c.bf16 %v2449_v47, %v2445_v46  ;;  %v2451_v56 = vld [vmem:[%s14812_s25 + $0x3c8] sm:$0xff]  ;;  %v2453_v58 = vld [vmem:[%s14812_s25 + $0x3d8] sm:$0xff]  ;;  %v3410_v60 = vpack.c.bf16 %v2446_v52, %v2442_v51  ;;  %v3412_v61 = vpack.c.bf16 %v2448_v55, %v2444_v53  ;;  %v2456_v4 = vld [vmem:[%s14812_s25 + $0x3f0] sm:$0xff] }
 0x370   : > { %5613 = vmatpush1.bf16.msra.mxu0 %v3390_v63  ;;  %v2455_v57 = vld [vmem:[%s14812_s25 + $0x3e8] sm:$0xff]  ;;  %v2457_v59 = vld [vmem:[%s14812_s25 + $0x3f8] sm:$0xff]  ;;  %v2450_v63 = vld [vmem:[%s14812_s25 + $0x3c0] sm:$0xff] }
 0x371   : > { %7157 = vmatpush1.bf16.msra.mxu1 %v3392_v0  ;;  %5614 = vmatprep.subr.bf16.mxu0 %v3395_v1  ;;  %v3415_v62 = vpack.c.bf16 %v2455_v57, %v2451_v56  ;;  %v2454_v0 = vld [vmem:[%s14812_s25 + $0x3e0] sm:$0xff]  ;;  %v2452_v1 = vld [vmem:[%s14812_s25 + $0x3d0] sm:$0xff]  ;;  %v3417_v3 = vpack.c.bf16 %v2457_v59, %v2453_v58  ;;  %v2459_v5 = vld [vmem:[%s14812_s25 + $0x408] sm:$0xff] }
 0x372   : > { %7158 = vmatprep.subr.bf16.mxu1 %v3397_v6  ;;  %v2463_v6 = vld [vmem:[%s14812_s25 + $0x428] sm:$0xff]  ;;  %v2461_v7 = vld [vmem:[%s14812_s25 + $0x418] sm:$0xff]  ;;  %v3414_v9 = vpack.c.bf16 %v2454_v0, %v2450_v63  ;;  %v3416_v10 = vpack.c.bf16 %v2456_v4, %v2452_v1  ;;  %v2460_v16 = vld [vmem:[%s14812_s25 + $0x410] sm:$0xff] }
 0x373   : > { %v2465_v8 = vld [vmem:[%s14812_s25 + $0x438] sm:$0xff]  ;;  %v3419_v11 = vpack.c.bf16 %v2463_v6, %v2459_v5  ;;  %v2464_v17 = vld [vmem:[%s14812_s25 + $0x430] sm:$0xff]  ;;  %v2467_v19 = vld [vmem:[%s14812_s25 + $0x448] sm:$0xff] }
 0x374   : > { %5615 = vmatpush1.bf16.msra.mxu0 %v3394_v12  ;;  %v2458_v12 = vld [vmem:[%s14812_s25 + $0x400] sm:$0xff]  ;;  %v3421_v15 = vpack.c.bf16 %v2465_v8, %v2461_v7  ;;  %v2471_v20 = vld [vmem:[%s14812_s25 + $0x468] sm:$0xff]  ;;  %v2469_v22 = vld [vmem:[%s14812_s25 + $0x458] sm:$0xff] }
 0x375   : > { %7159 = vmatpush1.bf16.msra.mxu1 %v3396_v13  ;;  %5616 = vmatprep.subr.bf16.mxu0 %v3399_v14  ;;  %v2462_v13 = vld [vmem:[%s14812_s25 + $0x420] sm:$0xff]  ;;  %v2473_v23 = vld [vmem:[%s14812_s25 + $0x478] sm:$0xff]  ;;  %v2468_v28 = vld [vmem:[%s14812_s25 + $0x450] sm:$0xff]  ;;  %v3423_v29 = vpack.c.bf16 %v2471_v20, %v2467_v19 }
 0x376   : > { %7160 = vmatprep.subr.bf16.mxu1 %v3401_v18  ;;  %v3882_v14 = vld [vmem:[%s17728_s1 + $0x80] sm:$0xff]  ;;  %v3418_v21 = vpack.c.bf16 %v2462_v13, %v2458_v12  ;;  %v2475_v31 = vld [vmem:[%s14812_s25 + $0x488] sm:$0xff]  ;;  %v3425_v33 = vpack.c.bf16 %v2473_v23, %v2469_v22  ;;  %v2477_v34 = vld [vmem:[%s14812_s25 + $0x498] sm:$0xff] }
 0x377   : > { %v3890_v18 = vld [vmem:[%s17728_s1 + $0xc0] sm:$0xff]  ;;  %v2479_v32 = vld [vmem:[%s14812_s25 + $0x4a8] sm:$0xff]  ;;  %v2481_v35 = vld [vmem:[%s14812_s25 + $0x4b8] sm:$0xff] }
 0x378   : > { %5617 = vmatpush1.bf16.msra.mxu0 %v3398_v24  ;;  %v3420_v24 = vpack.c.bf16 %v2464_v17, %v2460_v16  ;;  %v2470_v27 = vld [vmem:[%s14812_s25 + $0x460] sm:$0xff]  ;;  %v3427_v40 = vpack.c.bf16 %v2479_v32, %v2475_v31  ;;  %v2476_v43 = vld [vmem:[%s14812_s25 + $0x490] sm:$0xff]  ;;  %v9712_v44 = vcombine.low %v3882_v14, %v3890_v18  ;;  %v2483_v46 = vld [vmem:[%s14812_s25 + $0x4c8] sm:$0xff] }
 0x379   : > { %7161 = vmatpush1.bf16.msra.mxu1 %v3400_v25  ;;  %5618 = vmatprep.subr.bf16.mxu0 %v3403_v26  ;;  %v9713_v25 = vcombine.high %v3882_v14, %v3890_v18  ;;  %v2466_v26 = vld [vmem:[%s14812_s25 + $0x440] sm:$0xff]  ;;  %v2480_v45 = vld [vmem:[%s14812_s25 + $0x4b0] sm:$0xff]  ;;  %v2487_v47 = vld [vmem:[%s14812_s25 + $0x4e8] sm:$0xff] }
 0x37a   : > { %7162 = vmatprep.subr.bf16.mxu1 %v3405_v30  ;;  %v2472_v30 = vld [vmem:[%s14812_s25 + $0x470] sm:$0xff]  ;;  %v3906_v39 = vld [vmem:[%s17728_s1 + $0x140] sm:$0xff]  ;;  %v3428_v52 = vpack.c.bf16 %v2480_v45, %v2476_v43  ;;  %v3431_v53 = vpack.c.bf16 %v2487_v47, %v2483_v46  ;;  %v2491_v59 = vld [vmem:[%s14812_s25 + $0x508] sm:$0xff] }
 0x37b   : > { %v2474_v41 = vld [vmem:[%s14812_s25 + $0x480] sm:$0xff]  ;;  %v2484_v56 = vld [vmem:[%s14812_s25 + $0x4d0] sm:$0xff]  ;;  %v2503_v12 = vld [vmem:[%s14812_s25 + $0x568] sm:$0xff] }
 0x37c   : > { %5619 = vmatpush1.bf16.msra.mxu0 %v3402_v36  ;;  %v3422_v36 = vpack.c.bf16 %v2470_v27, %v2466_v26  ;;  %v2486_v55 = vld [vmem:[%s14812_s25 + $0x4e0] sm:$0xff]  ;;  %v2488_v58 = vld [vmem:[%s14812_s25 + $0x4f0] sm:$0xff]  ;;  %v2501_v14 = vld [vmem:[%s14812_s25 + $0x558] sm:$0xff] }
 0x37d   : > { %7163 = vmatpush1.bf16.msra.mxu1 %v3404_v37  ;;  %5620 = vmatprep.subr.bf16.mxu0 %v3407_v38  ;;  %v3424_v37 = vpack.c.bf16 %v2472_v30, %v2468_v28  ;;  %v3898_v38 = vld [vmem:[%s17728_s1 + $0x100] sm:$0xff]  ;;  %v2492_v7 = vld [vmem:[%s14812_s25 + $0x510] sm:$0xff]  ;;  %v2509_v26 = vld [vmem:[%s14812_s25 + $0x598] sm:$0xff] }
 0x37e   : > { %7164 = vmatprep.subr.bf16.mxu1 %v3409_v42  ;;  %v2478_v42 = vld [vmem:[%s14812_s25 + $0x4a0] sm:$0xff]  ;;  %v9728_v8 = vcombine.low %v3898_v38, %v3906_v39  ;;  %v2504_v23 = vld [vmem:[%s14812_s25 + $0x570] sm:$0xff]  ;;  %v2513_v27 = vld [vmem:[%s14812_s25 + $0x5b8] sm:$0xff] }
 0x37f   : > { %v3426_v51 = vpack.c.bf16 %v2478_v42, %v2474_v41  ;;  %v3914_v63 = vld [vmem:[%s17728_s1 + $0x180] sm:$0xff]  ;;  %v2517_v41 = vld [vmem:[%s14812_s25 + $0x5d8] sm:$0xff] }
 0x380   : > { %5621 = vmatpush1.bf16.msra.mxu0 %v3406_v48  ;;  %v9729_v48 = vcombine.high %v3898_v38, %v3906_v39  ;;  %v3922_v0 = vld [vmem:[%s17728_s1 + $0x1c0] sm:$0xff]  ;;  %v2512_v38 = vld [vmem:[%s14812_s25 + $0x5b0] sm:$0xff]  ;;  %v2515_v39 = vld [vmem:[%s14812_s25 + $0x5c8] sm:$0xff] }
 0x381   : > { %7165 = vmatpush1.bf16.msra.mxu1 %v3408_v49  ;;  %5622 = vmatprep.subr.bf16.mxu0 %v3411_v50  ;;  %v2485_v49 = vld [vmem:[%s14812_s25 + $0x4d8] sm:$0xff]  ;;  %v2490_v5 = vld [vmem:[%s14812_s25 + $0x500] sm:$0xff]  ;;  %v9745_v13 = vcombine.high %v3914_v63, %v3922_v0 }
 0x382   : > { %7166 = vmatprep.subr.bf16.mxu1 %v3413_v54  ;;  %v2489_v50 = vld [vmem:[%s14812_s25 + $0x4f8] sm:$0xff]  ;;  %v2482_v54 = vld [vmem:[%s14812_s25 + $0x4c0] sm:$0xff] }
 0x383   : > { %v3433_v57 = vpack.c.bf16 %v2489_v50, %v2485_v49  ;;  %v3430_v1 = vpack.c.bf16 %v2486_v55, %v2482_v54  ;;  %v2494_v6 = vld [vmem:[%s14812_s25 + $0x520] sm:$0xff]  ;;  %v2521_v42 = vld [vmem:[%s14812_s25 + $0x5f8] sm:$0xff]  ;;  %v2520_v50 = vld [vmem:[%s14812_s25 + $0x5f0] sm:$0xff] }
 0x384   : > { %5623 = vmatpush1.bf16.msra.mxu0 %v3410_v60  ;;  %v2495_v60 = vld [vmem:[%s14812_s25 + $0x528] sm:$0xff]  ;;  %v3434_v16 = vpack.c.bf16 %v2494_v6, %v2490_v5  ;;  %v2498_v19 = vld [vmem:[%s14812_s25 + $0x540] sm:$0xff]  ;;  %v3449_v49 = vpack.c.bf16 %v2521_v42, %v2517_v41  ;;  %v2529_v54 = vld [vmem:[%s14812_s25 + $0x638] sm:$0xff] }
 0x385   : > { %7167 = vmatpush1.bf16.msra.mxu1 %v3412_v61  ;;  %5624 = vmatprep.subr.bf16.mxu0 %v3415_v62  ;;  %v2493_v61 = vld [vmem:[%s14812_s25 + $0x518] sm:$0xff]  ;;  %v3435_v4 = vpack.c.bf16 %v2495_v60, %v2491_v59  ;;  %v2502_v20 = vld [vmem:[%s14812_s25 + $0x560] sm:$0xff]  ;;  %v2552_v42 = vld [vmem:[%s14812_s25 + $0x6f0] sm:$0xff] }
 0x386   : > { %7168 = vmatprep.subr.bf16.mxu1 %v3417_v3  ;;  %v2497_v62 = vld [vmem:[%s14812_s25 + $0x538] sm:$0xff]  ;;  %v3432_v3 = vpack.c.bf16 %v2488_v58, %v2484_v56  ;;  %v3930_v28 = vld [vmem:[%s17728_s1 + $0x200] sm:$0xff]  ;;  %v3438_v30 = vpack.c.bf16 %v2502_v20, %v2498_v19 }
 0x387   : > { %v2514_v46 = vld [vmem:[%s14812_s25 + $0x5c0] sm:$0xff]  ;;  %v2533_v6 = vld [vmem:[%s14812_s25 + $0x658] sm:$0xff] }
 0x388   : > { %5625 = vmatpush1.bf16.msra.mxu0 %v3414_v9  ;;  %v3437_v9 = vpack.c.bf16 %v2497_v62, %v2493_v61  ;;  %v2518_v47 = vld [vmem:[%s14812_s25 + $0x5e0] sm:$0xff]  ;;  %v2524_v62 = vld [vmem:[%s14812_s25 + $0x610] sm:$0xff]  ;;  %v2545_v19 = vld [vmem:[%s14812_s25 + $0x6b8] sm:$0xff] }
 0x389   : > { %7169 = vmatpush1.bf16.msra.mxu1 %v3416_v10  ;;  %5787 = vmatprep.subr.bf16.mxu0 %v3419_v11  ;;  %v2496_v10 = vld [vmem:[%s14812_s25 + $0x530] sm:$0xff]  ;;  %v2499_v11 = vld [vmem:[%s14812_s25 + $0x548] sm:$0xff]  ;;  %v3946_v55 = vld [vmem:[%s17728_s1 + $0x280] sm:$0xff] }
 0x38a   : > { %7331 = vmatprep.subr.bf16.mxu1 %v3421_v15  ;;  %v2505_v15 = vld [vmem:[%s14812_s25 + $0x578] sm:$0xff]  ;;  %v3436_v17 = vpack.c.bf16 %v2496_v10, %v2492_v7  ;;  %v3439_v18 = vpack.c.bf16 %v2503_v12, %v2499_v11  ;;  %v3954_v56 = vld [vmem:[%s17728_s1 + $0x2c0] sm:$0xff] }
 0x38b   : > { %5627 = vmatmul.mubr.bf16.vlgmr.msra.gmra.mrb[0].mxu0 %v14810_v2  ;;  %v3441_v22 = vpack.c.bf16 %v2505_v15, %v2501_v14  ;;  %v2522_v60 = vld [vmem:[%s14812_s25 + $0x600] sm:$0xff]  ;;  %v9777_v5 = vcombine.high %v3946_v55, %v3954_v56  ;;  %v2537_v7 = vld [vmem:[%s14812_s25 + $0x678] sm:$0xff]  ;;  %v2536_v15 = vld [vmem:[%s14812_s25 + $0x670] sm:$0xff] }
 0x38c   : > { %7171 = vmatmul.mubr.bf16.vlgmr.msra.gmra.mrb[0].mxu1 %v14810_v2  ;;  %5788 = vmatpush1.bf16.msra.mxu0 %v3418_v21  ;;  %v3429_v2 = vpack.c.bf16 %v2481_v35, %v2477_v34  ;;  %v2500_v21 = vld [vmem:[%s14812_s25 + $0x550] sm:$0xff]  ;;  %v2510_v34 = vld [vmem:[%s14812_s25 + $0x5a0] sm:$0xff]  ;;  %v3457_v14 = vpack.c.bf16 %v2537_v7, %v2533_v6 }
 0x38d   : > { %7332 = vmatpush1.bf16.msra.mxu1 %v3420_v24  ;;  %5636 = vmatprep.mubr.bf16.mxu0 %v9713_v25  ;;  %v2507_v24 = vld [vmem:[%s14812_s25 + $0x588] sm:$0xff]  ;;  %v3440_v31 = vpack.c.bf16 %v2504_v23, %v2500_v21  ;;  %v2508_v35 = vld [vmem:[%s14812_s25 + $0x590] sm:$0xff]  ;;  %v2526_v61 = vld [vmem:[%s14812_s25 + $0x620] sm:$0xff] }
 0x38e   : > { %7180 = vmatprep.mubr.bf16.mxu1 %v9713_v25  ;;  %5789 = vmatprep.subr.bf16.mxu0 %v3423_v29  ;;  %v2511_v25 = vld [vmem:[%s14812_s25 + $0x5a8] sm:$0xff]  ;;  %v3938_v29 = vld [vmem:[%s17728_s1 + $0x240] sm:$0xff]  ;;  %v2568_v7 = vld [vmem:[%s14812_s25 + $0x770] sm:$0xff] }
 0x38f   : > { %7333 = vmatprep.subr.bf16.mxu1 %v3425_v33  ;;  %v3443_v32 = vpack.c.bf16 %v2511_v25, %v2507_v24  ;;  %v2506_v33 = vld [vmem:[%s14812_s25 + $0x580] sm:$0xff] }
 0x390   : > { %5790 = vmatpush1.bf16.msra.mxu0 %v3422_v36  ;;  %v9744_v36 = vcombine.low %v3914_v63, %v3922_v0  ;;  %v3442_v43 = vpack.c.bf16 %v2510_v34, %v2506_v33  ;;  %v9760_v63 = vcombine.low %v3930_v28, %v3938_v29  ;;  %v2530_v11 = vld [vmem:[%s14812_s25 + $0x640] sm:$0xff]  ;;  %v2549_v34 = vld [vmem:[%s14812_s25 + $0x6d8] sm:$0xff] }
 0x391   : > { %7334 = vmatpush1.bf16.msra.mxu1 %v3424_v37  ;;  %5791 = vmatprep.subr.bf16.mxu0 %v3427_v40  ;;  %v3445_v37 = vpack.c.bf16 %v2513_v27, %v2509_v26  ;;  %v2519_v40 = vld [vmem:[%s14812_s25 + $0x5e8] sm:$0xff]  ;;  %v2534_v12 = vld [vmem:[%s14812_s25 + $0x660] sm:$0xff]  ;;  %v2540_v27 = vld [vmem:[%s14812_s25 + $0x690] sm:$0xff] }
 0x392   : > { %7335 = vmatprep.subr.bf16.mxu1 %v3429_v2  ;;  %v9761_v2 = vcombine.high %v3930_v28, %v3938_v29  ;;  %v3447_v45 = vpack.c.bf16 %v2519_v40, %v2515_v39  ;;  %v3962_v20 = vld [vmem:[%s17728_s1 + $0x300] sm:$0xff]  ;;  %v9776_v28 = vcombine.low %v3946_v55, %v3954_v56 }
 0x393   : > { %5637 = vmatmul.mubr.bf16.gmra.mrb[4].mxu0 %v9712_v44  ;;  %v3970_v21 = vld [vmem:[%s17728_s1 + $0x340] sm:$0xff] }
 0x394   : > { %7181 = vmatmul.mubr.bf16.gmra.mrb[4].mxu1 %v9712_v44  ;;  %5646 = vmatprep.mubr.bf16.mxu0 %v9729_v48  ;;  %v3444_v44 = vpack.c.bf16 %v2512_v38, %v2508_v35  ;;  %v2538_v25 = vld [vmem:[%s14812_s25 + $0x680] sm:$0xff]  ;;  %v9793_v33 = vcombine.high %v3962_v20, %v3970_v21  ;;  %v2553_v35 = vld [vmem:[%s14812_s25 + $0x6f8] sm:$0xff]  ;;  %v9792_v55 = vcombine.low %v3962_v20, %v3970_v21 }
 0x395   : > { %7190 = vmatprep.mubr.bf16.mxu1 %v9729_v48  ;;  %5792 = vmatpush1.bf16.msra.mxu0 %v3426_v51  ;;  %v2516_v48 = vld [vmem:[%s14812_s25 + $0x5d0] sm:$0xff]  ;;  %v2523_v51 = vld [vmem:[%s14812_s25 + $0x608] sm:$0xff]  ;;  %v2542_v26 = vld [vmem:[%s14812_s25 + $0x6a0] sm:$0xff]  ;;  %v3465_v41 = vpack.c.bf16 %v2553_v35, %v2549_v34 }
 0x396   : > { %7336 = vmatpush1.bf16.msra.mxu1 %v3428_v52  ;;  %5793 = vmatprep.subr.bf16.mxu0 %v3431_v53  ;;  %v2527_v52 = vld [vmem:[%s14812_s25 + $0x628] sm:$0xff]  ;;  %v2525_v53 = vld [vmem:[%s14812_s25 + $0x618] sm:$0xff]  ;;  %v3448_v58 = vpack.c.bf16 %v2520_v50, %v2516_v48  ;;  %v2546_v39 = vld [vmem:[%s14812_s25 + $0x6c0] sm:$0xff] }
 0x397   : > { %7337 = vmatprep.subr.bf16.mxu1 %v3433_v57  ;;  %v3446_v57 = vpack.c.bf16 %v2518_v47, %v2514_v46  ;;  %v3451_v59 = vpack.c.bf16 %v2527_v52, %v2523_v51  ;;  %v3453_v0 = vpack.c.bf16 %v2529_v54, %v2525_v53  ;;  %v2550_v40 = vld [vmem:[%s14812_s25 + $0x6e0] sm:$0xff]  ;;  %v2561_v46 = vld [vmem:[%s14812_s25 + $0x738] sm:$0xff]  ;;  %v2556_v54 = vld [vmem:[%s14812_s25 + $0x710] sm:$0xff] }
 0x398   : > { %v3978_v47 = vld [vmem:[%s17728_s1 + $0x380] sm:$0xff]  ;;  %v2584_v35 = vld [vmem:[%s14812_s25 + $0x7f0] sm:$0xff] }
 0x399   : > { %5794 = vmatpush1.bf16.msra.mxu0 %v3430_v1  ;;  %v2528_v1 = vld [vmem:[%s14812_s25 + $0x630] sm:$0xff]  ;;  %v3986_v48 = vld [vmem:[%s17728_s1 + $0x3c0] sm:$0xff] }
 0x39a   : > { %7338 = vmatpush1.bf16.msra.mxu1 %v3432_v3  ;;  %5795 = vmatprep.subr.bf16.mxu0 %v3435_v4  ;;  %v2531_v3 = vld [vmem:[%s14812_s25 + $0x648] sm:$0xff]  ;;  %v2554_v52 = vld [vmem:[%s14812_s25 + $0x700] sm:$0xff]  ;;  %v9808_v20 = vcombine.low %v3978_v47, %v3986_v48 }
 0x39b   : > { %5647 = vmatmul.mubr.bf16.gmra.mrb[8].mxu0 %v9728_v8  ;;  %7339 = vmatprep.subr.bf16.mxu1 %v3437_v9  ;;  %v2535_v4 = vld [vmem:[%s14812_s25 + $0x668] sm:$0xff]  ;;  %v3452_v9 = vpack.c.bf16 %v2528_v1, %v2524_v62  ;;  %v2558_v53 = vld [vmem:[%s14812_s25 + $0x720] sm:$0xff]  ;;  %v2569_v62 = vld [vmem:[%s14812_s25 + $0x778] sm:$0xff] }
 0x39c   : > { %7191 = vmatmul.mubr.bf16.gmra.mrb[8].mxu1 %v9728_v8  ;;  %5656 = vmatprep.mubr.bf16.mxu0 %v9745_v13  ;;  %v3450_v8 = vpack.c.bf16 %v2526_v61, %v2522_v60  ;;  %v3455_v10 = vpack.c.bf16 %v2535_v4, %v2531_v3  ;;  %v9809_v60 = vcombine.high %v3978_v47, %v3986_v48  ;;  %v2565_v61 = vld [vmem:[%s14812_s25 + $0x758] sm:$0xff]  ;;  %v2562_v3 = vld [vmem:[%s14812_s25 + $0x740] sm:$0xff] }
 0x39d   : > { %7200 = vmatprep.mubr.bf16.mxu1 %v9745_v13  ;;  %5796 = vmatpush1.bf16.msra.mxu0 %v3434_v16  ;;  %v2532_v13 = vld [vmem:[%s14812_s25 + $0x650] sm:$0xff]  ;;  %v2539_v16 = vld [vmem:[%s14812_s25 + $0x688] sm:$0xff]  ;;  %v2566_v4 = vld [vmem:[%s14812_s25 + $0x760] sm:$0xff]  ;;  %v3473_v6 = vpack.c.bf16 %v2569_v62, %v2565_v61 }
 0x39e   : > { %7340 = vmatpush1.bf16.msra.mxu1 %v3436_v17  ;;  %5797 = vmatprep.subr.bf16.mxu0 %v3439_v18  ;;  %v2543_v17 = vld [vmem:[%s14812_s25 + $0x6a8] sm:$0xff]  ;;  %v2541_v18 = vld [vmem:[%s14812_s25 + $0x698] sm:$0xff]  ;;  %v3456_v23 = vpack.c.bf16 %v2536_v15, %v2532_v13  ;;  %v4002_v13 = vld [vmem:[%s17728_s1 + $0x440] sm:$0xff] }
 0x39f   : > { %7341 = vmatprep.subr.bf16.mxu1 %v3441_v22  ;;  %v3454_v22 = vpack.c.bf16 %v2534_v12, %v2530_v11  ;;  %v3459_v24 = vpack.c.bf16 %v2543_v17, %v2539_v16  ;;  %v3461_v29 = vpack.c.bf16 %v2545_v19, %v2541_v18  ;;  %v2577_v11 = vld [vmem:[%s14812_s25 + $0x7b8] sm:$0xff]  ;;  %v3994_v12 = vld [vmem:[%s17728_s1 + $0x400] sm:$0xff]  ;;  %v2572_v19 = vld [vmem:[%s14812_s25 + $0x790] sm:$0xff] }
 0x3a0   : > { %v2570_v17 = vld [vmem:[%s14812_s25 + $0x780] sm:$0xff] }
 0x3a1   : > { %5798 = vmatpush1.bf16.msra.mxu0 %v3438_v30  ;;  %v2544_v30 = vld [vmem:[%s14812_s25 + $0x6b0] sm:$0xff]  ;;  %v2574_v18 = vld [vmem:[%s14812_s25 + $0x7a0] sm:$0xff] }
 0x3a2   : > { %7342 = vmatpush1.bf16.msra.mxu1 %v3440_v31  ;;  %5799 = vmatprep.subr.bf16.mxu0 %v3443_v32  ;;  %v2547_v31 = vld [vmem:[%s14812_s25 + $0x6c8] sm:$0xff]  ;;  %v4026_v47 = vld [vmem:[%s17728_s1 + $0x500] sm:$0xff] }
 0x3a3   : > { %5657 = vmatmul.mubr.bf16.gmra.mrb[12].mxu0 %v9744_v36  ;;  %7343 = vmatprep.subr.bf16.mxu1 %v3445_v37  ;;  %v2551_v32 = vld [vmem:[%s14812_s25 + $0x6e8] sm:$0xff]  ;;  %v3460_v37 = vpack.c.bf16 %v2544_v30, %v2540_v27  ;;  %v2585_v27 = vld [vmem:[%s14812_s25 + $0x7f8] sm:$0xff]  ;;  %v4034_v48 = vld [vmem:[%s17728_s1 + $0x540] sm:$0xff] }
 0x3a4   : > { %7201 = vmatmul.mubr.bf16.gmra.mrb[12].mxu1 %v9744_v36  ;;  %5666 = vmatprep.mubr.bf16.mxu0 %v9761_v2  ;;  %v3458_v36 = vpack.c.bf16 %v2542_v26, %v2538_v25  ;;  %v3463_v38 = vpack.c.bf16 %v2551_v32, %v2547_v31  ;;  %v9825_v25 = vcombine.high %v3994_v12, %v4002_v13  ;;  %v2581_v26 = vld [vmem:[%s14812_s25 + $0x7d8] sm:$0xff]  ;;  %v2578_v31 = vld [vmem:[%s14812_s25 + $0x7c0] sm:$0xff] }
 0x3a5   : > { %7210 = vmatprep.mubr.bf16.mxu1 %v9761_v2  ;;  %5800 = vmatpush1.bf16.msra.mxu0 %v3442_v43  ;;  %v2548_v2 = vld [vmem:[%s14812_s25 + $0x6d0] sm:$0xff]  ;;  %v2555_v43 = vld [vmem:[%s14812_s25 + $0x708] sm:$0xff]  ;;  %v2582_v32 = vld [vmem:[%s14812_s25 + $0x7e0] sm:$0xff]  ;;  %v3481_v34 = vpack.c.bf16 %v2585_v27, %v2581_v26 }
 0x3a6   : > { %7344 = vmatpush1.bf16.msra.mxu1 %v3444_v44  ;;  %5801 = vmatprep.subr.bf16.mxu0 %v3447_v45  ;;  %v2559_v44 = vld [vmem:[%s14812_s25 + $0x728] sm:$0xff]  ;;  %v2557_v45 = vld [vmem:[%s14812_s25 + $0x718] sm:$0xff]  ;;  %v3464_v50 = vpack.c.bf16 %v2552_v42, %v2548_v2  ;;  %v4018_v2 = vld [vmem:[%s17728_s1 + $0x4c0] sm:$0xff] }
 0x3a7   : > { %7345 = vmatprep.subr.bf16.mxu1 %v3449_v49  ;;  %v3462_v49 = vpack.c.bf16 %v2550_v40, %v2546_v39  ;;  %v3467_v51 = vpack.c.bf16 %v2559_v44, %v2555_v43  ;;  %v3469_v56 = vpack.c.bf16 %v2561_v46, %v2557_v45  ;;  %v2593_v39 = vld [vmem:[%s14812_s25 + $0x838] sm:$0xff]  ;;  %v4010_v40 = vld [vmem:[%s17728_s1 + $0x480] sm:$0xff]  ;;  %v9824_v44 = vcombine.low %v3994_v12, %v4002_v13 }
 0x3a8   : > { %v9841_v46 = vcombine.high %v4010_v40, %v4018_v2  ;;  %v2586_v12 = vld [vmem:[%s14812_s25 + $0x800] sm:$0xff] }
 0x3a9   : > { %5802 = vmatpush1.bf16.msra.mxu0 %v3446_v57  ;;  %v2560_v57 = vld [vmem:[%s14812_s25 + $0x730] sm:$0xff]  ;;  %v2590_v13 = vld [vmem:[%s14812_s25 + $0x820] sm:$0xff] }
 0x3aa   : > { %7346 = vmatpush1.bf16.msra.mxu1 %v3448_v58  ;;  %5803 = vmatprep.subr.bf16.mxu0 %v3451_v59  ;;  %v2563_v58 = vld [vmem:[%s14812_s25 + $0x748] sm:$0xff]  ;;  %v2594_v26 = vld [vmem:[%s14812_s25 + $0x840] sm:$0xff] }
 0x3ab   : > { %5667 = vmatmul.mubr.bf16.gmra.mrb[16].mxu0 %v9760_v63  ;;  %7347 = vmatprep.subr.bf16.mxu1 %v3453_v0  ;;  %v2567_v59 = vld [vmem:[%s14812_s25 + $0x768] sm:$0xff]  ;;  %v3468_v0 = vpack.c.bf16 %v2560_v57, %v2556_v54  ;;  %v2598_v27 = vld [vmem:[%s14812_s25 + $0x860] sm:$0xff] }
 0x3ac   : > { %7211 = vmatmul.mubr.bf16.gmra.mrb[16].mxu1 %v9760_v63  ;;  %5676 = vmatprep.mubr.bf16.mxu0 %v9777_v5  ;;  %v3466_v63 = vpack.c.bf16 %v2558_v53, %v2554_v52  ;;  %v3471_v1 = vpack.c.bf16 %v2567_v59, %v2563_v58  ;;  %v4050_v52 = vld [vmem:[%s17728_s1 + $0x5c0] sm:$0xff]  ;;  %v9856_v53 = vcombine.low %v4026_v47, %v4034_v48 }
 0x3ad   : > { %7220 = vmatprep.mubr.bf16.mxu1 %v9777_v5  ;;  %5804 = vmatpush1.bf16.msra.mxu0 %v3450_v8  ;;  %v2564_v5 = vld [vmem:[%s14812_s25 + $0x750] sm:$0xff]  ;;  %v2571_v8 = vld [vmem:[%s14812_s25 + $0x788] sm:$0xff]  ;;  %v4074_v59 = vld [vmem:[%s17728_s1 + $0x680] sm:$0xff] }
 0x3ae   : > { %7348 = vmatpush1.bf16.msra.mxu1 %v3452_v9  ;;  %5805 = vmatprep.subr.bf16.mxu0 %v3455_v10  ;;  %v2575_v9 = vld [vmem:[%s14812_s25 + $0x7a8] sm:$0xff]  ;;  %v2573_v10 = vld [vmem:[%s14812_s25 + $0x798] sm:$0xff]  ;;  %v3472_v15 = vpack.c.bf16 %v2568_v7, %v2564_v5  ;;  %v4114_v5 = vld [vmem:[%s17728_s1 + $0x7c0] sm:$0xff] }
 0x3af   : > { %7349 = vmatprep.subr.bf16.mxu1 %v3457_v14  ;;  %v3470_v14 = vpack.c.bf16 %v2566_v4, %v2562_v3  ;;  %v3475_v16 = vpack.c.bf16 %v2575_v9, %v2571_v8  ;;  %v3477_v21 = vpack.c.bf16 %v2577_v11, %v2573_v10  ;;  %v4106_v4 = vld [vmem:[%s17728_s1 + $0x780] sm:$0xff]  ;;  %v3867_v8 = vld [vmem:[%s17728_s1 + $0x8] sm:$0xff] }
 0x3b0   : > { %v9937_v7 = vcombine.high %v4106_v4, %v4114_v5  ;;  %v3875_v9 = vld [vmem:[%s17728_s1 + $0x48] sm:$0xff]  ;;  %v9936_v10 = vcombine.low %v4106_v4, %v4114_v5  ;;  %v2618_v5 = vld [vmem:[%s14812_s25 + $0x900] sm:$0xff] }
 0x3b1   : > { %5806 = vmatpush1.bf16.msra.mxu0 %v3454_v22  ;;  %v2576_v22 = vld [vmem:[%s14812_s25 + $0x7b0] sm:$0xff]  ;;  %v9699_v11 = vcombine.high %v3867_v8, %v3875_v9 }
 0x3b2   : > { %7350 = vmatpush1.bf16.msra.mxu1 %v3456_v23  ;;  %5807 = vmatprep.subr.bf16.mxu0 %v3459_v24  ;;  %v2579_v23 = vld [vmem:[%s14812_s25 + $0x7c8] sm:$0xff] }
 0x3b3   : > { %5677 = vmatmul.mubr.bf16.gmra.mrb[20].mxu0 %v9776_v28  ;;  %7351 = vmatprep.subr.bf16.mxu1 %v3461_v29  ;;  %v2583_v24 = vld [vmem:[%s14812_s25 + $0x7e8] sm:$0xff]  ;;  %v3476_v29 = vpack.c.bf16 %v2576_v22, %v2572_v19  ;;  %v2597_v22 = vld [vmem:[%s14812_s25 + $0x858] sm:$0xff] }
 0x3b4   : > { %7221 = vmatmul.mubr.bf16.gmra.mrb[20].mxu1 %v9776_v28  ;;  %5686 = vmatprep.mubr.bf16.mxu0 %v9793_v33  ;;  %v3474_v28 = vpack.c.bf16 %v2574_v18, %v2570_v17  ;;  %v3479_v30 = vpack.c.bf16 %v2583_v24, %v2579_v23  ;;  %v3891_v17 = vld [vmem:[%s17728_s1 + $0xc8] sm:$0xff]  ;;  %v9698_v18 = vcombine.low %v3867_v8, %v3875_v9  ;;  %v2601_v23 = vld [vmem:[%s14812_s25 + $0x878] sm:$0xff] }
 0x3b5   : > { %7230 = vmatprep.mubr.bf16.mxu1 %v9793_v33  ;;  %5808 = vmatpush1.bf16.msra.mxu0 %v3458_v36  ;;  %v2580_v33 = vld [vmem:[%s14812_s25 + $0x7d0] sm:$0xff]  ;;  %v2587_v36 = vld [vmem:[%s14812_s25 + $0x808] sm:$0xff] }
 0x3b6   : > { %7352 = vmatpush1.bf16.msra.mxu1 %v3460_v37  ;;  %5809 = vmatprep.subr.bf16.mxu0 %v3463_v38  ;;  %v2591_v37 = vld [vmem:[%s14812_s25 + $0x828] sm:$0xff]  ;;  %v2589_v38 = vld [vmem:[%s14812_s25 + $0x818] sm:$0xff]  ;;  %v3480_v42 = vpack.c.bf16 %v2584_v35, %v2580_v33  ;;  %v3489_v33 = vpack.c.bf16 %v2601_v23, %v2597_v22  ;;  %v2632_v23 = vld [vmem:[%s14812_s25 + $0x970] sm:$0xff] }
 0x3b7   : > { %7353 = vmatprep.subr.bf16.mxu1 %v3465_v41  ;;  %v3478_v41 = vpack.c.bf16 %v2582_v32, %v2578_v31  ;;  %v3483_v43 = vpack.c.bf16 %v2591_v37, %v2587_v36  ;;  %v3485_v45 = vpack.c.bf16 %v2593_v39, %v2589_v38  ;;  %v2595_v19 = vld [vmem:[%s14812_s25 + $0x848] sm:$0xff]  ;;  %v2609_v35 = vld [vmem:[%s14812_s25 + $0x8b8] sm:$0xff]  ;;  %v3486_v36 = vpack.c.bf16 %v2598_v27, %v2594_v26 }
 0x3b8   : > { %v2603_v31 = vld [vmem:[%s14812_s25 + $0x888] sm:$0xff]  ;;  %v2637_v26 = vld [vmem:[%s14812_s25 + $0x998] sm:$0xff] }
 0x3b9   : > { %5810 = vmatpush1.bf16.msra.mxu0 %v3462_v49  ;;  %v9840_v49 = vcombine.low %v4010_v40, %v4018_v2  ;;  %v2607_v32 = vld [vmem:[%s14812_s25 + $0x8a8] sm:$0xff]  ;;  %v2641_v27 = vld [vmem:[%s14812_s25 + $0x9b8] sm:$0xff] }
 0x3ba   : > { %7354 = vmatpush1.bf16.msra.mxu1 %v3464_v50  ;;  %5811 = vmatprep.subr.bf16.mxu0 %v3467_v51  ;;  %v9857_v50 = vcombine.high %v4026_v47, %v4034_v48  ;;  %v4042_v51 = vld [vmem:[%s17728_s1 + $0x580] sm:$0xff]  ;;  %v3899_v38 = vld [vmem:[%s17728_s1 + $0x108] sm:$0xff]  ;;  %v3491_v40 = vpack.c.bf16 %v2607_v32, %v2603_v31 }
 0x3bb   : > { %5687 = vmatmul.mubr.bf16.gmra.mrb[24].mxu0 %v9792_v55  ;;  %7355 = vmatprep.subr.bf16.mxu1 %v3469_v56  ;;  %v9873_v54 = vcombine.high %v4042_v51, %v4050_v52  ;;  %v4066_v56 = vld [vmem:[%s17728_s1 + $0x640] sm:$0xff]  ;;  %v9872_v57 = vcombine.low %v4042_v51, %v4050_v52  ;;  %v3907_v39 = vld [vmem:[%s17728_s1 + $0x148] sm:$0xff] }
 0x3bc   : > { %7231 = vmatmul.mubr.bf16.gmra.mrb[24].mxu1 %v9792_v55  ;;  %5696 = vmatprep.mubr.bf16.mxu0 %v9809_v60  ;;  %v4058_v55 = vld [vmem:[%s17728_s1 + $0x600] sm:$0xff]  ;;  %v2615_v47 = vld [vmem:[%s14812_s25 + $0x8e8] sm:$0xff]  ;;  %v9731_v48 = vcombine.high %v3899_v38, %v3907_v39  ;;  %v9730_v8 = vcombine.low %v3899_v38, %v3907_v39  ;;  %v2640_v38 = vld [vmem:[%s14812_s25 + $0x9b0] sm:$0xff] }
 0x3bd   : > { %7240 = vmatprep.mubr.bf16.mxu1 %v9809_v60  ;;  %5812 = vmatpush1.bf16.msra.mxu0 %v3466_v63  ;;  %v9889_v58 = vcombine.high %v4058_v55, %v4066_v56  ;;  %v4082_v60 = vld [vmem:[%s17728_s1 + $0x6c0] sm:$0xff]  ;;  %v9888_v61 = vcombine.low %v4058_v55, %v4066_v56  ;;  %v2612_v56 = vld [vmem:[%s14812_s25 + $0x8d0] sm:$0xff]  ;;  %v2643_v39 = vld [vmem:[%s14812_s25 + $0x9c8] sm:$0xff] }
 0x3be   : > { %7356 = vmatpush1.bf16.msra.mxu1 %v3468_v0  ;;  %5813 = vmatprep.subr.bf16.mxu0 %v3471_v1  ;;  %v9905_v62 = vcombine.high %v4074_v59, %v4082_v60  ;;  %v4090_v63 = vld [vmem:[%s17728_s1 + $0x700] sm:$0xff]  ;;  %v9904_v1 = vcombine.low %v4074_v59, %v4082_v60  ;;  %v2619_v59 = vld [vmem:[%s14812_s25 + $0x908] sm:$0xff] }
 0x3bf   : > { %7357 = vmatprep.subr.bf16.mxu1 %v3473_v6  ;;  %v4098_v0 = vld [vmem:[%s17728_s1 + $0x740] sm:$0xff]  ;;  %v2623_v60 = vld [vmem:[%s14812_s25 + $0x928] sm:$0xff] }
 0x3c0   : > { %v9921_v3 = vcombine.high %v4090_v63, %v4098_v0  ;;  %v9920_v6 = vcombine.low %v4090_v63, %v4098_v0  ;;  %v2614_v55 = vld [vmem:[%s14812_s25 + $0x8e0] sm:$0xff]  ;;  %v3915_v63 = vld [vmem:[%s17728_s1 + $0x188] sm:$0xff]  ;;  %v3499_v4 = vpack.c.bf16 %v2623_v60, %v2619_v59 }
 0x3c1   : > { %5814 = vmatpush1.bf16.msra.mxu0 %v3470_v14  ;;  %v2588_v14 = vld [vmem:[%s14812_s25 + $0x810] sm:$0xff]  ;;  %v3923_v0 = vld [vmem:[%s17728_s1 + $0x1c8] sm:$0xff]  ;;  %v2650_v60 = vld [vmem:[%s14812_s25 + $0xa00] sm:$0xff] }
 0x3c2   : > { %7358 = vmatpush1.bf16.msra.mxu1 %v3472_v15  ;;  %5815 = vmatprep.subr.bf16.mxu0 %v3475_v16  ;;  %v2592_v15 = vld [vmem:[%s14812_s25 + $0x830] sm:$0xff]  ;;  %v3883_v16 = vld [vmem:[%s17728_s1 + $0x88] sm:$0xff] }
 0x3c3   : > { %5697 = vmatmul.mubr.bf16.gmra.mrb[28].mxu0 %v9808_v20  ;;  %7359 = vmatprep.subr.bf16.mxu1 %v3477_v21  ;;  %v3482_v21 = vpack.c.bf16 %v2590_v13, %v2586_v12  ;;  %v3484_v24 = vpack.c.bf16 %v2592_v15, %v2588_v14  ;;  %v2631_v12 = vld [vmem:[%s14812_s25 + $0x968] sm:$0xff]  ;;  %v9747_v13 = vcombine.high %v3915_v63, %v3923_v0  ;;  %v2629_v14 = vld [vmem:[%s14812_s25 + $0x958] sm:$0xff] }
 0x3c4   : > { %7241 = vmatmul.mubr.bf16.gmra.mrb[28].mxu1 %v9808_v20  ;;  %5706 = vmatprep.mubr.bf16.mxu0 %v9825_v25  ;;  %v2599_v20 = vld [vmem:[%s14812_s25 + $0x868] sm:$0xff]  ;;  %v2633_v15 = vld [vmem:[%s14812_s25 + $0x978] sm:$0xff] }
 0x3c5   : > { %7250 = vmatprep.mubr.bf16.mxu1 %v9825_v25  ;;  %5816 = vmatpush1.bf16.msra.mxu0 %v3474_v28  ;;  %v9715_v25 = vcombine.high %v3883_v16, %v3891_v17  ;;  %v2596_v28 = vld [vmem:[%s14812_s25 + $0x850] sm:$0xff]  ;;  %v3505_v22 = vpack.c.bf16 %v2633_v15, %v2629_v14 }
 0x3c6   : > { %7360 = vmatpush1.bf16.msra.mxu1 %v3476_v29  ;;  %5817 = vmatprep.subr.bf16.mxu0 %v3479_v30  ;;  %v3487_v29 = vpack.c.bf16 %v2599_v20, %v2595_v19  ;;  %v2600_v30 = vld [vmem:[%s14812_s25 + $0x870] sm:$0xff]  ;;  %v2626_v19 = vld [vmem:[%s14812_s25 + $0x940] sm:$0xff] }
 0x3c7   : > { %7361 = vmatprep.subr.bf16.mxu1 %v3481_v34  ;;  %v2605_v34 = vld [vmem:[%s14812_s25 + $0x898] sm:$0xff]  ;;  %v3488_v37 = vpack.c.bf16 %v2600_v30, %v2596_v28  ;;  %v2630_v20 = vld [vmem:[%s14812_s25 + $0x960] sm:$0xff]  ;;  %v3931_v28 = vld [vmem:[%s17728_s1 + $0x208] sm:$0xff] }
 0x3c8   : > { %v3493_v2 = vpack.c.bf16 %v2609_v35, %v2605_v34  ;;  %v3502_v30 = vpack.c.bf16 %v2630_v20, %v2626_v19  ;;  %v2638_v34 = vld [vmem:[%s14812_s25 + $0x9a0] sm:$0xff]  ;;  %v2636_v35 = vld [vmem:[%s14812_s25 + $0x990] sm:$0xff]  ;;  %v2673_v19 = vld [vmem:[%s14812_s25 + $0xab8] sm:$0xff] }
 0x3c9   : > { %5818 = vmatpush1.bf16.msra.mxu0 %v3478_v41  ;;  %v2602_v41 = vld [vmem:[%s14812_s25 + $0x880] sm:$0xff]  ;;  %v2664_v15 = vld [vmem:[%s14812_s25 + $0xa70] sm:$0xff]  ;;  %v3963_v20 = vld [vmem:[%s17728_s1 + $0x308] sm:$0xff] }
 0x3ca   : > { %7362 = vmatpush1.bf16.msra.mxu1 %v3480_v42  ;;  %5980 = vmatprep.subr.bf16.mxu0 %v3483_v43  ;;  %v2606_v42 = vld [vmem:[%s14812_s25 + $0x8a0] sm:$0xff]  ;;  %v2604_v43 = vld [vmem:[%s14812_s25 + $0x890] sm:$0xff] }
 0x3cb   : > { %5707 = vmatmul.mubr.bf16.gmra.mrb[32].mxu0 %v9824_v44  ;;  %7524 = vmatprep.subr.bf16.mxu1 %v3485_v45  ;;  %v2608_v45 = vld [vmem:[%s14812_s25 + $0x8b0] sm:$0xff]  ;;  %v3490_v51 = vpack.c.bf16 %v2606_v42, %v2602_v41  ;;  %v2645_v41 = vld [vmem:[%s14812_s25 + $0x9d8] sm:$0xff] }
 0x3cc   : > { %7251 = vmatmul.mubr.bf16.gmra.mrb[32].mxu1 %v9824_v44  ;;  %5716 = vmatprep.mubr.bf16.mxu0 %v9841_v46  ;;  %v9714_v44 = vcombine.low %v3883_v16, %v3891_v17  ;;  %v3492_v52 = vpack.c.bf16 %v2608_v45, %v2604_v43  ;;  %v2649_v42 = vld [vmem:[%s14812_s25 + $0x9f8] sm:$0xff] }
 0x3cd   : > { %7260 = vmatprep.mubr.bf16.mxu1 %v9841_v46  ;;  %v2611_v46 = vld [vmem:[%s14812_s25 + $0x8c8] sm:$0xff] }
 0x3d3   : > { %5717 = vmatmul.mubr.bf16.gmra.mrb[36].mxu0 %v9840_v49 }
 0x3d4   : > { %7261 = vmatmul.mubr.bf16.gmra.mrb[36].mxu1 %v9840_v49  ;;  %5726 = vmatprep.mubr.bf16.mxu0 %v9857_v50  ;;  %v2613_v49 = vld [vmem:[%s14812_s25 + $0x8d8] sm:$0xff] }
 0x3d5   : > { %7270 = vmatprep.mubr.bf16.mxu1 %v9857_v50  ;;  %v2617_v50 = vld [vmem:[%s14812_s25 + $0x8f8] sm:$0xff] }
 0x3db   : > { %5727 = vmatmul.mubr.bf16.gmra.mrb[40].mxu0 %v9856_v53 }
 0x3dc   : > { %7271 = vmatmul.mubr.bf16.gmra.mrb[40].mxu1 %v9856_v53  ;;  %5736 = vmatprep.mubr.bf16.mxu0 %v9873_v54  ;;  %v3495_v53 = vpack.c.bf16 %v2615_v47, %v2611_v46  ;;  %v2642_v46 = vld [vmem:[%s14812_s25 + $0x9c0] sm:$0xff] }
 0x3dd   : > { %7280 = vmatprep.mubr.bf16.mxu1 %v9873_v54  ;;  %v2610_v54 = vld [vmem:[%s14812_s25 + $0x8c0] sm:$0xff] }
 0x3de   : > { %v2646_v47 = vld [vmem:[%s14812_s25 + $0x9e0] sm:$0xff] }
 0x3e3   : > { %5737 = vmatmul.mubr.bf16.gmra.mrb[44].mxu0 %v9872_v57 }
 0x3e4   : > { %7281 = vmatmul.mubr.bf16.gmra.mrb[44].mxu1 %v9872_v57  ;;  %5746 = vmatprep.mubr.bf16.mxu0 %v9889_v58  ;;  %v3497_v57 = vpack.c.bf16 %v2617_v50, %v2613_v49  ;;  %v3513_v49 = vpack.c.bf16 %v2649_v42, %v2645_v41  ;;  %v2648_v50 = vld [vmem:[%s14812_s25 + $0x9f0] sm:$0xff] }
 0x3e5   : > { %7290 = vmatprep.mubr.bf16.mxu1 %v9889_v58  ;;  %v2616_v58 = vld [vmem:[%s14812_s25 + $0x8f0] sm:$0xff] }
 0x3e6   : > { %v2680_v42 = vld [vmem:[%s14812_s25 + $0xaf0] sm:$0xff] }
 0x3eb   : > { %5747 = vmatmul.mubr.bf16.gmra.mrb[48].mxu0 %v9888_v61 }
 0x3ec   : > { %7291 = vmatmul.mubr.bf16.gmra.mrb[48].mxu1 %v9888_v61  ;;  %5756 = vmatprep.mubr.bf16.mxu0 %v9905_v62  ;;  %v2621_v61 = vld [vmem:[%s14812_s25 + $0x918] sm:$0xff] }
 0x3ed   : > { %7300 = vmatprep.mubr.bf16.mxu1 %v9905_v62  ;;  %v2625_v62 = vld [vmem:[%s14812_s25 + $0x938] sm:$0xff] }
 0x3ee   : > { %v3501_v9 = vpack.c.bf16 %v2625_v62, %v2621_v61  ;;  %v2654_v61 = vld [vmem:[%s14812_s25 + $0xa20] sm:$0xff]  ;;  %v2652_v62 = vld [vmem:[%s14812_s25 + $0xa10] sm:$0xff] }
 0x3f3   : > { %5757 = vmatmul.mubr.bf16.gmra.mrb[52].mxu0 %v9904_v1 }
 0x3f4   : > { %7301 = vmatmul.mubr.bf16.gmra.mrb[52].mxu1 %v9904_v1  ;;  %5766 = vmatprep.mubr.bf16.mxu0 %v9921_v3  ;;  %v3494_v1 = vpack.c.bf16 %v2614_v55, %v2610_v54  ;;  %v2657_v54 = vld [vmem:[%s14812_s25 + $0xa38] sm:$0xff]  ;;  %v3947_v55 = vld [vmem:[%s17728_s1 + $0x288] sm:$0xff] }
 0x3f5   : > { %7310 = vmatprep.mubr.bf16.mxu1 %v9921_v3  ;;  %v3496_v3 = vpack.c.bf16 %v2616_v58, %v2612_v56  ;;  %v3955_v56 = vld [vmem:[%s17728_s1 + $0x2c8] sm:$0xff] }
 0x3fb   : > { %5767 = vmatmul.mubr.bf16.gmra.mrb[56].mxu0 %v9920_v6 }
 0x3fc   : > { %7311 = vmatmul.mubr.bf16.gmra.mrb[56].mxu1 %v9920_v6  ;;  %5776 = vmatprep.mubr.bf16.mxu0 %v9937_v7  ;;  %v2622_v6 = vld [vmem:[%s14812_s25 + $0x920] sm:$0xff] }
 0x3fd   : > { %7320 = vmatprep.mubr.bf16.mxu1 %v9937_v7  ;;  %v2620_v7 = vld [vmem:[%s14812_s25 + $0x910] sm:$0xff]  ;;  %v3498_v16 = vpack.c.bf16 %v2622_v6, %v2618_v5  ;;  %v9779_v5 = vcombine.high %v3947_v55, %v3955_v56  ;;  %v2661_v6 = vld [vmem:[%s14812_s25 + $0xa58] sm:$0xff] }
 0x403   : > { %5777 = vmatmul.mubr.bf16.gmra.mrb[60].mxu0 %v9936_v10 }
 0x404   : > { %7321 = vmatmul.mubr.bf16.gmra.mrb[60].mxu1 %v9936_v10  ;;  %5819 = vmatprep.mubr.bf16.mxu0 %v9699_v11  ;;  %v2624_v10 = vld [vmem:[%s14812_s25 + $0x930] sm:$0xff] }
 0x405   : > { %7363 = vmatprep.mubr.bf16.mxu1 %v9699_v11  ;;  %v2627_v11 = vld [vmem:[%s14812_s25 + $0x948] sm:$0xff]  ;;  %v3500_v17 = vpack.c.bf16 %v2624_v10, %v2620_v7  ;;  %v2665_v7 = vld [vmem:[%s14812_s25 + $0xa78] sm:$0xff] }
 0x406   : > { %v3521_v14 = vpack.c.bf16 %v2665_v7, %v2661_v6  ;;  %v2696_v7 = vld [vmem:[%s14812_s25 + $0xb70] sm:$0xff] }
 0x40b   : > { %5820 = vmatmul.mubr.bf16.vlgmr.msra.gmra.mrb[0].mxu0 %v9698_v18 }
 0x40c   : > { %7364 = vmatmul.mubr.bf16.vlgmr.msra.gmra.mrb[0].mxu1 %v9698_v18  ;;  %5981 = vmatpush1.bf16.msra.mxu0 %v3482_v21  ;;  %v3503_v18 = vpack.c.bf16 %v2631_v12, %v2627_v11  ;;  %v2628_v21 = vld [vmem:[%s14812_s25 + $0x950] sm:$0xff]  ;;  %v2658_v11 = vld [vmem:[%s14812_s25 + $0xa40] sm:$0xff] }
 0x40d   : > { %7525 = vmatpush1.bf16.msra.mxu1 %v3484_v24  ;;  %5829 = vmatprep.mubr.bf16.mxu0 %v9715_v25  ;;  %v2635_v24 = vld [vmem:[%s14812_s25 + $0x988] sm:$0xff]  ;;  %v3504_v31 = vpack.c.bf16 %v2632_v23, %v2628_v21  ;;  %v2662_v12 = vld [vmem:[%s14812_s25 + $0xa60] sm:$0xff] }
 0x40e   : > { %7373 = vmatprep.mubr.bf16.mxu1 %v9715_v25  ;;  %5982 = vmatprep.subr.bf16.mxu0 %v3487_v29  ;;  %v2639_v25 = vld [vmem:[%s14812_s25 + $0x9a8] sm:$0xff] }
 0x40f   : > { %7526 = vmatprep.subr.bf16.mxu1 %v3489_v33  ;;  %v3939_v29 = vld [vmem:[%s17728_s1 + $0x248] sm:$0xff]  ;;  %v3507_v32 = vpack.c.bf16 %v2639_v25, %v2635_v24  ;;  %v2634_v33 = vld [vmem:[%s14812_s25 + $0x980] sm:$0xff] }
 0x410   : > { %5983 = vmatpush1.bf16.msra.mxu0 %v3486_v36  ;;  %v9746_v36 = vcombine.low %v3915_v63, %v3923_v0  ;;  %v3506_v43 = vpack.c.bf16 %v2638_v34, %v2634_v33  ;;  %v9762_v63 = vcombine.low %v3931_v28, %v3939_v29  ;;  %v3971_v21 = vld [vmem:[%s17728_s1 + $0x348] sm:$0xff]  ;;  %v2666_v25 = vld [vmem:[%s14812_s25 + $0xa80] sm:$0xff]  ;;  %v2677_v34 = vld [vmem:[%s14812_s25 + $0xad8] sm:$0xff] }
 0x411   : > { %7527 = vmatpush1.bf16.msra.mxu1 %v3488_v37  ;;  %5984 = vmatprep.subr.bf16.mxu0 %v3491_v40  ;;  %v3509_v37 = vpack.c.bf16 %v2641_v27, %v2637_v26  ;;  %v2647_v40 = vld [vmem:[%s14812_s25 + $0x9e8] sm:$0xff]  ;;  %v2670_v26 = vld [vmem:[%s14812_s25 + $0xaa0] sm:$0xff]  ;;  %v2668_v27 = vld [vmem:[%s14812_s25 + $0xa90] sm:$0xff]  ;;  %v9795_v33 = vcombine.high %v3963_v20, %v3971_v21 }
 0x412   : > { %7528 = vmatprep.subr.bf16.mxu1 %v3493_v2  ;;  %v9763_v2 = vcombine.high %v3931_v28, %v3939_v29  ;;  %v3511_v45 = vpack.c.bf16 %v2647_v40, %v2643_v39  ;;  %v9778_v28 = vcombine.low %v3947_v55, %v3955_v56  ;;  %v2674_v39 = vld [vmem:[%s14812_s25 + $0xac0] sm:$0xff]  ;;  %v9794_v55 = vcombine.low %v3963_v20, %v3971_v21 }
 0x413   : > { %5830 = vmatmul.mubr.bf16.gmra.mrb[4].mxu0 %v9714_v44  ;;  %v2678_v40 = vld [vmem:[%s14812_s25 + $0xae0] sm:$0xff] }
 0x414   : > { %7374 = vmatmul.mubr.bf16.gmra.mrb[4].mxu1 %v9714_v44  ;;  %5839 = vmatprep.mubr.bf16.mxu0 %v9731_v48  ;;  %v3508_v44 = vpack.c.bf16 %v2640_v38, %v2636_v35  ;;  %v2681_v35 = vld [vmem:[%s14812_s25 + $0xaf8] sm:$0xff] }
 0x415   : > { %7383 = vmatprep.mubr.bf16.mxu1 %v9731_v48  ;;  %5985 = vmatpush1.bf16.msra.mxu0 %v3490_v51  ;;  %v2644_v48 = vld [vmem:[%s14812_s25 + $0x9d0] sm:$0xff]  ;;  %v2651_v51 = vld [vmem:[%s14812_s25 + $0xa08] sm:$0xff]  ;;  %v3529_v41 = vpack.c.bf16 %v2681_v35, %v2677_v34 }
 0x416   : > { %7529 = vmatpush1.bf16.msra.mxu1 %v3492_v52  ;;  %5986 = vmatprep.subr.bf16.mxu0 %v3495_v53  ;;  %v2655_v52 = vld [vmem:[%s14812_s25 + $0xa28] sm:$0xff]  ;;  %v2653_v53 = vld [vmem:[%s14812_s25 + $0xa18] sm:$0xff]  ;;  %v3512_v58 = vpack.c.bf16 %v2648_v50, %v2644_v48  ;;  %v2712_v35 = vld [vmem:[%s14812_s25 + $0xbf0] sm:$0xff] }
 0x417   : > { %7530 = vmatprep.subr.bf16.mxu1 %v3497_v57  ;;  %v3510_v57 = vpack.c.bf16 %v2646_v47, %v2642_v46  ;;  %v3515_v59 = vpack.c.bf16 %v2655_v52, %v2651_v51  ;;  %v3517_v0 = vpack.c.bf16 %v2657_v54, %v2653_v53  ;;  %v2689_v46 = vld [vmem:[%s14812_s25 + $0xb38] sm:$0xff]  ;;  %v3979_v47 = vld [vmem:[%s17728_s1 + $0x388] sm:$0xff]  ;;  %v2682_v52 = vld [vmem:[%s14812_s25 + $0xb00] sm:$0xff] }
 0x418   : > { %v3987_v48 = vld [vmem:[%s17728_s1 + $0x3c8] sm:$0xff]  ;;  %v2686_v53 = vld [vmem:[%s14812_s25 + $0xb20] sm:$0xff]  ;;  %v2684_v54 = vld [vmem:[%s14812_s25 + $0xb10] sm:$0xff] }
 0x419   : > { %5987 = vmatpush1.bf16.msra.mxu0 %v3494_v1  ;;  %v2656_v1 = vld [vmem:[%s14812_s25 + $0xa30] sm:$0xff]  ;;  %v9810_v20 = vcombine.low %v3979_v47, %v3987_v48 }
 0x41a   : > { %7531 = vmatpush1.bf16.msra.mxu1 %v3496_v3  ;;  %5988 = vmatprep.subr.bf16.mxu0 %v3499_v4  ;;  %v2659_v3 = vld [vmem:[%s14812_s25 + $0xa48] sm:$0xff] }
 0x41b   : > { %5840 = vmatmul.mubr.bf16.gmra.mrb[8].mxu0 %v9730_v8  ;;  %7532 = vmatprep.subr.bf16.mxu1 %v3501_v9  ;;  %v2663_v4 = vld [vmem:[%s14812_s25 + $0xa68] sm:$0xff]  ;;  %v3516_v9 = vpack.c.bf16 %v2656_v1, %v2652_v62  ;;  %v2697_v62 = vld [vmem:[%s14812_s25 + $0xb78] sm:$0xff] }
 0x41c   : > { %7384 = vmatmul.mubr.bf16.gmra.mrb[8].mxu1 %v9730_v8  ;;  %5849 = vmatprep.mubr.bf16.mxu0 %v9747_v13  ;;  %v3514_v8 = vpack.c.bf16 %v2654_v61, %v2650_v60  ;;  %v3519_v10 = vpack.c.bf16 %v2663_v4, %v2659_v3  ;;  %v9811_v60 = vcombine.high %v3979_v47, %v3987_v48  ;;  %v2693_v61 = vld [vmem:[%s14812_s25 + $0xb58] sm:$0xff]  ;;  %v2690_v3 = vld [vmem:[%s14812_s25 + $0xb40] sm:$0xff]  ;;  %v4027_v47 = vld [vmem:[%s17728_s1 + $0x508] sm:$0xff] }
 0x41d   : > { %7393 = vmatprep.mubr.bf16.mxu1 %v9747_v13  ;;  %5989 = vmatpush1.bf16.msra.mxu0 %v3498_v16  ;;  %v2660_v13 = vld [vmem:[%s14812_s25 + $0xa50] sm:$0xff]  ;;  %v2667_v16 = vld [vmem:[%s14812_s25 + $0xa88] sm:$0xff]  ;;  %v2694_v4 = vld [vmem:[%s14812_s25 + $0xb60] sm:$0xff]  ;;  %v3537_v6 = vpack.c.bf16 %v2697_v62, %v2693_v61 }
 0x41e   : > { %7533 = vmatpush1.bf16.msra.mxu1 %v3500_v17  ;;  %5990 = vmatprep.subr.bf16.mxu0 %v3503_v18  ;;  %v2671_v17 = vld [vmem:[%s14812_s25 + $0xaa8] sm:$0xff]  ;;  %v2669_v18 = vld [vmem:[%s14812_s25 + $0xa98] sm:$0xff]  ;;  %v3520_v23 = vpack.c.bf16 %v2664_v15, %v2660_v13 }
 0x41f   : > { %7534 = vmatprep.subr.bf16.mxu1 %v3505_v22  ;;  %v3518_v22 = vpack.c.bf16 %v2662_v12, %v2658_v11  ;;  %v3523_v24 = vpack.c.bf16 %v2671_v17, %v2667_v16  ;;  %v3525_v29 = vpack.c.bf16 %v2673_v19, %v2669_v18  ;;  %v2705_v11 = vld [vmem:[%s14812_s25 + $0xbb8] sm:$0xff]  ;;  %v3995_v12 = vld [vmem:[%s17728_s1 + $0x408] sm:$0xff]  ;;  %v2698_v17 = vld [vmem:[%s14812_s25 + $0xb80] sm:$0xff] }
 0x420   : > { %v4003_v13 = vld [vmem:[%s17728_s1 + $0x448] sm:$0xff]  ;;  %v2702_v18 = vld [vmem:[%s14812_s25 + $0xba0] sm:$0xff]  ;;  %v2700_v19 = vld [vmem:[%s14812_s25 + $0xb90] sm:$0xff] }
 0x421   : > { %5991 = vmatpush1.bf16.msra.mxu0 %v3502_v30  ;;  %v2672_v30 = vld [vmem:[%s14812_s25 + $0xab0] sm:$0xff]  ;;  %v4035_v48 = vld [vmem:[%s17728_s1 + $0x548] sm:$0xff] }
 0x422   : > { %7535 = vmatpush1.bf16.msra.mxu1 %v3504_v31  ;;  %5992 = vmatprep.subr.bf16.mxu0 %v3507_v32  ;;  %v2675_v31 = vld [vmem:[%s14812_s25 + $0xac8] sm:$0xff] }
 0x423   : > { %5850 = vmatmul.mubr.bf16.gmra.mrb[12].mxu0 %v9746_v36  ;;  %7536 = vmatprep.subr.bf16.mxu1 %v3509_v37  ;;  %v2679_v32 = vld [vmem:[%s14812_s25 + $0xae8] sm:$0xff]  ;;  %v3524_v37 = vpack.c.bf16 %v2672_v30, %v2668_v27  ;;  %v2713_v27 = vld [vmem:[%s14812_s25 + $0xbf8] sm:$0xff] }
 0x424   : > { %7394 = vmatmul.mubr.bf16.gmra.mrb[12].mxu1 %v9746_v36  ;;  %5859 = vmatprep.mubr.bf16.mxu0 %v9763_v2  ;;  %v3522_v36 = vpack.c.bf16 %v2670_v26, %v2666_v25  ;;  %v3527_v38 = vpack.c.bf16 %v2679_v32, %v2675_v31  ;;  %v9827_v25 = vcombine.high %v3995_v12, %v4003_v13  ;;  %v2709_v26 = vld [vmem:[%s14812_s25 + $0xbd8] sm:$0xff]  ;;  %v2706_v31 = vld [vmem:[%s14812_s25 + $0xbc0] sm:$0xff] }
 0x425   : > { %7403 = vmatprep.mubr.bf16.mxu1 %v9763_v2  ;;  %5993 = vmatpush1.bf16.msra.mxu0 %v3506_v43  ;;  %v2676_v2 = vld [vmem:[%s14812_s25 + $0xad0] sm:$0xff]  ;;  %v2683_v43 = vld [vmem:[%s14812_s25 + $0xb08] sm:$0xff]  ;;  %v2710_v32 = vld [vmem:[%s14812_s25 + $0xbe0] sm:$0xff]  ;;  %v3545_v34 = vpack.c.bf16 %v2713_v27, %v2709_v26 }
 0x426   : > { %7537 = vmatpush1.bf16.msra.mxu1 %v3508_v44  ;;  %5994 = vmatprep.subr.bf16.mxu0 %v3511_v45  ;;  %v2687_v44 = vld [vmem:[%s14812_s25 + $0xb28] sm:$0xff]  ;;  %v2685_v45 = vld [vmem:[%s14812_s25 + $0xb18] sm:$0xff]  ;;  %v3528_v50 = vpack.c.bf16 %v2680_v42, %v2676_v2  ;;  %v2722_v26 = vld [vmem:[%s14812_s25 + $0xc40] sm:$0xff] }
 0x427   : > { %7538 = vmatprep.subr.bf16.mxu1 %v3513_v49  ;;  %v3526_v49 = vpack.c.bf16 %v2678_v40, %v2674_v39  ;;  %v3531_v51 = vpack.c.bf16 %v2687_v44, %v2683_v43  ;;  %v3533_v56 = vpack.c.bf16 %v2689_v46, %v2685_v45  ;;  %v2721_v39 = vld [vmem:[%s14812_s25 + $0xc38] sm:$0xff]  ;;  %v4011_v40 = vld [vmem:[%s17728_s1 + $0x488] sm:$0xff]  ;;  %v9826_v44 = vcombine.low %v3995_v12, %v4003_v13  ;;  %v2714_v12 = vld [vmem:[%s14812_s25 + $0xc00] sm:$0xff] }
 0x428   : > { %v4019_v2 = vld [vmem:[%s17728_s1 + $0x4c8] sm:$0xff]  ;;  %v2718_v13 = vld [vmem:[%s14812_s25 + $0xc20] sm:$0xff] }
 0x429   : > { %5995 = vmatpush1.bf16.msra.mxu0 %v3510_v57  ;;  %v2688_v57 = vld [vmem:[%s14812_s25 + $0xb30] sm:$0xff]  ;;  %v9843_v46 = vcombine.high %v4011_v40, %v4019_v2  ;;  %v2726_v27 = vld [vmem:[%s14812_s25 + $0xc60] sm:$0xff] }
 0x42a   : > { %7539 = vmatpush1.bf16.msra.mxu1 %v3512_v58  ;;  %5996 = vmatprep.subr.bf16.mxu0 %v3515_v59  ;;  %v2691_v58 = vld [vmem:[%s14812_s25 + $0xb48] sm:$0xff] }
 0x42b   : > { %5860 = vmatmul.mubr.bf16.gmra.mrb[16].mxu0 %v9762_v63  ;;  %7540 = vmatprep.subr.bf16.mxu1 %v3517_v0  ;;  %v2695_v59 = vld [vmem:[%s14812_s25 + $0xb68] sm:$0xff]  ;;  %v3532_v0 = vpack.c.bf16 %v2688_v57, %v2684_v54 }
 0x42c   : > { %7404 = vmatmul.mubr.bf16.gmra.mrb[16].mxu1 %v9762_v63  ;;  %5869 = vmatprep.mubr.bf16.mxu0 %v9779_v5  ;;  %v3530_v63 = vpack.c.bf16 %v2686_v53, %v2682_v52  ;;  %v3535_v1 = vpack.c.bf16 %v2695_v59, %v2691_v58  ;;  %v4051_v52 = vld [vmem:[%s17728_s1 + $0x5c8] sm:$0xff]  ;;  %v9858_v53 = vcombine.low %v4027_v47, %v4035_v48 }
 0x42d   : > { %7413 = vmatprep.mubr.bf16.mxu1 %v9779_v5  ;;  %5997 = vmatpush1.bf16.msra.mxu0 %v3514_v8  ;;  %v2692_v5 = vld [vmem:[%s14812_s25 + $0xb50] sm:$0xff]  ;;  %v2699_v8 = vld [vmem:[%s14812_s25 + $0xb88] sm:$0xff] }
 0x42e   : > { %7541 = vmatpush1.bf16.msra.mxu1 %v3516_v9  ;;  %5998 = vmatprep.subr.bf16.mxu0 %v3519_v10  ;;  %v2703_v9 = vld [vmem:[%s14812_s25 + $0xba8] sm:$0xff]  ;;  %v2701_v10 = vld [vmem:[%s14812_s25 + $0xb98] sm:$0xff]  ;;  %v3536_v15 = vpack.c.bf16 %v2696_v7, %v2692_v5 }
 0x42f   : > { %7542 = vmatprep.subr.bf16.mxu1 %v3521_v14  ;;  %v3534_v14 = vpack.c.bf16 %v2694_v4, %v2690_v3  ;;  %v3539_v16 = vpack.c.bf16 %v2703_v9, %v2699_v8  ;;  %v3541_v21 = vpack.c.bf16 %v2705_v11, %v2701_v10  ;;  %v4075_v59 = vld [vmem:[%s17728_s1 + $0x688] sm:$0xff]  ;;  %v3868_v8 = vld [vmem:[%s17728_s1 + $0x10] sm:$0xff] }
 0x430   : > { %v4107_v4 = vld [vmem:[%s17728_s1 + $0x788] sm:$0xff]  ;;  %v3876_v9 = vld [vmem:[%s17728_s1 + $0x50] sm:$0xff] }
 0x431   : > { %5999 = vmatpush1.bf16.msra.mxu0 %v3518_v22  ;;  %v2704_v22 = vld [vmem:[%s14812_s25 + $0xbb0] sm:$0xff]  ;;  %v4115_v5 = vld [vmem:[%s17728_s1 + $0x7c8] sm:$0xff]  ;;  %v9701_v11 = vcombine.high %v3868_v8, %v3876_v9 }
 0x432   : > { %7543 = vmatpush1.bf16.msra.mxu1 %v3520_v23  ;;  %6000 = vmatprep.subr.bf16.mxu0 %v3523_v24  ;;  %v2707_v23 = vld [vmem:[%s14812_s25 + $0xbc8] sm:$0xff]  ;;  %v9939_v7 = vcombine.high %v4107_v4, %v4115_v5  ;;  %v9938_v10 = vcombine.low %v4107_v4, %v4115_v5  ;;  %v2746_v5 = vld [vmem:[%s14812_s25 + $0xd00] sm:$0xff] }
 0x433   : > { %5870 = vmatmul.mubr.bf16.gmra.mrb[20].mxu0 %v9778_v28  ;;  %7544 = vmatprep.subr.bf16.mxu1 %v3525_v29  ;;  %v2711_v24 = vld [vmem:[%s14812_s25 + $0xbe8] sm:$0xff]  ;;  %v3540_v29 = vpack.c.bf16 %v2704_v22, %v2700_v19  ;;  %v2725_v22 = vld [vmem:[%s14812_s25 + $0xc58] sm:$0xff] }
 0x434   : > { %7414 = vmatmul.mubr.bf16.gmra.mrb[20].mxu1 %v9778_v28  ;;  %5879 = vmatprep.mubr.bf16.mxu0 %v9795_v33  ;;  %v3538_v28 = vpack.c.bf16 %v2702_v18, %v2698_v17  ;;  %v3543_v30 = vpack.c.bf16 %v2711_v24, %v2707_v23  ;;  %v3892_v17 = vld [vmem:[%s17728_s1 + $0xd0] sm:$0xff]  ;;  %v9700_v18 = vcombine.low %v3868_v8, %v3876_v9  ;;  %v2723_v19 = vld [vmem:[%s14812_s25 + $0xc48] sm:$0xff]  ;;  %v2729_v23 = vld [vmem:[%s14812_s25 + $0xc78] sm:$0xff] }
 0x435   : > { %7423 = vmatprep.mubr.bf16.mxu1 %v9795_v33  ;;  %6001 = vmatpush1.bf16.msra.mxu0 %v3522_v36  ;;  %v2708_v33 = vld [vmem:[%s14812_s25 + $0xbd0] sm:$0xff]  ;;  %v2715_v36 = vld [vmem:[%s14812_s25 + $0xc08] sm:$0xff] }
 0x436   : > { %7545 = vmatpush1.bf16.msra.mxu1 %v3524_v37  ;;  %6002 = vmatprep.subr.bf16.mxu0 %v3527_v38  ;;  %v2719_v37 = vld [vmem:[%s14812_s25 + $0xc28] sm:$0xff]  ;;  %v2717_v38 = vld [vmem:[%s14812_s25 + $0xc18] sm:$0xff]  ;;  %v3544_v42 = vpack.c.bf16 %v2712_v35, %v2708_v33  ;;  %v3553_v33 = vpack.c.bf16 %v2729_v23, %v2725_v22  ;;  %v2760_v23 = vld [vmem:[%s14812_s25 + $0xd70] sm:$0xff] }
 0x437   : > { %7546 = vmatprep.subr.bf16.mxu1 %v3529_v41  ;;  %v3542_v41 = vpack.c.bf16 %v2710_v32, %v2706_v31  ;;  %v3547_v43 = vpack.c.bf16 %v2719_v37, %v2715_v36  ;;  %v3549_v45 = vpack.c.bf16 %v2721_v39, %v2717_v38  ;;  %v2731_v31 = vld [vmem:[%s14812_s25 + $0xc88] sm:$0xff]  ;;  %v2737_v35 = vld [vmem:[%s14812_s25 + $0xcb8] sm:$0xff]  ;;  %v3550_v36 = vpack.c.bf16 %v2726_v27, %v2722_v26  ;;  %v3900_v38 = vld [vmem:[%s17728_s1 + $0x110] sm:$0xff] }
 0x438   : > { %v2735_v32 = vld [vmem:[%s14812_s25 + $0xca8] sm:$0xff]  ;;  %v3908_v39 = vld [vmem:[%s17728_s1 + $0x150] sm:$0xff]  ;;  %v2765_v26 = vld [vmem:[%s14812_s25 + $0xd98] sm:$0xff] }
 0x439   : > { %6003 = vmatpush1.bf16.msra.mxu0 %v3526_v49  ;;  %v9842_v49 = vcombine.low %v4011_v40, %v4019_v2  ;;  %v3555_v40 = vpack.c.bf16 %v2735_v32, %v2731_v31  ;;  %v9732_v8 = vcombine.low %v3900_v38, %v3908_v39  ;;  %v2769_v27 = vld [vmem:[%s14812_s25 + $0xdb8] sm:$0xff] }
 0x43a   : > { %7547 = vmatpush1.bf16.msra.mxu1 %v3528_v50  ;;  %6004 = vmatprep.subr.bf16.mxu0 %v3531_v51  ;;  %v9859_v50 = vcombine.high %v4027_v47, %v4035_v48  ;;  %v4043_v51 = vld [vmem:[%s17728_s1 + $0x588] sm:$0xff]  ;;  %v9733_v48 = vcombine.high %v3900_v38, %v3908_v39  ;;  %v2768_v38 = vld [vmem:[%s14812_s25 + $0xdb0] sm:$0xff] }
 0x43b   : > { %5880 = vmatmul.mubr.bf16.gmra.mrb[24].mxu0 %v9794_v55  ;;  %7548 = vmatprep.subr.bf16.mxu1 %v3533_v56  ;;  %v9875_v54 = vcombine.high %v4043_v51, %v4051_v52  ;;  %v4067_v56 = vld [vmem:[%s17728_s1 + $0x648] sm:$0xff]  ;;  %v9874_v57 = vcombine.low %v4043_v51, %v4051_v52 }
 0x43c   : > { %7424 = vmatmul.mubr.bf16.gmra.mrb[24].mxu1 %v9794_v55  ;;  %5889 = vmatprep.mubr.bf16.mxu0 %v9811_v60  ;;  %v4059_v55 = vld [vmem:[%s17728_s1 + $0x608] sm:$0xff] }
 0x43d   : > { %7433 = vmatprep.mubr.bf16.mxu1 %v9811_v60  ;;  %6005 = vmatpush1.bf16.msra.mxu0 %v3530_v63  ;;  %v9891_v58 = vcombine.high %v4059_v55, %v4067_v56  ;;  %v4083_v60 = vld [vmem:[%s17728_s1 + $0x6c8] sm:$0xff]  ;;  %v9890_v61 = vcombine.low %v4059_v55, %v4067_v56  ;;  %v2742_v55 = vld [vmem:[%s14812_s25 + $0xce0] sm:$0xff]  ;;  %v2740_v56 = vld [vmem:[%s14812_s25 + $0xcd0] sm:$0xff] }
 0x43e   : > { %7549 = vmatpush1.bf16.msra.mxu1 %v3532_v0  ;;  %6006 = vmatprep.subr.bf16.mxu0 %v3535_v1  ;;  %v9907_v62 = vcombine.high %v4075_v59, %v4083_v60  ;;  %v4091_v63 = vld [vmem:[%s17728_s1 + $0x708] sm:$0xff]  ;;  %v9906_v1 = vcombine.low %v4075_v59, %v4083_v60 }
 0x43f   : > { %7550 = vmatprep.subr.bf16.mxu1 %v3537_v6  ;;  %v4099_v0 = vld [vmem:[%s17728_s1 + $0x748] sm:$0xff] }
 0x440   : > { %v9923_v3 = vcombine.high %v4091_v63, %v4099_v0  ;;  %v9922_v6 = vcombine.low %v4091_v63, %v4099_v0  ;;  %v2743_v47 = vld [vmem:[%s14812_s25 + $0xce8] sm:$0xff]  ;;  %v3916_v63 = vld [vmem:[%s17728_s1 + $0x190] sm:$0xff] }
 0x441   : > { %6007 = vmatpush1.bf16.msra.mxu0 %v3534_v14  ;;  %v2716_v14 = vld [vmem:[%s14812_s25 + $0xc10] sm:$0xff]  ;;  %v2747_v59 = vld [vmem:[%s14812_s25 + $0xd08] sm:$0xff] }
 0x442   : > { %7551 = vmatpush1.bf16.msra.mxu1 %v3536_v15  ;;  %6008 = vmatprep.subr.bf16.mxu0 %v3539_v16  ;;  %v2720_v15 = vld [vmem:[%s14812_s25 + $0xc30] sm:$0xff]  ;;  %v2751_v60 = vld [vmem:[%s14812_s25 + $0xd28] sm:$0xff] }
 0x443   : > { %5890 = vmatmul.mubr.bf16.gmra.mrb[28].mxu0 %v9810_v20  ;;  %7552 = vmatprep.subr.bf16.mxu1 %v3541_v21  ;;  %v3884_v16 = vld [vmem:[%s17728_s1 + $0x90] sm:$0xff]  ;;  %v3546_v21 = vpack.c.bf16 %v2718_v13, %v2714_v12  ;;  %v3548_v24 = vpack.c.bf16 %v2720_v15, %v2716_v14  ;;  %v3563_v4 = vpack.c.bf16 %v2751_v60, %v2747_v59  ;;  %v2759_v12 = vld [vmem:[%s14812_s25 + $0xd68] sm:$0xff]  ;;  %v2757_v14 = vld [vmem:[%s14812_s25 + $0xd58] sm:$0xff] }
 0x444   : > { %7434 = vmatmul.mubr.bf16.gmra.mrb[28].mxu1 %v9810_v20  ;;  %5899 = vmatprep.mubr.bf16.mxu0 %v9827_v25  ;;  %v2727_v20 = vld [vmem:[%s14812_s25 + $0xc68] sm:$0xff]  ;;  %v3924_v0 = vld [vmem:[%s17728_s1 + $0x1d0] sm:$0xff]  ;;  %v2761_v15 = vld [vmem:[%s14812_s25 + $0xd78] sm:$0xff] }
 0x445   : > { %7443 = vmatprep.mubr.bf16.mxu1 %v9827_v25  ;;  %6009 = vmatpush1.bf16.msra.mxu0 %v3538_v28  ;;  %v9717_v25 = vcombine.high %v3884_v16, %v3892_v17  ;;  %v2724_v28 = vld [vmem:[%s14812_s25 + $0xc50] sm:$0xff]  ;;  %v9749_v13 = vcombine.high %v3916_v63, %v3924_v0  ;;  %v3569_v22 = vpack.c.bf16 %v2761_v15, %v2757_v14  ;;  %v2771_v39 = vld [vmem:[%s14812_s25 + $0xdc8] sm:$0xff]  ;;  %v2778_v60 = vld [vmem:[%s14812_s25 + $0xe00] sm:$0xff] }
 0x446   : > { %7553 = vmatpush1.bf16.msra.mxu1 %v3540_v29  ;;  %6010 = vmatprep.subr.bf16.mxu0 %v3543_v30  ;;  %v3551_v29 = vpack.c.bf16 %v2727_v20, %v2723_v19  ;;  %v2728_v30 = vld [vmem:[%s14812_s25 + $0xc70] sm:$0xff]  ;;  %v2754_v19 = vld [vmem:[%s14812_s25 + $0xd40] sm:$0xff] }
 0x447   : > { %7554 = vmatprep.subr.bf16.mxu1 %v3545_v34  ;;  %v2733_v34 = vld [vmem:[%s14812_s25 + $0xc98] sm:$0xff]  ;;  %v3552_v37 = vpack.c.bf16 %v2728_v30, %v2724_v28  ;;  %v2758_v20 = vld [vmem:[%s14812_s25 + $0xd60] sm:$0xff]  ;;  %v3932_v28 = vld [vmem:[%s17728_s1 + $0x210] sm:$0xff] }
 0x448   : > { %v3557_v2 = vpack.c.bf16 %v2737_v35, %v2733_v34  ;;  %v3566_v30 = vpack.c.bf16 %v2758_v20, %v2754_v19  ;;  %v2766_v34 = vld [vmem:[%s14812_s25 + $0xda0] sm:$0xff]  ;;  %v2764_v35 = vld [vmem:[%s14812_s25 + $0xd90] sm:$0xff]  ;;  %v2801_v19 = vld [vmem:[%s14812_s25 + $0xeb8] sm:$0xff] }
 0x449   : > { %6011 = vmatpush1.bf16.msra.mxu0 %v3542_v41  ;;  %v2730_v41 = vld [vmem:[%s14812_s25 + $0xc80] sm:$0xff]  ;;  %v2792_v15 = vld [vmem:[%s14812_s25 + $0xe70] sm:$0xff] }
 0x44a   : > { %7555 = vmatpush1.bf16.msra.mxu1 %v3544_v42  ;;  %6173 = vmatprep.subr.bf16.mxu0 %v3547_v43  ;;  %v2734_v42 = vld [vmem:[%s14812_s25 + $0xca0] sm:$0xff]  ;;  %v2732_v43 = vld [vmem:[%s14812_s25 + $0xc90] sm:$0xff] }
 0x44b   : > { %5900 = vmatmul.mubr.bf16.gmra.mrb[32].mxu0 %v9826_v44  ;;  %7717 = vmatprep.subr.bf16.mxu1 %v3549_v45  ;;  %v2736_v45 = vld [vmem:[%s14812_s25 + $0xcb0] sm:$0xff]  ;;  %v3554_v51 = vpack.c.bf16 %v2734_v42, %v2730_v41  ;;  %v2773_v41 = vld [vmem:[%s14812_s25 + $0xdd8] sm:$0xff] }
 0x44c   : > { %7444 = vmatmul.mubr.bf16.gmra.mrb[32].mxu1 %v9826_v44  ;;  %5909 = vmatprep.mubr.bf16.mxu0 %v9843_v46  ;;  %v9716_v44 = vcombine.low %v3884_v16, %v3892_v17  ;;  %v3556_v52 = vpack.c.bf16 %v2736_v45, %v2732_v43  ;;  %v2777_v42 = vld [vmem:[%s14812_s25 + $0xdf8] sm:$0xff]  ;;  %v3964_v20 = vld [vmem:[%s17728_s1 + $0x310] sm:$0xff] }
 0x44d   : > { %7453 = vmatprep.mubr.bf16.mxu1 %v9843_v46  ;;  %v2739_v46 = vld [vmem:[%s14812_s25 + $0xcc8] sm:$0xff] }
 0x453   : > { %5910 = vmatmul.mubr.bf16.gmra.mrb[36].mxu0 %v9842_v49 }
 0x454   : > { %7454 = vmatmul.mubr.bf16.gmra.mrb[36].mxu1 %v9842_v49  ;;  %5919 = vmatprep.mubr.bf16.mxu0 %v9859_v50  ;;  %v2741_v49 = vld [vmem:[%s14812_s25 + $0xcd8] sm:$0xff] }
 0x455   : > { %7463 = vmatprep.mubr.bf16.mxu1 %v9859_v50  ;;  %v2745_v50 = vld [vmem:[%s14812_s25 + $0xcf8] sm:$0xff] }
 0x45b   : > { %5920 = vmatmul.mubr.bf16.gmra.mrb[40].mxu0 %v9858_v53 }
 0x45c   : > { %7464 = vmatmul.mubr.bf16.gmra.mrb[40].mxu1 %v9858_v53  ;;  %5929 = vmatprep.mubr.bf16.mxu0 %v9875_v54  ;;  %v3559_v53 = vpack.c.bf16 %v2743_v47, %v2739_v46  ;;  %v2770_v46 = vld [vmem:[%s14812_s25 + $0xdc0] sm:$0xff] }
 0x45d   : > { %7473 = vmatprep.mubr.bf16.mxu1 %v9875_v54  ;;  %v2738_v54 = vld [vmem:[%s14812_s25 + $0xcc0] sm:$0xff] }
 0x45e   : > { %v2774_v47 = vld [vmem:[%s14812_s25 + $0xde0] sm:$0xff] }
 0x463   : > { %5930 = vmatmul.mubr.bf16.gmra.mrb[44].mxu0 %v9874_v57 }
 0x464   : > { %7474 = vmatmul.mubr.bf16.gmra.mrb[44].mxu1 %v9874_v57  ;;  %5939 = vmatprep.mubr.bf16.mxu0 %v9891_v58  ;;  %v3561_v57 = vpack.c.bf16 %v2745_v50, %v2741_v49  ;;  %v3577_v49 = vpack.c.bf16 %v2777_v42, %v2773_v41  ;;  %v2776_v50 = vld [vmem:[%s14812_s25 + $0xdf0] sm:$0xff] }
 0x465   : > { %7483 = vmatprep.mubr.bf16.mxu1 %v9891_v58  ;;  %v2744_v58 = vld [vmem:[%s14812_s25 + $0xcf0] sm:$0xff] }
 0x466   : > { %v2808_v42 = vld [vmem:[%s14812_s25 + $0xef0] sm:$0xff] }
 0x46b   : > { %5940 = vmatmul.mubr.bf16.gmra.mrb[48].mxu0 %v9890_v61 }
 0x46c   : > { %7484 = vmatmul.mubr.bf16.gmra.mrb[48].mxu1 %v9890_v61  ;;  %5949 = vmatprep.mubr.bf16.mxu0 %v9907_v62  ;;  %v2749_v61 = vld [vmem:[%s14812_s25 + $0xd18] sm:$0xff] }
 0x46d   : > { %7493 = vmatprep.mubr.bf16.mxu1 %v9907_v62  ;;  %v2753_v62 = vld [vmem:[%s14812_s25 + $0xd38] sm:$0xff] }
 0x46e   : > { %v3565_v9 = vpack.c.bf16 %v2753_v62, %v2749_v61  ;;  %v2782_v61 = vld [vmem:[%s14812_s25 + $0xe20] sm:$0xff]  ;;  %v2780_v62 = vld [vmem:[%s14812_s25 + $0xe10] sm:$0xff] }
 0x473   : > { %5950 = vmatmul.mubr.bf16.gmra.mrb[52].mxu0 %v9906_v1 }
 0x474   : > { %7494 = vmatmul.mubr.bf16.gmra.mrb[52].mxu1 %v9906_v1  ;;  %5959 = vmatprep.mubr.bf16.mxu0 %v9923_v3  ;;  %v3558_v1 = vpack.c.bf16 %v2742_v55, %v2738_v54  ;;  %v2785_v54 = vld [vmem:[%s14812_s25 + $0xe38] sm:$0xff]  ;;  %v3948_v55 = vld [vmem:[%s17728_s1 + $0x290] sm:$0xff] }
 0x475   : > { %7503 = vmatprep.mubr.bf16.mxu1 %v9923_v3  ;;  %v3560_v3 = vpack.c.bf16 %v2744_v58, %v2740_v56  ;;  %v3956_v56 = vld [vmem:[%s17728_s1 + $0x2d0] sm:$0xff] }
 0x47b   : > { %5960 = vmatmul.mubr.bf16.gmra.mrb[56].mxu0 %v9922_v6 }
 0x47c   : > { %7504 = vmatmul.mubr.bf16.gmra.mrb[56].mxu1 %v9922_v6  ;;  %5969 = vmatprep.mubr.bf16.mxu0 %v9939_v7  ;;  %v2750_v6 = vld [vmem:[%s14812_s25 + $0xd20] sm:$0xff] }
 0x47d   : > { %7513 = vmatprep.mubr.bf16.mxu1 %v9939_v7  ;;  %v2748_v7 = vld [vmem:[%s14812_s25 + $0xd10] sm:$0xff]  ;;  %v3562_v16 = vpack.c.bf16 %v2750_v6, %v2746_v5  ;;  %v9781_v5 = vcombine.high %v3948_v55, %v3956_v56  ;;  %v2789_v6 = vld [vmem:[%s14812_s25 + $0xe58] sm:$0xff] }
 0x483   : > { %5970 = vmatmul.mubr.bf16.gmra.mrb[60].mxu0 %v9938_v10 }
 0x484   : > { %7514 = vmatmul.mubr.bf16.gmra.mrb[60].mxu1 %v9938_v10  ;;  %6012 = vmatprep.mubr.bf16.mxu0 %v9701_v11  ;;  %v2752_v10 = vld [vmem:[%s14812_s25 + $0xd30] sm:$0xff] }
 0x485   : > { %7556 = vmatprep.mubr.bf16.mxu1 %v9701_v11  ;;  %v2755_v11 = vld [vmem:[%s14812_s25 + $0xd48] sm:$0xff]  ;;  %v3564_v17 = vpack.c.bf16 %v2752_v10, %v2748_v7  ;;  %v2793_v7 = vld [vmem:[%s14812_s25 + $0xe78] sm:$0xff] }
 0x486   : > { %v3585_v14 = vpack.c.bf16 %v2793_v7, %v2789_v6  ;;  %v2824_v7 = vld [vmem:[%s14812_s25 + $0xf70] sm:$0xff] }
 0x48b   : > { %6013 = vmatmul.mubr.bf16.vlgmr.msra.gmra.mrb[0].mxu0 %v9700_v18 }
 0x48c   : > { %7557 = vmatmul.mubr.bf16.vlgmr.msra.gmra.mrb[0].mxu1 %v9700_v18  ;;  %6174 = vmatpush1.bf16.msra.mxu0 %v3546_v21  ;;  %v3567_v18 = vpack.c.bf16 %v2759_v12, %v2755_v11  ;;  %v2756_v21 = vld [vmem:[%s14812_s25 + $0xd50] sm:$0xff]  ;;  %v2786_v11 = vld [vmem:[%s14812_s25 + $0xe40] sm:$0xff] }
 0x48d   : > { %7718 = vmatpush1.bf16.msra.mxu1 %v3548_v24  ;;  %6022 = vmatprep.mubr.bf16.mxu0 %v9717_v25  ;;  %v2763_v24 = vld [vmem:[%s14812_s25 + $0xd88] sm:$0xff]  ;;  %v3568_v31 = vpack.c.bf16 %v2760_v23, %v2756_v21  ;;  %v2790_v12 = vld [vmem:[%s14812_s25 + $0xe60] sm:$0xff]  ;;  %v3972_v21 = vld [vmem:[%s17728_s1 + $0x350] sm:$0xff] }
 0x48e   : > { %7566 = vmatprep.mubr.bf16.mxu1 %v9717_v25  ;;  %6175 = vmatprep.subr.bf16.mxu0 %v3551_v29  ;;  %v2767_v25 = vld [vmem:[%s14812_s25 + $0xda8] sm:$0xff]  ;;  %v3940_v29 = vld [vmem:[%s17728_s1 + $0x250] sm:$0xff] }
 0x48f   : > { %7719 = vmatprep.subr.bf16.mxu1 %v3553_v33  ;;  %v3571_v32 = vpack.c.bf16 %v2767_v25, %v2763_v24  ;;  %v2762_v33 = vld [vmem:[%s14812_s25 + $0xd80] sm:$0xff] }
 0x490   : > { %6176 = vmatpush1.bf16.msra.mxu0 %v3550_v36  ;;  %v9748_v36 = vcombine.low %v3916_v63, %v3924_v0  ;;  %v3570_v43 = vpack.c.bf16 %v2766_v34, %v2762_v33  ;;  %v9764_v63 = vcombine.low %v3932_v28, %v3940_v29  ;;  %v2794_v25 = vld [vmem:[%s14812_s25 + $0xe80] sm:$0xff]  ;;  %v9797_v33 = vcombine.high %v3964_v20, %v3972_v21  ;;  %v2805_v34 = vld [vmem:[%s14812_s25 + $0xed8] sm:$0xff] }
 0x491   : > { %7720 = vmatpush1.bf16.msra.mxu1 %v3552_v37  ;;  %6177 = vmatprep.subr.bf16.mxu0 %v3555_v40  ;;  %v3573_v37 = vpack.c.bf16 %v2769_v27, %v2765_v26  ;;  %v2775_v40 = vld [vmem:[%s14812_s25 + $0xde8] sm:$0xff]  ;;  %v2798_v26 = vld [vmem:[%s14812_s25 + $0xea0] sm:$0xff]  ;;  %v2796_v27 = vld [vmem:[%s14812_s25 + $0xe90] sm:$0xff] }
 0x492   : > { %7721 = vmatprep.subr.bf16.mxu1 %v3557_v2  ;;  %v9765_v2 = vcombine.high %v3932_v28, %v3940_v29  ;;  %v3575_v45 = vpack.c.bf16 %v2775_v40, %v2771_v39  ;;  %v9780_v28 = vcombine.low %v3948_v55, %v3956_v56  ;;  %v2802_v39 = vld [vmem:[%s14812_s25 + $0xec0] sm:$0xff]  ;;  %v9796_v55 = vcombine.low %v3964_v20, %v3972_v21 }
 0x493   : > { %6023 = vmatmul.mubr.bf16.gmra.mrb[4].mxu0 %v9716_v44  ;;  %v2806_v40 = vld [vmem:[%s14812_s25 + $0xee0] sm:$0xff] }
 0x494   : > { %7567 = vmatmul.mubr.bf16.gmra.mrb[4].mxu1 %v9716_v44  ;;  %6032 = vmatprep.mubr.bf16.mxu0 %v9733_v48  ;;  %v3572_v44 = vpack.c.bf16 %v2768_v38, %v2764_v35  ;;  %v2809_v35 = vld [vmem:[%s14812_s25 + $0xef8] sm:$0xff] }
 0x495   : > { %7576 = vmatprep.mubr.bf16.mxu1 %v9733_v48  ;;  %6178 = vmatpush1.bf16.msra.mxu0 %v3554_v51  ;;  %v2772_v48 = vld [vmem:[%s14812_s25 + $0xdd0] sm:$0xff]  ;;  %v2779_v51 = vld [vmem:[%s14812_s25 + $0xe08] sm:$0xff]  ;;  %v3593_v41 = vpack.c.bf16 %v2809_v35, %v2805_v34 }
 0x496   : > { %7722 = vmatpush1.bf16.msra.mxu1 %v3556_v52  ;;  %6179 = vmatprep.subr.bf16.mxu0 %v3559_v53  ;;  %v2783_v52 = vld [vmem:[%s14812_s25 + $0xe28] sm:$0xff]  ;;  %v2781_v53 = vld [vmem:[%s14812_s25 + $0xe18] sm:$0xff]  ;;  %v3576_v58 = vpack.c.bf16 %v2776_v50, %v2772_v48  ;;  %v3988_v48 = vld [vmem:[%s17728_s1 + $0x3d0] sm:$0xff] }
 0x497   : > { %7723 = vmatprep.subr.bf16.mxu1 %v3561_v57  ;;  %v3574_v57 = vpack.c.bf16 %v2774_v47, %v2770_v46  ;;  %v3579_v59 = vpack.c.bf16 %v2783_v52, %v2779_v51  ;;  %v3581_v0 = vpack.c.bf16 %v2785_v54, %v2781_v53  ;;  %v2817_v46 = vld [vmem:[%s14812_s25 + $0xf38] sm:$0xff]  ;;  %v3980_v47 = vld [vmem:[%s17728_s1 + $0x390] sm:$0xff]  ;;  %v2810_v52 = vld [vmem:[%s14812_s25 + $0xf00] sm:$0xff] }
 0x498   : > { %v2814_v53 = vld [vmem:[%s14812_s25 + $0xf20] sm:$0xff]  ;;  %v2812_v54 = vld [vmem:[%s14812_s25 + $0xf10] sm:$0xff]  ;;  %v9812_v20 = vcombine.low %v3980_v47, %v3988_v48 }
 0x499   : > { %6180 = vmatpush1.bf16.msra.mxu0 %v3558_v1  ;;  %v2784_v1 = vld [vmem:[%s14812_s25 + $0xe30] sm:$0xff] }
 0x49a   : > { %7724 = vmatpush1.bf16.msra.mxu1 %v3560_v3  ;;  %6181 = vmatprep.subr.bf16.mxu0 %v3563_v4  ;;  %v2787_v3 = vld [vmem:[%s14812_s25 + $0xe48] sm:$0xff]  ;;  %v2840_v35 = vld [vmem:[%s14812_s25 + $0xff0] sm:$0xff] }
 0x49b   : > { %6033 = vmatmul.mubr.bf16.gmra.mrb[8].mxu0 %v9732_v8  ;;  %7725 = vmatprep.subr.bf16.mxu1 %v3565_v9  ;;  %v2791_v4 = vld [vmem:[%s14812_s25 + $0xe68] sm:$0xff]  ;;  %v3580_v9 = vpack.c.bf16 %v2784_v1, %v2780_v62  ;;  %v2825_v62 = vld [vmem:[%s14812_s25 + $0xf78] sm:$0xff] }
 0x49c   : > { %7577 = vmatmul.mubr.bf16.gmra.mrb[8].mxu1 %v9732_v8  ;;  %6042 = vmatprep.mubr.bf16.mxu0 %v9749_v13  ;;  %v3578_v8 = vpack.c.bf16 %v2782_v61, %v2778_v60  ;;  %v3583_v10 = vpack.c.bf16 %v2791_v4, %v2787_v3  ;;  %v9813_v60 = vcombine.high %v3980_v47, %v3988_v48  ;;  %v2821_v61 = vld [vmem:[%s14812_s25 + $0xf58] sm:$0xff]  ;;  %v2818_v3 = vld [vmem:[%s14812_s25 + $0xf40] sm:$0xff]  ;;  %v4028_v47 = vld [vmem:[%s17728_s1 + $0x510] sm:$0xff] }
 0x49d   : > { %7586 = vmatprep.mubr.bf16.mxu1 %v9749_v13  ;;  %6182 = vmatpush1.bf16.msra.mxu0 %v3562_v16  ;;  %v2788_v13 = vld [vmem:[%s14812_s25 + $0xe50] sm:$0xff]  ;;  %v2795_v16 = vld [vmem:[%s14812_s25 + $0xe88] sm:$0xff]  ;;  %v2822_v4 = vld [vmem:[%s14812_s25 + $0xf60] sm:$0xff]  ;;  %v3601_v6 = vpack.c.bf16 %v2825_v62, %v2821_v61 }
 0x49e   : > { %7726 = vmatpush1.bf16.msra.mxu1 %v3564_v17  ;;  %6183 = vmatprep.subr.bf16.mxu0 %v3567_v18  ;;  %v2799_v17 = vld [vmem:[%s14812_s25 + $0xea8] sm:$0xff]  ;;  %v2797_v18 = vld [vmem:[%s14812_s25 + $0xe98] sm:$0xff]  ;;  %v3584_v23 = vpack.c.bf16 %v2792_v15, %v2788_v13  ;;  %v4004_v13 = vld [vmem:[%s17728_s1 + $0x450] sm:$0xff] }
 0x49f   : > { %7727 = vmatprep.subr.bf16.mxu1 %v3569_v22  ;;  %v3582_v22 = vpack.c.bf16 %v2790_v12, %v2786_v11  ;;  %v3587_v24 = vpack.c.bf16 %v2799_v17, %v2795_v16  ;;  %v3589_v29 = vpack.c.bf16 %v2801_v19, %v2797_v18  ;;  %v2833_v11 = vld [vmem:[%s14812_s25 + $0xfb8] sm:$0xff]  ;;  %v3996_v12 = vld [vmem:[%s17728_s1 + $0x410] sm:$0xff]  ;;  %v2826_v17 = vld [vmem:[%s14812_s25 + $0xf80] sm:$0xff] }
 0x4a0   : > { %v2830_v18 = vld [vmem:[%s14812_s25 + $0xfa0] sm:$0xff]  ;;  %v2828_v19 = vld [vmem:[%s14812_s25 + $0xf90] sm:$0xff] }
 0x4a1   : > { %6184 = vmatpush1.bf16.msra.mxu0 %v3566_v30  ;;  %v2800_v30 = vld [vmem:[%s14812_s25 + $0xeb0] sm:$0xff] }
 0x4a2   : > { %7728 = vmatpush1.bf16.msra.mxu1 %v3568_v31  ;;  %6185 = vmatprep.subr.bf16.mxu0 %v3571_v32  ;;  %v2803_v31 = vld [vmem:[%s14812_s25 + $0xec8] sm:$0xff]  ;;  %v4036_v48 = vld [vmem:[%s17728_s1 + $0x550] sm:$0xff] }
 0x4a3   : > { %6043 = vmatmul.mubr.bf16.gmra.mrb[12].mxu0 %v9748_v36  ;;  %7729 = vmatprep.subr.bf16.mxu1 %v3573_v37  ;;  %v2807_v32 = vld [vmem:[%s14812_s25 + $0xee8] sm:$0xff]  ;;  %v3588_v37 = vpack.c.bf16 %v2800_v30, %v2796_v27  ;;  %v2841_v27 = vld [vmem:[%s14812_s25 + $0xff8] sm:$0xff] }
 0x4a4   : > { %7587 = vmatmul.mubr.bf16.gmra.mrb[12].mxu1 %v9748_v36  ;;  %6052 = vmatprep.mubr.bf16.mxu0 %v9765_v2  ;;  %v3586_v36 = vpack.c.bf16 %v2798_v26, %v2794_v25  ;;  %v3591_v38 = vpack.c.bf16 %v2807_v32, %v2803_v31  ;;  %v9829_v25 = vcombine.high %v3996_v12, %v4004_v13  ;;  %v2837_v26 = vld [vmem:[%s14812_s25 + $0xfd8] sm:$0xff]  ;;  %v2834_v31 = vld [vmem:[%s14812_s25 + $0xfc0] sm:$0xff] }
 0x4a5   : > { %7596 = vmatprep.mubr.bf16.mxu1 %v9765_v2  ;;  %6186 = vmatpush1.bf16.msra.mxu0 %v3570_v43  ;;  %v2804_v2 = vld [vmem:[%s14812_s25 + $0xed0] sm:$0xff]  ;;  %v2811_v43 = vld [vmem:[%s14812_s25 + $0xf08] sm:$0xff]  ;;  %v2838_v32 = vld [vmem:[%s14812_s25 + $0xfe0] sm:$0xff]  ;;  %v3609_v34 = vpack.c.bf16 %v2841_v27, %v2837_v26 }
 0x4a6   : > { %7730 = vmatpush1.bf16.msra.mxu1 %v3572_v44  ;;  %6187 = vmatprep.subr.bf16.mxu0 %v3575_v45  ;;  %v2815_v44 = vld [vmem:[%s14812_s25 + $0xf28] sm:$0xff]  ;;  %v2813_v45 = vld [vmem:[%s14812_s25 + $0xf18] sm:$0xff]  ;;  %v3592_v50 = vpack.c.bf16 %v2808_v42, %v2804_v2  ;;  %v4020_v2 = vld [vmem:[%s17728_s1 + $0x4d0] sm:$0xff] }
 0x4a7   : > { %7731 = vmatprep.subr.bf16.mxu1 %v3577_v49  ;;  %v3590_v49 = vpack.c.bf16 %v2806_v40, %v2802_v39  ;;  %v3595_v51 = vpack.c.bf16 %v2815_v44, %v2811_v43  ;;  %v3597_v56 = vpack.c.bf16 %v2817_v46, %v2813_v45  ;;  %v2849_v39 = vld [vmem:[%s14812_s25 + $0x1038] sm:$0xff]  ;;  %v4012_v40 = vld [vmem:[%s17728_s1 + $0x490] sm:$0xff]  ;;  %v9828_v44 = vcombine.low %v3996_v12, %v4004_v13  ;;  %v2842_v12 = vld [vmem:[%s14812_s25 + $0x1000] sm:$0xff] }
 0x4a8   : > { %v9845_v46 = vcombine.high %v4012_v40, %v4020_v2  ;;  %v2846_v13 = vld [vmem:[%s14812_s25 + $0x1020] sm:$0xff] }
 0x4a9   : > { %6188 = vmatpush1.bf16.msra.mxu0 %v3574_v57  ;;  %v2816_v57 = vld [vmem:[%s14812_s25 + $0xf30] sm:$0xff]  ;;  %v2850_v26 = vld [vmem:[%s14812_s25 + $0x1040] sm:$0xff] }
 0x4aa   : > { %7732 = vmatpush1.bf16.msra.mxu1 %v3576_v58  ;;  %6189 = vmatprep.subr.bf16.mxu0 %v3579_v59  ;;  %v2819_v58 = vld [vmem:[%s14812_s25 + $0xf48] sm:$0xff]  ;;  %v2854_v27 = vld [vmem:[%s14812_s25 + $0x1060] sm:$0xff] }
 0x4ab   : > { %6053 = vmatmul.mubr.bf16.gmra.mrb[16].mxu0 %v9764_v63  ;;  %7733 = vmatprep.subr.bf16.mxu1 %v3581_v0  ;;  %v2823_v59 = vld [vmem:[%s14812_s25 + $0xf68] sm:$0xff]  ;;  %v3596_v0 = vpack.c.bf16 %v2816_v57, %v2812_v54 }
 0x4ac   : > { %7597 = vmatmul.mubr.bf16.gmra.mrb[16].mxu1 %v9764_v63  ;;  %6062 = vmatprep.mubr.bf16.mxu0 %v9781_v5  ;;  %v3594_v63 = vpack.c.bf16 %v2814_v53, %v2810_v52  ;;  %v3599_v1 = vpack.c.bf16 %v2823_v59, %v2819_v58  ;;  %v4052_v52 = vld [vmem:[%s17728_s1 + $0x5d0] sm:$0xff]  ;;  %v9860_v53 = vcombine.low %v4028_v47, %v4036_v48 }
 0x4ad   : > { %7606 = vmatprep.mubr.bf16.mxu1 %v9781_v5  ;;  %6190 = vmatpush1.bf16.msra.mxu0 %v3578_v8  ;;  %v2820_v5 = vld [vmem:[%s14812_s25 + $0xf50] sm:$0xff]  ;;  %v2827_v8 = vld [vmem:[%s14812_s25 + $0xf88] sm:$0xff] }
 0x4ae   : > { %7734 = vmatpush1.bf16.msra.mxu1 %v3580_v9  ;;  %6191 = vmatprep.subr.bf16.mxu0 %v3583_v10  ;;  %v2831_v9 = vld [vmem:[%s14812_s25 + $0xfa8] sm:$0xff]  ;;  %v2829_v10 = vld [vmem:[%s14812_s25 + $0xf98] sm:$0xff]  ;;  %v3600_v15 = vpack.c.bf16 %v2824_v7, %v2820_v5  ;;  %v4076_v59 = vld [vmem:[%s17728_s1 + $0x690] sm:$0xff] }
 0x4af   : > { %7735 = vmatprep.subr.bf16.mxu1 %v3585_v14  ;;  %v3598_v14 = vpack.c.bf16 %v2822_v4, %v2818_v3  ;;  %v3603_v16 = vpack.c.bf16 %v2831_v9, %v2827_v8  ;;  %v3605_v21 = vpack.c.bf16 %v2833_v11, %v2829_v10  ;;  %v4108_v4 = vld [vmem:[%s17728_s1 + $0x790] sm:$0xff]  ;;  %v3869_v8 = vld [vmem:[%s17728_s1 + $0x18] sm:$0xff] }
 0x4b0   : > { %v4116_v5 = vld [vmem:[%s17728_s1 + $0x7d0] sm:$0xff]  ;;  %v3877_v9 = vld [vmem:[%s17728_s1 + $0x58] sm:$0xff] }
 0x4b1   : > { %6192 = vmatpush1.bf16.msra.mxu0 %v3582_v22  ;;  %v2832_v22 = vld [vmem:[%s14812_s25 + $0xfb0] sm:$0xff]  ;;  %v9941_v7 = vcombine.high %v4108_v4, %v4116_v5  ;;  %v9940_v10 = vcombine.low %v4108_v4, %v4116_v5  ;;  %v9703_v11 = vcombine.high %v3869_v8, %v3877_v9  ;;  %v2874_v5 = vld [vmem:[%s14812_s25 + $0x1100] sm:$0xff] }
 0x4b2   : > { %7736 = vmatpush1.bf16.msra.mxu1 %v3584_v23  ;;  %6193 = vmatprep.subr.bf16.mxu0 %v3587_v24  ;;  %v2835_v23 = vld [vmem:[%s14812_s25 + $0xfc8] sm:$0xff] }
 0x4b3   : > { %6063 = vmatmul.mubr.bf16.gmra.mrb[20].mxu0 %v9780_v28  ;;  %7737 = vmatprep.subr.bf16.mxu1 %v3589_v29  ;;  %v2839_v24 = vld [vmem:[%s14812_s25 + $0xfe8] sm:$0xff]  ;;  %v3604_v29 = vpack.c.bf16 %v2832_v22, %v2828_v19  ;;  %v2853_v22 = vld [vmem:[%s14812_s25 + $0x1058] sm:$0xff] }
 0x4b4   : > { %7607 = vmatmul.mubr.bf16.gmra.mrb[20].mxu1 %v9780_v28  ;;  %6072 = vmatprep.mubr.bf16.mxu0 %v9797_v33  ;;  %v3602_v28 = vpack.c.bf16 %v2830_v18, %v2826_v17  ;;  %v3607_v30 = vpack.c.bf16 %v2839_v24, %v2835_v23  ;;  %v3893_v17 = vld [vmem:[%s17728_s1 + $0xd8] sm:$0xff]  ;;  %v9702_v18 = vcombine.low %v3869_v8, %v3877_v9  ;;  %v2851_v19 = vld [vmem:[%s14812_s25 + $0x1048] sm:$0xff] }
 0x4b5   : > { %7616 = vmatprep.mubr.bf16.mxu1 %v9797_v33  ;;  %6194 = vmatpush1.bf16.msra.mxu0 %v3586_v36  ;;  %v2836_v33 = vld [vmem:[%s14812_s25 + $0xfd0] sm:$0xff]  ;;  %v2843_v36 = vld [vmem:[%s14812_s25 + $0x1008] sm:$0xff]  ;;  %v2857_v23 = vld [vmem:[%s14812_s25 + $0x1078] sm:$0xff] }
 0x4b6   : > { %7738 = vmatpush1.bf16.msra.mxu1 %v3588_v37  ;;  %6195 = vmatprep.subr.bf16.mxu0 %v3591_v38  ;;  %v2847_v37 = vld [vmem:[%s14812_s25 + $0x1028] sm:$0xff]  ;;  %v2845_v38 = vld [vmem:[%s14812_s25 + $0x1018] sm:$0xff]  ;;  %v3608_v42 = vpack.c.bf16 %v2840_v35, %v2836_v33  ;;  %v3617_v33 = vpack.c.bf16 %v2857_v23, %v2853_v22  ;;  %v2888_v23 = vld [vmem:[%s14812_s25 + $0x1170] sm:$0xff] }
 0x4b7   : > { %7739 = vmatprep.subr.bf16.mxu1 %v3593_v41  ;;  %v3606_v41 = vpack.c.bf16 %v2838_v32, %v2834_v31  ;;  %v3611_v43 = vpack.c.bf16 %v2847_v37, %v2843_v36  ;;  %v3613_v45 = vpack.c.bf16 %v2849_v39, %v2845_v38  ;;  %v2859_v31 = vld [vmem:[%s14812_s25 + $0x1088] sm:$0xff]  ;;  %v2865_v35 = vld [vmem:[%s14812_s25 + $0x10b8] sm:$0xff]  ;;  %v3614_v36 = vpack.c.bf16 %v2854_v27, %v2850_v26 }
 0x4b8   : > { %v2863_v32 = vld [vmem:[%s14812_s25 + $0x10a8] sm:$0xff]  ;;  %v3901_v38 = vld [vmem:[%s17728_s1 + $0x118] sm:$0xff] }
 0x4b9   : > { %6196 = vmatpush1.bf16.msra.mxu0 %v3590_v49  ;;  %v9844_v49 = vcombine.low %v4012_v40, %v4020_v2  ;;  %v3909_v39 = vld [vmem:[%s17728_s1 + $0x158] sm:$0xff]  ;;  %v3619_v40 = vpack.c.bf16 %v2863_v32, %v2859_v31 }
 0x4ba   : > { %7740 = vmatpush1.bf16.msra.mxu1 %v3592_v50  ;;  %6197 = vmatprep.subr.bf16.mxu0 %v3595_v51  ;;  %v9861_v50 = vcombine.high %v4028_v47, %v4036_v48  ;;  %v4044_v51 = vld [vmem:[%s17728_s1 + $0x590] sm:$0xff]  ;;  %v2871_v47 = vld [vmem:[%s14812_s25 + $0x10e8] sm:$0xff]  ;;  %v9735_v48 = vcombine.high %v3901_v38, %v3909_v39  ;;  %v9734_v8 = vcombine.low %v3901_v38, %v3909_v39  ;;  %v2893_v26 = vld [vmem:[%s14812_s25 + $0x1198] sm:$0xff] }
 0x4bb   : > { %6073 = vmatmul.mubr.bf16.gmra.mrb[24].mxu0 %v9796_v55  ;;  %7741 = vmatprep.subr.bf16.mxu1 %v3597_v56  ;;  %v9877_v54 = vcombine.high %v4044_v51, %v4052_v52  ;;  %v4068_v56 = vld [vmem:[%s17728_s1 + $0x650] sm:$0xff]  ;;  %v9876_v57 = vcombine.low %v4044_v51, %v4052_v52  ;;  %v2897_v27 = vld [vmem:[%s14812_s25 + $0x11b8] sm:$0xff]  ;;  %v2899_v39 = vld [vmem:[%s14812_s25 + $0x11c8] sm:$0xff] }
 0x4bc   : > { %7617 = vmatmul.mubr.bf16.gmra.mrb[24].mxu1 %v9796_v55  ;;  %6082 = vmatprep.mubr.bf16.mxu0 %v9813_v60  ;;  %v4060_v55 = vld [vmem:[%s17728_s1 + $0x610] sm:$0xff] }
 0x4bd   : > { %7626 = vmatprep.mubr.bf16.mxu1 %v9813_v60  ;;  %6198 = vmatpush1.bf16.msra.mxu0 %v3594_v63  ;;  %v9893_v58 = vcombine.high %v4060_v55, %v4068_v56  ;;  %v4084_v60 = vld [vmem:[%s17728_s1 + $0x6d0] sm:$0xff]  ;;  %v9892_v61 = vcombine.low %v4060_v55, %v4068_v56  ;;  %v2870_v55 = vld [vmem:[%s14812_s25 + $0x10e0] sm:$0xff] }
 0x4be   : > { %7742 = vmatpush1.bf16.msra.mxu1 %v3596_v0  ;;  %6199 = vmatprep.subr.bf16.mxu0 %v3599_v1  ;;  %v9909_v62 = vcombine.high %v4076_v59, %v4084_v60  ;;  %v4092_v63 = vld [vmem:[%s17728_s1 + $0x710] sm:$0xff]  ;;  %v9908_v1 = vcombine.low %v4076_v59, %v4084_v60  ;;  %v2875_v59 = vld [vmem:[%s14812_s25 + $0x1108] sm:$0xff] }
 0x4bf   : > { %7743 = vmatprep.subr.bf16.mxu1 %v3601_v6  ;;  %v4100_v0 = vld [vmem:[%s17728_s1 + $0x750] sm:$0xff]  ;;  %v2879_v60 = vld [vmem:[%s14812_s25 + $0x1128] sm:$0xff] }
 0x4c0   : > { %v9925_v3 = vcombine.high %v4092_v63, %v4100_v0  ;;  %v9924_v6 = vcombine.low %v4092_v63, %v4100_v0  ;;  %v2868_v56 = vld [vmem:[%s14812_s25 + $0x10d0] sm:$0xff]  ;;  %v3917_v63 = vld [vmem:[%s17728_s1 + $0x198] sm:$0xff]  ;;  %v3627_v4 = vpack.c.bf16 %v2879_v60, %v2875_v59  ;;  %v2906_v60 = vld [vmem:[%s14812_s25 + $0x1200] sm:$0xff] }
 0x4c1   : > { %6200 = vmatpush1.bf16.msra.mxu0 %v3598_v14  ;;  %v2844_v14 = vld [vmem:[%s14812_s25 + $0x1010] sm:$0xff]  ;;  %v3925_v0 = vld [vmem:[%s17728_s1 + $0x1d8] sm:$0xff] }
 0x4c2   : > { %7744 = vmatpush1.bf16.msra.mxu1 %v3600_v15  ;;  %6201 = vmatprep.subr.bf16.mxu0 %v3603_v16  ;;  %v2848_v15 = vld [vmem:[%s14812_s25 + $0x1030] sm:$0xff]  ;;  %v3885_v16 = vld [vmem:[%s17728_s1 + $0x98] sm:$0xff] }
 0x4c3   : > { %6083 = vmatmul.mubr.bf16.gmra.mrb[28].mxu0 %v9812_v20  ;;  %7745 = vmatprep.subr.bf16.mxu1 %v3605_v21  ;;  %v3610_v21 = vpack.c.bf16 %v2846_v13, %v2842_v12  ;;  %v3612_v24 = vpack.c.bf16 %v2848_v15, %v2844_v14  ;;  %v2887_v12 = vld [vmem:[%s14812_s25 + $0x1168] sm:$0xff]  ;;  %v9751_v13 = vcombine.high %v3917_v63, %v3925_v0  ;;  %v2885_v14 = vld [vmem:[%s14812_s25 + $0x1158] sm:$0xff]  ;;  %v2896_v38 = vld [vmem:[%s14812_s25 + $0x11b0] sm:$0xff] }
 0x4c4   : > { %7627 = vmatmul.mubr.bf16.gmra.mrb[28].mxu1 %v9812_v20  ;;  %6092 = vmatprep.mubr.bf16.mxu0 %v9829_v25  ;;  %v2855_v20 = vld [vmem:[%s14812_s25 + $0x1068] sm:$0xff]  ;;  %v2889_v15 = vld [vmem:[%s14812_s25 + $0x1178] sm:$0xff] }
 0x4c5   : > { %7636 = vmatprep.mubr.bf16.mxu1 %v9829_v25  ;;  %6202 = vmatpush1.bf16.msra.mxu0 %v3602_v28  ;;  %v9719_v25 = vcombine.high %v3885_v16, %v3893_v17  ;;  %v2852_v28 = vld [vmem:[%s14812_s25 + $0x1050] sm:$0xff]  ;;  %v3633_v22 = vpack.c.bf16 %v2889_v15, %v2885_v14 }
 0x4c6   : > { %7746 = vmatpush1.bf16.msra.mxu1 %v3604_v29  ;;  %6203 = vmatprep.subr.bf16.mxu0 %v3607_v30  ;;  %v3615_v29 = vpack.c.bf16 %v2855_v20, %v2851_v19  ;;  %v2856_v30 = vld [vmem:[%s14812_s25 + $0x1070] sm:$0xff]  ;;  %v2882_v19 = vld [vmem:[%s14812_s25 + $0x1140] sm:$0xff] }
 0x4c7   : > { %7747 = vmatprep.subr.bf16.mxu1 %v3609_v34  ;;  %v2861_v34 = vld [vmem:[%s14812_s25 + $0x1098] sm:$0xff]  ;;  %v3616_v37 = vpack.c.bf16 %v2856_v30, %v2852_v28  ;;  %v2886_v20 = vld [vmem:[%s14812_s25 + $0x1160] sm:$0xff]  ;;  %v2920_v15 = vld [vmem:[%s14812_s25 + $0x1270] sm:$0xff] }
 0x4c8   : > { %v3621_v2 = vpack.c.bf16 %v2865_v35, %v2861_v34  ;;  %v3933_v28 = vld [vmem:[%s17728_s1 + $0x218] sm:$0xff]  ;;  %v3630_v30 = vpack.c.bf16 %v2886_v20, %v2882_v19  ;;  %v2894_v34 = vld [vmem:[%s14812_s25 + $0x11a0] sm:$0xff]  ;;  %v2892_v35 = vld [vmem:[%s14812_s25 + $0x1190] sm:$0xff] }
 0x4c9   : > { %6204 = vmatpush1.bf16.msra.mxu0 %v3606_v41  ;;  %v2858_v41 = vld [vmem:[%s14812_s25 + $0x1080] sm:$0xff]  ;;  %v2929_v19 = vld [vmem:[%s14812_s25 + $0x12b8] sm:$0xff] }
 0x4ca   : > { %7748 = vmatpush1.bf16.msra.mxu1 %v3608_v42  ;;  %6366 = vmatprep.subr.bf16.mxu0 %v3611_v43  ;;  %v2862_v42 = vld [vmem:[%s14812_s25 + $0x10a0] sm:$0xff]  ;;  %v2860_v43 = vld [vmem:[%s14812_s25 + $0x1090] sm:$0xff]  ;;  %v3965_v20 = vld [vmem:[%s17728_s1 + $0x318] sm:$0xff] }
 0x4cb   : > { %6093 = vmatmul.mubr.bf16.gmra.mrb[32].mxu0 %v9828_v44  ;;  %7910 = vmatprep.subr.bf16.mxu1 %v3613_v45  ;;  %v2864_v45 = vld [vmem:[%s14812_s25 + $0x10b0] sm:$0xff]  ;;  %v3618_v51 = vpack.c.bf16 %v2862_v42, %v2858_v41  ;;  %v2901_v41 = vld [vmem:[%s14812_s25 + $0x11d8] sm:$0xff] }
 0x4cc   : > { %7637 = vmatmul.mubr.bf16.gmra.mrb[32].mxu1 %v9828_v44  ;;  %6102 = vmatprep.mubr.bf16.mxu0 %v9845_v46  ;;  %v9718_v44 = vcombine.low %v3885_v16, %v3893_v17  ;;  %v3620_v52 = vpack.c.bf16 %v2864_v45, %v2860_v43  ;;  %v2905_v42 = vld [vmem:[%s14812_s25 + $0x11f8] sm:$0xff] }
 0x4cd   : > { %7646 = vmatprep.mubr.bf16.mxu1 %v9845_v46  ;;  %v2867_v46 = vld [vmem:[%s14812_s25 + $0x10c8] sm:$0xff] }
 0x4d3   : > { %6103 = vmatmul.mubr.bf16.gmra.mrb[36].mxu0 %v9844_v49 }
 0x4d4   : > { %7647 = vmatmul.mubr.bf16.gmra.mrb[36].mxu1 %v9844_v49  ;;  %6112 = vmatprep.mubr.bf16.mxu0 %v9861_v50  ;;  %v2869_v49 = vld [vmem:[%s14812_s25 + $0x10d8] sm:$0xff] }
 0x4d5   : > { %7656 = vmatprep.mubr.bf16.mxu1 %v9861_v50  ;;  %v2873_v50 = vld [vmem:[%s14812_s25 + $0x10f8] sm:$0xff] }
 0x4db   : > { %6113 = vmatmul.mubr.bf16.gmra.mrb[40].mxu0 %v9860_v53 }
 0x4dc   : > { %7657 = vmatmul.mubr.bf16.gmra.mrb[40].mxu1 %v9860_v53  ;;  %6122 = vmatprep.mubr.bf16.mxu0 %v9877_v54  ;;  %v3623_v53 = vpack.c.bf16 %v2871_v47, %v2867_v46  ;;  %v2898_v46 = vld [vmem:[%s14812_s25 + $0x11c0] sm:$0xff] }
 0x4dd   : > { %7666 = vmatprep.mubr.bf16.mxu1 %v9877_v54  ;;  %v2866_v54 = vld [vmem:[%s14812_s25 + $0x10c0] sm:$0xff] }
 0x4de   : > { %v2902_v47 = vld [vmem:[%s14812_s25 + $0x11e0] sm:$0xff] }
 0x4e3   : > { %6123 = vmatmul.mubr.bf16.gmra.mrb[44].mxu0 %v9876_v57 }
 0x4e4   : > { %7667 = vmatmul.mubr.bf16.gmra.mrb[44].mxu1 %v9876_v57  ;;  %6132 = vmatprep.mubr.bf16.mxu0 %v9893_v58  ;;  %v3625_v57 = vpack.c.bf16 %v2873_v50, %v2869_v49  ;;  %v3641_v49 = vpack.c.bf16 %v2905_v42, %v2901_v41  ;;  %v2904_v50 = vld [vmem:[%s14812_s25 + $0x11f0] sm:$0xff] }
 0x4e5   : > { %7676 = vmatprep.mubr.bf16.mxu1 %v9893_v58  ;;  %v2872_v58 = vld [vmem:[%s14812_s25 + $0x10f0] sm:$0xff] }
 0x4e6   : > { %v2936_v42 = vld [vmem:[%s14812_s25 + $0x12f0] sm:$0xff] }
 0x4eb   : > { %6133 = vmatmul.mubr.bf16.gmra.mrb[48].mxu0 %v9892_v61 }
 0x4ec   : > { %7677 = vmatmul.mubr.bf16.gmra.mrb[48].mxu1 %v9892_v61  ;;  %6142 = vmatprep.mubr.bf16.mxu0 %v9909_v62  ;;  %v2877_v61 = vld [vmem:[%s14812_s25 + $0x1118] sm:$0xff] }
 0x4ed   : > { %7686 = vmatprep.mubr.bf16.mxu1 %v9909_v62  ;;  %v2881_v62 = vld [vmem:[%s14812_s25 + $0x1138] sm:$0xff] }
 0x4ee   : > { %v3629_v9 = vpack.c.bf16 %v2881_v62, %v2877_v61  ;;  %v2910_v61 = vld [vmem:[%s14812_s25 + $0x1220] sm:$0xff]  ;;  %v2908_v62 = vld [vmem:[%s14812_s25 + $0x1210] sm:$0xff] }
 0x4f3   : > { %6143 = vmatmul.mubr.bf16.gmra.mrb[52].mxu0 %v9908_v1 }
 0x4f4   : > { %7687 = vmatmul.mubr.bf16.gmra.mrb[52].mxu1 %v9908_v1  ;;  %6152 = vmatprep.mubr.bf16.mxu0 %v9925_v3  ;;  %v3622_v1 = vpack.c.bf16 %v2870_v55, %v2866_v54  ;;  %v2913_v54 = vld [vmem:[%s14812_s25 + $0x1238] sm:$0xff] }
 0x4f5   : > { %7696 = vmatprep.mubr.bf16.mxu1 %v9925_v3  ;;  %v3624_v3 = vpack.c.bf16 %v2872_v58, %v2868_v56  ;;  %v3949_v55 = vld [vmem:[%s17728_s1 + $0x298] sm:$0xff] }
 0x4f6   : > { %v3957_v56 = vld [vmem:[%s17728_s1 + $0x2d8] sm:$0xff] }
 0x4fb   : > { %6153 = vmatmul.mubr.bf16.gmra.mrb[56].mxu0 %v9924_v6 }
 0x4fc   : > { %7697 = vmatmul.mubr.bf16.gmra.mrb[56].mxu1 %v9924_v6  ;;  %6162 = vmatprep.mubr.bf16.mxu0 %v9941_v7  ;;  %v2878_v6 = vld [vmem:[%s14812_s25 + $0x1120] sm:$0xff] }
 0x4fd   : > { %7706 = vmatprep.mubr.bf16.mxu1 %v9941_v7  ;;  %v2876_v7 = vld [vmem:[%s14812_s25 + $0x1110] sm:$0xff]  ;;  %v3626_v16 = vpack.c.bf16 %v2878_v6, %v2874_v5  ;;  %v9783_v5 = vcombine.high %v3949_v55, %v3957_v56  ;;  %v2917_v6 = vld [vmem:[%s14812_s25 + $0x1258] sm:$0xff] }
 0x503   : > { %6163 = vmatmul.mubr.bf16.gmra.mrb[60].mxu0 %v9940_v10 }
 0x504   : > { %7707 = vmatmul.mubr.bf16.gmra.mrb[60].mxu1 %v9940_v10  ;;  %6205 = vmatprep.mubr.bf16.mxu0 %v9703_v11  ;;  %v2880_v10 = vld [vmem:[%s14812_s25 + $0x1130] sm:$0xff] }
 0x505   : > { %7749 = vmatprep.mubr.bf16.mxu1 %v9703_v11  ;;  %v2883_v11 = vld [vmem:[%s14812_s25 + $0x1148] sm:$0xff]  ;;  %v3628_v17 = vpack.c.bf16 %v2880_v10, %v2876_v7  ;;  %v2921_v7 = vld [vmem:[%s14812_s25 + $0x1278] sm:$0xff] }
 0x506   : > { %v3649_v14 = vpack.c.bf16 %v2921_v7, %v2917_v6  ;;  %v2952_v7 = vld [vmem:[%s14812_s25 + $0x1370] sm:$0xff] }
 0x50b   : > { %6206 = vmatmul.mubr.bf16.vlgmr.msra.gmra.mrb[0].mxu0 %v9702_v18 }
 0x50c   : > { %7750 = vmatmul.mubr.bf16.vlgmr.msra.gmra.mrb[0].mxu1 %v9702_v18  ;;  %6367 = vmatpush1.bf16.msra.mxu0 %v3610_v21  ;;  %v3631_v18 = vpack.c.bf16 %v2887_v12, %v2883_v11  ;;  %v2884_v21 = vld [vmem:[%s14812_s25 + $0x1150] sm:$0xff]  ;;  %v2914_v11 = vld [vmem:[%s14812_s25 + $0x1240] sm:$0xff] }
 0x50d   : > { %7911 = vmatpush1.bf16.msra.mxu1 %v3612_v24  ;;  %6215 = vmatprep.mubr.bf16.mxu0 %v9719_v25  ;;  %v2891_v24 = vld [vmem:[%s14812_s25 + $0x1188] sm:$0xff]  ;;  %v3632_v31 = vpack.c.bf16 %v2888_v23, %v2884_v21  ;;  %v2918_v12 = vld [vmem:[%s14812_s25 + $0x1260] sm:$0xff]  ;;  %v3973_v21 = vld [vmem:[%s17728_s1 + $0x358] sm:$0xff] }
 0x50e   : > { %7759 = vmatprep.mubr.bf16.mxu1 %v9719_v25  ;;  %6368 = vmatprep.subr.bf16.mxu0 %v3615_v29  ;;  %v2895_v25 = vld [vmem:[%s14812_s25 + $0x11a8] sm:$0xff]  ;;  %v3941_v29 = vld [vmem:[%s17728_s1 + $0x258] sm:$0xff] }
 0x50f   : > { %7912 = vmatprep.subr.bf16.mxu1 %v3617_v33  ;;  %v3635_v32 = vpack.c.bf16 %v2895_v25, %v2891_v24  ;;  %v2890_v33 = vld [vmem:[%s14812_s25 + $0x1180] sm:$0xff] }
 0x510   : > { %6369 = vmatpush1.bf16.msra.mxu0 %v3614_v36  ;;  %v9750_v36 = vcombine.low %v3917_v63, %v3925_v0  ;;  %v3634_v43 = vpack.c.bf16 %v2894_v34, %v2890_v33  ;;  %v9766_v63 = vcombine.low %v3933_v28, %v3941_v29  ;;  %v2922_v25 = vld [vmem:[%s14812_s25 + $0x1280] sm:$0xff]  ;;  %v9799_v33 = vcombine.high %v3965_v20, %v3973_v21  ;;  %v2933_v34 = vld [vmem:[%s14812_s25 + $0x12d8] sm:$0xff] }
 0x511   : > { %7913 = vmatpush1.bf16.msra.mxu1 %v3616_v37  ;;  %6370 = vmatprep.subr.bf16.mxu0 %v3619_v40  ;;  %v3637_v37 = vpack.c.bf16 %v2897_v27, %v2893_v26  ;;  %v2903_v40 = vld [vmem:[%s14812_s25 + $0x11e8] sm:$0xff]  ;;  %v2926_v26 = vld [vmem:[%s14812_s25 + $0x12a0] sm:$0xff]  ;;  %v2924_v27 = vld [vmem:[%s14812_s25 + $0x1290] sm:$0xff] }
 0x512   : > { %7914 = vmatprep.subr.bf16.mxu1 %v3621_v2  ;;  %v9767_v2 = vcombine.high %v3933_v28, %v3941_v29  ;;  %v3639_v45 = vpack.c.bf16 %v2903_v40, %v2899_v39  ;;  %v9782_v28 = vcombine.low %v3949_v55, %v3957_v56  ;;  %v2930_v39 = vld [vmem:[%s14812_s25 + $0x12c0] sm:$0xff]  ;;  %v9798_v55 = vcombine.low %v3965_v20, %v3973_v21 }
 0x513   : > { %6216 = vmatmul.mubr.bf16.gmra.mrb[4].mxu0 %v9718_v44  ;;  %v2934_v40 = vld [vmem:[%s14812_s25 + $0x12e0] sm:$0xff] }
 0x514   : > { %7760 = vmatmul.mubr.bf16.gmra.mrb[4].mxu1 %v9718_v44  ;;  %6225 = vmatprep.mubr.bf16.mxu0 %v9735_v48  ;;  %v3636_v44 = vpack.c.bf16 %v2896_v38, %v2892_v35  ;;  %v2937_v35 = vld [vmem:[%s14812_s25 + $0x12f8] sm:$0xff] }
 0x515   : > { %7769 = vmatprep.mubr.bf16.mxu1 %v9735_v48  ;;  %6371 = vmatpush1.bf16.msra.mxu0 %v3618_v51  ;;  %v2900_v48 = vld [vmem:[%s14812_s25 + $0x11d0] sm:$0xff]  ;;  %v2907_v51 = vld [vmem:[%s14812_s25 + $0x1208] sm:$0xff]  ;;  %v3657_v41 = vpack.c.bf16 %v2937_v35, %v2933_v34 }
 0x516   : > { %7915 = vmatpush1.bf16.msra.mxu1 %v3620_v52  ;;  %6372 = vmatprep.subr.bf16.mxu0 %v3623_v53  ;;  %v2911_v52 = vld [vmem:[%s14812_s25 + $0x1228] sm:$0xff]  ;;  %v2909_v53 = vld [vmem:[%s14812_s25 + $0x1218] sm:$0xff]  ;;  %v3640_v58 = vpack.c.bf16 %v2904_v50, %v2900_v48  ;;  %v2968_v35 = vld [vmem:[%s14812_s25 + $0x13f0] sm:$0xff] }
 0x517   : > { %7916 = vmatprep.subr.bf16.mxu1 %v3625_v57  ;;  %v3638_v57 = vpack.c.bf16 %v2902_v47, %v2898_v46  ;;  %v3643_v59 = vpack.c.bf16 %v2911_v52, %v2907_v51  ;;  %v3645_v0 = vpack.c.bf16 %v2913_v54, %v2909_v53  ;;  %v2945_v46 = vld [vmem:[%s14812_s25 + $0x1338] sm:$0xff]  ;;  %v2938_v52 = vld [vmem:[%s14812_s25 + $0x1300] sm:$0xff]  ;;  %v2940_v54 = vld [vmem:[%s14812_s25 + $0x1310] sm:$0xff] }
 0x518   : > { %v3981_v47 = vld [vmem:[%s17728_s1 + $0x398] sm:$0xff]  ;;  %v2942_v53 = vld [vmem:[%s14812_s25 + $0x1320] sm:$0xff] }
 0x519   : > { %6373 = vmatpush1.bf16.msra.mxu0 %v3622_v1  ;;  %v2912_v1 = vld [vmem:[%s14812_s25 + $0x1230] sm:$0xff]  ;;  %v3989_v48 = vld [vmem:[%s17728_s1 + $0x3d8] sm:$0xff] }
 0x51a   : > { %7917 = vmatpush1.bf16.msra.mxu1 %v3624_v3  ;;  %6374 = vmatprep.subr.bf16.mxu0 %v3627_v4  ;;  %v2915_v3 = vld [vmem:[%s14812_s25 + $0x1248] sm:$0xff]  ;;  %v9814_v20 = vcombine.low %v3981_v47, %v3989_v48 }
 0x51b   : > { %6226 = vmatmul.mubr.bf16.gmra.mrb[8].mxu0 %v9734_v8  ;;  %7918 = vmatprep.subr.bf16.mxu1 %v3629_v9  ;;  %v2919_v4 = vld [vmem:[%s14812_s25 + $0x1268] sm:$0xff]  ;;  %v3644_v9 = vpack.c.bf16 %v2912_v1, %v2908_v62  ;;  %v2953_v62 = vld [vmem:[%s14812_s25 + $0x1378] sm:$0xff] }
 0x51c   : > { %7770 = vmatmul.mubr.bf16.gmra.mrb[8].mxu1 %v9734_v8  ;;  %6235 = vmatprep.mubr.bf16.mxu0 %v9751_v13  ;;  %v3642_v8 = vpack.c.bf16 %v2910_v61, %v2906_v60  ;;  %v3647_v10 = vpack.c.bf16 %v2919_v4, %v2915_v3  ;;  %v9815_v60 = vcombine.high %v3981_v47, %v3989_v48  ;;  %v2949_v61 = vld [vmem:[%s14812_s25 + $0x1358] sm:$0xff]  ;;  %v2946_v3 = vld [vmem:[%s14812_s25 + $0x1340] sm:$0xff] }
 0x51d   : > { %7779 = vmatprep.mubr.bf16.mxu1 %v9751_v13  ;;  %6375 = vmatpush1.bf16.msra.mxu0 %v3626_v16  ;;  %v2916_v13 = vld [vmem:[%s14812_s25 + $0x1250] sm:$0xff]  ;;  %v2923_v16 = vld [vmem:[%s14812_s25 + $0x1288] sm:$0xff]  ;;  %v2950_v4 = vld [vmem:[%s14812_s25 + $0x1360] sm:$0xff]  ;;  %v3665_v6 = vpack.c.bf16 %v2953_v62, %v2949_v61 }
 0x51e   : > { %7919 = vmatpush1.bf16.msra.mxu1 %v3628_v17  ;;  %6376 = vmatprep.subr.bf16.mxu0 %v3631_v18  ;;  %v2927_v17 = vld [vmem:[%s14812_s25 + $0x12a8] sm:$0xff]  ;;  %v2925_v18 = vld [vmem:[%s14812_s25 + $0x1298] sm:$0xff]  ;;  %v3648_v23 = vpack.c.bf16 %v2920_v15, %v2916_v13 }
 0x51f   : > { %7920 = vmatprep.subr.bf16.mxu1 %v3633_v22  ;;  %v3646_v22 = vpack.c.bf16 %v2918_v12, %v2914_v11  ;;  %v3651_v24 = vpack.c.bf16 %v2927_v17, %v2923_v16  ;;  %v3653_v29 = vpack.c.bf16 %v2929_v19, %v2925_v18  ;;  %v2961_v11 = vld [vmem:[%s14812_s25 + $0x13b8] sm:$0xff]  ;;  %v2954_v17 = vld [vmem:[%s14812_s25 + $0x1380] sm:$0xff]  ;;  %v2956_v19 = vld [vmem:[%s14812_s25 + $0x1390] sm:$0xff] }
 0x520   : > { %v3997_v12 = vld [vmem:[%s17728_s1 + $0x418] sm:$0xff]  ;;  %v2958_v18 = vld [vmem:[%s14812_s25 + $0x13a0] sm:$0xff] }
 0x521   : > { %6377 = vmatpush1.bf16.msra.mxu0 %v3630_v30  ;;  %v2928_v30 = vld [vmem:[%s14812_s25 + $0x12b0] sm:$0xff]  ;;  %v4005_v13 = vld [vmem:[%s17728_s1 + $0x458] sm:$0xff] }
 0x522   : > { %7921 = vmatpush1.bf16.msra.mxu1 %v3632_v31  ;;  %6378 = vmatprep.subr.bf16.mxu0 %v3635_v32  ;;  %v2931_v31 = vld [vmem:[%s14812_s25 + $0x12c8] sm:$0xff]  ;;  %v4029_v47 = vld [vmem:[%s17728_s1 + $0x518] sm:$0xff] }
 0x523   : > { %6236 = vmatmul.mubr.bf16.gmra.mrb[12].mxu0 %v9750_v36  ;;  %7922 = vmatprep.subr.bf16.mxu1 %v3637_v37  ;;  %v2935_v32 = vld [vmem:[%s14812_s25 + $0x12e8] sm:$0xff]  ;;  %v3652_v37 = vpack.c.bf16 %v2928_v30, %v2924_v27  ;;  %v2969_v27 = vld [vmem:[%s14812_s25 + $0x13f8] sm:$0xff] }
 0x524   : > { %7780 = vmatmul.mubr.bf16.gmra.mrb[12].mxu1 %v9750_v36  ;;  %6245 = vmatprep.mubr.bf16.mxu0 %v9767_v2  ;;  %v3650_v36 = vpack.c.bf16 %v2926_v26, %v2922_v25  ;;  %v3655_v38 = vpack.c.bf16 %v2935_v32, %v2931_v31  ;;  %v9831_v25 = vcombine.high %v3997_v12, %v4005_v13  ;;  %v2965_v26 = vld [vmem:[%s14812_s25 + $0x13d8] sm:$0xff]  ;;  %v2962_v31 = vld [vmem:[%s14812_s25 + $0x13c0] sm:$0xff] }
 0x525   : > { %7789 = vmatprep.mubr.bf16.mxu1 %v9767_v2  ;;  %6379 = vmatpush1.bf16.msra.mxu0 %v3634_v43  ;;  %v2932_v2 = vld [vmem:[%s14812_s25 + $0x12d0] sm:$0xff]  ;;  %v2939_v43 = vld [vmem:[%s14812_s25 + $0x1308] sm:$0xff]  ;;  %v2966_v32 = vld [vmem:[%s14812_s25 + $0x13e0] sm:$0xff]  ;;  %v3673_v34 = vpack.c.bf16 %v2969_v27, %v2965_v26 }
 0x526   : > { %7923 = vmatpush1.bf16.msra.mxu1 %v3636_v44  ;;  %6380 = vmatprep.subr.bf16.mxu0 %v3639_v45  ;;  %v2943_v44 = vld [vmem:[%s14812_s25 + $0x1328] sm:$0xff]  ;;  %v2941_v45 = vld [vmem:[%s14812_s25 + $0x1318] sm:$0xff]  ;;  %v3656_v50 = vpack.c.bf16 %v2936_v42, %v2932_v2  ;;  %v2978_v26 = vld [vmem:[%s14812_s25 + $0x1440] sm:$0xff] }
 0x527   : > { %7924 = vmatprep.subr.bf16.mxu1 %v3641_v49  ;;  %v3654_v49 = vpack.c.bf16 %v2934_v40, %v2930_v39  ;;  %v3659_v51 = vpack.c.bf16 %v2943_v44, %v2939_v43  ;;  %v3661_v56 = vpack.c.bf16 %v2945_v46, %v2941_v45  ;;  %v2977_v39 = vld [vmem:[%s14812_s25 + $0x1438] sm:$0xff]  ;;  %v9830_v44 = vcombine.low %v3997_v12, %v4005_v13  ;;  %v2970_v12 = vld [vmem:[%s14812_s25 + $0x1400] sm:$0xff] }
 0x528   : > { %v4013_v40 = vld [vmem:[%s17728_s1 + $0x498] sm:$0xff]  ;;  %v2974_v13 = vld [vmem:[%s14812_s25 + $0x1420] sm:$0xff] }
 0x529   : > { %6381 = vmatpush1.bf16.msra.mxu0 %v3638_v57  ;;  %v2944_v57 = vld [vmem:[%s14812_s25 + $0x1330] sm:$0xff]  ;;  %v4021_v2 = vld [vmem:[%s17728_s1 + $0x4d8] sm:$0xff]  ;;  %v2982_v27 = vld [vmem:[%s14812_s25 + $0x1460] sm:$0xff] }
 0x52a   : > { %7925 = vmatpush1.bf16.msra.mxu1 %v3640_v58  ;;  %6382 = vmatprep.subr.bf16.mxu0 %v3643_v59  ;;  %v2947_v58 = vld [vmem:[%s14812_s25 + $0x1348] sm:$0xff]  ;;  %v9847_v46 = vcombine.high %v4013_v40, %v4021_v2  ;;  %v4037_v48 = vld [vmem:[%s17728_s1 + $0x558] sm:$0xff] }
 0x52b   : > { %6246 = vmatmul.mubr.bf16.gmra.mrb[16].mxu0 %v9766_v63  ;;  %7926 = vmatprep.subr.bf16.mxu1 %v3645_v0  ;;  %v2951_v59 = vld [vmem:[%s14812_s25 + $0x1368] sm:$0xff]  ;;  %v3660_v0 = vpack.c.bf16 %v2944_v57, %v2940_v54 }
 0x52c   : > { %7790 = vmatmul.mubr.bf16.gmra.mrb[16].mxu1 %v9766_v63  ;;  %6255 = vmatprep.mubr.bf16.mxu0 %v9783_v5  ;;  %v3658_v63 = vpack.c.bf16 %v2942_v53, %v2938_v52  ;;  %v3663_v1 = vpack.c.bf16 %v2951_v59, %v2947_v58  ;;  %v4053_v52 = vld [vmem:[%s17728_s1 + $0x5d8] sm:$0xff]  ;;  %v9862_v53 = vcombine.low %v4029_v47, %v4037_v48 }
 0x52d   : > { %7799 = vmatprep.mubr.bf16.mxu1 %v9783_v5  ;;  %6383 = vmatpush1.bf16.msra.mxu0 %v3642_v8  ;;  %v2948_v5 = vld [vmem:[%s14812_s25 + $0x1350] sm:$0xff]  ;;  %v2955_v8 = vld [vmem:[%s14812_s25 + $0x1388] sm:$0xff]  ;;  %v4077_v59 = vld [vmem:[%s17728_s1 + $0x698] sm:$0xff] }
 0x52e   : > { %7927 = vmatpush1.bf16.msra.mxu1 %v3644_v9  ;;  %6384 = vmatprep.subr.bf16.mxu0 %v3647_v10  ;;  %v2959_v9 = vld [vmem:[%s14812_s25 + $0x13a8] sm:$0xff]  ;;  %v2957_v10 = vld [vmem:[%s14812_s25 + $0x1398] sm:$0xff]  ;;  %v3664_v15 = vpack.c.bf16 %v2952_v7, %v2948_v5 }
 0x52f   : > { %7928 = vmatprep.subr.bf16.mxu1 %v3649_v14  ;;  %v3662_v14 = vpack.c.bf16 %v2950_v4, %v2946_v3  ;;  %v3667_v16 = vpack.c.bf16 %v2959_v9, %v2955_v8  ;;  %v3669_v21 = vpack.c.bf16 %v2961_v11, %v2957_v10  ;;  %v4109_v4 = vld [vmem:[%s17728_s1 + $0x798] sm:$0xff]  ;;  %v3870_v8 = vld [vmem:[%s17728_s1 + $0x20] sm:$0xff] }
 0x530   : > { %v4117_v5 = vld [vmem:[%s17728_s1 + $0x7d8] sm:$0xff]  ;;  %v3878_v9 = vld [vmem:[%s17728_s1 + $0x60] sm:$0xff] }
 0x531   : > { %6385 = vmatpush1.bf16.msra.mxu0 %v3646_v22  ;;  %v2960_v22 = vld [vmem:[%s14812_s25 + $0x13b0] sm:$0xff]  ;;  %v9943_v7 = vcombine.high %v4109_v4, %v4117_v5  ;;  %v9942_v10 = vcombine.low %v4109_v4, %v4117_v5  ;;  %v9705_v11 = vcombine.high %v3870_v8, %v3878_v9  ;;  %v3002_v5 = vld [vmem:[%s14812_s25 + $0x1500] sm:$0xff] }
 0x532   : > { %7929 = vmatpush1.bf16.msra.mxu1 %v3648_v23  ;;  %6386 = vmatprep.subr.bf16.mxu0 %v3651_v24  ;;  %v2963_v23 = vld [vmem:[%s14812_s25 + $0x13c8] sm:$0xff] }
 0x533   : > { %6256 = vmatmul.mubr.bf16.gmra.mrb[20].mxu0 %v9782_v28  ;;  %7930 = vmatprep.subr.bf16.mxu1 %v3653_v29  ;;  %v2967_v24 = vld [vmem:[%s14812_s25 + $0x13e8] sm:$0xff]  ;;  %v3668_v29 = vpack.c.bf16 %v2960_v22, %v2956_v19  ;;  %v2981_v22 = vld [vmem:[%s14812_s25 + $0x1458] sm:$0xff] }
 0x534   : > { %7800 = vmatmul.mubr.bf16.gmra.mrb[20].mxu1 %v9782_v28  ;;  %6265 = vmatprep.mubr.bf16.mxu0 %v9799_v33  ;;  %v3666_v28 = vpack.c.bf16 %v2958_v18, %v2954_v17  ;;  %v3671_v30 = vpack.c.bf16 %v2967_v24, %v2963_v23  ;;  %v3894_v17 = vld [vmem:[%s17728_s1 + $0xe0] sm:$0xff]  ;;  %v9704_v18 = vcombine.low %v3870_v8, %v3878_v9  ;;  %v2979_v19 = vld [vmem:[%s14812_s25 + $0x1448] sm:$0xff]  ;;  %v2985_v23 = vld [vmem:[%s14812_s25 + $0x1478] sm:$0xff] }
 0x535   : > { %7809 = vmatprep.mubr.bf16.mxu1 %v9799_v33  ;;  %6387 = vmatpush1.bf16.msra.mxu0 %v3650_v36  ;;  %v2964_v33 = vld [vmem:[%s14812_s25 + $0x13d0] sm:$0xff]  ;;  %v2971_v36 = vld [vmem:[%s14812_s25 + $0x1408] sm:$0xff] }
 0x536   : > { %7931 = vmatpush1.bf16.msra.mxu1 %v3652_v37  ;;  %6388 = vmatprep.subr.bf16.mxu0 %v3655_v38  ;;  %v2975_v37 = vld [vmem:[%s14812_s25 + $0x1428] sm:$0xff]  ;;  %v2973_v38 = vld [vmem:[%s14812_s25 + $0x1418] sm:$0xff]  ;;  %v3672_v42 = vpack.c.bf16 %v2968_v35, %v2964_v33  ;;  %v3681_v33 = vpack.c.bf16 %v2985_v23, %v2981_v22  ;;  %v3016_v23 = vld [vmem:[%s14812_s25 + $0x1570] sm:$0xff] }
 0x537   : > { %7932 = vmatprep.subr.bf16.mxu1 %v3657_v41  ;;  %v3670_v41 = vpack.c.bf16 %v2966_v32, %v2962_v31  ;;  %v3675_v43 = vpack.c.bf16 %v2975_v37, %v2971_v36  ;;  %v3677_v45 = vpack.c.bf16 %v2977_v39, %v2973_v38  ;;  %v2987_v31 = vld [vmem:[%s14812_s25 + $0x1488] sm:$0xff]  ;;  %v2993_v35 = vld [vmem:[%s14812_s25 + $0x14b8] sm:$0xff]  ;;  %v3678_v36 = vpack.c.bf16 %v2982_v27, %v2978_v26  ;;  %v3902_v38 = vld [vmem:[%s17728_s1 + $0x120] sm:$0xff] }
 0x538   : > { %v2991_v32 = vld [vmem:[%s14812_s25 + $0x14a8] sm:$0xff]  ;;  %v3910_v39 = vld [vmem:[%s17728_s1 + $0x160] sm:$0xff]  ;;  %v3021_v26 = vld [vmem:[%s14812_s25 + $0x1598] sm:$0xff] }
 0x539   : > { %6389 = vmatpush1.bf16.msra.mxu0 %v3654_v49  ;;  %v9846_v49 = vcombine.low %v4013_v40, %v4021_v2  ;;  %v3683_v40 = vpack.c.bf16 %v2991_v32, %v2987_v31  ;;  %v9736_v8 = vcombine.low %v3902_v38, %v3910_v39  ;;  %v3025_v27 = vld [vmem:[%s14812_s25 + $0x15b8] sm:$0xff] }
 0x53a   : > { %7933 = vmatpush1.bf16.msra.mxu1 %v3656_v50  ;;  %6390 = vmatprep.subr.bf16.mxu0 %v3659_v51  ;;  %v9863_v50 = vcombine.high %v4029_v47, %v4037_v48  ;;  %v4045_v51 = vld [vmem:[%s17728_s1 + $0x598] sm:$0xff]  ;;  %v2999_v47 = vld [vmem:[%s14812_s25 + $0x14e8] sm:$0xff]  ;;  %v9737_v48 = vcombine.high %v3902_v38, %v3910_v39  ;;  %v3024_v38 = vld [vmem:[%s14812_s25 + $0x15b0] sm:$0xff] }
 0x53b   : > { %6266 = vmatmul.mubr.bf16.gmra.mrb[24].mxu0 %v9798_v55  ;;  %7934 = vmatprep.subr.bf16.mxu1 %v3661_v56  ;;  %v9879_v54 = vcombine.high %v4045_v51, %v4053_v52  ;;  %v4069_v56 = vld [vmem:[%s17728_s1 + $0x658] sm:$0xff]  ;;  %v9878_v57 = vcombine.low %v4045_v51, %v4053_v52  ;;  %v3027_v39 = vld [vmem:[%s14812_s25 + $0x15c8] sm:$0xff] }
 0x53c   : > { %7810 = vmatmul.mubr.bf16.gmra.mrb[24].mxu1 %v9798_v55  ;;  %6275 = vmatprep.mubr.bf16.mxu0 %v9815_v60  ;;  %v4061_v55 = vld [vmem:[%s17728_s1 + $0x618] sm:$0xff] }
 0x53d   : > { %7819 = vmatprep.mubr.bf16.mxu1 %v9815_v60  ;;  %6391 = vmatpush1.bf16.msra.mxu0 %v3658_v63  ;;  %v9895_v58 = vcombine.high %v4061_v55, %v4069_v56  ;;  %v4085_v60 = vld [vmem:[%s17728_s1 + $0x6d8] sm:$0xff]  ;;  %v9894_v61 = vcombine.low %v4061_v55, %v4069_v56  ;;  %v2998_v55 = vld [vmem:[%s14812_s25 + $0x14e0] sm:$0xff]  ;;  %v2996_v56 = vld [vmem:[%s14812_s25 + $0x14d0] sm:$0xff] }
 0x53e   : > { %7935 = vmatpush1.bf16.msra.mxu1 %v3660_v0  ;;  %6392 = vmatprep.subr.bf16.mxu0 %v3663_v1  ;;  %v9911_v62 = vcombine.high %v4077_v59, %v4085_v60  ;;  %v4093_v63 = vld [vmem:[%s17728_s1 + $0x718] sm:$0xff]  ;;  %v9910_v1 = vcombine.low %v4077_v59, %v4085_v60  ;;  %v3003_v59 = vld [vmem:[%s14812_s25 + $0x1508] sm:$0xff] }
 0x53f   : > { %7936 = vmatprep.subr.bf16.mxu1 %v3665_v6  ;;  %v4101_v0 = vld [vmem:[%s17728_s1 + $0x758] sm:$0xff]  ;;  %v3007_v60 = vld [vmem:[%s14812_s25 + $0x1528] sm:$0xff] }
 0x540   : > { %v9927_v3 = vcombine.high %v4093_v63, %v4101_v0  ;;  %v9926_v6 = vcombine.low %v4093_v63, %v4101_v0  ;;  %v3918_v63 = vld [vmem:[%s17728_s1 + $0x1a0] sm:$0xff]  ;;  %v3691_v4 = vpack.c.bf16 %v3007_v60, %v3003_v59 }
 0x541   : > { %6393 = vmatpush1.bf16.msra.mxu0 %v3662_v14  ;;  %v2972_v14 = vld [vmem:[%s14812_s25 + $0x1410] sm:$0xff]  ;;  %v3926_v0 = vld [vmem:[%s17728_s1 + $0x1e0] sm:$0xff] }
 0x542   : > { %7937 = vmatpush1.bf16.msra.mxu1 %v3664_v15  ;;  %6394 = vmatprep.subr.bf16.mxu0 %v3667_v16  ;;  %v2976_v15 = vld [vmem:[%s14812_s25 + $0x1430] sm:$0xff]  ;;  %v3886_v16 = vld [vmem:[%s17728_s1 + $0xa0] sm:$0xff] }
 0x543   : > { %6276 = vmatmul.mubr.bf16.gmra.mrb[28].mxu0 %v9814_v20  ;;  %7938 = vmatprep.subr.bf16.mxu1 %v3669_v21  ;;  %v3674_v21 = vpack.c.bf16 %v2974_v13, %v2970_v12  ;;  %v3676_v24 = vpack.c.bf16 %v2976_v15, %v2972_v14  ;;  %v3015_v12 = vld [vmem:[%s14812_s25 + $0x1568] sm:$0xff]  ;;  %v9753_v13 = vcombine.high %v3918_v63, %v3926_v0  ;;  %v3013_v14 = vld [vmem:[%s14812_s25 + $0x1558] sm:$0xff]  ;;  %v3034_v60 = vld [vmem:[%s14812_s25 + $0x1600] sm:$0xff] }
 0x544   : > { %7820 = vmatmul.mubr.bf16.gmra.mrb[28].mxu1 %v9814_v20  ;;  %6285 = vmatprep.mubr.bf16.mxu0 %v9831_v25  ;;  %v2983_v20 = vld [vmem:[%s14812_s25 + $0x1468] sm:$0xff]  ;;  %v3017_v15 = vld [vmem:[%s14812_s25 + $0x1578] sm:$0xff] }
 0x545   : > { %7829 = vmatprep.mubr.bf16.mxu1 %v9831_v25  ;;  %6395 = vmatpush1.bf16.msra.mxu0 %v3666_v28  ;;  %v9721_v25 = vcombine.high %v3886_v16, %v3894_v17  ;;  %v2980_v28 = vld [vmem:[%s14812_s25 + $0x1450] sm:$0xff]  ;;  %v3697_v22 = vpack.c.bf16 %v3017_v15, %v3013_v14 }
 0x546   : > { %7939 = vmatpush1.bf16.msra.mxu1 %v3668_v29  ;;  %6396 = vmatprep.subr.bf16.mxu0 %v3671_v30  ;;  %v3679_v29 = vpack.c.bf16 %v2983_v20, %v2979_v19  ;;  %v2984_v30 = vld [vmem:[%s14812_s25 + $0x1470] sm:$0xff]  ;;  %v3010_v19 = vld [vmem:[%s14812_s25 + $0x1540] sm:$0xff] }
 0x547   : > { %7940 = vmatprep.subr.bf16.mxu1 %v3673_v34  ;;  %v2989_v34 = vld [vmem:[%s14812_s25 + $0x1498] sm:$0xff]  ;;  %v3680_v37 = vpack.c.bf16 %v2984_v30, %v2980_v28  ;;  %v3014_v20 = vld [vmem:[%s14812_s25 + $0x1560] sm:$0xff]  ;;  %v3048_v15 = vld [vmem:[%s14812_s25 + $0x1670] sm:$0xff] }
 0x548   : > { %v3685_v2 = vpack.c.bf16 %v2993_v35, %v2989_v34  ;;  %v3934_v28 = vld [vmem:[%s17728_s1 + $0x220] sm:$0xff]  ;;  %v3694_v30 = vpack.c.bf16 %v3014_v20, %v3010_v19  ;;  %v3020_v35 = vld [vmem:[%s14812_s25 + $0x1590] sm:$0xff]  ;;  %v3057_v19 = vld [vmem:[%s14812_s25 + $0x16b8] sm:$0xff] }
 0x549   : > { %6397 = vmatpush1.bf16.msra.mxu0 %v3670_v41  ;;  %v2986_v41 = vld [vmem:[%s14812_s25 + $0x1480] sm:$0xff] }
 0x54a   : > { %7941 = vmatpush1.bf16.msra.mxu1 %v3672_v42  ;;  %6559 = vmatprep.subr.bf16.mxu0 %v3675_v43  ;;  %v2990_v42 = vld [vmem:[%s14812_s25 + $0x14a0] sm:$0xff]  ;;  %v2988_v43 = vld [vmem:[%s14812_s25 + $0x1490] sm:$0xff] }
 0x54b   : > { %6286 = vmatmul.mubr.bf16.gmra.mrb[32].mxu0 %v9830_v44  ;;  %8103 = vmatprep.subr.bf16.mxu1 %v3677_v45  ;;  %v2992_v45 = vld [vmem:[%s14812_s25 + $0x14b0] sm:$0xff]  ;;  %v3682_v51 = vpack.c.bf16 %v2990_v42, %v2986_v41  ;;  %v3022_v34 = vld [vmem:[%s14812_s25 + $0x15a0] sm:$0xff]  ;;  %v3029_v41 = vld [vmem:[%s14812_s25 + $0x15d8] sm:$0xff] }
 0x54c   : > { %7830 = vmatmul.mubr.bf16.gmra.mrb[32].mxu1 %v9830_v44  ;;  %6295 = vmatprep.mubr.bf16.mxu0 %v9847_v46  ;;  %v9720_v44 = vcombine.low %v3886_v16, %v3894_v17  ;;  %v3684_v52 = vpack.c.bf16 %v2992_v45, %v2988_v43  ;;  %v3033_v42 = vld [vmem:[%s14812_s25 + $0x15f8] sm:$0xff]  ;;  %v3966_v20 = vld [vmem:[%s17728_s1 + $0x320] sm:$0xff] }
 0x54d   : > { %7839 = vmatprep.mubr.bf16.mxu1 %v9847_v46  ;;  %v2995_v46 = vld [vmem:[%s14812_s25 + $0x14c8] sm:$0xff] }
 0x553   : > { %6296 = vmatmul.mubr.bf16.gmra.mrb[36].mxu0 %v9846_v49 }
 0x554   : > { %7840 = vmatmul.mubr.bf16.gmra.mrb[36].mxu1 %v9846_v49  ;;  %6305 = vmatprep.mubr.bf16.mxu0 %v9863_v50  ;;  %v2997_v49 = vld [vmem:[%s14812_s25 + $0x14d8] sm:$0xff] }
 0x555   : > { %7849 = vmatprep.mubr.bf16.mxu1 %v9863_v50  ;;  %v3001_v50 = vld [vmem:[%s14812_s25 + $0x14f8] sm:$0xff] }
 0x55b   : > { %6306 = vmatmul.mubr.bf16.gmra.mrb[40].mxu0 %v9862_v53 }
 0x55c   : > { %7850 = vmatmul.mubr.bf16.gmra.mrb[40].mxu1 %v9862_v53  ;;  %6315 = vmatprep.mubr.bf16.mxu0 %v9879_v54  ;;  %v3687_v53 = vpack.c.bf16 %v2999_v47, %v2995_v46  ;;  %v3026_v46 = vld [vmem:[%s14812_s25 + $0x15c0] sm:$0xff] }
 0x55d   : > { %7859 = vmatprep.mubr.bf16.mxu1 %v9879_v54  ;;  %v2994_v54 = vld [vmem:[%s14812_s25 + $0x14c0] sm:$0xff] }
 0x55e   : > { %v3030_v47 = vld [vmem:[%s14812_s25 + $0x15e0] sm:$0xff] }
 0x563   : > { %6316 = vmatmul.mubr.bf16.gmra.mrb[44].mxu0 %v9878_v57 }
 0x564   : > { %7860 = vmatmul.mubr.bf16.gmra.mrb[44].mxu1 %v9878_v57  ;;  %6325 = vmatprep.mubr.bf16.mxu0 %v9895_v58  ;;  %v3689_v57 = vpack.c.bf16 %v3001_v50, %v2997_v49  ;;  %v3705_v49 = vpack.c.bf16 %v3033_v42, %v3029_v41  ;;  %v3032_v50 = vld [vmem:[%s14812_s25 + $0x15f0] sm:$0xff] }
 0x565   : > { %7869 = vmatprep.mubr.bf16.mxu1 %v9895_v58  ;;  %v3000_v58 = vld [vmem:[%s14812_s25 + $0x14f0] sm:$0xff] }
 0x566   : > { %v3064_v42 = vld [vmem:[%s14812_s25 + $0x16f0] sm:$0xff] }
 0x56b   : > { %6326 = vmatmul.mubr.bf16.gmra.mrb[48].mxu0 %v9894_v61 }
 0x56c   : > { %7870 = vmatmul.mubr.bf16.gmra.mrb[48].mxu1 %v9894_v61  ;;  %6335 = vmatprep.mubr.bf16.mxu0 %v9911_v62  ;;  %v3005_v61 = vld [vmem:[%s14812_s25 + $0x1518] sm:$0xff] }
 0x56d   : > { %7879 = vmatprep.mubr.bf16.mxu1 %v9911_v62  ;;  %v3009_v62 = vld [vmem:[%s14812_s25 + $0x1538] sm:$0xff] }
 0x56e   : > { %v3693_v9 = vpack.c.bf16 %v3009_v62, %v3005_v61  ;;  %v3038_v61 = vld [vmem:[%s14812_s25 + $0x1620] sm:$0xff]  ;;  %v3036_v62 = vld [vmem:[%s14812_s25 + $0x1610] sm:$0xff] }
 0x573   : > { %6336 = vmatmul.mubr.bf16.gmra.mrb[52].mxu0 %v9910_v1 }
 0x574   : > { %7880 = vmatmul.mubr.bf16.gmra.mrb[52].mxu1 %v9910_v1  ;;  %6345 = vmatprep.mubr.bf16.mxu0 %v9927_v3  ;;  %v3686_v1 = vpack.c.bf16 %v2998_v55, %v2994_v54  ;;  %v3041_v54 = vld [vmem:[%s14812_s25 + $0x1638] sm:$0xff]  ;;  %v3950_v55 = vld [vmem:[%s17728_s1 + $0x2a0] sm:$0xff] }
 0x575   : > { %7889 = vmatprep.mubr.bf16.mxu1 %v9927_v3  ;;  %v3688_v3 = vpack.c.bf16 %v3000_v58, %v2996_v56  ;;  %v3958_v56 = vld [vmem:[%s17728_s1 + $0x2e0] sm:$0xff] }
 0x57b   : > { %6346 = vmatmul.mubr.bf16.gmra.mrb[56].mxu0 %v9926_v6 }
 0x57c   : > { %7890 = vmatmul.mubr.bf16.gmra.mrb[56].mxu1 %v9926_v6  ;;  %6355 = vmatprep.mubr.bf16.mxu0 %v9943_v7  ;;  %v3006_v6 = vld [vmem:[%s14812_s25 + $0x1520] sm:$0xff] }
 0x57d   : > { %7899 = vmatprep.mubr.bf16.mxu1 %v9943_v7  ;;  %v3004_v7 = vld [vmem:[%s14812_s25 + $0x1510] sm:$0xff]  ;;  %v3690_v16 = vpack.c.bf16 %v3006_v6, %v3002_v5  ;;  %v9785_v5 = vcombine.high %v3950_v55, %v3958_v56  ;;  %v3045_v6 = vld [vmem:[%s14812_s25 + $0x1658] sm:$0xff] }
 0x583   : > { %6356 = vmatmul.mubr.bf16.gmra.mrb[60].mxu0 %v9942_v10 }
 0x584   : > { %7900 = vmatmul.mubr.bf16.gmra.mrb[60].mxu1 %v9942_v10  ;;  %6398 = vmatprep.mubr.bf16.mxu0 %v9705_v11  ;;  %v3008_v10 = vld [vmem:[%s14812_s25 + $0x1530] sm:$0xff] }
 0x585   : > { %7942 = vmatprep.mubr.bf16.mxu1 %v9705_v11  ;;  %v3011_v11 = vld [vmem:[%s14812_s25 + $0x1548] sm:$0xff]  ;;  %v3692_v17 = vpack.c.bf16 %v3008_v10, %v3004_v7  ;;  %v3049_v7 = vld [vmem:[%s14812_s25 + $0x1678] sm:$0xff] }
 0x586   : > { %v3713_v14 = vpack.c.bf16 %v3049_v7, %v3045_v6  ;;  %v3080_v7 = vld [vmem:[%s14812_s25 + $0x1770] sm:$0xff] }
 0x58b   : > { %6399 = vmatmul.mubr.bf16.vlgmr.msra.gmra.mrb[0].mxu0 %v9704_v18 }
 0x58c   : > { %7943 = vmatmul.mubr.bf16.vlgmr.msra.gmra.mrb[0].mxu1 %v9704_v18  ;;  %6560 = vmatpush1.bf16.msra.mxu0 %v3674_v21  ;;  %v3695_v18 = vpack.c.bf16 %v3015_v12, %v3011_v11  ;;  %v3012_v21 = vld [vmem:[%s14812_s25 + $0x1550] sm:$0xff]  ;;  %v3042_v11 = vld [vmem:[%s14812_s25 + $0x1640] sm:$0xff] }
 0x58d   : > { %8104 = vmatpush1.bf16.msra.mxu1 %v3676_v24  ;;  %6408 = vmatprep.mubr.bf16.mxu0 %v9721_v25  ;;  %v3019_v24 = vld [vmem:[%s14812_s25 + $0x1588] sm:$0xff]  ;;  %v3696_v31 = vpack.c.bf16 %v3016_v23, %v3012_v21  ;;  %v3046_v12 = vld [vmem:[%s14812_s25 + $0x1660] sm:$0xff] }
 0x58e   : > { %7952 = vmatprep.mubr.bf16.mxu1 %v9721_v25  ;;  %6561 = vmatprep.subr.bf16.mxu0 %v3679_v29  ;;  %v3023_v25 = vld [vmem:[%s14812_s25 + $0x15a8] sm:$0xff]  ;;  %v3942_v29 = vld [vmem:[%s17728_s1 + $0x260] sm:$0xff] }
 0x58f   : > { %8105 = vmatprep.subr.bf16.mxu1 %v3681_v33  ;;  %v3699_v32 = vpack.c.bf16 %v3023_v25, %v3019_v24  ;;  %v3018_v33 = vld [vmem:[%s14812_s25 + $0x1580] sm:$0xff] }
 0x590   : > { %6562 = vmatpush1.bf16.msra.mxu0 %v3678_v36  ;;  %v9752_v36 = vcombine.low %v3918_v63, %v3926_v0  ;;  %v3698_v43 = vpack.c.bf16 %v3022_v34, %v3018_v33  ;;  %v9768_v63 = vcombine.low %v3934_v28, %v3942_v29  ;;  %v3974_v21 = vld [vmem:[%s17728_s1 + $0x360] sm:$0xff]  ;;  %v3061_v34 = vld [vmem:[%s14812_s25 + $0x16d8] sm:$0xff] }
 0x591   : > { %8106 = vmatpush1.bf16.msra.mxu1 %v3680_v37  ;;  %6563 = vmatprep.subr.bf16.mxu0 %v3683_v40  ;;  %v3701_v37 = vpack.c.bf16 %v3025_v27, %v3021_v26  ;;  %v3031_v40 = vld [vmem:[%s14812_s25 + $0x15e8] sm:$0xff]  ;;  %v3050_v25 = vld [vmem:[%s14812_s25 + $0x1680] sm:$0xff]  ;;  %v3052_v27 = vld [vmem:[%s14812_s25 + $0x1690] sm:$0xff]  ;;  %v9801_v33 = vcombine.high %v3966_v20, %v3974_v21 }
 0x592   : > { %8107 = vmatprep.subr.bf16.mxu1 %v3685_v2  ;;  %v9769_v2 = vcombine.high %v3934_v28, %v3942_v29  ;;  %v3703_v45 = vpack.c.bf16 %v3031_v40, %v3027_v39  ;;  %v3054_v26 = vld [vmem:[%s14812_s25 + $0x16a0] sm:$0xff]  ;;  %v9784_v28 = vcombine.low %v3950_v55, %v3958_v56  ;;  %v9800_v55 = vcombine.low %v3966_v20, %v3974_v21 }
 0x593   : > { %6409 = vmatmul.mubr.bf16.gmra.mrb[4].mxu0 %v9720_v44  ;;  %v3058_v39 = vld [vmem:[%s14812_s25 + $0x16c0] sm:$0xff] }
 0x594   : > { %7953 = vmatmul.mubr.bf16.gmra.mrb[4].mxu1 %v9720_v44  ;;  %6418 = vmatprep.mubr.bf16.mxu0 %v9737_v48  ;;  %v3700_v44 = vpack.c.bf16 %v3024_v38, %v3020_v35  ;;  %v3065_v35 = vld [vmem:[%s14812_s25 + $0x16f8] sm:$0xff]  ;;  %v3062_v40 = vld [vmem:[%s14812_s25 + $0x16e0] sm:$0xff] }
 0x595   : > { %7962 = vmatprep.mubr.bf16.mxu1 %v9737_v48  ;;  %6564 = vmatpush1.bf16.msra.mxu0 %v3682_v51  ;;  %v3028_v48 = vld [vmem:[%s14812_s25 + $0x15d0] sm:$0xff]  ;;  %v3035_v51 = vld [vmem:[%s14812_s25 + $0x1608] sm:$0xff]  ;;  %v3721_v41 = vpack.c.bf16 %v3065_v35, %v3061_v34 }
 0x596   : > { %8108 = vmatpush1.bf16.msra.mxu1 %v3684_v52  ;;  %6565 = vmatprep.subr.bf16.mxu0 %v3687_v53  ;;  %v3039_v52 = vld [vmem:[%s14812_s25 + $0x1628] sm:$0xff]  ;;  %v3037_v53 = vld [vmem:[%s14812_s25 + $0x1618] sm:$0xff]  ;;  %v3704_v58 = vpack.c.bf16 %v3032_v50, %v3028_v48  ;;  %v3990_v48 = vld [vmem:[%s17728_s1 + $0x3e0] sm:$0xff] }
 0x597   : > { %8109 = vmatprep.subr.bf16.mxu1 %v3689_v57  ;;  %v3702_v57 = vpack.c.bf16 %v3030_v47, %v3026_v46  ;;  %v3707_v59 = vpack.c.bf16 %v3039_v52, %v3035_v51  ;;  %v3709_v0 = vpack.c.bf16 %v3041_v54, %v3037_v53  ;;  %v3073_v46 = vld [vmem:[%s14812_s25 + $0x1738] sm:$0xff]  ;;  %v3982_v47 = vld [vmem:[%s17728_s1 + $0x3a0] sm:$0xff]  ;;  %v3068_v54 = vld [vmem:[%s14812_s25 + $0x1710] sm:$0xff] }
 0x598   : > { %v3066_v52 = vld [vmem:[%s14812_s25 + $0x1700] sm:$0xff]  ;;  %v9816_v20 = vcombine.low %v3982_v47, %v3990_v48  ;;  %v3096_v35 = vld [vmem:[%s14812_s25 + $0x17f0] sm:$0xff] }
 0x599   : > { %6566 = vmatpush1.bf16.msra.mxu0 %v3686_v1  ;;  %v3040_v1 = vld [vmem:[%s14812_s25 + $0x1630] sm:$0xff]  ;;  %v3070_v53 = vld [vmem:[%s14812_s25 + $0x1720] sm:$0xff] }
 0x59a   : > { %8110 = vmatpush1.bf16.msra.mxu1 %v3688_v3  ;;  %6567 = vmatprep.subr.bf16.mxu0 %v3691_v4  ;;  %v3043_v3 = vld [vmem:[%s14812_s25 + $0x1648] sm:$0xff] }
 0x59b   : > { %6419 = vmatmul.mubr.bf16.gmra.mrb[8].mxu0 %v9736_v8  ;;  %8111 = vmatprep.subr.bf16.mxu1 %v3693_v9  ;;  %v3047_v4 = vld [vmem:[%s14812_s25 + $0x1668] sm:$0xff]  ;;  %v3708_v9 = vpack.c.bf16 %v3040_v1, %v3036_v62  ;;  %v3081_v62 = vld [vmem:[%s14812_s25 + $0x1778] sm:$0xff] }
 0x59c   : > { %7963 = vmatmul.mubr.bf16.gmra.mrb[8].mxu1 %v9736_v8  ;;  %6428 = vmatprep.mubr.bf16.mxu0 %v9753_v13  ;;  %v3706_v8 = vpack.c.bf16 %v3038_v61, %v3034_v60  ;;  %v3711_v10 = vpack.c.bf16 %v3047_v4, %v3043_v3  ;;  %v9817_v60 = vcombine.high %v3982_v47, %v3990_v48  ;;  %v3077_v61 = vld [vmem:[%s14812_s25 + $0x1758] sm:$0xff]  ;;  %v3074_v3 = vld [vmem:[%s14812_s25 + $0x1740] sm:$0xff] }
 0x59d   : > { %7972 = vmatprep.mubr.bf16.mxu1 %v9753_v13  ;;  %6568 = vmatpush1.bf16.msra.mxu0 %v3690_v16  ;;  %v3044_v13 = vld [vmem:[%s14812_s25 + $0x1650] sm:$0xff]  ;;  %v3051_v16 = vld [vmem:[%s14812_s25 + $0x1688] sm:$0xff]  ;;  %v3078_v4 = vld [vmem:[%s14812_s25 + $0x1760] sm:$0xff]  ;;  %v3729_v6 = vpack.c.bf16 %v3081_v62, %v3077_v61 }
 0x59e   : > { %8112 = vmatpush1.bf16.msra.mxu1 %v3692_v17  ;;  %6569 = vmatprep.subr.bf16.mxu0 %v3695_v18  ;;  %v3055_v17 = vld [vmem:[%s14812_s25 + $0x16a8] sm:$0xff]  ;;  %v3053_v18 = vld [vmem:[%s14812_s25 + $0x1698] sm:$0xff]  ;;  %v3712_v23 = vpack.c.bf16 %v3048_v15, %v3044_v13  ;;  %v4006_v13 = vld [vmem:[%s17728_s1 + $0x460] sm:$0xff] }
 0x59f   : > { %8113 = vmatprep.subr.bf16.mxu1 %v3697_v22  ;;  %v3710_v22 = vpack.c.bf16 %v3046_v12, %v3042_v11  ;;  %v3715_v24 = vpack.c.bf16 %v3055_v17, %v3051_v16  ;;  %v3717_v29 = vpack.c.bf16 %v3057_v19, %v3053_v18  ;;  %v3089_v11 = vld [vmem:[%s14812_s25 + $0x17b8] sm:$0xff]  ;;  %v3998_v12 = vld [vmem:[%s17728_s1 + $0x420] sm:$0xff]  ;;  %v3084_v19 = vld [vmem:[%s14812_s25 + $0x1790] sm:$0xff] }
 0x5a0   : > { %v3082_v17 = vld [vmem:[%s14812_s25 + $0x1780] sm:$0xff] }
 0x5a1   : > { %6570 = vmatpush1.bf16.msra.mxu0 %v3694_v30  ;;  %v3056_v30 = vld [vmem:[%s14812_s25 + $0x16b0] sm:$0xff]  ;;  %v3086_v18 = vld [vmem:[%s14812_s25 + $0x17a0] sm:$0xff] }
 0x5a2   : > { %8114 = vmatpush1.bf16.msra.mxu1 %v3696_v31  ;;  %6571 = vmatprep.subr.bf16.mxu0 %v3699_v32  ;;  %v3059_v31 = vld [vmem:[%s14812_s25 + $0x16c8] sm:$0xff]  ;;  %v4030_v47 = vld [vmem:[%s17728_s1 + $0x520] sm:$0xff] }
 0x5a3   : > { %6429 = vmatmul.mubr.bf16.gmra.mrb[12].mxu0 %v9752_v36  ;;  %8115 = vmatprep.subr.bf16.mxu1 %v3701_v37  ;;  %v3063_v32 = vld [vmem:[%s14812_s25 + $0x16e8] sm:$0xff]  ;;  %v3716_v37 = vpack.c.bf16 %v3056_v30, %v3052_v27  ;;  %v3097_v27 = vld [vmem:[%s14812_s25 + $0x17f8] sm:$0xff]  ;;  %v4038_v48 = vld [vmem:[%s17728_s1 + $0x560] sm:$0xff] }
 0x5a4   : > { %7973 = vmatmul.mubr.bf16.gmra.mrb[12].mxu1 %v9752_v36  ;;  %6438 = vmatprep.mubr.bf16.mxu0 %v9769_v2  ;;  %v3714_v36 = vpack.c.bf16 %v3054_v26, %v3050_v25  ;;  %v3719_v38 = vpack.c.bf16 %v3063_v32, %v3059_v31  ;;  %v9833_v25 = vcombine.high %v3998_v12, %v4006_v13  ;;  %v3093_v26 = vld [vmem:[%s14812_s25 + $0x17d8] sm:$0xff]  ;;  %v3090_v31 = vld [vmem:[%s14812_s25 + $0x17c0] sm:$0xff] }
 0x5a5   : > { %7982 = vmatprep.mubr.bf16.mxu1 %v9769_v2  ;;  %6572 = vmatpush1.bf16.msra.mxu0 %v3698_v43  ;;  %v3060_v2 = vld [vmem:[%s14812_s25 + $0x16d0] sm:$0xff]  ;;  %v3067_v43 = vld [vmem:[%s14812_s25 + $0x1708] sm:$0xff]  ;;  %v3094_v32 = vld [vmem:[%s14812_s25 + $0x17e0] sm:$0xff]  ;;  %v3737_v34 = vpack.c.bf16 %v3097_v27, %v3093_v26 }
 0x5a6   : > { %8116 = vmatpush1.bf16.msra.mxu1 %v3700_v44  ;;  %6573 = vmatprep.subr.bf16.mxu0 %v3703_v45  ;;  %v3071_v44 = vld [vmem:[%s14812_s25 + $0x1728] sm:$0xff]  ;;  %v3069_v45 = vld [vmem:[%s14812_s25 + $0x1718] sm:$0xff]  ;;  %v3720_v50 = vpack.c.bf16 %v3064_v42, %v3060_v2  ;;  %v4022_v2 = vld [vmem:[%s17728_s1 + $0x4e0] sm:$0xff] }
 0x5a7   : > { %8117 = vmatprep.subr.bf16.mxu1 %v3705_v49  ;;  %v3718_v49 = vpack.c.bf16 %v3062_v40, %v3058_v39  ;;  %v3723_v51 = vpack.c.bf16 %v3071_v44, %v3067_v43  ;;  %v3725_v56 = vpack.c.bf16 %v3073_v46, %v3069_v45  ;;  %v3105_v39 = vld [vmem:[%s14812_s25 + $0x1838] sm:$0xff]  ;;  %v4014_v40 = vld [vmem:[%s17728_s1 + $0x4a0] sm:$0xff]  ;;  %v9832_v44 = vcombine.low %v3998_v12, %v4006_v13 }
 0x5a8   : > { %v9849_v46 = vcombine.high %v4014_v40, %v4022_v2  ;;  %v3098_v12 = vld [vmem:[%s14812_s25 + $0x1800] sm:$0xff] }
 0x5a9   : > { %6574 = vmatpush1.bf16.msra.mxu0 %v3702_v57  ;;  %v3072_v57 = vld [vmem:[%s14812_s25 + $0x1730] sm:$0xff]  ;;  %v3102_v13 = vld [vmem:[%s14812_s25 + $0x1820] sm:$0xff] }
 0x5aa   : > { %8118 = vmatpush1.bf16.msra.mxu1 %v3704_v58  ;;  %6575 = vmatprep.subr.bf16.mxu0 %v3707_v59  ;;  %v3075_v58 = vld [vmem:[%s14812_s25 + $0x1748] sm:$0xff]  ;;  %v3106_v26 = vld [vmem:[%s14812_s25 + $0x1840] sm:$0xff] }
 0x5ab   : > { %6439 = vmatmul.mubr.bf16.gmra.mrb[16].mxu0 %v9768_v63  ;;  %8119 = vmatprep.subr.bf16.mxu1 %v3709_v0  ;;  %v3079_v59 = vld [vmem:[%s14812_s25 + $0x1768] sm:$0xff]  ;;  %v3724_v0 = vpack.c.bf16 %v3072_v57, %v3068_v54  ;;  %v3110_v27 = vld [vmem:[%s14812_s25 + $0x1860] sm:$0xff] }
 0x5ac   : > { %7983 = vmatmul.mubr.bf16.gmra.mrb[16].mxu1 %v9768_v63  ;;  %6448 = vmatprep.mubr.bf16.mxu0 %v9785_v5  ;;  %v3722_v63 = vpack.c.bf16 %v3070_v53, %v3066_v52  ;;  %v3727_v1 = vpack.c.bf16 %v3079_v59, %v3075_v58  ;;  %v4054_v52 = vld [vmem:[%s17728_s1 + $0x5e0] sm:$0xff]  ;;  %v9864_v53 = vcombine.low %v4030_v47, %v4038_v48 }
 0x5ad   : > { %7992 = vmatprep.mubr.bf16.mxu1 %v9785_v5  ;;  %6576 = vmatpush1.bf16.msra.mxu0 %v3706_v8  ;;  %v3076_v5 = vld [vmem:[%s14812_s25 + $0x1750] sm:$0xff]  ;;  %v3083_v8 = vld [vmem:[%s14812_s25 + $0x1788] sm:$0xff]  ;;  %v4078_v59 = vld [vmem:[%s17728_s1 + $0x6a0] sm:$0xff] }
 0x5ae   : > { %8120 = vmatpush1.bf16.msra.mxu1 %v3708_v9  ;;  %6577 = vmatprep.subr.bf16.mxu0 %v3711_v10  ;;  %v3087_v9 = vld [vmem:[%s14812_s25 + $0x17a8] sm:$0xff]  ;;  %v3085_v10 = vld [vmem:[%s14812_s25 + $0x1798] sm:$0xff]  ;;  %v3728_v15 = vpack.c.bf16 %v3080_v7, %v3076_v5  ;;  %v4118_v5 = vld [vmem:[%s17728_s1 + $0x7e0] sm:$0xff] }
 0x5af   : > { %8121 = vmatprep.subr.bf16.mxu1 %v3713_v14  ;;  %v3726_v14 = vpack.c.bf16 %v3078_v4, %v3074_v3  ;;  %v3731_v16 = vpack.c.bf16 %v3087_v9, %v3083_v8  ;;  %v3733_v21 = vpack.c.bf16 %v3089_v11, %v3085_v10  ;;  %v4110_v4 = vld [vmem:[%s17728_s1 + $0x7a0] sm:$0xff]  ;;  %v3871_v8 = vld [vmem:[%s17728_s1 + $0x28] sm:$0xff] }
 0x5b0   : > { %v9945_v7 = vcombine.high %v4110_v4, %v4118_v5  ;;  %v3879_v9 = vld [vmem:[%s17728_s1 + $0x68] sm:$0xff]  ;;  %v9944_v10 = vcombine.low %v4110_v4, %v4118_v5  ;;  %v3130_v5 = vld [vmem:[%s14812_s25 + $0x1900] sm:$0xff] }
 0x5b1   : > { %6578 = vmatpush1.bf16.msra.mxu0 %v3710_v22  ;;  %v3088_v22 = vld [vmem:[%s14812_s25 + $0x17b0] sm:$0xff]  ;;  %v9707_v11 = vcombine.high %v3871_v8, %v3879_v9 }
 0x5b2   : > { %8122 = vmatpush1.bf16.msra.mxu1 %v3712_v23  ;;  %6579 = vmatprep.subr.bf16.mxu0 %v3715_v24  ;;  %v3091_v23 = vld [vmem:[%s14812_s25 + $0x17c8] sm:$0xff] }
 0x5b3   : > { %6449 = vmatmul.mubr.bf16.gmra.mrb[20].mxu0 %v9784_v28  ;;  %8123 = vmatprep.subr.bf16.mxu1 %v3717_v29  ;;  %v3095_v24 = vld [vmem:[%s14812_s25 + $0x17e8] sm:$0xff]  ;;  %v3732_v29 = vpack.c.bf16 %v3088_v22, %v3084_v19  ;;  %v3109_v22 = vld [vmem:[%s14812_s25 + $0x1858] sm:$0xff] }
 0x5b4   : > { %7993 = vmatmul.mubr.bf16.gmra.mrb[20].mxu1 %v9784_v28  ;;  %6458 = vmatprep.mubr.bf16.mxu0 %v9801_v33  ;;  %v3730_v28 = vpack.c.bf16 %v3086_v18, %v3082_v17  ;;  %v3735_v30 = vpack.c.bf16 %v3095_v24, %v3091_v23  ;;  %v3895_v17 = vld [vmem:[%s17728_s1 + $0xe8] sm:$0xff]  ;;  %v9706_v18 = vcombine.low %v3871_v8, %v3879_v9  ;;  %v3113_v23 = vld [vmem:[%s14812_s25 + $0x1878] sm:$0xff] }
 0x5b5   : > { %8002 = vmatprep.mubr.bf16.mxu1 %v9801_v33  ;;  %6580 = vmatpush1.bf16.msra.mxu0 %v3714_v36  ;;  %v3092_v33 = vld [vmem:[%s14812_s25 + $0x17d0] sm:$0xff]  ;;  %v3099_v36 = vld [vmem:[%s14812_s25 + $0x1808] sm:$0xff] }
 0x5b6   : > { %8124 = vmatpush1.bf16.msra.mxu1 %v3716_v37  ;;  %6581 = vmatprep.subr.bf16.mxu0 %v3719_v38  ;;  %v3103_v37 = vld [vmem:[%s14812_s25 + $0x1828] sm:$0xff]  ;;  %v3101_v38 = vld [vmem:[%s14812_s25 + $0x1818] sm:$0xff]  ;;  %v3736_v42 = vpack.c.bf16 %v3096_v35, %v3092_v33  ;;  %v3745_v33 = vpack.c.bf16 %v3113_v23, %v3109_v22  ;;  %v3144_v23 = vld [vmem:[%s14812_s25 + $0x1970] sm:$0xff] }
 0x5b7   : > { %8125 = vmatprep.subr.bf16.mxu1 %v3721_v41  ;;  %v3734_v41 = vpack.c.bf16 %v3094_v32, %v3090_v31  ;;  %v3739_v43 = vpack.c.bf16 %v3103_v37, %v3099_v36  ;;  %v3741_v45 = vpack.c.bf16 %v3105_v39, %v3101_v38  ;;  %v3107_v19 = vld [vmem:[%s14812_s25 + $0x1848] sm:$0xff]  ;;  %v3121_v35 = vld [vmem:[%s14812_s25 + $0x18b8] sm:$0xff]  ;;  %v3742_v36 = vpack.c.bf16 %v3110_v27, %v3106_v26 }
 0x5b8   : > { %v3115_v31 = vld [vmem:[%s14812_s25 + $0x1888] sm:$0xff]  ;;  %v3149_v26 = vld [vmem:[%s14812_s25 + $0x1998] sm:$0xff] }
 0x5b9   : > { %6582 = vmatpush1.bf16.msra.mxu0 %v3718_v49  ;;  %v9848_v49 = vcombine.low %v4014_v40, %v4022_v2  ;;  %v3119_v32 = vld [vmem:[%s14812_s25 + $0x18a8] sm:$0xff]  ;;  %v3153_v27 = vld [vmem:[%s14812_s25 + $0x19b8] sm:$0xff] }
 0x5ba   : > { %8126 = vmatpush1.bf16.msra.mxu1 %v3720_v50  ;;  %6583 = vmatprep.subr.bf16.mxu0 %v3723_v51  ;;  %v9865_v50 = vcombine.high %v4030_v47, %v4038_v48  ;;  %v4046_v51 = vld [vmem:[%s17728_s1 + $0x5a0] sm:$0xff]  ;;  %v3903_v38 = vld [vmem:[%s17728_s1 + $0x128] sm:$0xff]  ;;  %v3747_v40 = vpack.c.bf16 %v3119_v32, %v3115_v31 }
 0x5bb   : > { %6459 = vmatmul.mubr.bf16.gmra.mrb[24].mxu0 %v9800_v55  ;;  %8127 = vmatprep.subr.bf16.mxu1 %v3725_v56  ;;  %v9881_v54 = vcombine.high %v4046_v51, %v4054_v52  ;;  %v4070_v56 = vld [vmem:[%s17728_s1 + $0x660] sm:$0xff]  ;;  %v9880_v57 = vcombine.low %v4046_v51, %v4054_v52  ;;  %v3911_v39 = vld [vmem:[%s17728_s1 + $0x168] sm:$0xff] }
 0x5bc   : > { %8003 = vmatmul.mubr.bf16.gmra.mrb[24].mxu1 %v9800_v55  ;;  %6468 = vmatprep.mubr.bf16.mxu0 %v9817_v60  ;;  %v4062_v55 = vld [vmem:[%s17728_s1 + $0x620] sm:$0xff]  ;;  %v3127_v47 = vld [vmem:[%s14812_s25 + $0x18e8] sm:$0xff]  ;;  %v9739_v48 = vcombine.high %v3903_v38, %v3911_v39  ;;  %v9738_v8 = vcombine.low %v3903_v38, %v3911_v39  ;;  %v3152_v38 = vld [vmem:[%s14812_s25 + $0x19b0] sm:$0xff] }
 0x5bd   : > { %8012 = vmatprep.mubr.bf16.mxu1 %v9817_v60  ;;  %6584 = vmatpush1.bf16.msra.mxu0 %v3722_v63  ;;  %v9897_v58 = vcombine.high %v4062_v55, %v4070_v56  ;;  %v4086_v60 = vld [vmem:[%s17728_s1 + $0x6e0] sm:$0xff]  ;;  %v9896_v61 = vcombine.low %v4062_v55, %v4070_v56  ;;  %v3124_v56 = vld [vmem:[%s14812_s25 + $0x18d0] sm:$0xff]  ;;  %v3155_v39 = vld [vmem:[%s14812_s25 + $0x19c8] sm:$0xff] }
 0x5be   : > { %8128 = vmatpush1.bf16.msra.mxu1 %v3724_v0  ;;  %6585 = vmatprep.subr.bf16.mxu0 %v3727_v1  ;;  %v9913_v62 = vcombine.high %v4078_v59, %v4086_v60  ;;  %v4094_v63 = vld [vmem:[%s17728_s1 + $0x720] sm:$0xff]  ;;  %v9912_v1 = vcombine.low %v4078_v59, %v4086_v60  ;;  %v3131_v59 = vld [vmem:[%s14812_s25 + $0x1908] sm:$0xff] }
 0x5bf   : > { %8129 = vmatprep.subr.bf16.mxu1 %v3729_v6  ;;  %v4102_v0 = vld [vmem:[%s17728_s1 + $0x760] sm:$0xff]  ;;  %v3135_v60 = vld [vmem:[%s14812_s25 + $0x1928] sm:$0xff] }
 0x5c0   : > { %v9929_v3 = vcombine.high %v4094_v63, %v4102_v0  ;;  %v9928_v6 = vcombine.low %v4094_v63, %v4102_v0  ;;  %v3126_v55 = vld [vmem:[%s14812_s25 + $0x18e0] sm:$0xff]  ;;  %v3919_v63 = vld [vmem:[%s17728_s1 + $0x1a8] sm:$0xff]  ;;  %v3755_v4 = vpack.c.bf16 %v3135_v60, %v3131_v59 }
 0x5c1   : > { %6586 = vmatpush1.bf16.msra.mxu0 %v3726_v14  ;;  %v3100_v14 = vld [vmem:[%s14812_s25 + $0x1810] sm:$0xff]  ;;  %v3927_v0 = vld [vmem:[%s17728_s1 + $0x1e8] sm:$0xff]  ;;  %v3162_v60 = vld [vmem:[%s14812_s25 + $0x1a00] sm:$0xff] }
 0x5c2   : > { %8130 = vmatpush1.bf16.msra.mxu1 %v3728_v15  ;;  %6587 = vmatprep.subr.bf16.mxu0 %v3731_v16  ;;  %v3104_v15 = vld [vmem:[%s14812_s25 + $0x1830] sm:$0xff]  ;;  %v3887_v16 = vld [vmem:[%s17728_s1 + $0xa8] sm:$0xff] }
 0x5c3   : > { %6469 = vmatmul.mubr.bf16.gmra.mrb[28].mxu0 %v9816_v20  ;;  %8131 = vmatprep.subr.bf16.mxu1 %v3733_v21  ;;  %v3738_v21 = vpack.c.bf16 %v3102_v13, %v3098_v12  ;;  %v3740_v24 = vpack.c.bf16 %v3104_v15, %v3100_v14  ;;  %v3143_v12 = vld [vmem:[%s14812_s25 + $0x1968] sm:$0xff]  ;;  %v9755_v13 = vcombine.high %v3919_v63, %v3927_v0  ;;  %v3141_v14 = vld [vmem:[%s14812_s25 + $0x1958] sm:$0xff] }
 0x5c4   : > { %8013 = vmatmul.mubr.bf16.gmra.mrb[28].mxu1 %v9816_v20  ;;  %6478 = vmatprep.mubr.bf16.mxu0 %v9833_v25  ;;  %v3111_v20 = vld [vmem:[%s14812_s25 + $0x1868] sm:$0xff]  ;;  %v3145_v15 = vld [vmem:[%s14812_s25 + $0x1978] sm:$0xff] }
 0x5c5   : > { %8022 = vmatprep.mubr.bf16.mxu1 %v9833_v25  ;;  %6588 = vmatpush1.bf16.msra.mxu0 %v3730_v28  ;;  %v9723_v25 = vcombine.high %v3887_v16, %v3895_v17  ;;  %v3108_v28 = vld [vmem:[%s14812_s25 + $0x1850] sm:$0xff]  ;;  %v3761_v22 = vpack.c.bf16 %v3145_v15, %v3141_v14 }
 0x5c6   : > { %8132 = vmatpush1.bf16.msra.mxu1 %v3732_v29  ;;  %6589 = vmatprep.subr.bf16.mxu0 %v3735_v30  ;;  %v3743_v29 = vpack.c.bf16 %v3111_v20, %v3107_v19  ;;  %v3112_v30 = vld [vmem:[%s14812_s25 + $0x1870] sm:$0xff]  ;;  %v3138_v19 = vld [vmem:[%s14812_s25 + $0x1940] sm:$0xff] }
 0x5c7   : > { %8133 = vmatprep.subr.bf16.mxu1 %v3737_v34  ;;  %v3117_v34 = vld [vmem:[%s14812_s25 + $0x1898] sm:$0xff]  ;;  %v3744_v37 = vpack.c.bf16 %v3112_v30, %v3108_v28  ;;  %v3142_v20 = vld [vmem:[%s14812_s25 + $0x1960] sm:$0xff]  ;;  %v3935_v28 = vld [vmem:[%s17728_s1 + $0x228] sm:$0xff] }
 0x5c8   : > { %v3749_v2 = vpack.c.bf16 %v3121_v35, %v3117_v34  ;;  %v3758_v30 = vpack.c.bf16 %v3142_v20, %v3138_v19  ;;  %v3150_v34 = vld [vmem:[%s14812_s25 + $0x19a0] sm:$0xff]  ;;  %v3148_v35 = vld [vmem:[%s14812_s25 + $0x1990] sm:$0xff]  ;;  %v3185_v19 = vld [vmem:[%s14812_s25 + $0x1ab8] sm:$0xff] }
 0x5c9   : > { %6590 = vmatpush1.bf16.msra.mxu0 %v3734_v41  ;;  %v3114_v41 = vld [vmem:[%s14812_s25 + $0x1880] sm:$0xff]  ;;  %v3176_v15 = vld [vmem:[%s14812_s25 + $0x1a70] sm:$0xff]  ;;  %v3967_v20 = vld [vmem:[%s17728_s1 + $0x328] sm:$0xff] }
 0x5ca   : > { %8134 = vmatpush1.bf16.msra.mxu1 %v3736_v42  ;;  %6752 = vmatprep.subr.bf16.mxu0 %v3739_v43  ;;  %v3118_v42 = vld [vmem:[%s14812_s25 + $0x18a0] sm:$0xff]  ;;  %v3116_v43 = vld [vmem:[%s14812_s25 + $0x1890] sm:$0xff] }
 0x5cb   : > { %6479 = vmatmul.mubr.bf16.gmra.mrb[32].mxu0 %v9832_v44  ;;  %8296 = vmatprep.subr.bf16.mxu1 %v3741_v45  ;;  %v3120_v45 = vld [vmem:[%s14812_s25 + $0x18b0] sm:$0xff]  ;;  %v3746_v51 = vpack.c.bf16 %v3118_v42, %v3114_v41  ;;  %v3157_v41 = vld [vmem:[%s14812_s25 + $0x19d8] sm:$0xff] }
 0x5cc   : > { %8023 = vmatmul.mubr.bf16.gmra.mrb[32].mxu1 %v9832_v44  ;;  %6488 = vmatprep.mubr.bf16.mxu0 %v9849_v46  ;;  %v9722_v44 = vcombine.low %v3887_v16, %v3895_v17  ;;  %v3748_v52 = vpack.c.bf16 %v3120_v45, %v3116_v43  ;;  %v3161_v42 = vld [vmem:[%s14812_s25 + $0x19f8] sm:$0xff] }
 0x5cd   : > { %8032 = vmatprep.mubr.bf16.mxu1 %v9849_v46  ;;  %v3123_v46 = vld [vmem:[%s14812_s25 + $0x18c8] sm:$0xff] }
 0x5d3   : > { %6489 = vmatmul.mubr.bf16.gmra.mrb[36].mxu0 %v9848_v49 }
 0x5d4   : > { %8033 = vmatmul.mubr.bf16.gmra.mrb[36].mxu1 %v9848_v49  ;;  %6498 = vmatprep.mubr.bf16.mxu0 %v9865_v50  ;;  %v3125_v49 = vld [vmem:[%s14812_s25 + $0x18d8] sm:$0xff] }
 0x5d5   : > { %8042 = vmatprep.mubr.bf16.mxu1 %v9865_v50  ;;  %v3129_v50 = vld [vmem:[%s14812_s25 + $0x18f8] sm:$0xff] }
 0x5db   : > { %6499 = vmatmul.mubr.bf16.gmra.mrb[40].mxu0 %v9864_v53 }
 0x5dc   : > { %8043 = vmatmul.mubr.bf16.gmra.mrb[40].mxu1 %v9864_v53  ;;  %6508 = vmatprep.mubr.bf16.mxu0 %v9881_v54  ;;  %v3751_v53 = vpack.c.bf16 %v3127_v47, %v3123_v46  ;;  %v3154_v46 = vld [vmem:[%s14812_s25 + $0x19c0] sm:$0xff] }
 0x5dd   : > { %8052 = vmatprep.mubr.bf16.mxu1 %v9881_v54  ;;  %v3122_v54 = vld [vmem:[%s14812_s25 + $0x18c0] sm:$0xff] }
 0x5de   : > { %v3158_v47 = vld [vmem:[%s14812_s25 + $0x19e0] sm:$0xff] }
 0x5e3   : > { %6509 = vmatmul.mubr.bf16.gmra.mrb[44].mxu0 %v9880_v57 }
 0x5e4   : > { %8053 = vmatmul.mubr.bf16.gmra.mrb[44].mxu1 %v9880_v57  ;;  %6518 = vmatprep.mubr.bf16.mxu0 %v9897_v58  ;;  %v3753_v57 = vpack.c.bf16 %v3129_v50, %v3125_v49  ;;  %v3769_v49 = vpack.c.bf16 %v3161_v42, %v3157_v41  ;;  %v3160_v50 = vld [vmem:[%s14812_s25 + $0x19f0] sm:$0xff] }
 0x5e5   : > { %8062 = vmatprep.mubr.bf16.mxu1 %v9897_v58  ;;  %v3128_v58 = vld [vmem:[%s14812_s25 + $0x18f0] sm:$0xff] }
 0x5e6   : > { %v3192_v42 = vld [vmem:[%s14812_s25 + $0x1af0] sm:$0xff] }
 0x5eb   : > { %6519 = vmatmul.mubr.bf16.gmra.mrb[48].mxu0 %v9896_v61 }
 0x5ec   : > { %8063 = vmatmul.mubr.bf16.gmra.mrb[48].mxu1 %v9896_v61  ;;  %6528 = vmatprep.mubr.bf16.mxu0 %v9913_v62  ;;  %v3133_v61 = vld [vmem:[%s14812_s25 + $0x1918] sm:$0xff] }
 0x5ed   : > { %8072 = vmatprep.mubr.bf16.mxu1 %v9913_v62  ;;  %v3137_v62 = vld [vmem:[%s14812_s25 + $0x1938] sm:$0xff] }
 0x5ee   : > { %v3757_v9 = vpack.c.bf16 %v3137_v62, %v3133_v61  ;;  %v3166_v61 = vld [vmem:[%s14812_s25 + $0x1a20] sm:$0xff]  ;;  %v3164_v62 = vld [vmem:[%s14812_s25 + $0x1a10] sm:$0xff] }
 0x5f3   : > { %6529 = vmatmul.mubr.bf16.gmra.mrb[52].mxu0 %v9912_v1 }
 0x5f4   : > { %8073 = vmatmul.mubr.bf16.gmra.mrb[52].mxu1 %v9912_v1  ;;  %6538 = vmatprep.mubr.bf16.mxu0 %v9929_v3  ;;  %v3750_v1 = vpack.c.bf16 %v3126_v55, %v3122_v54  ;;  %v3169_v54 = vld [vmem:[%s14812_s25 + $0x1a38] sm:$0xff]  ;;  %v3951_v55 = vld [vmem:[%s17728_s1 + $0x2a8] sm:$0xff] }
 0x5f5   : > { %8082 = vmatprep.mubr.bf16.mxu1 %v9929_v3  ;;  %v3752_v3 = vpack.c.bf16 %v3128_v58, %v3124_v56  ;;  %v3959_v56 = vld [vmem:[%s17728_s1 + $0x2e8] sm:$0xff] }
 0x5fb   : > { %6539 = vmatmul.mubr.bf16.gmra.mrb[56].mxu0 %v9928_v6 }
 0x5fc   : > { %8083 = vmatmul.mubr.bf16.gmra.mrb[56].mxu1 %v9928_v6  ;;  %6548 = vmatprep.mubr.bf16.mxu0 %v9945_v7  ;;  %v3134_v6 = vld [vmem:[%s14812_s25 + $0x1920] sm:$0xff] }
 0x5fd   : > { %8092 = vmatprep.mubr.bf16.mxu1 %v9945_v7  ;;  %v3132_v7 = vld [vmem:[%s14812_s25 + $0x1910] sm:$0xff]  ;;  %v3754_v16 = vpack.c.bf16 %v3134_v6, %v3130_v5  ;;  %v9787_v5 = vcombine.high %v3951_v55, %v3959_v56  ;;  %v3173_v6 = vld [vmem:[%s14812_s25 + $0x1a58] sm:$0xff] }
 0x603   : > { %6549 = vmatmul.mubr.bf16.gmra.mrb[60].mxu0 %v9944_v10 }
 0x604   : > { %8093 = vmatmul.mubr.bf16.gmra.mrb[60].mxu1 %v9944_v10  ;;  %6591 = vmatprep.mubr.bf16.mxu0 %v9707_v11  ;;  %v3136_v10 = vld [vmem:[%s14812_s25 + $0x1930] sm:$0xff] }
 0x605   : > { %8135 = vmatprep.mubr.bf16.mxu1 %v9707_v11  ;;  %v3139_v11 = vld [vmem:[%s14812_s25 + $0x1948] sm:$0xff]  ;;  %v3756_v17 = vpack.c.bf16 %v3136_v10, %v3132_v7  ;;  %v3177_v7 = vld [vmem:[%s14812_s25 + $0x1a78] sm:$0xff] }
 0x606   : > { %v3777_v14 = vpack.c.bf16 %v3177_v7, %v3173_v6  ;;  %v3208_v7 = vld [vmem:[%s14812_s25 + $0x1b70] sm:$0xff] }
 0x60b   : > { %6592 = vmatmul.mubr.bf16.vlgmr.msra.gmra.mrb[0].mxu0 %v9706_v18 }
 0x60c   : > { %8136 = vmatmul.mubr.bf16.vlgmr.msra.gmra.mrb[0].mxu1 %v9706_v18  ;;  %6753 = vmatpush1.bf16.msra.mxu0 %v3738_v21  ;;  %v3759_v18 = vpack.c.bf16 %v3143_v12, %v3139_v11  ;;  %v3140_v21 = vld [vmem:[%s14812_s25 + $0x1950] sm:$0xff]  ;;  %v3170_v11 = vld [vmem:[%s14812_s25 + $0x1a40] sm:$0xff] }
 0x60d   : > { %8297 = vmatpush1.bf16.msra.mxu1 %v3740_v24  ;;  %6601 = vmatprep.mubr.bf16.mxu0 %v9723_v25  ;;  %v3147_v24 = vld [vmem:[%s14812_s25 + $0x1988] sm:$0xff]  ;;  %v3760_v31 = vpack.c.bf16 %v3144_v23, %v3140_v21  ;;  %v3174_v12 = vld [vmem:[%s14812_s25 + $0x1a60] sm:$0xff] }
 0x60e   : > { %8145 = vmatprep.mubr.bf16.mxu1 %v9723_v25  ;;  %6754 = vmatprep.subr.bf16.mxu0 %v3743_v29  ;;  %v3151_v25 = vld [vmem:[%s14812_s25 + $0x19a8] sm:$0xff] }
 0x60f   : > { %8298 = vmatprep.subr.bf16.mxu1 %v3745_v33  ;;  %v3943_v29 = vld [vmem:[%s17728_s1 + $0x268] sm:$0xff]  ;;  %v3763_v32 = vpack.c.bf16 %v3151_v25, %v3147_v24  ;;  %v3146_v33 = vld [vmem:[%s14812_s25 + $0x1980] sm:$0xff] }
 0x610   : > { %6755 = vmatpush1.bf16.msra.mxu0 %v3742_v36  ;;  %v9754_v36 = vcombine.low %v3919_v63, %v3927_v0  ;;  %v3762_v43 = vpack.c.bf16 %v3150_v34, %v3146_v33  ;;  %v9770_v63 = vcombine.low %v3935_v28, %v3943_v29  ;;  %v3975_v21 = vld [vmem:[%s17728_s1 + $0x368] sm:$0xff]  ;;  %v3178_v25 = vld [vmem:[%s14812_s25 + $0x1a80] sm:$0xff]  ;;  %v3189_v34 = vld [vmem:[%s14812_s25 + $0x1ad8] sm:$0xff] }
 0x611   : > { %8299 = vmatpush1.bf16.msra.mxu1 %v3744_v37  ;;  %6756 = vmatprep.subr.bf16.mxu0 %v3747_v40  ;;  %v3765_v37 = vpack.c.bf16 %v3153_v27, %v3149_v26  ;;  %v3159_v40 = vld [vmem:[%s14812_s25 + $0x19e8] sm:$0xff]  ;;  %v3182_v26 = vld [vmem:[%s14812_s25 + $0x1aa0] sm:$0xff]  ;;  %v3180_v27 = vld [vmem:[%s14812_s25 + $0x1a90] sm:$0xff]  ;;  %v9803_v33 = vcombine.high %v3967_v20, %v3975_v21 }
 0x612   : > { %8300 = vmatprep.subr.bf16.mxu1 %v3749_v2  ;;  %v9771_v2 = vcombine.high %v3935_v28, %v3943_v29  ;;  %v3767_v45 = vpack.c.bf16 %v3159_v40, %v3155_v39  ;;  %v9786_v28 = vcombine.low %v3951_v55, %v3959_v56  ;;  %v3186_v39 = vld [vmem:[%s14812_s25 + $0x1ac0] sm:$0xff]  ;;  %v9802_v55 = vcombine.low %v3967_v20, %v3975_v21 }
 0x613   : > { %6602 = vmatmul.mubr.bf16.gmra.mrb[4].mxu0 %v9722_v44  ;;  %v3190_v40 = vld [vmem:[%s14812_s25 + $0x1ae0] sm:$0xff] }
 0x614   : > { %8146 = vmatmul.mubr.bf16.gmra.mrb[4].mxu1 %v9722_v44  ;;  %6611 = vmatprep.mubr.bf16.mxu0 %v9739_v48  ;;  %v3764_v44 = vpack.c.bf16 %v3152_v38, %v3148_v35  ;;  %v3193_v35 = vld [vmem:[%s14812_s25 + $0x1af8] sm:$0xff] }
 0x615   : > { %8155 = vmatprep.mubr.bf16.mxu1 %v9739_v48  ;;  %6757 = vmatpush1.bf16.msra.mxu0 %v3746_v51  ;;  %v3156_v48 = vld [vmem:[%s14812_s25 + $0x19d0] sm:$0xff]  ;;  %v3163_v51 = vld [vmem:[%s14812_s25 + $0x1a08] sm:$0xff]  ;;  %v3785_v41 = vpack.c.bf16 %v3193_v35, %v3189_v34 }
 0x616   : > { %8301 = vmatpush1.bf16.msra.mxu1 %v3748_v52  ;;  %6758 = vmatprep.subr.bf16.mxu0 %v3751_v53  ;;  %v3167_v52 = vld [vmem:[%s14812_s25 + $0x1a28] sm:$0xff]  ;;  %v3165_v53 = vld [vmem:[%s14812_s25 + $0x1a18] sm:$0xff]  ;;  %v3768_v58 = vpack.c.bf16 %v3160_v50, %v3156_v48  ;;  %v3224_v35 = vld [vmem:[%s14812_s25 + $0x1bf0] sm:$0xff] }
 0x617   : > { %8302 = vmatprep.subr.bf16.mxu1 %v3753_v57  ;;  %v3766_v57 = vpack.c.bf16 %v3158_v47, %v3154_v46  ;;  %v3771_v59 = vpack.c.bf16 %v3167_v52, %v3163_v51  ;;  %v3773_v0 = vpack.c.bf16 %v3169_v54, %v3165_v53  ;;  %v3201_v46 = vld [vmem:[%s14812_s25 + $0x1b38] sm:$0xff]  ;;  %v3983_v47 = vld [vmem:[%s17728_s1 + $0x3a8] sm:$0xff]  ;;  %v3194_v52 = vld [vmem:[%s14812_s25 + $0x1b00] sm:$0xff] }
 0x618   : > { %v3991_v48 = vld [vmem:[%s17728_s1 + $0x3e8] sm:$0xff]  ;;  %v3198_v53 = vld [vmem:[%s14812_s25 + $0x1b20] sm:$0xff]  ;;  %v3196_v54 = vld [vmem:[%s14812_s25 + $0x1b10] sm:$0xff] }
 0x619   : > { %6759 = vmatpush1.bf16.msra.mxu0 %v3750_v1  ;;  %v3168_v1 = vld [vmem:[%s14812_s25 + $0x1a30] sm:$0xff]  ;;  %v9818_v20 = vcombine.low %v3983_v47, %v3991_v48 }
 0x61a   : > { %8303 = vmatpush1.bf16.msra.mxu1 %v3752_v3  ;;  %6760 = vmatprep.subr.bf16.mxu0 %v3755_v4  ;;  %v3171_v3 = vld [vmem:[%s14812_s25 + $0x1a48] sm:$0xff] }
 0x61b   : > { %6612 = vmatmul.mubr.bf16.gmra.mrb[8].mxu0 %v9738_v8  ;;  %8304 = vmatprep.subr.bf16.mxu1 %v3757_v9  ;;  %v3175_v4 = vld [vmem:[%s14812_s25 + $0x1a68] sm:$0xff]  ;;  %v3772_v9 = vpack.c.bf16 %v3168_v1, %v3164_v62  ;;  %v3209_v62 = vld [vmem:[%s14812_s25 + $0x1b78] sm:$0xff] }
 0x61c   : > { %8156 = vmatmul.mubr.bf16.gmra.mrb[8].mxu1 %v9738_v8  ;;  %6621 = vmatprep.mubr.bf16.mxu0 %v9755_v13  ;;  %v3770_v8 = vpack.c.bf16 %v3166_v61, %v3162_v60  ;;  %v3775_v10 = vpack.c.bf16 %v3175_v4, %v3171_v3  ;;  %v9819_v60 = vcombine.high %v3983_v47, %v3991_v48  ;;  %v3205_v61 = vld [vmem:[%s14812_s25 + $0x1b58] sm:$0xff]  ;;  %v3202_v3 = vld [vmem:[%s14812_s25 + $0x1b40] sm:$0xff]  ;;  %v4031_v47 = vld [vmem:[%s17728_s1 + $0x528] sm:$0xff] }
 0x61d   : > { %8165 = vmatprep.mubr.bf16.mxu1 %v9755_v13  ;;  %6761 = vmatpush1.bf16.msra.mxu0 %v3754_v16  ;;  %v3172_v13 = vld [vmem:[%s14812_s25 + $0x1a50] sm:$0xff]  ;;  %v3179_v16 = vld [vmem:[%s14812_s25 + $0x1a88] sm:$0xff]  ;;  %v3206_v4 = vld [vmem:[%s14812_s25 + $0x1b60] sm:$0xff]  ;;  %v3793_v6 = vpack.c.bf16 %v3209_v62, %v3205_v61 }
 0x61e   : > { %8305 = vmatpush1.bf16.msra.mxu1 %v3756_v17  ;;  %6762 = vmatprep.subr.bf16.mxu0 %v3759_v18  ;;  %v3183_v17 = vld [vmem:[%s14812_s25 + $0x1aa8] sm:$0xff]  ;;  %v3181_v18 = vld [vmem:[%s14812_s25 + $0x1a98] sm:$0xff]  ;;  %v3776_v23 = vpack.c.bf16 %v3176_v15, %v3172_v13 }
 0x61f   : > { %8306 = vmatprep.subr.bf16.mxu1 %v3761_v22  ;;  %v3774_v22 = vpack.c.bf16 %v3174_v12, %v3170_v11  ;;  %v3779_v24 = vpack.c.bf16 %v3183_v17, %v3179_v16  ;;  %v3781_v29 = vpack.c.bf16 %v3185_v19, %v3181_v18  ;;  %v3217_v11 = vld [vmem:[%s14812_s25 + $0x1bb8] sm:$0xff]  ;;  %v3999_v12 = vld [vmem:[%s17728_s1 + $0x428] sm:$0xff]  ;;  %v3210_v17 = vld [vmem:[%s14812_s25 + $0x1b80] sm:$0xff] }
 0x620   : > { %v4007_v13 = vld [vmem:[%s17728_s1 + $0x468] sm:$0xff]  ;;  %v3214_v18 = vld [vmem:[%s14812_s25 + $0x1ba0] sm:$0xff]  ;;  %v3212_v19 = vld [vmem:[%s14812_s25 + $0x1b90] sm:$0xff] }
 0x621   : > { %6763 = vmatpush1.bf16.msra.mxu0 %v3758_v30  ;;  %v3184_v30 = vld [vmem:[%s14812_s25 + $0x1ab0] sm:$0xff]  ;;  %v4039_v48 = vld [vmem:[%s17728_s1 + $0x568] sm:$0xff] }
 0x622   : > { %8307 = vmatpush1.bf16.msra.mxu1 %v3760_v31  ;;  %6764 = vmatprep.subr.bf16.mxu0 %v3763_v32  ;;  %v3187_v31 = vld [vmem:[%s14812_s25 + $0x1ac8] sm:$0xff] }
 0x623   : > { %6622 = vmatmul.mubr.bf16.gmra.mrb[12].mxu0 %v9754_v36  ;;  %8308 = vmatprep.subr.bf16.mxu1 %v3765_v37  ;;  %v3191_v32 = vld [vmem:[%s14812_s25 + $0x1ae8] sm:$0xff]  ;;  %v3780_v37 = vpack.c.bf16 %v3184_v30, %v3180_v27  ;;  %v3225_v27 = vld [vmem:[%s14812_s25 + $0x1bf8] sm:$0xff] }
 0x624   : > { %8166 = vmatmul.mubr.bf16.gmra.mrb[12].mxu1 %v9754_v36  ;;  %6631 = vmatprep.mubr.bf16.mxu0 %v9771_v2  ;;  %v3778_v36 = vpack.c.bf16 %v3182_v26, %v3178_v25  ;;  %v3783_v38 = vpack.c.bf16 %v3191_v32, %v3187_v31  ;;  %v9835_v25 = vcombine.high %v3999_v12, %v4007_v13  ;;  %v3221_v26 = vld [vmem:[%s14812_s25 + $0x1bd8] sm:$0xff]  ;;  %v3218_v31 = vld [vmem:[%s14812_s25 + $0x1bc0] sm:$0xff] }
 0x625   : > { %8175 = vmatprep.mubr.bf16.mxu1 %v9771_v2  ;;  %6765 = vmatpush1.bf16.msra.mxu0 %v3762_v43  ;;  %v3188_v2 = vld [vmem:[%s14812_s25 + $0x1ad0] sm:$0xff]  ;;  %v3195_v43 = vld [vmem:[%s14812_s25 + $0x1b08] sm:$0xff]  ;;  %v3222_v32 = vld [vmem:[%s14812_s25 + $0x1be0] sm:$0xff]  ;;  %v3801_v34 = vpack.c.bf16 %v3225_v27, %v3221_v26 }
 0x626   : > { %8309 = vmatpush1.bf16.msra.mxu1 %v3764_v44  ;;  %6766 = vmatprep.subr.bf16.mxu0 %v3767_v45  ;;  %v3199_v44 = vld [vmem:[%s14812_s25 + $0x1b28] sm:$0xff]  ;;  %v3197_v45 = vld [vmem:[%s14812_s25 + $0x1b18] sm:$0xff]  ;;  %v3784_v50 = vpack.c.bf16 %v3192_v42, %v3188_v2  ;;  %v3234_v26 = vld [vmem:[%s14812_s25 + $0x1c40] sm:$0xff] }
 0x627   : > { %8310 = vmatprep.subr.bf16.mxu1 %v3769_v49  ;;  %v3782_v49 = vpack.c.bf16 %v3190_v40, %v3186_v39  ;;  %v3787_v51 = vpack.c.bf16 %v3199_v44, %v3195_v43  ;;  %v3789_v56 = vpack.c.bf16 %v3201_v46, %v3197_v45  ;;  %v3233_v39 = vld [vmem:[%s14812_s25 + $0x1c38] sm:$0xff]  ;;  %v4015_v40 = vld [vmem:[%s17728_s1 + $0x4a8] sm:$0xff]  ;;  %v9834_v44 = vcombine.low %v3999_v12, %v4007_v13  ;;  %v3226_v12 = vld [vmem:[%s14812_s25 + $0x1c00] sm:$0xff] }
 0x628   : > { %v4023_v2 = vld [vmem:[%s17728_s1 + $0x4e8] sm:$0xff]  ;;  %v3230_v13 = vld [vmem:[%s14812_s25 + $0x1c20] sm:$0xff] }
 0x629   : > { %6767 = vmatpush1.bf16.msra.mxu0 %v3766_v57  ;;  %v3200_v57 = vld [vmem:[%s14812_s25 + $0x1b30] sm:$0xff]  ;;  %v9851_v46 = vcombine.high %v4015_v40, %v4023_v2  ;;  %v3238_v27 = vld [vmem:[%s14812_s25 + $0x1c60] sm:$0xff] }
 0x62a   : > { %8311 = vmatpush1.bf16.msra.mxu1 %v3768_v58  ;;  %6768 = vmatprep.subr.bf16.mxu0 %v3771_v59  ;;  %v3203_v58 = vld [vmem:[%s14812_s25 + $0x1b48] sm:$0xff] }
 0x62b   : > { %6632 = vmatmul.mubr.bf16.gmra.mrb[16].mxu0 %v9770_v63  ;;  %8312 = vmatprep.subr.bf16.mxu1 %v3773_v0  ;;  %v3207_v59 = vld [vmem:[%s14812_s25 + $0x1b68] sm:$0xff]  ;;  %v3788_v0 = vpack.c.bf16 %v3200_v57, %v3196_v54 }
 0x62c   : > { %8176 = vmatmul.mubr.bf16.gmra.mrb[16].mxu1 %v9770_v63  ;;  %6641 = vmatprep.mubr.bf16.mxu0 %v9787_v5  ;;  %v3786_v63 = vpack.c.bf16 %v3198_v53, %v3194_v52  ;;  %v3791_v1 = vpack.c.bf16 %v3207_v59, %v3203_v58  ;;  %v4055_v52 = vld [vmem:[%s17728_s1 + $0x5e8] sm:$0xff]  ;;  %v9866_v53 = vcombine.low %v4031_v47, %v4039_v48 }
 0x62d   : > { %8185 = vmatprep.mubr.bf16.mxu1 %v9787_v5  ;;  %6769 = vmatpush1.bf16.msra.mxu0 %v3770_v8  ;;  %v3204_v5 = vld [vmem:[%s14812_s25 + $0x1b50] sm:$0xff]  ;;  %v3211_v8 = vld [vmem:[%s14812_s25 + $0x1b88] sm:$0xff] }
 0x62e   : > { %8313 = vmatpush1.bf16.msra.mxu1 %v3772_v9  ;;  %6770 = vmatprep.subr.bf16.mxu0 %v3775_v10  ;;  %v3215_v9 = vld [vmem:[%s14812_s25 + $0x1ba8] sm:$0xff]  ;;  %v3213_v10 = vld [vmem:[%s14812_s25 + $0x1b98] sm:$0xff]  ;;  %v3792_v15 = vpack.c.bf16 %v3208_v7, %v3204_v5 }
 0x62f   : > { %8314 = vmatprep.subr.bf16.mxu1 %v3777_v14  ;;  %v3790_v14 = vpack.c.bf16 %v3206_v4, %v3202_v3  ;;  %v3795_v16 = vpack.c.bf16 %v3215_v9, %v3211_v8  ;;  %v3797_v21 = vpack.c.bf16 %v3217_v11, %v3213_v10  ;;  %v4079_v59 = vld [vmem:[%s17728_s1 + $0x6a8] sm:$0xff]  ;;  %v3872_v8 = vld [vmem:[%s17728_s1 + $0x30] sm:$0xff] }
 0x630   : > { %v4111_v4 = vld [vmem:[%s17728_s1 + $0x7a8] sm:$0xff]  ;;  %v3880_v9 = vld [vmem:[%s17728_s1 + $0x70] sm:$0xff] }
 0x631   : > { %6771 = vmatpush1.bf16.msra.mxu0 %v3774_v22  ;;  %v3216_v22 = vld [vmem:[%s14812_s25 + $0x1bb0] sm:$0xff]  ;;  %v4119_v5 = vld [vmem:[%s17728_s1 + $0x7e8] sm:$0xff]  ;;  %v9709_v11 = vcombine.high %v3872_v8, %v3880_v9 }
 0x632   : > { %8315 = vmatpush1.bf16.msra.mxu1 %v3776_v23  ;;  %6772 = vmatprep.subr.bf16.mxu0 %v3779_v24  ;;  %v3219_v23 = vld [vmem:[%s14812_s25 + $0x1bc8] sm:$0xff]  ;;  %v9947_v7 = vcombine.high %v4111_v4, %v4119_v5  ;;  %v9946_v10 = vcombine.low %v4111_v4, %v4119_v5  ;;  %v3258_v5 = vld [vmem:[%s14812_s25 + $0x1d00] sm:$0xff] }
 0x633   : > { %6642 = vmatmul.mubr.bf16.gmra.mrb[20].mxu0 %v9786_v28  ;;  %8316 = vmatprep.subr.bf16.mxu1 %v3781_v29  ;;  %v3223_v24 = vld [vmem:[%s14812_s25 + $0x1be8] sm:$0xff]  ;;  %v3796_v29 = vpack.c.bf16 %v3216_v22, %v3212_v19  ;;  %v3237_v22 = vld [vmem:[%s14812_s25 + $0x1c58] sm:$0xff] }
 0x634   : > { %8186 = vmatmul.mubr.bf16.gmra.mrb[20].mxu1 %v9786_v28  ;;  %6651 = vmatprep.mubr.bf16.mxu0 %v9803_v33  ;;  %v3794_v28 = vpack.c.bf16 %v3214_v18, %v3210_v17  ;;  %v3799_v30 = vpack.c.bf16 %v3223_v24, %v3219_v23  ;;  %v3896_v17 = vld [vmem:[%s17728_s1 + $0xf0] sm:$0xff]  ;;  %v9708_v18 = vcombine.low %v3872_v8, %v3880_v9  ;;  %v3235_v19 = vld [vmem:[%s14812_s25 + $0x1c48] sm:$0xff]  ;;  %v3241_v23 = vld [vmem:[%s14812_s25 + $0x1c78] sm:$0xff] }
 0x635   : > { %8195 = vmatprep.mubr.bf16.mxu1 %v9803_v33  ;;  %6773 = vmatpush1.bf16.msra.mxu0 %v3778_v36  ;;  %v3220_v33 = vld [vmem:[%s14812_s25 + $0x1bd0] sm:$0xff]  ;;  %v3227_v36 = vld [vmem:[%s14812_s25 + $0x1c08] sm:$0xff] }
 0x636   : > { %8317 = vmatpush1.bf16.msra.mxu1 %v3780_v37  ;;  %6774 = vmatprep.subr.bf16.mxu0 %v3783_v38  ;;  %v3231_v37 = vld [vmem:[%s14812_s25 + $0x1c28] sm:$0xff]  ;;  %v3229_v38 = vld [vmem:[%s14812_s25 + $0x1c18] sm:$0xff]  ;;  %v3800_v42 = vpack.c.bf16 %v3224_v35, %v3220_v33  ;;  %v3809_v33 = vpack.c.bf16 %v3241_v23, %v3237_v22  ;;  %v3272_v23 = vld [vmem:[%s14812_s25 + $0x1d70] sm:$0xff] }
 0x637   : > { %8318 = vmatprep.subr.bf16.mxu1 %v3785_v41  ;;  %v3798_v41 = vpack.c.bf16 %v3222_v32, %v3218_v31  ;;  %v3803_v43 = vpack.c.bf16 %v3231_v37, %v3227_v36  ;;  %v3805_v45 = vpack.c.bf16 %v3233_v39, %v3229_v38  ;;  %v3243_v31 = vld [vmem:[%s14812_s25 + $0x1c88] sm:$0xff]  ;;  %v3249_v35 = vld [vmem:[%s14812_s25 + $0x1cb8] sm:$0xff]  ;;  %v3806_v36 = vpack.c.bf16 %v3238_v27, %v3234_v26  ;;  %v3904_v38 = vld [vmem:[%s17728_s1 + $0x130] sm:$0xff] }
 0x638   : > { %v3247_v32 = vld [vmem:[%s14812_s25 + $0x1ca8] sm:$0xff]  ;;  %v3912_v39 = vld [vmem:[%s17728_s1 + $0x170] sm:$0xff]  ;;  %v3277_v26 = vld [vmem:[%s14812_s25 + $0x1d98] sm:$0xff] }
 0x639   : > { %6775 = vmatpush1.bf16.msra.mxu0 %v3782_v49  ;;  %v9850_v49 = vcombine.low %v4015_v40, %v4023_v2  ;;  %v3811_v40 = vpack.c.bf16 %v3247_v32, %v3243_v31  ;;  %v9740_v8 = vcombine.low %v3904_v38, %v3912_v39  ;;  %v3281_v27 = vld [vmem:[%s14812_s25 + $0x1db8] sm:$0xff] }
 0x63a   : > { %8319 = vmatpush1.bf16.msra.mxu1 %v3784_v50  ;;  %6776 = vmatprep.subr.bf16.mxu0 %v3787_v51  ;;  %v9867_v50 = vcombine.high %v4031_v47, %v4039_v48  ;;  %v4047_v51 = vld [vmem:[%s17728_s1 + $0x5a8] sm:$0xff]  ;;  %v9741_v48 = vcombine.high %v3904_v38, %v3912_v39  ;;  %v3280_v38 = vld [vmem:[%s14812_s25 + $0x1db0] sm:$0xff] }
 0x63b   : > { %6652 = vmatmul.mubr.bf16.gmra.mrb[24].mxu0 %v9802_v55  ;;  %8320 = vmatprep.subr.bf16.mxu1 %v3789_v56  ;;  %v9883_v54 = vcombine.high %v4047_v51, %v4055_v52  ;;  %v4071_v56 = vld [vmem:[%s17728_s1 + $0x668] sm:$0xff]  ;;  %v9882_v57 = vcombine.low %v4047_v51, %v4055_v52 }
 0x63c   : > { %8196 = vmatmul.mubr.bf16.gmra.mrb[24].mxu1 %v9802_v55  ;;  %6661 = vmatprep.mubr.bf16.mxu0 %v9819_v60  ;;  %v4063_v55 = vld [vmem:[%s17728_s1 + $0x628] sm:$0xff] }
 0x63d   : > { %8205 = vmatprep.mubr.bf16.mxu1 %v9819_v60  ;;  %6777 = vmatpush1.bf16.msra.mxu0 %v3786_v63  ;;  %v9899_v58 = vcombine.high %v4063_v55, %v4071_v56  ;;  %v4087_v60 = vld [vmem:[%s17728_s1 + $0x6e8] sm:$0xff]  ;;  %v9898_v61 = vcombine.low %v4063_v55, %v4071_v56  ;;  %v3254_v55 = vld [vmem:[%s14812_s25 + $0x1ce0] sm:$0xff]  ;;  %v3252_v56 = vld [vmem:[%s14812_s25 + $0x1cd0] sm:$0xff] }
 0x63e   : > { %8321 = vmatpush1.bf16.msra.mxu1 %v3788_v0  ;;  %6778 = vmatprep.subr.bf16.mxu0 %v3791_v1  ;;  %v9915_v62 = vcombine.high %v4079_v59, %v4087_v60  ;;  %v4095_v63 = vld [vmem:[%s17728_s1 + $0x728] sm:$0xff]  ;;  %v9914_v1 = vcombine.low %v4079_v59, %v4087_v60 }
 0x63f   : > { %8322 = vmatprep.subr.bf16.mxu1 %v3793_v6  ;;  %v4103_v0 = vld [vmem:[%s17728_s1 + $0x768] sm:$0xff] }
 0x640   : > { %v9931_v3 = vcombine.high %v4095_v63, %v4103_v0  ;;  %v9930_v6 = vcombine.low %v4095_v63, %v4103_v0  ;;  %v3255_v47 = vld [vmem:[%s14812_s25 + $0x1ce8] sm:$0xff]  ;;  %v3920_v63 = vld [vmem:[%s17728_s1 + $0x1b0] sm:$0xff] }
 0x641   : > { %6779 = vmatpush1.bf16.msra.mxu0 %v3790_v14  ;;  %v3228_v14 = vld [vmem:[%s14812_s25 + $0x1c10] sm:$0xff]  ;;  %v3259_v59 = vld [vmem:[%s14812_s25 + $0x1d08] sm:$0xff] }
 0x642   : > { %8323 = vmatpush1.bf16.msra.mxu1 %v3792_v15  ;;  %6780 = vmatprep.subr.bf16.mxu0 %v3795_v16  ;;  %v3232_v15 = vld [vmem:[%s14812_s25 + $0x1c30] sm:$0xff]  ;;  %v3263_v60 = vld [vmem:[%s14812_s25 + $0x1d28] sm:$0xff] }
 0x643   : > { %6662 = vmatmul.mubr.bf16.gmra.mrb[28].mxu0 %v9818_v20  ;;  %8324 = vmatprep.subr.bf16.mxu1 %v3797_v21  ;;  %v3888_v16 = vld [vmem:[%s17728_s1 + $0xb0] sm:$0xff]  ;;  %v3802_v21 = vpack.c.bf16 %v3230_v13, %v3226_v12  ;;  %v3804_v24 = vpack.c.bf16 %v3232_v15, %v3228_v14  ;;  %v3819_v4 = vpack.c.bf16 %v3263_v60, %v3259_v59  ;;  %v3271_v12 = vld [vmem:[%s14812_s25 + $0x1d68] sm:$0xff]  ;;  %v3269_v14 = vld [vmem:[%s14812_s25 + $0x1d58] sm:$0xff] }
 0x644   : > { %8206 = vmatmul.mubr.bf16.gmra.mrb[28].mxu1 %v9818_v20  ;;  %6671 = vmatprep.mubr.bf16.mxu0 %v9835_v25  ;;  %v3239_v20 = vld [vmem:[%s14812_s25 + $0x1c68] sm:$0xff]  ;;  %v3928_v0 = vld [vmem:[%s17728_s1 + $0x1f0] sm:$0xff]  ;;  %v3273_v15 = vld [vmem:[%s14812_s25 + $0x1d78] sm:$0xff] }
 0x645   : > { %8215 = vmatprep.mubr.bf16.mxu1 %v9835_v25  ;;  %6781 = vmatpush1.bf16.msra.mxu0 %v3794_v28  ;;  %v9725_v25 = vcombine.high %v3888_v16, %v3896_v17  ;;  %v3236_v28 = vld [vmem:[%s14812_s25 + $0x1c50] sm:$0xff]  ;;  %v9757_v13 = vcombine.high %v3920_v63, %v3928_v0  ;;  %v3825_v22 = vpack.c.bf16 %v3273_v15, %v3269_v14  ;;  %v3283_v39 = vld [vmem:[%s14812_s25 + $0x1dc8] sm:$0xff]  ;;  %v3290_v60 = vld [vmem:[%s14812_s25 + $0x1e00] sm:$0xff] }
 0x646   : > { %8325 = vmatpush1.bf16.msra.mxu1 %v3796_v29  ;;  %6782 = vmatprep.subr.bf16.mxu0 %v3799_v30  ;;  %v3807_v29 = vpack.c.bf16 %v3239_v20, %v3235_v19  ;;  %v3240_v30 = vld [vmem:[%s14812_s25 + $0x1c70] sm:$0xff]  ;;  %v3266_v19 = vld [vmem:[%s14812_s25 + $0x1d40] sm:$0xff] }
 0x647   : > { %8326 = vmatprep.subr.bf16.mxu1 %v3801_v34  ;;  %v3245_v34 = vld [vmem:[%s14812_s25 + $0x1c98] sm:$0xff]  ;;  %v3808_v37 = vpack.c.bf16 %v3240_v30, %v3236_v28  ;;  %v3270_v20 = vld [vmem:[%s14812_s25 + $0x1d60] sm:$0xff]  ;;  %v3936_v28 = vld [vmem:[%s17728_s1 + $0x230] sm:$0xff] }
 0x648   : > { %v3813_v2 = vpack.c.bf16 %v3249_v35, %v3245_v34  ;;  %v3822_v30 = vpack.c.bf16 %v3270_v20, %v3266_v19  ;;  %v3278_v34 = vld [vmem:[%s14812_s25 + $0x1da0] sm:$0xff]  ;;  %v3276_v35 = vld [vmem:[%s14812_s25 + $0x1d90] sm:$0xff]  ;;  %v3313_v19 = vld [vmem:[%s14812_s25 + $0x1eb8] sm:$0xff] }
 0x649   : > { %6783 = vmatpush1.bf16.msra.mxu0 %v3798_v41  ;;  %v3242_v41 = vld [vmem:[%s14812_s25 + $0x1c80] sm:$0xff]  ;;  %v3304_v15 = vld [vmem:[%s14812_s25 + $0x1e70] sm:$0xff] }
 0x64a   : > { %8327 = vmatpush1.bf16.msra.mxu1 %v3800_v42  ;;  %6945 = vmatprep.subr.bf16.mxu0 %v3803_v43  ;;  %v3246_v42 = vld [vmem:[%s14812_s25 + $0x1ca0] sm:$0xff]  ;;  %v3244_v43 = vld [vmem:[%s14812_s25 + $0x1c90] sm:$0xff] }
 0x64b   : > { %6672 = vmatmul.mubr.bf16.gmra.mrb[32].mxu0 %v9834_v44  ;;  %8489 = vmatprep.subr.bf16.mxu1 %v3805_v45  ;;  %v3248_v45 = vld [vmem:[%s14812_s25 + $0x1cb0] sm:$0xff]  ;;  %v3810_v51 = vpack.c.bf16 %v3246_v42, %v3242_v41  ;;  %v3285_v41 = vld [vmem:[%s14812_s25 + $0x1dd8] sm:$0xff] }
 0x64c   : > { %8216 = vmatmul.mubr.bf16.gmra.mrb[32].mxu1 %v9834_v44  ;;  %6681 = vmatprep.mubr.bf16.mxu0 %v9851_v46  ;;  %v9724_v44 = vcombine.low %v3888_v16, %v3896_v17  ;;  %v3812_v52 = vpack.c.bf16 %v3248_v45, %v3244_v43  ;;  %v3289_v42 = vld [vmem:[%s14812_s25 + $0x1df8] sm:$0xff]  ;;  %v3968_v20 = vld [vmem:[%s17728_s1 + $0x330] sm:$0xff] }
 0x64d   : > { %8225 = vmatprep.mubr.bf16.mxu1 %v9851_v46  ;;  %v3251_v46 = vld [vmem:[%s14812_s25 + $0x1cc8] sm:$0xff] }
 0x653   : > { %6682 = vmatmul.mubr.bf16.gmra.mrb[36].mxu0 %v9850_v49 }
 0x654   : > { %8226 = vmatmul.mubr.bf16.gmra.mrb[36].mxu1 %v9850_v49  ;;  %6691 = vmatprep.mubr.bf16.mxu0 %v9867_v50  ;;  %v3253_v49 = vld [vmem:[%s14812_s25 + $0x1cd8] sm:$0xff] }
 0x655   : > { %8235 = vmatprep.mubr.bf16.mxu1 %v9867_v50  ;;  %v3257_v50 = vld [vmem:[%s14812_s25 + $0x1cf8] sm:$0xff] }
 0x65b   : > { %6692 = vmatmul.mubr.bf16.gmra.mrb[40].mxu0 %v9866_v53 }
 0x65c   : > { %8236 = vmatmul.mubr.bf16.gmra.mrb[40].mxu1 %v9866_v53  ;;  %6701 = vmatprep.mubr.bf16.mxu0 %v9883_v54  ;;  %v3815_v53 = vpack.c.bf16 %v3255_v47, %v3251_v46  ;;  %v3282_v46 = vld [vmem:[%s14812_s25 + $0x1dc0] sm:$0xff] }
 0x65d   : > { %8245 = vmatprep.mubr.bf16.mxu1 %v9883_v54  ;;  %v3250_v54 = vld [vmem:[%s14812_s25 + $0x1cc0] sm:$0xff] }
 0x65e   : > { %v3286_v47 = vld [vmem:[%s14812_s25 + $0x1de0] sm:$0xff] }
 0x663   : > { %6702 = vmatmul.mubr.bf16.gmra.mrb[44].mxu0 %v9882_v57 }
 0x664   : > { %8246 = vmatmul.mubr.bf16.gmra.mrb[44].mxu1 %v9882_v57  ;;  %6711 = vmatprep.mubr.bf16.mxu0 %v9899_v58  ;;  %v3817_v57 = vpack.c.bf16 %v3257_v50, %v3253_v49  ;;  %v3833_v49 = vpack.c.bf16 %v3289_v42, %v3285_v41  ;;  %v3288_v50 = vld [vmem:[%s14812_s25 + $0x1df0] sm:$0xff] }
 0x665   : > { %8255 = vmatprep.mubr.bf16.mxu1 %v9899_v58  ;;  %v3256_v58 = vld [vmem:[%s14812_s25 + $0x1cf0] sm:$0xff] }
 0x666   : > { %v3320_v42 = vld [vmem:[%s14812_s25 + $0x1ef0] sm:$0xff] }
 0x66b   : > { %6712 = vmatmul.mubr.bf16.gmra.mrb[48].mxu0 %v9898_v61 }
 0x66c   : > { %8256 = vmatmul.mubr.bf16.gmra.mrb[48].mxu1 %v9898_v61  ;;  %6721 = vmatprep.mubr.bf16.mxu0 %v9915_v62  ;;  %v3261_v61 = vld [vmem:[%s14812_s25 + $0x1d18] sm:$0xff] }
 0x66d   : > { %8265 = vmatprep.mubr.bf16.mxu1 %v9915_v62  ;;  %v3265_v62 = vld [vmem:[%s14812_s25 + $0x1d38] sm:$0xff] }
 0x66e   : > { %v3821_v9 = vpack.c.bf16 %v3265_v62, %v3261_v61  ;;  %v3294_v61 = vld [vmem:[%s14812_s25 + $0x1e20] sm:$0xff]  ;;  %v3292_v62 = vld [vmem:[%s14812_s25 + $0x1e10] sm:$0xff] }
 0x673   : > { %6722 = vmatmul.mubr.bf16.gmra.mrb[52].mxu0 %v9914_v1 }
 0x674   : > { %8266 = vmatmul.mubr.bf16.gmra.mrb[52].mxu1 %v9914_v1  ;;  %6731 = vmatprep.mubr.bf16.mxu0 %v9931_v3  ;;  %v3814_v1 = vpack.c.bf16 %v3254_v55, %v3250_v54  ;;  %v3297_v54 = vld [vmem:[%s14812_s25 + $0x1e38] sm:$0xff]  ;;  %v3952_v55 = vld [vmem:[%s17728_s1 + $0x2b0] sm:$0xff] }
 0x675   : > { %8275 = vmatprep.mubr.bf16.mxu1 %v9931_v3  ;;  %v3816_v3 = vpack.c.bf16 %v3256_v58, %v3252_v56  ;;  %v3960_v56 = vld [vmem:[%s17728_s1 + $0x2f0] sm:$0xff] }
 0x67b   : > { %6732 = vmatmul.mubr.bf16.gmra.mrb[56].mxu0 %v9930_v6 }
 0x67c   : > { %8276 = vmatmul.mubr.bf16.gmra.mrb[56].mxu1 %v9930_v6  ;;  %6741 = vmatprep.mubr.bf16.mxu0 %v9947_v7  ;;  %v3262_v6 = vld [vmem:[%s14812_s25 + $0x1d20] sm:$0xff] }
 0x67d   : > { %8285 = vmatprep.mubr.bf16.mxu1 %v9947_v7  ;;  %v3260_v7 = vld [vmem:[%s14812_s25 + $0x1d10] sm:$0xff]  ;;  %v3818_v16 = vpack.c.bf16 %v3262_v6, %v3258_v5  ;;  %v9789_v5 = vcombine.high %v3952_v55, %v3960_v56  ;;  %v3301_v6 = vld [vmem:[%s14812_s25 + $0x1e58] sm:$0xff] }
 0x683   : > { %6742 = vmatmul.mubr.bf16.gmra.mrb[60].mxu0 %v9946_v10 }
 0x684   : > { %8286 = vmatmul.mubr.bf16.gmra.mrb[60].mxu1 %v9946_v10  ;;  %6784 = vmatprep.mubr.bf16.mxu0 %v9709_v11  ;;  %v3264_v10 = vld [vmem:[%s14812_s25 + $0x1d30] sm:$0xff] }
 0x685   : > { %8328 = vmatprep.mubr.bf16.mxu1 %v9709_v11  ;;  %v3267_v11 = vld [vmem:[%s14812_s25 + $0x1d48] sm:$0xff]  ;;  %v3820_v17 = vpack.c.bf16 %v3264_v10, %v3260_v7  ;;  %v3305_v7 = vld [vmem:[%s14812_s25 + $0x1e78] sm:$0xff] }
 0x686   : > { %v3841_v14 = vpack.c.bf16 %v3305_v7, %v3301_v6  ;;  %v3336_v7 = vld [vmem:[%s14812_s25 + $0x1f70] sm:$0xff] }
 0x68b   : > { %6785 = vmatmul.mubr.bf16.vlgmr.msra.gmra.mrb[0].mxu0 %v9708_v18 }
 0x68c   : > { %8329 = vmatmul.mubr.bf16.vlgmr.msra.gmra.mrb[0].mxu1 %v9708_v18  ;;  %6946 = vmatpush1.bf16.msra.mxu0 %v3802_v21  ;;  %v3823_v18 = vpack.c.bf16 %v3271_v12, %v3267_v11  ;;  %v3268_v21 = vld [vmem:[%s14812_s25 + $0x1d50] sm:$0xff]  ;;  %v3298_v11 = vld [vmem:[%s14812_s25 + $0x1e40] sm:$0xff] }
 0x68d   : > { %8490 = vmatpush1.bf16.msra.mxu1 %v3804_v24  ;;  %6794 = vmatprep.mubr.bf16.mxu0 %v9725_v25  ;;  %v3275_v24 = vld [vmem:[%s14812_s25 + $0x1d88] sm:$0xff]  ;;  %v3824_v31 = vpack.c.bf16 %v3272_v23, %v3268_v21  ;;  %v3302_v12 = vld [vmem:[%s14812_s25 + $0x1e60] sm:$0xff]  ;;  %v3976_v21 = vld [vmem:[%s17728_s1 + $0x370] sm:$0xff] }
 0x68e   : > { %8338 = vmatprep.mubr.bf16.mxu1 %v9725_v25  ;;  %6947 = vmatprep.subr.bf16.mxu0 %v3807_v29  ;;  %v3279_v25 = vld [vmem:[%s14812_s25 + $0x1da8] sm:$0xff]  ;;  %v3944_v29 = vld [vmem:[%s17728_s1 + $0x270] sm:$0xff] }
 0x68f   : > { %8491 = vmatprep.subr.bf16.mxu1 %v3809_v33  ;;  %v3827_v32 = vpack.c.bf16 %v3279_v25, %v3275_v24  ;;  %v3274_v33 = vld [vmem:[%s14812_s25 + $0x1d80] sm:$0xff] }
 0x690   : > { %6948 = vmatpush1.bf16.msra.mxu0 %v3806_v36  ;;  %v9756_v36 = vcombine.low %v3920_v63, %v3928_v0  ;;  %v3826_v43 = vpack.c.bf16 %v3278_v34, %v3274_v33  ;;  %v9772_v63 = vcombine.low %v3936_v28, %v3944_v29  ;;  %v3306_v25 = vld [vmem:[%s14812_s25 + $0x1e80] sm:$0xff]  ;;  %v9805_v33 = vcombine.high %v3968_v20, %v3976_v21  ;;  %v3317_v34 = vld [vmem:[%s14812_s25 + $0x1ed8] sm:$0xff] }
 0x691   : > { %8492 = vmatpush1.bf16.msra.mxu1 %v3808_v37  ;;  %6949 = vmatprep.subr.bf16.mxu0 %v3811_v40  ;;  %v3829_v37 = vpack.c.bf16 %v3281_v27, %v3277_v26  ;;  %v3287_v40 = vld [vmem:[%s14812_s25 + $0x1de8] sm:$0xff]  ;;  %v3310_v26 = vld [vmem:[%s14812_s25 + $0x1ea0] sm:$0xff]  ;;  %v3308_v27 = vld [vmem:[%s14812_s25 + $0x1e90] sm:$0xff] }
 0x692   : > { %8493 = vmatprep.subr.bf16.mxu1 %v3813_v2  ;;  %v9773_v2 = vcombine.high %v3936_v28, %v3944_v29  ;;  %v3831_v45 = vpack.c.bf16 %v3287_v40, %v3283_v39  ;;  %v9788_v28 = vcombine.low %v3952_v55, %v3960_v56  ;;  %v3314_v39 = vld [vmem:[%s14812_s25 + $0x1ec0] sm:$0xff]  ;;  %v9804_v55 = vcombine.low %v3968_v20, %v3976_v21 }
 0x693   : > { %6795 = vmatmul.mubr.bf16.gmra.mrb[4].mxu0 %v9724_v44  ;;  %v3318_v40 = vld [vmem:[%s14812_s25 + $0x1ee0] sm:$0xff] }
 0x694   : > { %8339 = vmatmul.mubr.bf16.gmra.mrb[4].mxu1 %v9724_v44  ;;  %6804 = vmatprep.mubr.bf16.mxu0 %v9741_v48  ;;  %v3828_v44 = vpack.c.bf16 %v3280_v38, %v3276_v35  ;;  %v3321_v35 = vld [vmem:[%s14812_s25 + $0x1ef8] sm:$0xff] }
 0x695   : > { %8348 = vmatprep.mubr.bf16.mxu1 %v9741_v48  ;;  %6950 = vmatpush1.bf16.msra.mxu0 %v3810_v51  ;;  %v3284_v48 = vld [vmem:[%s14812_s25 + $0x1dd0] sm:$0xff]  ;;  %v3291_v51 = vld [vmem:[%s14812_s25 + $0x1e08] sm:$0xff]  ;;  %v3849_v41 = vpack.c.bf16 %v3321_v35, %v3317_v34 }
 0x696   : > { %8494 = vmatpush1.bf16.msra.mxu1 %v3812_v52  ;;  %6951 = vmatprep.subr.bf16.mxu0 %v3815_v53  ;;  %v3295_v52 = vld [vmem:[%s14812_s25 + $0x1e28] sm:$0xff]  ;;  %v3293_v53 = vld [vmem:[%s14812_s25 + $0x1e18] sm:$0xff]  ;;  %v3832_v58 = vpack.c.bf16 %v3288_v50, %v3284_v48  ;;  %v3992_v48 = vld [vmem:[%s17728_s1 + $0x3f0] sm:$0xff] }
 0x697   : > { %8495 = vmatprep.subr.bf16.mxu1 %v3817_v57  ;;  %v3830_v57 = vpack.c.bf16 %v3286_v47, %v3282_v46  ;;  %v3835_v59 = vpack.c.bf16 %v3295_v52, %v3291_v51  ;;  %v3837_v0 = vpack.c.bf16 %v3297_v54, %v3293_v53  ;;  %v3329_v46 = vld [vmem:[%s14812_s25 + $0x1f38] sm:$0xff]  ;;  %v3984_v47 = vld [vmem:[%s17728_s1 + $0x3b0] sm:$0xff]  ;;  %v3322_v52 = vld [vmem:[%s14812_s25 + $0x1f00] sm:$0xff] }
 0x698   : > { %v3326_v53 = vld [vmem:[%s14812_s25 + $0x1f20] sm:$0xff]  ;;  %v3324_v54 = vld [vmem:[%s14812_s25 + $0x1f10] sm:$0xff]  ;;  %v9820_v20 = vcombine.low %v3984_v47, %v3992_v48 }
 0x699   : > { %6952 = vmatpush1.bf16.msra.mxu0 %v3814_v1  ;;  %v3296_v1 = vld [vmem:[%s14812_s25 + $0x1e30] sm:$0xff] }
 0x69a   : > { %8496 = vmatpush1.bf16.msra.mxu1 %v3816_v3  ;;  %6953 = vmatprep.subr.bf16.mxu0 %v3819_v4  ;;  %v3299_v3 = vld [vmem:[%s14812_s25 + $0x1e48] sm:$0xff]  ;;  %v3348_v34 = vld [vmem:[%s14812_s25 + $0x1fd0] sm:$0xff] }
 0x69b   : > { %6805 = vmatmul.mubr.bf16.gmra.mrb[8].mxu0 %v9740_v8  ;;  %8497 = vmatprep.subr.bf16.mxu1 %v3821_v9  ;;  %v3303_v4 = vld [vmem:[%s14812_s25 + $0x1e68] sm:$0xff]  ;;  %v3836_v9 = vpack.c.bf16 %v3296_v1, %v3292_v62  ;;  %v3337_v62 = vld [vmem:[%s14812_s25 + $0x1f78] sm:$0xff]  ;;  %v3352_v35 = vld [vmem:[%s14812_s25 + $0x1ff0] sm:$0xff] }
 0x69c   : > { %8349 = vmatmul.mubr.bf16.gmra.mrb[8].mxu1 %v9740_v8  ;;  %6814 = vmatprep.mubr.bf16.mxu0 %v9757_v13  ;;  %v3834_v8 = vpack.c.bf16 %v3294_v61, %v3290_v60  ;;  %v3839_v10 = vpack.c.bf16 %v3303_v4, %v3299_v3  ;;  %v9821_v60 = vcombine.high %v3984_v47, %v3992_v48  ;;  %v3333_v61 = vld [vmem:[%s14812_s25 + $0x1f58] sm:$0xff]  ;;  %v3330_v3 = vld [vmem:[%s14812_s25 + $0x1f40] sm:$0xff] }
 0x69d   : > { %8358 = vmatprep.mubr.bf16.mxu1 %v9757_v13  ;;  %6954 = vmatpush1.bf16.msra.mxu0 %v3818_v16  ;;  %v3300_v13 = vld [vmem:[%s14812_s25 + $0x1e50] sm:$0xff]  ;;  %v3307_v16 = vld [vmem:[%s14812_s25 + $0x1e88] sm:$0xff]  ;;  %v3334_v4 = vld [vmem:[%s14812_s25 + $0x1f60] sm:$0xff]  ;;  %v3857_v6 = vpack.c.bf16 %v3337_v62, %v3333_v61 }
 0x69e   : > { %8498 = vmatpush1.bf16.msra.mxu1 %v3820_v17  ;;  %6955 = vmatprep.subr.bf16.mxu0 %v3823_v18  ;;  %v3311_v17 = vld [vmem:[%s14812_s25 + $0x1ea8] sm:$0xff]  ;;  %v3309_v18 = vld [vmem:[%s14812_s25 + $0x1e98] sm:$0xff]  ;;  %v3840_v23 = vpack.c.bf16 %v3304_v15, %v3300_v13  ;;  %v4008_v13 = vld [vmem:[%s17728_s1 + $0x470] sm:$0xff] }
 0x69f   : > { %8499 = vmatprep.subr.bf16.mxu1 %v3825_v22  ;;  %v3838_v22 = vpack.c.bf16 %v3302_v12, %v3298_v11  ;;  %v3843_v24 = vpack.c.bf16 %v3311_v17, %v3307_v16  ;;  %v3845_v29 = vpack.c.bf16 %v3313_v19, %v3309_v18  ;;  %v3345_v11 = vld [vmem:[%s14812_s25 + $0x1fb8] sm:$0xff]  ;;  %v4000_v12 = vld [vmem:[%s17728_s1 + $0x430] sm:$0xff]  ;;  %v3338_v17 = vld [vmem:[%s14812_s25 + $0x1f80] sm:$0xff] }
 0x6a0   : > { %v3342_v18 = vld [vmem:[%s14812_s25 + $0x1fa0] sm:$0xff]  ;;  %v3340_v19 = vld [vmem:[%s14812_s25 + $0x1f90] sm:$0xff]  ;;  %v4127_v61 = vld [vmem:[%s17729_s2 + $0x28] sm:$0xff] }
 0x6a1   : > { %6956 = vmatpush1.bf16.msra.mxu0 %v3822_v30  ;;  %v3312_v30 = vld [vmem:[%s14812_s25 + $0x1eb0] sm:$0xff] }
 0x6a2   : > { %8500 = vmatpush1.bf16.msra.mxu1 %v3824_v31  ;;  %6957 = vmatprep.subr.bf16.mxu0 %v3827_v32  ;;  %v3315_v31 = vld [vmem:[%s14812_s25 + $0x1ec8] sm:$0xff] }
 0x6a3   : > { %6815 = vmatmul.mubr.bf16.gmra.mrb[12].mxu0 %v9756_v36  ;;  %8501 = vmatprep.subr.bf16.mxu1 %v3829_v37  ;;  %v3319_v32 = vld [vmem:[%s14812_s25 + $0x1ee8] sm:$0xff]  ;;  %v3844_v37 = vpack.c.bf16 %v3312_v30, %v3308_v27  ;;  %v3353_v27 = vld [vmem:[%s14812_s25 + $0x1ff8] sm:$0xff] }
 0x6a4   : > { %8359 = vmatmul.mubr.bf16.gmra.mrb[12].mxu1 %v9756_v36  ;;  %6824 = vmatprep.mubr.bf16.mxu0 %v9773_v2  ;;  %v3842_v36 = vpack.c.bf16 %v3310_v26, %v3306_v25  ;;  %v3847_v38 = vpack.c.bf16 %v3319_v32, %v3315_v31  ;;  %v9837_v25 = vcombine.high %v4000_v12, %v4008_v13  ;;  %v3349_v26 = vld [vmem:[%s14812_s25 + $0x1fd8] sm:$0xff]  ;;  %v3346_v31 = vld [vmem:[%s14812_s25 + $0x1fc0] sm:$0xff] }
 0x6a5   : > { %8368 = vmatprep.mubr.bf16.mxu1 %v9773_v2  ;;  %6958 = vmatpush1.bf16.msra.mxu0 %v3826_v43  ;;  %v3316_v2 = vld [vmem:[%s14812_s25 + $0x1ed0] sm:$0xff]  ;;  %v3323_v43 = vld [vmem:[%s14812_s25 + $0x1f08] sm:$0xff]  ;;  %v3350_v32 = vld [vmem:[%s14812_s25 + $0x1fe0] sm:$0xff] }
 0x6a6   : > { %8502 = vmatpush1.bf16.msra.mxu1 %v3828_v44  ;;  %6959 = vmatprep.subr.bf16.mxu0 %v3831_v45  ;;  %v3327_v44 = vld [vmem:[%s14812_s25 + $0x1f28] sm:$0xff]  ;;  %v3325_v45 = vld [vmem:[%s14812_s25 + $0x1f18] sm:$0xff]  ;;  %v3848_v50 = vpack.c.bf16 %v3320_v42, %v3316_v2  ;;  %v4040_v42 = vld [vmem:[%s17728_s1 + $0x570] sm:$0xff] }
 0x6a7   : > { %8503 = vmatprep.subr.bf16.mxu1 %v3833_v49  ;;  %v3846_v49 = vpack.c.bf16 %v3318_v40, %v3314_v39  ;;  %v3851_v51 = vpack.c.bf16 %v3327_v44, %v3323_v43  ;;  %v3853_v56 = vpack.c.bf16 %v3329_v46, %v3325_v45  ;;  %v3864_v39 = vpack.c.bf16 %v3352_v35, %v3348_v34  ;;  %v4048_v45 = vld [vmem:[%s17728_s1 + $0x5b0] sm:$0xff]  ;;  %v3905_v35 = vld [vmem:[%s17728_s1 + $0x138] sm:$0xff] }
 0x6a8   : > { %v9836_v40 = vcombine.low %v4000_v12, %v4008_v13  ;;  %v4056_v46 = vld [vmem:[%s17728_s1 + $0x5f0] sm:$0xff]  ;;  %v4135_v13 = vld [vmem:[%s17729_s2 + $0x68] sm:$0xff] }
 0x6a9   : > { %6960 = vmatpush1.bf16.msra.mxu0 %v3830_v57  ;;  %v3328_v57 = vld [vmem:[%s14812_s25 + $0x1f30] sm:$0xff]  ;;  %v9885_v48 = vcombine.high %v4048_v45, %v4056_v46 }
 0x6aa   : > { %8504 = vmatpush1.bf16.msra.mxu1 %v3832_v58  ;;  %6961 = vmatprep.subr.bf16.mxu0 %v3835_v59  ;;  %v3331_v58 = vld [vmem:[%s14812_s25 + $0x1f48] sm:$0xff]  ;;  %v4120_v12 = vld [vmem:[%s17728_s1 + $0x7f0] sm:$0xff] }
 0x6ab   : > { %6825 = vmatmul.mubr.bf16.gmra.mrb[16].mxu0 %v9772_v63  ;;  %8505 = vmatprep.subr.bf16.mxu1 %v3837_v0  ;;  %v3335_v59 = vld [vmem:[%s14812_s25 + $0x1f68] sm:$0xff]  ;;  %v3852_v0 = vpack.c.bf16 %v3328_v57, %v3324_v54  ;;  %v9884_v54 = vcombine.low %v4048_v45, %v4056_v46  ;;  %v4125_v57 = vld [vmem:[%s17729_s2 + $0x18] sm:$0xff]  ;;  %v4144_v34 = vld [vmem:[%s17729_s2 + $0xb0] sm:$0xff] }
 0x6ac   : > { %8369 = vmatmul.mubr.bf16.gmra.mrb[16].mxu1 %v9772_v63  ;;  %6834 = vmatprep.mubr.bf16.mxu0 %v9789_v5  ;;  %v3850_v63 = vpack.c.bf16 %v3326_v53, %v3322_v52  ;;  %v3855_v1 = vpack.c.bf16 %v3335_v59, %v3331_v58  ;;  %v11518_v52 = vmov 0   ;;  %v4124_v53 = vld [vmem:[%s17729_s2 + $0x10] sm:$0xff]  ;;  %v4150_v46 = vld [vmem:[%s17729_s2 + $0xe0] sm:$0xff] }
 0x6ad   : > { %8378 = vmatprep.mubr.bf16.mxu1 %v9789_v5  ;;  %6962 = vmatpush1.bf16.msra.mxu0 %v3834_v8  ;;  %v3332_v5 = vld [vmem:[%s14812_s25 + $0x1f50] sm:$0xff]  ;;  %v3339_v8 = vld [vmem:[%s14812_s25 + $0x1f88] sm:$0xff] }
 0x6ae   : > { %8506 = vmatpush1.bf16.msra.mxu1 %v3836_v9  ;;  %6963 = vmatprep.subr.bf16.mxu0 %v3839_v10  ;;  %v3343_v9 = vld [vmem:[%s14812_s25 + $0x1fa8] sm:$0xff]  ;;  %v3341_v10 = vld [vmem:[%s14812_s25 + $0x1f98] sm:$0xff]  ;;  %v3856_v15 = vpack.c.bf16 %v3336_v7, %v3332_v5  ;;  %v4080_v58 = vld [vmem:[%s17728_s1 + $0x6b0] sm:$0xff] }
 0x6af   : > { %8507 = vmatprep.subr.bf16.mxu1 %v3841_v14  ;;  %v3854_v14 = vpack.c.bf16 %v3334_v4, %v3330_v3  ;;  %v3859_v16 = vpack.c.bf16 %v3343_v9, %v3339_v8  ;;  %v3861_v21 = vpack.c.bf16 %v3345_v11, %v3341_v10  ;;  %11264 = vset.pattern.permute.xlu0 %v11518_v52  ;;  %v4088_v59 = vld [vmem:[%s17728_s1 + $0x6f0] sm:$0xff]  ;;  %v4131_v5 = vld [vmem:[%s17729_s2 + $0x48] sm:$0xff]  ;;  %v4130_v7 = vld [vmem:[%s17729_s2 + $0x40] sm:$0xff] }
 0x6b0   : > { %11265 = vset.pattern.permute.xlu1 %v11518_v52  ;;  %v4096_v3 = vld [vmem:[%s17728_s1 + $0x730] sm:$0xff]  ;;  %v4133_v9 = vld [vmem:[%s17729_s2 + $0x58] sm:$0xff] }
 0x6b1   : > { %6964 = vmatpush1.bf16.msra.mxu0 %v3838_v22  ;;  %v3344_v22 = vld [vmem:[%s14812_s25 + $0x1fb0] sm:$0xff]  ;;  %4166 = vperm.xlu1 %11265, %v4124_v53  }
 0x6b2   : > { %8508 = vmatpush1.bf16.msra.mxu1 %v3840_v23  ;;  %6965 = vmatprep.subr.bf16.mxu0 %v3843_v24  ;;  %v3347_v23 = vld [vmem:[%s14812_s25 + $0x1fc8] sm:$0xff]  ;;  %v4104_v4 = vld [vmem:[%s17728_s1 + $0x770] sm:$0xff] }
 0x6b3   : > { %6835 = vmatmul.mubr.bf16.gmra.mrb[20].mxu0 %v9788_v28  ;;  %8509 = vmatprep.subr.bf16.mxu1 %v3845_v29  ;;  %v3351_v24 = vld [vmem:[%s14812_s25 + $0x1fe8] sm:$0xff]  ;;  %v3860_v29 = vpack.c.bf16 %v3344_v22, %v3340_v19  ;;  %v9933_v8 = vcombine.high %v4096_v3, %v4104_v4  ;;  %v4132_v10 = vld [vmem:[%s17729_s2 + $0x50] sm:$0xff]  ;;  %v3873_v19 = vld [vmem:[%s17728_s1 + $0x38] sm:$0xff] }
 0x6b4   : > { %8379 = vmatmul.mubr.bf16.gmra.mrb[20].mxu1 %v9788_v28  ;;  %6844 = vmatprep.mubr.bf16.mxu0 %v9805_v33  ;;  %v3858_v28 = vpack.c.bf16 %v3342_v18, %v3338_v17  ;;  %v3863_v30 = vpack.c.bf16 %v3351_v24, %v3347_v23  ;;  %v4112_v11 = vld [vmem:[%s17728_s1 + $0x7b0] sm:$0xff]  ;;  %v4137_v17 = vld [vmem:[%s17729_s2 + $0x78] sm:$0xff]  ;;  %v4138_v23 = vld [vmem:[%s17729_s2 + $0x80] sm:$0xff] }
 0x6b5   : > { %8388 = vmatprep.mubr.bf16.mxu1 %v9805_v33  ;;  %6966 = vmatpush1.bf16.msra.mxu0 %v3842_v36  ;;  %v3865_v33 = vpack.c.bf16 %v3353_v27, %v3349_v26  ;;  %v4016_v36 = vld [vmem:[%s17728_s1 + $0x4b0] sm:$0xff]  ;;  %v9948_v22 = vcombine.low %v4112_v11, %v4120_v12  ;;  %v3889_v27 = vld [vmem:[%s17728_s1 + $0xb8] sm:$0xff] }
 0x6b6   : > { %8510 = vmatpush1.bf16.msra.mxu1 %v3844_v37  ;;  %6967 = vmatprep.subr.bf16.mxu0 %v3847_v38  ;;  %v4024_v37 = vld [vmem:[%s17728_s1 + $0x4f0] sm:$0xff]  ;;  %v3862_v38 = vpack.c.bf16 %v3350_v32, %v3346_v31  ;;  %v4142_v31 = vld [vmem:[%s17729_s2 + $0xa0] sm:$0xff] }
 0x6b7   : > { %8511 = vmatprep.subr.bf16.mxu1 %v3849_v41  ;;  %v9853_v2 = vcombine.high %v4016_v36, %v4024_v37  ;;  %v4032_v41 = vld [vmem:[%s17728_s1 + $0x530] sm:$0xff]  ;;  %v9852_v43 = vcombine.low %v4016_v36, %v4024_v37  ;;  %4171 = vperm.xlu1 %11265, %v4125_v57   ;;  %v3913_v36 = vld [vmem:[%s17728_s1 + $0x178] sm:$0xff]  ;;  %v4147_v37 = vld [vmem:[%s17729_s2 + $0xc8] sm:$0xff] }
 0x6b8   : > { %v9869_v44 = vcombine.high %v4032_v41, %v4040_v42  ;;  %v9868_v47 = vcombine.low %v4032_v41, %v4040_v42  ;;  %v4136_v18 = vld [vmem:[%s17729_s2 + $0x70] sm:$0xff]  ;;  %v3921_v42 = vld [vmem:[%s17728_s1 + $0x1b8] sm:$0xff]  ;;  %v9742_v45 = vcombine.low %v3905_v35, %v3913_v36 }
 0x6b9   : > { %6968 = vmatpush1.bf16.msra.mxu0 %v3846_v49  ;;  %v4122_v49 = vld [vmem:[%s17729_s2] sm:$0xff]  ;;  %v4140_v26 = vld [vmem:[%s17729_s2 + $0x90] sm:$0xff] }
 0x6ba   : > { %8512 = vmatpush1.bf16.msra.mxu1 %v3848_v50  ;;  %6969 = vmatprep.subr.bf16.mxu0 %v3851_v51  ;;  %v4064_v50 = vld [vmem:[%s17728_s1 + $0x630] sm:$0xff] }
 0x6bb   : > { %6845 = vmatmul.mubr.bf16.gmra.mrb[24].mxu0 %v9804_v55  ;;  %8513 = vmatprep.subr.bf16.mxu1 %v3853_v56  ;;  %v4072_v51 = vld [vmem:[%s17728_s1 + $0x670] sm:$0xff] }
 0x6bc   : > { %8389 = vmatmul.mubr.bf16.gmra.mrb[24].mxu1 %v9804_v55  ;;  %6854 = vmatprep.mubr.bf16.mxu0 %v9821_v60  ;;  %v4123_v55 = vld [vmem:[%s17729_s2 + $0x8] sm:$0xff]  ;;  %v9901_v56 = vcombine.high %v4064_v50, %v4072_v51  ;;  %v9900_v62 = vcombine.low %v4064_v50, %v4072_v51  ;;  %v4148_v41 = vld [vmem:[%s17729_s2 + $0xd0] sm:$0xff]  ;;  %v3937_v50 = vld [vmem:[%s17728_s1 + $0x238] sm:$0xff] }
 0x6bd   : > { %8398 = vmatprep.mubr.bf16.mxu1 %v9821_v60  ;;  %6970 = vmatpush1.bf16.msra.mxu0 %v3850_v63  ;;  %v4126_v60 = vld [vmem:[%s17729_s2 + $0x20] sm:$0xff]  ;;  %v9917_v63 = vcombine.high %v4080_v58, %v4088_v59  ;;  %v3945_v51 = vld [vmem:[%s17728_s1 + $0x278] sm:$0xff] }
 0x6be   : > { %8514 = vmatpush1.bf16.msra.mxu1 %v3852_v0  ;;  %6971 = vmatprep.subr.bf16.mxu0 %v3855_v1  ;;  %v4129_v0 = vld [vmem:[%s17729_s2 + $0x38] sm:$0xff]  ;;  %v4128_v1 = vld [vmem:[%s17729_s2 + $0x30] sm:$0xff]  ;;  %v9775_v53 = vcombine.high %v3937_v50, %v3945_v51 }
 0x6bf   : > { %8515 = vmatprep.subr.bf16.mxu1 %v3857_v6  ;;  %4156 = vperm.xlu0 %11264, %v4122_v49   ;;  %v9916_v6 = vcombine.low %v4080_v58, %v4088_v59  ;;  %v4152_v49 = vld [vmem:[%s17729_s2 + $0xf0] sm:$0xff]  ;;  %v3969_v58 = vld [vmem:[%s17728_s1 + $0x338] sm:$0xff] }
 0x6c0   : > { %4181 = vperm.xlu1 %11265, %v4127_v61   ;;  %v3977_v59 = vld [vmem:[%s17728_s1 + $0x378] sm:$0xff] }
 0x6c1   : > { %6972 = vmatpush1.bf16.msra.mxu0 %v3854_v14  ;;  %v9932_v14 = vcombine.low %v4096_v3, %v4104_v4  ;;  %v9807_v61 = vcombine.high %v3969_v58, %v3977_v59  ;;  %v4001_v3 = vld [vmem:[%s17728_s1 + $0x438] sm:$0xff] }
 0x6c2   : > { %8516 = vmatpush1.bf16.msra.mxu1 %v3856_v15  ;;  %6973 = vmatprep.subr.bf16.mxu0 %v3859_v16  ;;  %v4134_v15 = vld [vmem:[%s17729_s2 + $0x60] sm:$0xff]  ;;  %v9949_v16 = vcombine.high %v4112_v11, %v4120_v12  ;;  %v4009_v4 = vld [vmem:[%s17728_s1 + $0x478] sm:$0xff] }
 0x6c3   : > { %6855 = vmatmul.mubr.bf16.gmra.mrb[28].mxu0 %v9820_v20  ;;  %8517 = vmatprep.subr.bf16.mxu1 %v3861_v21  ;;  %v4139_v21 = vld [vmem:[%s17729_s2 + $0x88] sm:$0xff]  ;;  %v4033_v11 = vld [vmem:[%s17728_s1 + $0x538] sm:$0xff] }
 0x6c4   : > { %8399 = vmatmul.mubr.bf16.gmra.mrb[28].mxu1 %v9820_v20  ;;  %6864 = vmatprep.mubr.bf16.mxu0 %v9837_v25  ;;  %v3881_v20 = vld [vmem:[%s17728_s1 + $0x78] sm:$0xff] }
 0x6c5   : > { %8408 = vmatprep.mubr.bf16.mxu1 %v9837_v25  ;;  %6974 = vmatpush1.bf16.msra.mxu0 %v3858_v28  ;;  %v9711_v24 = vcombine.high %v3873_v19, %v3881_v20  ;;  %v4141_v25 = vld [vmem:[%s17729_s2 + $0x98] sm:$0xff] }
 0x6c6   : > { %8518 = vmatpush1.bf16.msra.mxu1 %v3860_v29  ;;  %6975 = vmatprep.subr.bf16.mxu0 %v3863_v30  ;;  %v3897_v28 = vld [vmem:[%s17728_s1 + $0xf8] sm:$0xff]  ;;  %v4143_v29 = vld [vmem:[%s17729_s2 + $0xa8] sm:$0xff]  ;;  %v9710_v30 = vcombine.low %v3873_v19, %v3881_v20 }
 0x6c7   : > { %8519 = vmatprep.subr.bf16.mxu1 %v3865_v33  ;;  %4161 = vperm.xlu0 %11264, %v4123_v55   ;;  %v9727_v32 = vcombine.high %v3889_v27, %v3897_v28  ;;  %v4145_v33 = vld [vmem:[%s17729_s2 + $0xb8] sm:$0xff] }
 0x6c8   : > { %4191 = vperm.xlu1 %11265, %v4129_v0   ;;  %v3961_v55 = vld [vmem:[%s17728_s1 + $0x2f8] sm:$0xff]  ;;  %v9806_v0 = vcombine.low %v3969_v58, %v3977_v59 }
 0x6c9   : > { %6976 = vmatpush1.bf16.msra.mxu0 %v3862_v38  ;;  %v9726_v38 = vcombine.low %v3889_v27, %v3897_v28  ;;  %v4041_v12 = vld [vmem:[%s17728_s1 + $0x578] sm:$0xff] }
 0x6ca   : > { %8520 = vmatpush1.bf16.msra.mxu1 %v3864_v39  ;;  %v4146_v39 = vld [vmem:[%s17729_s2 + $0xc0] sm:$0xff]  ;;  %v4065_v19 = vld [vmem:[%s17728_s1 + $0x638] sm:$0xff] }
 0x6cb   : > { %6865 = vmatmul.mubr.bf16.gmra.mrb[32].mxu0 %v9836_v40  ;;  %4176 = vperm.xlu0 %11264, %v4126_v60   ;;  %v4073_v20 = vld [vmem:[%s17728_s1 + $0x678] sm:$0xff] }
 0x6cc   : > { %8409 = vmatmul.mubr.bf16.gmra.mrb[32].mxu1 %v9836_v40  ;;  %6874 = vmatprep.mubr.bf16.mxu0 %v9853_v2  ;;  %v9743_v40 = vcombine.high %v3905_v35, %v3913_v36  ;;  %v4097_v27 = vld [vmem:[%s17728_s1 + $0x738] sm:$0xff] }
 0x6cd   : > { %8418 = vmatprep.mubr.bf16.mxu1 %v9853_v2  ;;  %4201 = vperm.xlu1 %11265, %v4131_v5   ;;  %v4149_v2 = vld [vmem:[%s17729_s2 + $0xd8] sm:$0xff] }
 0x6ce   : > { %v4105_v28 = vld [vmem:[%s17728_s1 + $0x778] sm:$0xff] }
 0x6cf   : > { %4186 = vperm.xlu0 %11264, %v4128_v1  }
 0x6d1   : > { %4211 = vperm.xlu1 %11265, %v4133_v9   ;;  %v9838_v9 = vcombine.low %v4001_v3, %v4009_v4 }
 0x6d3   : > { %6875 = vmatmul.mubr.bf16.gmra.mrb[36].mxu0 %v9852_v43  ;;  %4196 = vperm.xlu0 %11264, %v4130_v7   ;;  %v4017_v7 = vld [vmem:[%s17728_s1 + $0x4b8] sm:$0xff] }
 0x6d4   : > { %8419 = vmatmul.mubr.bf16.gmra.mrb[36].mxu1 %v9852_v43  ;;  %6884 = vmatprep.mubr.bf16.mxu0 %v9869_v44  ;;  %v3929_v43 = vld [vmem:[%s17728_s1 + $0x1f8] sm:$0xff] }
 0x6d5   : > { %8428 = vmatprep.mubr.bf16.mxu1 %v9869_v44  ;;  %4221 = vperm.xlu1 %11265, %v4135_v13   ;;  %v4151_v44 = vld [vmem:[%s17729_s2 + $0xe8] sm:$0xff]  ;;  %v9758_v52 = vcombine.low %v3921_v42, %v3929_v43 }
 0x6d7   : > { %4206 = vperm.xlu0 %11264, %v4132_v10  }
 0x6d9   : > { %4231 = vperm.xlu1 %11265, %v4137_v17   ;;  %v9870_v17 = vcombine.low %v4033_v11, %v4041_v12 }
 0x6db   : > { %6885 = vmatmul.mubr.bf16.gmra.mrb[40].mxu0 %v9868_v47  ;;  %4216 = vperm.xlu0 %11264, %v4134_v15   ;;  %v4049_v15 = vld [vmem:[%s17728_s1 + $0x5b8] sm:$0xff] }
 0x6dc   : > { %8429 = vmatmul.mubr.bf16.gmra.mrb[40].mxu1 %v9868_v47  ;;  %6894 = vmatprep.mubr.bf16.mxu0 %v9885_v48  ;;  %v9759_v47 = vcombine.high %v3921_v42, %v3929_v43 }
 0x6dd   : > { %8438 = vmatprep.mubr.bf16.mxu1 %v9885_v48  ;;  %4241 = vperm.xlu1 %11265, %v4139_v21   ;;  %v4153_v48 = vld [vmem:[%s17729_s2 + $0xf8] sm:$0xff] }
 0x6df   : > { %4226 = vperm.xlu0 %11264, %v4136_v18  }
 0x6e1   : > { %4251 = vperm.xlu1 %11265, %v4141_v25   ;;  %v9902_v25 = vcombine.low %v4065_v19, %v4073_v20 }
 0x6e3   : > { %6895 = vmatmul.mubr.bf16.gmra.mrb[44].mxu0 %v9884_v54  ;;  %4236 = vperm.xlu0 %11264, %v4138_v23   ;;  %v4081_v23 = vld [vmem:[%s17728_s1 + $0x6b8] sm:$0xff] }
 0x6e4   : > { %8439 = vmatmul.mubr.bf16.gmra.mrb[44].mxu1 %v9884_v54  ;;  %6904 = vmatprep.mubr.bf16.mxu0 %v9901_v56  ;;  %v3953_v54 = vld [vmem:[%s17728_s1 + $0x2b8] sm:$0xff] }
 0x6e5   : > { %8448 = vmatprep.mubr.bf16.mxu1 %v9901_v56  ;;  %4261 = vperm.xlu1 %11265, %v4143_v29   ;;  %v9774_v56 = vcombine.low %v3937_v50, %v3945_v51  ;;  %v9791_v57 = vcombine.high %v3953_v54, %v3961_v55  ;;  %v9790_v60 = vcombine.low %v3953_v54, %v3961_v55 }
 0x6e7   : > { %4246 = vperm.xlu0 %11264, %v4140_v26  }
 0x6e9   : > { %4271 = vperm.xlu1 %11265, %v4145_v33   ;;  %v9934_v33 = vcombine.low %v4097_v27, %v4105_v28 }
 0x6eb   : > { %6905 = vmatmul.mubr.bf16.gmra.mrb[48].mxu0 %v9900_v62  ;;  %4256 = vperm.xlu0 %11264, %v4142_v31   ;;  %v4113_v31 = vld [vmem:[%s17728_s1 + $0x7b8] sm:$0xff] }
 0x6ec   : > { %8449 = vmatmul.mubr.bf16.gmra.mrb[48].mxu1 %v9900_v62  ;;  %6914 = vmatprep.mubr.bf16.mxu0 %v9917_v63  ;;  %v3985_v62 = vld [vmem:[%s17728_s1 + $0x3b8] sm:$0xff] }
 0x6ed   : > { %8458 = vmatprep.mubr.bf16.mxu1 %v9917_v63  ;;  %4281 = vperm.xlu1 %11265, %v4147_v37   ;;  %v3993_v63 = vld [vmem:[%s17728_s1 + $0x3f8] sm:$0xff] }
 0x6ee   : > { %v9823_v1 = vcombine.high %v3985_v62, %v3993_v63  ;;  %v9822_v5 = vcombine.low %v3985_v62, %v3993_v63 }
 0x6ef   : > { %4266 = vperm.xlu0 %11264, %v4144_v34  }
 0x6f1   : > { %4291 = vperm.xlu1 %11265, %v4149_v2  }
 0x6f3   : > { %6915 = vmatmul.mubr.bf16.gmra.mrb[52].mxu0 %v9916_v6  ;;  %4276 = vperm.xlu0 %11264, %v4146_v39  }
 0x6f4   : > { %8459 = vmatmul.mubr.bf16.gmra.mrb[52].mxu1 %v9916_v6  ;;  %6924 = vmatprep.mubr.bf16.mxu0 %v9933_v8  ;;  %v9839_v6 = vcombine.high %v4001_v3, %v4009_v4 }
 0x6f5   : > { %8468 = vmatprep.mubr.bf16.mxu1 %v9933_v8  ;;  %4301 = vperm.xlu1 %11265, %v4151_v44   ;;  %v4025_v8 = vld [vmem:[%s17728_s1 + $0x4f8] sm:$0xff] }
 0x6f6   : > { %v9855_v10 = vcombine.high %v4017_v7, %v4025_v8  ;;  %v9854_v13 = vcombine.low %v4017_v7, %v4025_v8 }
 0x6f7   : > { %4286 = vperm.xlu0 %11264, %v4148_v41  }
 0x6f9   : > { %4311 = vperm.xlu1 %11265, %v4153_v48  }
 0x6fb   : > { %6925 = vmatmul.mubr.bf16.gmra.mrb[56].mxu0 %v9932_v14  ;;  %4296 = vperm.xlu0 %11264, %v4150_v46  }
 0x6fc   : > { %8469 = vmatmul.mubr.bf16.gmra.mrb[56].mxu1 %v9932_v14  ;;  %6934 = vmatprep.mubr.bf16.mxu0 %v9949_v16  ;;  %v9871_v14 = vcombine.high %v4033_v11, %v4041_v12 }
 0x6fd   : > { %8478 = vmatprep.mubr.bf16.mxu1 %v9949_v16  ;;  %v4057_v16 = vld [vmem:[%s17728_s1 + $0x5f8] sm:$0xff] }
 0x6fe   : > { %v9887_v18 = vcombine.high %v4049_v15, %v4057_v16  ;;  %v9886_v21 = vcombine.low %v4049_v15, %v4057_v16 }
 0x6ff   : > { %4306 = vperm.xlu0 %11264, %v4152_v49  }
 0x703   : > { %6935 = vmatmul.mubr.bf16.gmra.mrb[60].mxu0 %v9948_v22 }
 0x704   : > { %8479 = vmatmul.mubr.bf16.gmra.mrb[60].mxu1 %v9948_v22  ;;  %6977 = vmatprep.mubr.bf16.mxu0 %v9711_v24  ;;  %v9903_v22 = vcombine.high %v4065_v19, %v4073_v20 }
 0x705   : > { %8521 = vmatprep.mubr.bf16.mxu1 %v9711_v24  ;;  %v4089_v24 = vld [vmem:[%s17728_s1 + $0x6f8] sm:$0xff] }
 0x706   : > { %v9919_v26 = vcombine.high %v4081_v23, %v4089_v24  ;;  %v9918_v29 = vcombine.low %v4081_v23, %v4089_v24 }
 0x70b   : > { %6978 = vmatmul.mubr.bf16.vlgmr.msra.gmra.mrb[0].mxu0 %v9710_v30 }
 0x70c   : > { %8522 = vmatmul.mubr.bf16.vlgmr.msra.gmra.mrb[0].mxu1 %v9710_v30  ;;  %6987 = vmatprep.mubr.bf16.mxu0 %v9727_v32  ;;  %v9935_v30 = vcombine.high %v4097_v27, %v4105_v28 }
 0x70d   : > { %8531 = vmatprep.mubr.bf16.mxu1 %v9727_v32  ;;  %v4121_v32 = vld [vmem:[%s17728_s1 + $0x7f8] sm:$0xff] }
 0x70e   : > { %v9951_v34 = vcombine.high %v4113_v31, %v4121_v32  ;;  %v9950_v35 = vcombine.low %v4113_v31, %v4121_v32 }
 0x713   : > { %6988 = vmatmul.mubr.bf16.gmra.mrb[4].mxu0 %v9726_v38 }
 0x714   : > { %8532 = vmatmul.mubr.bf16.gmra.mrb[4].mxu1 %v9726_v38  ;;  %6997 = vmatprep.mubr.bf16.mxu0 %v9743_v40 }
 0x715   : > { %8541 = vmatprep.mubr.bf16.mxu1 %v9743_v40 }
 0x71b   : > { %6998 = vmatmul.mubr.bf16.gmra.mrb[8].mxu0 %v9742_v45 }
 0x71c   : > { %8542 = vmatmul.mubr.bf16.gmra.mrb[8].mxu1 %v9742_v45  ;;  %7007 = vmatprep.mubr.bf16.mxu0 %v9759_v47 }
 0x71d   : > { %8551 = vmatprep.mubr.bf16.mxu1 %v9759_v47 }
 0x723   : > { %7008 = vmatmul.mubr.bf16.gmra.mrb[12].mxu0 %v9758_v52 }
 0x724   : > { %8552 = vmatmul.mubr.bf16.gmra.mrb[12].mxu1 %v9758_v52  ;;  %7017 = vmatprep.mubr.bf16.mxu0 %v9775_v53 }
 0x725   : > { %8561 = vmatprep.mubr.bf16.mxu1 %v9775_v53 }
 0x72b   : > { %7018 = vmatmul.mubr.bf16.gmra.mrb[16].mxu0 %v9774_v56 }
 0x72c   : > { %8562 = vmatmul.mubr.bf16.gmra.mrb[16].mxu1 %v9774_v56  ;;  %7027 = vmatprep.mubr.bf16.mxu0 %v9791_v57 }
 0x72d   : > { %8571 = vmatprep.mubr.bf16.mxu1 %v9791_v57 }
 0x730   : > { %v4167_v39 = vpop.permute.xlu1 %4166 }
 0x733   : > { %7028 = vmatmul.mubr.bf16.gmra.mrb[20].mxu0 %v9790_v60 }
 0x734   : > { %8572 = vmatmul.mubr.bf16.gmra.mrb[20].mxu1 %v9790_v60  ;;  %7037 = vmatprep.mubr.bf16.mxu0 %v9807_v61 }
 0x735   : > { %8581 = vmatprep.mubr.bf16.mxu1 %v9807_v61 }
 0x736   : > { %v4172_v54 = vpop.permute.xlu1 %4171 }
 0x73b   : > { %7038 = vmatmul.mubr.bf16.gmra.mrb[24].mxu0 %v9806_v0 }
 0x73c   : > { %8582 = vmatmul.mubr.bf16.gmra.mrb[24].mxu1 %v9806_v0  ;;  %7047 = vmatprep.mubr.bf16.mxu0 %v9823_v1 }
 0x73d   : > { %8591 = vmatprep.mubr.bf16.mxu1 %v9823_v1 }
 0x73e   : > { %v4157_v36 = vpop.permute.xlu0 %4156 }
 0x73f   : > { %v4182_v8 = vpop.permute.xlu1 %4181 }
 0x743   : > { %7048 = vmatmul.mubr.bf16.gmra.mrb[28].mxu0 %v9822_v5 }
 0x744   : > { %8592 = vmatmul.mubr.bf16.gmra.mrb[28].mxu1 %v9822_v5  ;;  %7057 = vmatprep.mubr.bf16.mxu0 %v9839_v6 }
 0x745   : > { %8601 = vmatprep.mubr.bf16.mxu1 %v9839_v6 }
 0x746   : > { %v4162_v37 = vpop.permute.xlu0 %4161 }
 0x74b   : > { %7058 = vmatmul.mubr.bf16.gmra.mrb[32].mxu0 %v9838_v9 }
 0x74c   : > { %8602 = vmatmul.mubr.bf16.gmra.mrb[32].mxu1 %v9838_v9  ;;  %7067 = vmatprep.mubr.bf16.mxu0 %v9855_v10  ;;  %v4177_v9 = vpop.permute.xlu0 %4176 }
 0x74d   : > { %8611 = vmatprep.mubr.bf16.mxu1 %v9855_v10 }
 0x750   : > { %v4187_v27 = vpop.permute.xlu0 %4186 }
 0x753   : > { %7068 = vmatmul.mubr.bf16.gmra.mrb[36].mxu0 %v9854_v13 }
 0x754   : > { %8612 = vmatmul.mubr.bf16.gmra.mrb[36].mxu1 %v9854_v13  ;;  %7077 = vmatprep.mubr.bf16.mxu0 %v9871_v14 }
 0x755   : > { %8621 = vmatprep.mubr.bf16.mxu1 %v9871_v14 }
 0x75b   : > { %7078 = vmatmul.mubr.bf16.gmra.mrb[40].mxu0 %v9870_v17 }
 0x75c   : > { %8622 = vmatmul.mubr.bf16.gmra.mrb[40].mxu1 %v9870_v17  ;;  %7087 = vmatprep.mubr.bf16.mxu0 %v9887_v18 }
 0x75d   : > { %8631 = vmatprep.mubr.bf16.mxu1 %v9887_v18 }
 0x763   : > { %7088 = vmatmul.mubr.bf16.gmra.mrb[44].mxu0 %v9886_v21 }
 0x764   : > { %8632 = vmatmul.mubr.bf16.gmra.mrb[44].mxu1 %v9886_v21  ;;  %7097 = vmatprep.mubr.bf16.mxu0 %v9903_v22 }
 0x765   : > { %8641 = vmatprep.mubr.bf16.mxu1 %v9903_v22 }
 0x76b   : > { %7098 = vmatmul.mubr.bf16.gmra.mrb[48].mxu0 %v9902_v25 }
 0x76c   : > { %8642 = vmatmul.mubr.bf16.gmra.mrb[48].mxu1 %v9902_v25  ;;  %7107 = vmatprep.mubr.bf16.mxu0 %v9919_v26 }
 0x76d   : > { %8651 = vmatprep.mubr.bf16.mxu1 %v9919_v26  ;;  %v4192_v26 = vpop.permute.xlu1 %4191 }
 0x773   : > { %7108 = vmatmul.mubr.bf16.gmra.mrb[52].mxu0 %v9918_v29 }
 0x774   : > { %8652 = vmatmul.mubr.bf16.gmra.mrb[52].mxu1 %v9918_v29  ;;  %7117 = vmatprep.mubr.bf16.mxu0 %v9935_v30 }
 0x775   : > { %8661 = vmatprep.mubr.bf16.mxu1 %v9935_v30 }
 0x77b   : > { %7118 = vmatmul.mubr.bf16.gmra.mrb[56].mxu0 %v9934_v33 }
 0x77c   : > { %8662 = vmatmul.mubr.bf16.gmra.mrb[56].mxu1 %v9934_v33  ;;  %7127 = vmatprep.mubr.bf16.mxu0 %v9951_v34 }
 0x77d   : > { %8671 = vmatprep.mubr.bf16.mxu1 %v9951_v34 }
 0x783   : > { %7128 = vmatmul.mubr.bf16.gmra.mrb[60].mxu0 %v9950_v35 }
 0x784   : > { %8672 = vmatmul.mubr.bf16.gmra.mrb[60].mxu1 %v9950_v35 }
 0x7de   : > { %v6979_v38 = vpop.f32.mrb[0].mxu0 }
 0x7df   : > { %v9985_v40 = vadd.f32 %v6979_v38, %v4157_v36  ;;  %v8523_v2 = vpop.f32.mrb[0].mxu1  ;;  %v6981_v41 = vpop.f32.mrb[1].mxu0 }
 0x7e0   : > { %v10049_v42 = vadd.f32 %v8523_v2, %v4157_v36  ;;  %v9986_v43 = vadd.f32 %v6981_v41, %v4157_v36  ;;  %v8525_v44 = vpop.f32.mrb[1].mxu1  ;;  %v6983_v45 = vpop.f32.mrb[2].mxu0 }
 0x7e1   : > { %8682 = vst [vmem:[%s16700_s4] sm:$0xff] %v9985_v40  ;;  %v10050_v46 = vadd.f32 %v8525_v44, %v4157_v36  ;;  %v9987_v47 = vadd.f32 %v6983_v45, %v4162_v37  ;;  %v8527_v48 = vpop.f32.mrb[2].mxu1  ;;  %v6985_v49 = vpop.f32.mrb[3].mxu0 }
 0x7e2   : > { %8684 = vst [vmem:[%s16700_s4 + $0x10] sm:$0xff] %v10049_v42  ;;  %8683 = vst [vmem:[%s16700_s4 + $0x8] sm:$0xff] %v9986_v43  ;;  %v10051_v50 = vadd.f32 %v8527_v48, %v4162_v37  ;;  %v9988_v51 = vadd.f32 %v6985_v49, %v4162_v37  ;;  %v8529_v52 = vpop.f32.mrb[3].mxu1  ;;  %v4202_v43 = vpop.permute.xlu1 %4201 }
 0x7e3   : > { %8685 = vst [vmem:[%s16700_s4 + $0x18] sm:$0xff] %v10050_v46  ;;  %8686 = vst [vmem:[%s16700_s4 + $0x20] sm:$0xff] %v9987_v47  ;;  %v10052_v53 = vadd.f32 %v8529_v52, %v4162_v37  ;;  %v4197_v44 = vpop.permute.xlu0 %4196 }
 0x7e4   : > { %8688 = vst [vmem:[%s16700_s4 + $0x30] sm:$0xff] %v10051_v50  ;;  %8687 = vst [vmem:[%s16700_s4 + $0x28] sm:$0xff] %v9988_v51 }
 0x7e5   : > { %8689 = vst [vmem:[%s16700_s4 + $0x38] sm:$0xff] %v10052_v53 }
 0x7e6   : > { %v6989_v55 = vpop.f32.mrb[4].mxu0 }
 0x7e7   : > { %v9989_v56 = vadd.f32 %v6989_v55, %v4167_v39  ;;  %v8533_v57 = vpop.f32.mrb[4].mxu1  ;;  %v6991_v58 = vpop.f32.mrb[5].mxu0 }
 0x7e8   : > { %v10053_v59 = vadd.f32 %v8533_v57, %v4167_v39  ;;  %v9990_v60 = vadd.f32 %v6991_v58, %v4167_v39  ;;  %v8535_v61 = vpop.f32.mrb[5].mxu1  ;;  %v6993_v62 = vpop.f32.mrb[6].mxu0 }
 0x7e9   : > { %8690 = vst [vmem:[%s16700_s4 + $0x40] sm:$0xff] %v9989_v56  ;;  %v10054_v63 = vadd.f32 %v8535_v61, %v4167_v39  ;;  %v9991_v0 = vadd.f32 %v6993_v62, %v4172_v54  ;;  %v8537_v1 = vpop.f32.mrb[6].mxu1  ;;  %v6995_v3 = vpop.f32.mrb[7].mxu0 }
 0x7ea   : > { %8692 = vst [vmem:[%s16700_s4 + $0x50] sm:$0xff] %v10053_v59  ;;  %8691 = vst [vmem:[%s16700_s4 + $0x48] sm:$0xff] %v9990_v60  ;;  %v10055_v4 = vadd.f32 %v8537_v1, %v4172_v54  ;;  %v9992_v5 = vadd.f32 %v6995_v3, %v4172_v54  ;;  %v8539_v6 = vpop.f32.mrb[7].mxu1  ;;  %v4212_v61 = vpop.permute.xlu1 %4211 }
 0x7eb   : > { %8693 = vst [vmem:[%s16700_s4 + $0x58] sm:$0xff] %v10054_v63  ;;  %8694 = vst [vmem:[%s16700_s4 + $0x60] sm:$0xff] %v9991_v0  ;;  %v10056_v7 = vadd.f32 %v8539_v6, %v4172_v54  ;;  %v4207_v62 = vpop.permute.xlu0 %4206 }
 0x7ec   : > { %8696 = vst [vmem:[%s16700_s4 + $0x70] sm:$0xff] %v10055_v4  ;;  %8695 = vst [vmem:[%s16700_s4 + $0x68] sm:$0xff] %v9992_v5 }
 0x7ed   : > { %8697 = vst [vmem:[%s16700_s4 + $0x78] sm:$0xff] %v10056_v7 }
 0x7ee   : > { %v6999_v10 = vpop.f32.mrb[8].mxu0 }
 0x7ef   : > { %v9993_v11 = vadd.f32 %v6999_v10, %v4177_v9  ;;  %v8543_v12 = vpop.f32.mrb[8].mxu1  ;;  %v7001_v13 = vpop.f32.mrb[9].mxu0 }
 0x7f0   : > { %v10057_v14 = vadd.f32 %v8543_v12, %v4177_v9  ;;  %v9994_v15 = vadd.f32 %v7001_v13, %v4177_v9  ;;  %v8545_v16 = vpop.f32.mrb[9].mxu1  ;;  %v7003_v17 = vpop.f32.mrb[10].mxu0 }
 0x7f1   : > { %8698 = vst [vmem:[%s16700_s4 + $0x80] sm:$0xff] %v9993_v11  ;;  %v10058_v18 = vadd.f32 %v8545_v16, %v4177_v9  ;;  %v9995_v19 = vadd.f32 %v7003_v17, %v4182_v8  ;;  %v8547_v20 = vpop.f32.mrb[10].mxu1  ;;  %v7005_v21 = vpop.f32.mrb[11].mxu0 }
 0x7f2   : > { %8700 = vst [vmem:[%s16700_s4 + $0x90] sm:$0xff] %v10057_v14  ;;  %8699 = vst [vmem:[%s16700_s4 + $0x88] sm:$0xff] %v9994_v15  ;;  %v10059_v22 = vadd.f32 %v8547_v20, %v4182_v8  ;;  %v9996_v23 = vadd.f32 %v7005_v21, %v4182_v8  ;;  %v8549_v24 = vpop.f32.mrb[11].mxu1  ;;  %v4222_v16 = vpop.permute.xlu1 %4221 }
 0x7f3   : > { %8701 = vst [vmem:[%s16700_s4 + $0x98] sm:$0xff] %v10058_v18  ;;  %8702 = vst [vmem:[%s16700_s4 + $0xa0] sm:$0xff] %v9995_v19  ;;  %v10060_v25 = vadd.f32 %v8549_v24, %v4182_v8  ;;  %v4217_v17 = vpop.permute.xlu0 %4216 }
 0x7f4   : > { %8704 = vst [vmem:[%s16700_s4 + $0xb0] sm:$0xff] %v10059_v22  ;;  %8703 = vst [vmem:[%s16700_s4 + $0xa8] sm:$0xff] %v9996_v23 }
 0x7f5   : > { %8705 = vst [vmem:[%s16700_s4 + $0xb8] sm:$0xff] %v10060_v25 }
 0x7f6   : > { %v7009_v28 = vpop.f32.mrb[12].mxu0 }
 0x7f7   : > { %v9997_v29 = vadd.f32 %v7009_v28, %v4187_v27  ;;  %v8553_v30 = vpop.f32.mrb[12].mxu1  ;;  %v7011_v31 = vpop.f32.mrb[13].mxu0 }
 0x7f8   : > { %v10061_v32 = vadd.f32 %v8553_v30, %v4187_v27  ;;  %v9998_v33 = vadd.f32 %v7011_v31, %v4187_v27  ;;  %v8555_v34 = vpop.f32.mrb[13].mxu1  ;;  %v7013_v35 = vpop.f32.mrb[14].mxu0 }
 0x7f9   : > { %8706 = vst [vmem:[%s16700_s4 + $0xc0] sm:$0xff] %v9997_v29  ;;  %v10062_v36 = vadd.f32 %v8555_v34, %v4187_v27  ;;  %v9999_v37 = vadd.f32 %v7013_v35, %v4192_v26  ;;  %v8557_v38 = vpop.f32.mrb[14].mxu1  ;;  %v7015_v39 = vpop.f32.mrb[15].mxu0 }
 0x7fa   : > { %8708 = vst [vmem:[%s16700_s4 + $0xd0] sm:$0xff] %v10061_v32  ;;  %8707 = vst [vmem:[%s16700_s4 + $0xc8] sm:$0xff] %v9998_v33  ;;  %v10063_v40 = vadd.f32 %v8557_v38, %v4192_v26  ;;  %v10000_v2 = vadd.f32 %v7015_v39, %v4192_v26  ;;  %v8559_v41 = vpop.f32.mrb[15].mxu1  ;;  %v4232_v34 = vpop.permute.xlu1 %4231 }
 0x7fb   : > { %8709 = vst [vmem:[%s16700_s4 + $0xd8] sm:$0xff] %v10062_v36  ;;  %8710 = vst [vmem:[%s16700_s4 + $0xe0] sm:$0xff] %v9999_v37  ;;  %v10064_v42 = vadd.f32 %v8559_v41, %v4192_v26  ;;  %v4227_v35 = vpop.permute.xlu0 %4226 }
 0x7fc   : > { %8712 = vst [vmem:[%s16700_s4 + $0xf0] sm:$0xff] %v10063_v40  ;;  %8711 = vst [vmem:[%s16700_s4 + $0xe8] sm:$0xff] %v10000_v2 }
 0x7fd   : > { %8713 = vst [vmem:[%s16700_s4 + $0xf8] sm:$0xff] %v10064_v42 }
 0x7fe   : > { %v7019_v45 = vpop.f32.mrb[16].mxu0 }
 0x7ff   : > { %v10001_v46 = vadd.f32 %v7019_v45, %v4197_v44  ;;  %v8563_v47 = vpop.f32.mrb[16].mxu1  ;;  %v7021_v48 = vpop.f32.mrb[17].mxu0 }
 0x800   : > { %v10065_v49 = vadd.f32 %v8563_v47, %v4197_v44  ;;  %v10002_v50 = vadd.f32 %v7021_v48, %v4197_v44  ;;  %v8565_v51 = vpop.f32.mrb[17].mxu1  ;;  %v7023_v52 = vpop.f32.mrb[18].mxu0 }
 0x801   : > { %8714 = vst [vmem:[%s16700_s4 + $0x100] sm:$0xff] %v10001_v46  ;;  %v10066_v53 = vadd.f32 %v8565_v51, %v4197_v44  ;;  %v10003_v54 = vadd.f32 %v7023_v52, %v4202_v43  ;;  %v8567_v55 = vpop.f32.mrb[18].mxu1  ;;  %v7025_v56 = vpop.f32.mrb[19].mxu0 }
 0x802   : > { %8716 = vst [vmem:[%s16700_s4 + $0x110] sm:$0xff] %v10065_v49  ;;  %8715 = vst [vmem:[%s16700_s4 + $0x108] sm:$0xff] %v10002_v50  ;;  %v10067_v57 = vadd.f32 %v8567_v55, %v4202_v43  ;;  %v10004_v58 = vadd.f32 %v7025_v56, %v4202_v43  ;;  %v8569_v59 = vpop.f32.mrb[19].mxu1  ;;  %v4242_v51 = vpop.permute.xlu1 %4241 }
 0x803   : > { %8717 = vst [vmem:[%s16700_s4 + $0x118] sm:$0xff] %v10066_v53  ;;  %8718 = vst [vmem:[%s16700_s4 + $0x120] sm:$0xff] %v10003_v54  ;;  %v10068_v60 = vadd.f32 %v8569_v59, %v4202_v43  ;;  %v4237_v52 = vpop.permute.xlu0 %4236 }
 0x804   : > { %8720 = vst [vmem:[%s16700_s4 + $0x130] sm:$0xff] %v10067_v57  ;;  %8719 = vst [vmem:[%s16700_s4 + $0x128] sm:$0xff] %v10004_v58 }
 0x805   : > { %8721 = vst [vmem:[%s16700_s4 + $0x138] sm:$0xff] %v10068_v60 }
 0x806   : > { %v7029_v63 = vpop.f32.mrb[20].mxu0 }
 0x807   : > { %v10005_v0 = vadd.f32 %v7029_v63, %v4207_v62  ;;  %v8573_v1 = vpop.f32.mrb[20].mxu1  ;;  %v7031_v3 = vpop.f32.mrb[21].mxu0 }
 0x808   : > { %v10069_v4 = vadd.f32 %v8573_v1, %v4207_v62  ;;  %v10006_v5 = vadd.f32 %v7031_v3, %v4207_v62  ;;  %v8575_v6 = vpop.f32.mrb[21].mxu1  ;;  %v7033_v7 = vpop.f32.mrb[22].mxu0 }
 0x809   : > { %8722 = vst [vmem:[%s16700_s4 + $0x140] sm:$0xff] %v10005_v0  ;;  %v10070_v8 = vadd.f32 %v8575_v6, %v4207_v62  ;;  %v10007_v9 = vadd.f32 %v7033_v7, %v4212_v61  ;;  %v8577_v10 = vpop.f32.mrb[22].mxu1  ;;  %v7035_v11 = vpop.f32.mrb[23].mxu0 }
 0x80a   : > { %8724 = vst [vmem:[%s16700_s4 + $0x150] sm:$0xff] %v10069_v4  ;;  %8723 = vst [vmem:[%s16700_s4 + $0x148] sm:$0xff] %v10006_v5  ;;  %v10071_v12 = vadd.f32 %v8577_v10, %v4212_v61  ;;  %v10008_v13 = vadd.f32 %v7035_v11, %v4212_v61  ;;  %v8579_v14 = vpop.f32.mrb[23].mxu1  ;;  %v4252_v6 = vpop.permute.xlu1 %4251 }
 0x80b   : > { %8725 = vst [vmem:[%s16700_s4 + $0x158] sm:$0xff] %v10070_v8  ;;  %8726 = vst [vmem:[%s16700_s4 + $0x160] sm:$0xff] %v10007_v9  ;;  %v10072_v15 = vadd.f32 %v8579_v14, %v4212_v61  ;;  %v4247_v7 = vpop.permute.xlu0 %4246 }
 0x80c   : > { %8728 = vst [vmem:[%s16700_s4 + $0x170] sm:$0xff] %v10071_v12  ;;  %8727 = vst [vmem:[%s16700_s4 + $0x168] sm:$0xff] %v10008_v13 }
 0x80d   : > { %8729 = vst [vmem:[%s16700_s4 + $0x178] sm:$0xff] %v10072_v15 }
 0x80e   : > { %v7039_v18 = vpop.f32.mrb[24].mxu0 }
 0x80f   : > { %v10009_v19 = vadd.f32 %v7039_v18, %v4217_v17  ;;  %v8583_v20 = vpop.f32.mrb[24].mxu1  ;;  %v7041_v21 = vpop.f32.mrb[25].mxu0 }
 0x810   : > { %v10073_v22 = vadd.f32 %v8583_v20, %v4217_v17  ;;  %v10010_v23 = vadd.f32 %v7041_v21, %v4217_v17  ;;  %v8585_v24 = vpop.f32.mrb[25].mxu1  ;;  %v7043_v25 = vpop.f32.mrb[26].mxu0 }
 0x811   : > { %8730 = vst [vmem:[%s16700_s4 + $0x180] sm:$0xff] %v10009_v19  ;;  %v10074_v26 = vadd.f32 %v8585_v24, %v4217_v17  ;;  %v10011_v27 = vadd.f32 %v7043_v25, %v4222_v16  ;;  %v8587_v28 = vpop.f32.mrb[26].mxu1  ;;  %v7045_v29 = vpop.f32.mrb[27].mxu0 }
 0x812   : > { %8732 = vst [vmem:[%s16700_s4 + $0x190] sm:$0xff] %v10073_v22  ;;  %8731 = vst [vmem:[%s16700_s4 + $0x188] sm:$0xff] %v10010_v23  ;;  %v10075_v30 = vadd.f32 %v8587_v28, %v4222_v16  ;;  %v10012_v31 = vadd.f32 %v7045_v29, %v4222_v16  ;;  %v8589_v32 = vpop.f32.mrb[27].mxu1  ;;  %v4262_v24 = vpop.permute.xlu1 %4261 }
 0x813   : > { %8733 = vst [vmem:[%s16700_s4 + $0x198] sm:$0xff] %v10074_v26  ;;  %8734 = vst [vmem:[%s16700_s4 + $0x1a0] sm:$0xff] %v10011_v27  ;;  %v10076_v33 = vadd.f32 %v8589_v32, %v4222_v16  ;;  %v4257_v25 = vpop.permute.xlu0 %4256 }
 0x814   : > { %8736 = vst [vmem:[%s16700_s4 + $0x1b0] sm:$0xff] %v10075_v30  ;;  %8735 = vst [vmem:[%s16700_s4 + $0x1a8] sm:$0xff] %v10012_v31 }
 0x815   : > { %8737 = vst [vmem:[%s16700_s4 + $0x1b8] sm:$0xff] %v10076_v33 }
 0x816   : > { %v7049_v36 = vpop.f32.mrb[28].mxu0 }
 0x817   : > { %v10013_v37 = vadd.f32 %v7049_v36, %v4227_v35  ;;  %v8593_v38 = vpop.f32.mrb[28].mxu1  ;;  %v7051_v39 = vpop.f32.mrb[29].mxu0 }
 0x818   : > { %v10077_v40 = vadd.f32 %v8593_v38, %v4227_v35  ;;  %v10014_v2 = vadd.f32 %v7051_v39, %v4227_v35  ;;  %v8595_v41 = vpop.f32.mrb[29].mxu1  ;;  %v7053_v42 = vpop.f32.mrb[30].mxu0 }
 0x819   : > { %8738 = vst [vmem:[%s16700_s4 + $0x1c0] sm:$0xff] %v10013_v37  ;;  %v10078_v43 = vadd.f32 %v8595_v41, %v4227_v35  ;;  %v10015_v44 = vadd.f32 %v7053_v42, %v4232_v34  ;;  %v8597_v45 = vpop.f32.mrb[30].mxu1  ;;  %v7055_v46 = vpop.f32.mrb[31].mxu0 }
 0x81a   : > { %8740 = vst [vmem:[%s16700_s4 + $0x1d0] sm:$0xff] %v10077_v40  ;;  %8739 = vst [vmem:[%s16700_s4 + $0x1c8] sm:$0xff] %v10014_v2  ;;  %v10079_v47 = vadd.f32 %v8597_v45, %v4232_v34  ;;  %v10016_v48 = vadd.f32 %v7055_v46, %v4232_v34  ;;  %v8599_v49 = vpop.f32.mrb[31].mxu1  ;;  %v4272_v41 = vpop.permute.xlu1 %4271 }
 0x81b   : > { %8741 = vst [vmem:[%s16700_s4 + $0x1d8] sm:$0xff] %v10078_v43  ;;  %8742 = vst [vmem:[%s16700_s4 + $0x1e0] sm:$0xff] %v10015_v44  ;;  %v10080_v50 = vadd.f32 %v8599_v49, %v4232_v34  ;;  %v4267_v42 = vpop.permute.xlu0 %4266 }
 0x81c   : > { %8744 = vst [vmem:[%s16700_s4 + $0x1f0] sm:$0xff] %v10079_v47  ;;  %8743 = vst [vmem:[%s16700_s4 + $0x1e8] sm:$0xff] %v10016_v48 }
 0x81d   : > { %8745 = vst [vmem:[%s16700_s4 + $0x1f8] sm:$0xff] %v10080_v50 }
 0x81e   : > { %v7059_v53 = vpop.f32.mrb[32].mxu0 }
 0x81f   : > { %v10017_v54 = vadd.f32 %v7059_v53, %v4237_v52  ;;  %v8603_v55 = vpop.f32.mrb[32].mxu1  ;;  %v7061_v56 = vpop.f32.mrb[33].mxu0 }
 0x820   : > { %v10081_v57 = vadd.f32 %v8603_v55, %v4237_v52  ;;  %v10018_v58 = vadd.f32 %v7061_v56, %v4237_v52  ;;  %v8605_v59 = vpop.f32.mrb[33].mxu1  ;;  %v7063_v60 = vpop.f32.mrb[34].mxu0 }
 0x821   : > { %8746 = vst [vmem:[%s16700_s4 + $0x200] sm:$0xff] %v10017_v54  ;;  %v10082_v61 = vadd.f32 %v8605_v59, %v4237_v52  ;;  %v10019_v62 = vadd.f32 %v7063_v60, %v4242_v51  ;;  %v8607_v63 = vpop.f32.mrb[34].mxu1  ;;  %v7065_v0 = vpop.f32.mrb[35].mxu0 }
 0x822   : > { %8748 = vst [vmem:[%s16700_s4 + $0x210] sm:$0xff] %v10081_v57  ;;  %8747 = vst [vmem:[%s16700_s4 + $0x208] sm:$0xff] %v10018_v58  ;;  %v10083_v1 = vadd.f32 %v8607_v63, %v4242_v51  ;;  %v10020_v3 = vadd.f32 %v7065_v0, %v4242_v51  ;;  %v8609_v4 = vpop.f32.mrb[35].mxu1  ;;  %v4282_v59 = vpop.permute.xlu1 %4281 }
 0x823   : > { %8749 = vst [vmem:[%s16700_s4 + $0x218] sm:$0xff] %v10082_v61  ;;  %8750 = vst [vmem:[%s16700_s4 + $0x220] sm:$0xff] %v10019_v62  ;;  %v10084_v5 = vadd.f32 %v8609_v4, %v4242_v51  ;;  %v4277_v60 = vpop.permute.xlu0 %4276 }
 0x824   : > { %8752 = vst [vmem:[%s16700_s4 + $0x230] sm:$0xff] %v10083_v1  ;;  %8751 = vst [vmem:[%s16700_s4 + $0x228] sm:$0xff] %v10020_v3 }
 0x825   : > { %8753 = vst [vmem:[%s16700_s4 + $0x238] sm:$0xff] %v10084_v5 }
 0x826   : > { %v7069_v8 = vpop.f32.mrb[36].mxu0 }
 0x827   : > { %v10021_v9 = vadd.f32 %v7069_v8, %v4247_v7  ;;  %v8613_v10 = vpop.f32.mrb[36].mxu1  ;;  %v7071_v11 = vpop.f32.mrb[37].mxu0 }
 0x828   : > { %v10085_v12 = vadd.f32 %v8613_v10, %v4247_v7  ;;  %v10022_v13 = vadd.f32 %v7071_v11, %v4247_v7  ;;  %v8615_v14 = vpop.f32.mrb[37].mxu1  ;;  %v7073_v15 = vpop.f32.mrb[38].mxu0 }
 0x829   : > { %8754 = vst [vmem:[%s16700_s4 + $0x240] sm:$0xff] %v10021_v9  ;;  %v10086_v16 = vadd.f32 %v8615_v14, %v4247_v7  ;;  %v10023_v17 = vadd.f32 %v7073_v15, %v4252_v6  ;;  %v8617_v18 = vpop.f32.mrb[38].mxu1  ;;  %v7075_v19 = vpop.f32.mrb[39].mxu0 }
 0x82a   : > { %8756 = vst [vmem:[%s16700_s4 + $0x250] sm:$0xff] %v10085_v12  ;;  %8755 = vst [vmem:[%s16700_s4 + $0x248] sm:$0xff] %v10022_v13  ;;  %v10087_v20 = vadd.f32 %v8617_v18, %v4252_v6  ;;  %v10024_v21 = vadd.f32 %v7075_v19, %v4252_v6  ;;  %v8619_v22 = vpop.f32.mrb[39].mxu1  ;;  %v4292_v14 = vpop.permute.xlu1 %4291 }
 0x82b   : > { %8757 = vst [vmem:[%s16700_s4 + $0x258] sm:$0xff] %v10086_v16  ;;  %8758 = vst [vmem:[%s16700_s4 + $0x260] sm:$0xff] %v10023_v17  ;;  %v10088_v23 = vadd.f32 %v8619_v22, %v4252_v6  ;;  %v4287_v15 = vpop.permute.xlu0 %4286 }
 0x82c   : > { %8760 = vst [vmem:[%s16700_s4 + $0x270] sm:$0xff] %v10087_v20  ;;  %8759 = vst [vmem:[%s16700_s4 + $0x268] sm:$0xff] %v10024_v21 }
 0x82d   : > { %8761 = vst [vmem:[%s16700_s4 + $0x278] sm:$0xff] %v10088_v23 }
 0x82e   : > { %v7079_v26 = vpop.f32.mrb[40].mxu0 }
 0x82f   : > { %v10025_v27 = vadd.f32 %v7079_v26, %v4257_v25  ;;  %v8623_v28 = vpop.f32.mrb[40].mxu1  ;;  %v7081_v29 = vpop.f32.mrb[41].mxu0 }
 0x830   : > { %v10089_v30 = vadd.f32 %v8623_v28, %v4257_v25  ;;  %v10026_v31 = vadd.f32 %v7081_v29, %v4257_v25  ;;  %v8625_v32 = vpop.f32.mrb[41].mxu1  ;;  %v7083_v33 = vpop.f32.mrb[42].mxu0 }
 0x831   : > { %8762 = vst [vmem:[%s16700_s4 + $0x280] sm:$0xff] %v10025_v27  ;;  %v10090_v34 = vadd.f32 %v8625_v32, %v4257_v25  ;;  %v10027_v35 = vadd.f32 %v7083_v33, %v4262_v24  ;;  %v8627_v36 = vpop.f32.mrb[42].mxu1  ;;  %v7085_v37 = vpop.f32.mrb[43].mxu0 }
 0x832   : > { %8764 = vst [vmem:[%s16700_s4 + $0x290] sm:$0xff] %v10089_v30  ;;  %8763 = vst [vmem:[%s16700_s4 + $0x288] sm:$0xff] %v10026_v31  ;;  %v10091_v38 = vadd.f32 %v8627_v36, %v4262_v24  ;;  %v10028_v39 = vadd.f32 %v7085_v37, %v4262_v24  ;;  %v8629_v40 = vpop.f32.mrb[43].mxu1  ;;  %v4302_v32 = vpop.permute.xlu1 %4301 }
 0x833   : > { %8765 = vst [vmem:[%s16700_s4 + $0x298] sm:$0xff] %v10090_v34  ;;  %8766 = vst [vmem:[%s16700_s4 + $0x2a0] sm:$0xff] %v10027_v35  ;;  %v10092_v2 = vadd.f32 %v8629_v40, %v4262_v24  ;;  %v4297_v33 = vpop.permute.xlu0 %4296 }
 0x834   : > { %8768 = vst [vmem:[%s16700_s4 + $0x2b0] sm:$0xff] %v10091_v38  ;;  %8767 = vst [vmem:[%s16700_s4 + $0x2a8] sm:$0xff] %v10028_v39 }
 0x835   : > { %8769 = vst [vmem:[%s16700_s4 + $0x2b8] sm:$0xff] %v10092_v2 }
 0x836   : > { %v7089_v43 = vpop.f32.mrb[44].mxu0 }
 0x837   : > { %v10029_v44 = vadd.f32 %v7089_v43, %v4267_v42  ;;  %v8633_v45 = vpop.f32.mrb[44].mxu1  ;;  %v7091_v46 = vpop.f32.mrb[45].mxu0 }
 0x838   : > { %v10093_v47 = vadd.f32 %v8633_v45, %v4267_v42  ;;  %v10030_v48 = vadd.f32 %v7091_v46, %v4267_v42  ;;  %v8635_v49 = vpop.f32.mrb[45].mxu1  ;;  %v7093_v50 = vpop.f32.mrb[46].mxu0 }
 0x839   : > { %8770 = vst [vmem:[%s16700_s4 + $0x2c0] sm:$0xff] %v10029_v44  ;;  %v10094_v51 = vadd.f32 %v8635_v49, %v4267_v42  ;;  %v10031_v52 = vadd.f32 %v7093_v50, %v4272_v41  ;;  %v8637_v53 = vpop.f32.mrb[46].mxu1  ;;  %v7095_v54 = vpop.f32.mrb[47].mxu0 }
 0x83a   : > { %8772 = vst [vmem:[%s16700_s4 + $0x2d0] sm:$0xff] %v10093_v47  ;;  %8771 = vst [vmem:[%s16700_s4 + $0x2c8] sm:$0xff] %v10030_v48  ;;  %v10095_v55 = vadd.f32 %v8637_v53, %v4272_v41  ;;  %v10032_v56 = vadd.f32 %v7095_v54, %v4272_v41  ;;  %v8639_v57 = vpop.f32.mrb[47].mxu1  ;;  %v4312_v49 = vpop.permute.xlu1 %4311 }
 0x83b   : > { %8773 = vst [vmem:[%s16700_s4 + $0x2d8] sm:$0xff] %v10094_v51  ;;  %8774 = vst [vmem:[%s16700_s4 + $0x2e0] sm:$0xff] %v10031_v52  ;;  %v10096_v58 = vadd.f32 %v8639_v57, %v4272_v41  ;;  %v4307_v50 = vpop.permute.xlu0 %4306 }
 0x83c   : > { %8776 = vst [vmem:[%s16700_s4 + $0x2f0] sm:$0xff] %v10095_v55  ;;  %8775 = vst [vmem:[%s16700_s4 + $0x2e8] sm:$0xff] %v10032_v56 }
 0x83d   : > { %8777 = vst [vmem:[%s16700_s4 + $0x2f8] sm:$0xff] %v10096_v58 }
 0x83e   : > { %v7099_v61 = vpop.f32.mrb[48].mxu0 }
 0x83f   : > { %v10033_v62 = vadd.f32 %v7099_v61, %v4277_v60  ;;  %v8643_v63 = vpop.f32.mrb[48].mxu1  ;;  %v7101_v0 = vpop.f32.mrb[49].mxu0 }
 0x840   : > { %v10097_v1 = vadd.f32 %v8643_v63, %v4277_v60  ;;  %v10034_v3 = vadd.f32 %v7101_v0, %v4277_v60  ;;  %v8645_v4 = vpop.f32.mrb[49].mxu1  ;;  %v7103_v5 = vpop.f32.mrb[50].mxu0 }
 0x841   : > { %8778 = vst [vmem:[%s16700_s4 + $0x300] sm:$0xff] %v10033_v62  ;;  %v10098_v6 = vadd.f32 %v8645_v4, %v4277_v60  ;;  %v10035_v7 = vadd.f32 %v7103_v5, %v4282_v59  ;;  %v8647_v8 = vpop.f32.mrb[50].mxu1  ;;  %v7105_v9 = vpop.f32.mrb[51].mxu0 }
 0x842   : > { %8780 = vst [vmem:[%s16700_s4 + $0x310] sm:$0xff] %v10097_v1  ;;  %8779 = vst [vmem:[%s16700_s4 + $0x308] sm:$0xff] %v10034_v3  ;;  %v10099_v10 = vadd.f32 %v8647_v8, %v4282_v59  ;;  %v10036_v11 = vadd.f32 %v7105_v9, %v4282_v59  ;;  %v8649_v12 = vpop.f32.mrb[51].mxu1 }
 0x843   : > { %8781 = vst [vmem:[%s16700_s4 + $0x318] sm:$0xff] %v10098_v6  ;;  %8782 = vst [vmem:[%s16700_s4 + $0x320] sm:$0xff] %v10035_v7  ;;  %v10100_v13 = vadd.f32 %v8649_v12, %v4282_v59 }
 0x844   : > { %8784 = vst [vmem:[%s16700_s4 + $0x330] sm:$0xff] %v10099_v10  ;;  %8783 = vst [vmem:[%s16700_s4 + $0x328] sm:$0xff] %v10036_v11 }
 0x845   : > { %8785 = vst [vmem:[%s16700_s4 + $0x338] sm:$0xff] %v10100_v13 }
 0x846   : > { %v7109_v16 = vpop.f32.mrb[52].mxu0 }
 0x847   : > { %v10037_v17 = vadd.f32 %v7109_v16, %v4287_v15  ;;  %v8653_v18 = vpop.f32.mrb[52].mxu1  ;;  %v7111_v19 = vpop.f32.mrb[53].mxu0 }
 0x848   : > { %v10101_v20 = vadd.f32 %v8653_v18, %v4287_v15  ;;  %v10038_v21 = vadd.f32 %v7111_v19, %v4287_v15  ;;  %v8655_v22 = vpop.f32.mrb[53].mxu1  ;;  %v7113_v23 = vpop.f32.mrb[54].mxu0 }
 0x849   : > { %8786 = vst [vmem:[%s16700_s4 + $0x340] sm:$0xff] %v10037_v17  ;;  %v10102_v24 = vadd.f32 %v8655_v22, %v4287_v15  ;;  %v10039_v25 = vadd.f32 %v7113_v23, %v4292_v14  ;;  %v8657_v26 = vpop.f32.mrb[54].mxu1  ;;  %v7115_v27 = vpop.f32.mrb[55].mxu0 }
 0x84a   : > { %8788 = vst [vmem:[%s16700_s4 + $0x350] sm:$0xff] %v10101_v20  ;;  %8787 = vst [vmem:[%s16700_s4 + $0x348] sm:$0xff] %v10038_v21  ;;  %v10103_v28 = vadd.f32 %v8657_v26, %v4292_v14  ;;  %v10040_v29 = vadd.f32 %v7115_v27, %v4292_v14  ;;  %v8659_v30 = vpop.f32.mrb[55].mxu1 }
 0x84b   : > { %8789 = vst [vmem:[%s16700_s4 + $0x358] sm:$0xff] %v10102_v24  ;;  %8790 = vst [vmem:[%s16700_s4 + $0x360] sm:$0xff] %v10039_v25  ;;  %v10104_v31 = vadd.f32 %v8659_v30, %v4292_v14 }
 0x84c   : > { %8792 = vst [vmem:[%s16700_s4 + $0x370] sm:$0xff] %v10103_v28  ;;  %8791 = vst [vmem:[%s16700_s4 + $0x368] sm:$0xff] %v10040_v29 }
 0x84d   : > { %8793 = vst [vmem:[%s16700_s4 + $0x378] sm:$0xff] %v10104_v31 }
 0x84e   : > { %v7119_v34 = vpop.f32.mrb[56].mxu0 }
 0x84f   : > { %v10041_v35 = vadd.f32 %v7119_v34, %v4297_v33  ;;  %v8663_v36 = vpop.f32.mrb[56].mxu1  ;;  %v7121_v37 = vpop.f32.mrb[57].mxu0 }
 0x850   : > { %v10105_v38 = vadd.f32 %v8663_v36, %v4297_v33  ;;  %v10042_v39 = vadd.f32 %v7121_v37, %v4297_v33  ;;  %v8665_v40 = vpop.f32.mrb[57].mxu1  ;;  %v7123_v2 = vpop.f32.mrb[58].mxu0 }
 0x851   : > { %8794 = vst [vmem:[%s16700_s4 + $0x380] sm:$0xff] %v10041_v35  ;;  %v10106_v41 = vadd.f32 %v8665_v40, %v4297_v33  ;;  %v10043_v42 = vadd.f32 %v7123_v2, %v4302_v32  ;;  %v8667_v43 = vpop.f32.mrb[58].mxu1  ;;  %v7125_v44 = vpop.f32.mrb[59].mxu0 }
 0x852   : > { %8796 = vst [vmem:[%s16700_s4 + $0x390] sm:$0xff] %v10105_v38  ;;  %8795 = vst [vmem:[%s16700_s4 + $0x388] sm:$0xff] %v10042_v39  ;;  %v10107_v45 = vadd.f32 %v8667_v43, %v4302_v32  ;;  %v10044_v46 = vadd.f32 %v7125_v44, %v4302_v32  ;;  %v8669_v47 = vpop.f32.mrb[59].mxu1 }
 0x853   : > { %8797 = vst [vmem:[%s16700_s4 + $0x398] sm:$0xff] %v10106_v41  ;;  %8798 = vst [vmem:[%s16700_s4 + $0x3a0] sm:$0xff] %v10043_v42  ;;  %v10108_v48 = vadd.f32 %v8669_v47, %v4302_v32 }
 0x854   : > { %8800 = vst [vmem:[%s16700_s4 + $0x3b0] sm:$0xff] %v10107_v45  ;;  %8799 = vst [vmem:[%s16700_s4 + $0x3a8] sm:$0xff] %v10044_v46 }
 0x855   : > { %8801 = vst [vmem:[%s16700_s4 + $0x3b8] sm:$0xff] %v10108_v48 }
 0x856   : > { %v7129_v51 = vpop.f32.mrb[60].mxu0 }
 0x857   : > { %v10045_v52 = vadd.f32 %v7129_v51, %v4307_v50  ;;  %v8673_v53 = vpop.f32.mrb[60].mxu1  ;;  %v7131_v54 = vpop.f32.mrb[61].mxu0  ;;  %8816 = sbr.rel (!%p11589_p6) target bundleno = 2411 (0x96b), region = 88 }
 0x858   : > { %v10109_v55 = vadd.f32 %v8673_v53, %v4307_v50  ;;  %v10046_v56 = vadd.f32 %v7131_v54, %v4307_v50  ;;  %v8675_v57 = vpop.f32.mrb[61].mxu1  ;;  %v7133_v58 = vpop.f32.mrb[62].mxu0 }
 0x859   : > { %8802 = vst [vmem:[%s16700_s4 + $0x3c0] sm:$0xff] %v10045_v52  ;;  %v10110_v59 = vadd.f32 %v8675_v57, %v4307_v50  ;;  %v10047_v60 = vadd.f32 %v7133_v58, %v4312_v49  ;;  %v8677_v61 = vpop.f32.mrb[62].mxu1  ;;  %v7135_v62 = vpop.f32.mrb[63].mxu0 }
 0x85a   : > { %8804 = vst [vmem:[%s16700_s4 + $0x3d0] sm:$0xff] %v10109_v55  ;;  %8803 = vst [vmem:[%s16700_s4 + $0x3c8] sm:$0xff] %v10046_v56  ;;  %v10111_v63 = vadd.f32 %v8677_v61, %v4312_v49  ;;  %v10048_v0 = vadd.f32 %v7135_v62, %v4312_v49  ;;  %v8679_v1 = vpop.f32.mrb[63].mxu1 }
 0x85b   : > { %8805 = vst [vmem:[%s16700_s4 + $0x3d8] sm:$0xff] %v10110_v59  ;;  %8806 = vst [vmem:[%s16700_s4 + $0x3e0] sm:$0xff] %v10047_v60  ;;  %v10112_v3 = vadd.f32 %v8679_v1, %v4312_v49 }
 0x85c   : > { %8808 = vst [vmem:[%s16700_s4 + $0x3f0] sm:$0xff] %v10111_v63  ;;  %8807 = vst [vmem:[%s16700_s4 + $0x3e8] sm:$0xff] %v10048_v0 }
 0x85d   : > { %8809 = vst [vmem:[%s16700_s4 + $0x3f8] sm:$0xff] %v10112_v3 }
 0x85e   : > { %s17781_s6 = smov (!%p8819_p9, %s8818_s6), 4 }
 0x85f   : > { %s9954_s10 = sshll.u32 %s17781_s6, 12  ;;  %s16839_s5 = sshll.u32 %s17781_s6, 3 }
 0x860   : > { %p9958_p10 = scmp.eq.s32.totalorder %s9954_s10, 0 }
 0x861   : > { %p8831_p6 = scmp.lt.u32.totalorder (!%p9958_p10), %s16839_s5, 8 }
 0x862   : > { %8830 = sbr.rel (%p9958_p10) target bundleno = 2411 (0x96b), region = 92 }
 0x869   : > { %8834 = sbr.rel (%p8831_p6) target bundleno = 2375 (0x947), region = 96  ;;  %s16843_s14 = sand.u32 (!%p8831_p6), 7, %s16839_s5  }
 0x86a   : > { %p8912_p11 = scmp.eq.s32.totalorder (!%p8831_p6), %s16843_s14, 0  ;;  %p9959_p12 = scmp.ne.s32.totalorder (!%p8831_p6), %s16843_s14, 0 }
 0x870   : > { %8915 = sbr.rel (%p9959_p12) target bundleno = 2250 (0x8ca), region = 111  ;;  %s8916_s15 = sshrl.u32 (!%p9959_p12), %s16839_s5, 3 }
 0x871   : > { %s16850_s23 = sshrl.u32 (!%p9959_p12), %s8916_s15, 1 }
 0x872   : > { %p9960_p13 = scmp.le.s32.totalorder (!%p9959_p12), %s16850_s23, 0 }
 0x877   : > { %9591 = sbr.rel (%p9960_p13) target bundleno = 2207 (0x89f), region = 229  ;;  %s17742_s11 = smov (!%p9960_p13), %s16837_s9 }
 0x878   : > { %s17743_s30 = smov (!%p9960_p13), %s16700_s4  ;;  %s16859_s22 = smov (!%p9960_p13), 0  }
 0x879   : > { %s16861_s25 = smov (!%p9960_p13), 0  }
 0x87e LB: >> { %v8929_v4 = vld [vmem:[%s11458_s30] sm:$0xff]  ;;  %v8931_v5 = vld [vmem:[%s11458_s30 + $0x8] sm:$0xff]  ;;  %s9057_s26 = sadd.s32 1, %s11462_s22  ;;  %s8923_s25 = sadd.s32 1, %s11466_s25   ;;  %s11466_s25 = sphi %s16861_s25, %s8923_s25   ;;  %s11462_s22 = sphi %s16859_s22, %s17746_s22   ;;  %s11458_s30 = sphi %s17743_s30, %s17745_s30   ;;  %s11454_s11 = sphi %s17742_s11, %s17744_s11  }
 0x87f   : >> { %v8933_v6 = vld [vmem:[%s11458_s30 + $0x20] sm:$0xff]  ;;  %8930 = vst [vmem:[%s11454_s11] sm:$0xff] %v8929_v4  ;;  %8932 = vst [vmem:[%s11454_s11 + $0x8] sm:$0xff] %v8931_v5  ;;  %v8935_v7 = vld [vmem:[%s11458_s30 + $0x28] sm:$0xff]  ;;  %p9058_p0 = scmp.ge.s32.totalorder %s9057_s26, %s16850_s23  ;;  %p8922_p1 = scmp.ge.s32.totalorder %s8923_s25, %s16850_s23 }
 0x880   : >> { %8934 = vst [vmem:[%s11454_s11 + $0x28] sm:$0xff] %v8933_v6  ;;  %v8937_v8 = vld [vmem:[%s11458_s30 + $0x40] sm:$0xff]  ;;  %v8939_v9 = vld [vmem:[%s11458_s30 + $0x48] sm:$0xff]  ;;  %8936 = vst [vmem:[%s11454_s11 + $0x30] sm:$0xff] %v8935_v7 }
 0x881   : >> { %8938 = vst [vmem:[%s11454_s11 + $0x50] sm:$0xff] %v8937_v8  ;;  %8940 = vst [vmem:[%s11454_s11 + $0x58] sm:$0xff] %v8939_v9  ;;  %v8941_v10 = vld [vmem:[%s11458_s30 + $0x60] sm:$0xff]  ;;  %v8943_v11 = vld [vmem:[%s11458_s30 + $0x68] sm:$0xff]  ;;  %s17783_s26 = smov (%p9058_p0, %s9057_s26), 0 }
 0x882   : >> { %v8945_v12 = vld [vmem:[%s11458_s30 + $0x80] sm:$0xff]  ;;  %8942 = vst [vmem:[%s11454_s11 + $0x78] sm:$0xff] %v8941_v10  ;;  %8944 = vst [vmem:[%s11454_s11 + $0x80] sm:$0xff] %v8943_v11  ;;  %v8947_v13 = vld [vmem:[%s11458_s30 + $0x88] sm:$0xff]  ;;  %s9961_s28 = sshll.u32 %s17783_s26, 4  ;;  %s17746_s22 = smov %s17783_s26 }
 0x883   : >> { %8946 = vst [vmem:[%s11454_s11 + $0xa0] sm:$0xff] %v8945_v12  ;;  %v8949_v14 = vld [vmem:[%s11458_s30 + $0xa0] sm:$0xff]  ;;  %v8951_v15 = vld [vmem:[%s11458_s30 + $0xa8] sm:$0xff]  ;;  %8948 = vst [vmem:[%s11454_s11 + $0xa8] sm:$0xff] %v8947_v13  ;;  %s16917_s12 = scalar_lea.vmem %s16700_s4, %s9961_s28 [#allocation3]   ;;  %s16920_s21 = scalar_lea.vmem %s16837_s9, %s9961_s28  }
 0x884   : >> { %8950 = vst [vmem:[%s11454_s11 + $0xc8] sm:$0xff] %v8949_v14  ;;  %8952 = vst [vmem:[%s11454_s11 + $0xd0] sm:$0xff] %v8951_v15  ;;  %v8953_v16 = vld [vmem:[%s11458_s30 + $0xc0] sm:$0xff]  ;;  %v8955_v17 = vld [vmem:[%s11458_s30 + $0xc8] sm:$0xff] }
 0x885   : >> { %v8957_v18 = vld [vmem:[%s11458_s30 + $0xe0] sm:$0xff]  ;;  %8954 = vst [vmem:[%s11454_s11 + $0xf0] sm:$0xff] %v8953_v16  ;;  %8956 = vst [vmem:[%s11454_s11 + $0xf8] sm:$0xff] %v8955_v17  ;;  %v8959_v19 = vld [vmem:[%s11458_s30 + $0xe8] sm:$0xff] }
 0x886   : >> { %8958 = vst [vmem:[%s11454_s11 + $0x118] sm:$0xff] %v8957_v18  ;;  %v8961_v20 = vld [vmem:[%s11458_s30 + $0x100] sm:$0xff]  ;;  %v8963_v21 = vld [vmem:[%s11458_s30 + $0x108] sm:$0xff]  ;;  %8960 = vst [vmem:[%s11454_s11 + $0x120] sm:$0xff] %v8959_v19 }
 0x887   : >> { %8962 = vst [vmem:[%s11454_s11 + $0x140] sm:$0xff] %v8961_v20  ;;  %8964 = vst [vmem:[%s11454_s11 + $0x148] sm:$0xff] %v8963_v21  ;;  %v8965_v22 = vld [vmem:[%s11458_s30 + $0x120] sm:$0xff]  ;;  %v8967_v23 = vld [vmem:[%s11458_s30 + $0x128] sm:$0xff] }
 0x888   : >> { %v8969_v24 = vld [vmem:[%s11458_s30 + $0x140] sm:$0xff]  ;;  %8966 = vst [vmem:[%s11454_s11 + $0x168] sm:$0xff] %v8965_v22  ;;  %8968 = vst [vmem:[%s11454_s11 + $0x170] sm:$0xff] %v8967_v23  ;;  %v8971_v25 = vld [vmem:[%s11458_s30 + $0x148] sm:$0xff] }
 0x889   : >> { %8970 = vst [vmem:[%s11454_s11 + $0x190] sm:$0xff] %v8969_v24  ;;  %v8973_v26 = vld [vmem:[%s11458_s30 + $0x160] sm:$0xff]  ;;  %v8975_v27 = vld [vmem:[%s11458_s30 + $0x168] sm:$0xff]  ;;  %8972 = vst [vmem:[%s11454_s11 + $0x198] sm:$0xff] %v8971_v25 }
 0x88a   : >> { %8974 = vst [vmem:[%s11454_s11 + $0x1b8] sm:$0xff] %v8973_v26  ;;  %8976 = vst [vmem:[%s11454_s11 + $0x1c0] sm:$0xff] %v8975_v27  ;;  %v8977_v28 = vld [vmem:[%s11458_s30 + $0x180] sm:$0xff]  ;;  %v8979_v29 = vld [vmem:[%s11458_s30 + $0x188] sm:$0xff] }
 0x88b   : >> { %v8981_v30 = vld [vmem:[%s11458_s30 + $0x1a0] sm:$0xff]  ;;  %8978 = vst [vmem:[%s11454_s11 + $0x1e0] sm:$0xff] %v8977_v28  ;;  %8980 = vst [vmem:[%s11454_s11 + $0x1e8] sm:$0xff] %v8979_v29  ;;  %v8983_v31 = vld [vmem:[%s11458_s30 + $0x1a8] sm:$0xff] }
 0x88c   : >> { %8982 = vst [vmem:[%s11454_s11 + $0x208] sm:$0xff] %v8981_v30  ;;  %v8985_v32 = vld [vmem:[%s11458_s30 + $0x1c0] sm:$0xff]  ;;  %v8987_v33 = vld [vmem:[%s11458_s30 + $0x1c8] sm:$0xff]  ;;  %8984 = vst [vmem:[%s11454_s11 + $0x210] sm:$0xff] %v8983_v31 }
 0x88d   : >> { %8986 = vst [vmem:[%s11454_s11 + $0x230] sm:$0xff] %v8985_v32  ;;  %8988 = vst [vmem:[%s11454_s11 + $0x238] sm:$0xff] %v8987_v33  ;;  %v8989_v34 = vld [vmem:[%s11458_s30 + $0x1e0] sm:$0xff]  ;;  %v8991_v35 = vld [vmem:[%s11458_s30 + $0x1e8] sm:$0xff] }
 0x88e   : >> { %v8993_v36 = vld [vmem:[%s11458_s30 + $0x200] sm:$0xff]  ;;  %8990 = vst [vmem:[%s11454_s11 + $0x258] sm:$0xff] %v8989_v34  ;;  %8992 = vst [vmem:[%s11454_s11 + $0x260] sm:$0xff] %v8991_v35  ;;  %v8995_v37 = vld [vmem:[%s11458_s30 + $0x208] sm:$0xff] }
 0x88f   : >> { %8994 = vst [vmem:[%s11454_s11 + $0x280] sm:$0xff] %v8993_v36  ;;  %v8997_v38 = vld [vmem:[%s11458_s30 + $0x220] sm:$0xff]  ;;  %v8999_v39 = vld [vmem:[%s11458_s30 + $0x228] sm:$0xff]  ;;  %8996 = vst [vmem:[%s11454_s11 + $0x288] sm:$0xff] %v8995_v37 }
 0x890   : >> { %8998 = vst [vmem:[%s11454_s11 + $0x2a8] sm:$0xff] %v8997_v38  ;;  %9000 = vst [vmem:[%s11454_s11 + $0x2b0] sm:$0xff] %v8999_v39  ;;  %v9001_v40 = vld [vmem:[%s11458_s30 + $0x240] sm:$0xff]  ;;  %v9003_v2 = vld [vmem:[%s11458_s30 + $0x248] sm:$0xff] }
 0x891   : >> { %v9005_v41 = vld [vmem:[%s11458_s30 + $0x260] sm:$0xff]  ;;  %9002 = vst [vmem:[%s11454_s11 + $0x2d0] sm:$0xff] %v9001_v40  ;;  %9004 = vst [vmem:[%s11454_s11 + $0x2d8] sm:$0xff] %v9003_v2  ;;  %v9007_v42 = vld [vmem:[%s11458_s30 + $0x268] sm:$0xff] }
 0x892   : >> { %9006 = vst [vmem:[%s11454_s11 + $0x2f8] sm:$0xff] %v9005_v41  ;;  %v9009_v43 = vld [vmem:[%s11458_s30 + $0x280] sm:$0xff]  ;;  %v9011_v44 = vld [vmem:[%s11458_s30 + $0x288] sm:$0xff]  ;;  %9008 = vst [vmem:[%s11454_s11 + $0x300] sm:$0xff] %v9007_v42 }
 0x893   : >> { %9010 = vst [vmem:[%s11454_s11 + $0x320] sm:$0xff] %v9009_v43  ;;  %9012 = vst [vmem:[%s11454_s11 + $0x328] sm:$0xff] %v9011_v44  ;;  %v9013_v45 = vld [vmem:[%s11458_s30 + $0x2a0] sm:$0xff]  ;;  %v9015_v46 = vld [vmem:[%s11458_s30 + $0x2a8] sm:$0xff] }
 0x894   : >> { %v9017_v47 = vld [vmem:[%s11458_s30 + $0x2c0] sm:$0xff]  ;;  %9014 = vst [vmem:[%s11454_s11 + $0x348] sm:$0xff] %v9013_v45  ;;  %9016 = vst [vmem:[%s11454_s11 + $0x350] sm:$0xff] %v9015_v46  ;;  %v9019_v48 = vld [vmem:[%s11458_s30 + $0x2c8] sm:$0xff] }
 0x895   : >> { %9018 = vst [vmem:[%s11454_s11 + $0x370] sm:$0xff] %v9017_v47  ;;  %v9021_v49 = vld [vmem:[%s11458_s30 + $0x2e0] sm:$0xff]  ;;  %v9023_v50 = vld [vmem:[%s11458_s30 + $0x2e8] sm:$0xff]  ;;  %9020 = vst [vmem:[%s11454_s11 + $0x378] sm:$0xff] %v9019_v48 }
 0x896   : >> { %9022 = vst [vmem:[%s11454_s11 + $0x398] sm:$0xff] %v9021_v49  ;;  %9024 = vst [vmem:[%s11454_s11 + $0x3a0] sm:$0xff] %v9023_v50  ;;  %v9025_v51 = vld [vmem:[%s11458_s30 + $0x300] sm:$0xff]  ;;  %v9027_v52 = vld [vmem:[%s11458_s30 + $0x308] sm:$0xff] }
 0x897   : >> { %v9029_v53 = vld [vmem:[%s11458_s30 + $0x320] sm:$0xff]  ;;  %9026 = vst [vmem:[%s11454_s11 + $0x3c0] sm:$0xff] %v9025_v51  ;;  %9028 = vst [vmem:[%s11454_s11 + $0x3c8] sm:$0xff] %v9027_v52  ;;  %v9031_v54 = vld [vmem:[%s11458_s30 + $0x328] sm:$0xff] }
 0x898   : >> { %9030 = vst [vmem:[%s11454_s11 + $0x3e8] sm:$0xff] %v9029_v53  ;;  %v9033_v55 = vld [vmem:[%s11458_s30 + $0x340] sm:$0xff]  ;;  %v9035_v56 = vld [vmem:[%s11458_s30 + $0x348] sm:$0xff]  ;;  %9032 = vst [vmem:[%s11454_s11 + $0x3f0] sm:$0xff] %v9031_v54  ;;  %8925 = sbr.rel (!%p8922_p1) target bundleno = 2174 (0x87e), region = 235 }
 0x899   : >> { %9034 = vst [vmem:[%s11454_s11 + $0x410] sm:$0xff] %v9033_v55  ;;  %9036 = vst [vmem:[%s11454_s11 + $0x418] sm:$0xff] %v9035_v56  ;;  %v9037_v57 = vld [vmem:[%s11458_s30 + $0x360] sm:$0xff]  ;;  %v9039_v58 = vld [vmem:[%s11458_s30 + $0x368] sm:$0xff] }
 0x89a   : >> { %v9041_v59 = vld [vmem:[%s11458_s30 + $0x380] sm:$0xff]  ;;  %9038 = vst [vmem:[%s11454_s11 + $0x438] sm:$0xff] %v9037_v57  ;;  %9040 = vst [vmem:[%s11454_s11 + $0x440] sm:$0xff] %v9039_v58  ;;  %v9043_v60 = vld [vmem:[%s11458_s30 + $0x388] sm:$0xff] }
 0x89b   : >> { %9042 = vst [vmem:[%s11454_s11 + $0x460] sm:$0xff] %v9041_v59  ;;  %v9045_v61 = vld [vmem:[%s11458_s30 + $0x3a0] sm:$0xff]  ;;  %v9047_v62 = vld [vmem:[%s11458_s30 + $0x3a8] sm:$0xff]  ;;  %9044 = vst [vmem:[%s11454_s11 + $0x468] sm:$0xff] %v9043_v60 }
 0x89c   : >> { %9046 = vst [vmem:[%s11454_s11 + $0x488] sm:$0xff] %v9045_v61  ;;  %9048 = vst [vmem:[%s11454_s11 + $0x490] sm:$0xff] %v9047_v62  ;;  %v9049_v63 = vld [vmem:[%s11458_s30 + $0x3c0] sm:$0xff]  ;;  %v9051_v0 = vld [vmem:[%s11458_s30 + $0x3c8] sm:$0xff] }
 0x89d   : >> { %v9053_v1 = vld [vmem:[%s11458_s30 + $0x3e0] sm:$0xff]  ;;  %9050 = vst [vmem:[%s11454_s11 + $0x4b0] sm:$0xff] %v9049_v63  ;;  %9052 = vst [vmem:[%s11454_s11 + $0x4b8] sm:$0xff] %v9051_v0  ;;  %v9055_v3 = vld [vmem:[%s11458_s30 + $0x3e8] sm:$0xff]  ;;  %s17745_s30 = smov %s16917_s12 }
 0x89e   : >> { %9054 = vst [vmem:[%s11454_s11 + $0x4d8] sm:$0xff] %v9053_v1  ;;  %9056 = vst [vmem:[%s11454_s11 + $0x4e0] sm:$0xff] %v9055_v3  ;;  %s17744_s11 = smov %s16920_s21 }
 0x89f PF: > { %s17026_s6 = sand.u32 1, %s8916_s15   ;;  %s9981_s7 = sshll.u32 %s16850_s23, 8 }
 0x8a0   : > { %s9068_s8 = sshra.s32 %s9981_s7, 4  ;;  %p9966_p2 = scmp.le.s32.totalorder %s17026_s6, 0 }
 0x8a1   : > { %s17030_s29 = scalar_lea.vmem %s16700_s4, %s9068_s8 [#allocation3]   ;;  %s17033_s24 = scalar_lea.vmem %s16837_s9, %s9068_s8  }
 0x8a2   : > { %9605 = sbr.rel (%p9966_p2) target bundleno = 2250 (0x8ca), region = 240  ;;  %s17747_s10 = smov (!%p9966_p2), %s17033_s24 }
 0x8a3   : > { %s17748_s11 = smov (!%p9966_p2), %s17030_s29  ;;  %s17042_s30 = smov (!%p9966_p2), 0  }
 0x8a4   : > { %s17044_s22 = smov (!%p9966_p2), 0  }
 0x8a9 LB: >> { %v9084_v4 = vld [vmem:[%s11474_s11] sm:$0xff]  ;;  %s9148_s15 = sadd.s32 1, %s11478_s30  ;;  %s9078_s22 = sadd.s32 1, %s11482_s22   ;;  %s11482_s22 = sphi %s17044_s22, %s9078_s22   ;;  %s11478_s30 = sphi %s17042_s30, %s17751_s30   ;;  %s11474_s11 = sphi %s17748_s11, %s17750_s11   ;;  %s11470_s10 = sphi %s17747_s10, %s17749_s10  }
 0x8aa   : >> { %v9086_v5 = vld [vmem:[%s11474_s11 + $0x20] sm:$0xff]  ;;  %9085 = vst [vmem:[%s11470_s10] sm:$0xff] %v9084_v4  ;;  %p9149_p3 = scmp.ge.s32.totalorder %s9148_s15, %s17026_s6  ;;  %p9077_p4 = scmp.ge.s32.totalorder %s9078_s22, %s17026_s6 }
 0x8ab   : >> { %v9088_v6 = vld [vmem:[%s11474_s11 + $0x40] sm:$0xff]  ;;  %9087 = vst [vmem:[%s11470_s10 + $0x28] sm:$0xff] %v9086_v5 }
 0x8ac   : >> { %9089 = vst [vmem:[%s11470_s10 + $0x50] sm:$0xff] %v9088_v6  ;;  %v9090_v7 = vld [vmem:[%s11474_s11 + $0x60] sm:$0xff]  ;;  %s17785_s15 = smov (%p9149_p3, %s9148_s15), 0 }
 0x8ad   : >> { %v9092_v8 = vld [vmem:[%s11474_s11 + $0x80] sm:$0xff]  ;;  %9091 = vst [vmem:[%s11470_s10 + $0x78] sm:$0xff] %v9090_v7  ;;  %s9967_s23 = sshll.u32 %s17785_s15, 3  ;;  %s17751_s30 = smov %s17785_s15 }
 0x8ae   : >> { %v9094_v9 = vld [vmem:[%s11474_s11 + $0xa0] sm:$0xff]  ;;  %9093 = vst [vmem:[%s11470_s10 + $0xa0] sm:$0xff] %v9092_v8  ;;  %s17100_s25 = scalar_lea.vmem %s17030_s29, %s9967_s23 [#allocation3]   ;;  %s9154_s26 = scalar_lea.vmem %s17033_s24, %s9967_s23  }
 0x8af   : >> { %9095 = vst [vmem:[%s11470_s10 + $0xc8] sm:$0xff] %v9094_v9  ;;  %v9096_v10 = vld [vmem:[%s11474_s11 + $0xc0] sm:$0xff] }
 0x8b0   : >> { %v9098_v11 = vld [vmem:[%s11474_s11 + $0xe0] sm:$0xff]  ;;  %9097 = vst [vmem:[%s11470_s10 + $0xf0] sm:$0xff] %v9096_v10 }
 0x8b1   : >> { %v9100_v12 = vld [vmem:[%s11474_s11 + $0x100] sm:$0xff]  ;;  %9099 = vst [vmem:[%s11470_s10 + $0x118] sm:$0xff] %v9098_v11 }
 0x8b2   : >> { %9101 = vst [vmem:[%s11470_s10 + $0x140] sm:$0xff] %v9100_v12  ;;  %v9102_v13 = vld [vmem:[%s11474_s11 + $0x120] sm:$0xff] }
 0x8b3   : >> { %v9104_v14 = vld [vmem:[%s11474_s11 + $0x140] sm:$0xff]  ;;  %9103 = vst [vmem:[%s11470_s10 + $0x168] sm:$0xff] %v9102_v13 }
 0x8b4   : >> { %v9106_v15 = vld [vmem:[%s11474_s11 + $0x160] sm:$0xff]  ;;  %9105 = vst [vmem:[%s11470_s10 + $0x190] sm:$0xff] %v9104_v14 }
 0x8b5   : >> { %9107 = vst [vmem:[%s11470_s10 + $0x1b8] sm:$0xff] %v9106_v15  ;;  %v9108_v16 = vld [vmem:[%s11474_s11 + $0x180] sm:$0xff] }
 0x8b6   : >> { %v9110_v17 = vld [vmem:[%s11474_s11 + $0x1a0] sm:$0xff]  ;;  %9109 = vst [vmem:[%s11470_s10 + $0x1e0] sm:$0xff] %v9108_v16 }
 0x8b7   : >> { %v9112_v18 = vld [vmem:[%s11474_s11 + $0x1c0] sm:$0xff]  ;;  %9111 = vst [vmem:[%s11470_s10 + $0x208] sm:$0xff] %v9110_v17 }
 0x8b8   : >> { %9113 = vst [vmem:[%s11470_s10 + $0x230] sm:$0xff] %v9112_v18  ;;  %v9114_v19 = vld [vmem:[%s11474_s11 + $0x1e0] sm:$0xff] }
 0x8b9   : >> { %v9116_v20 = vld [vmem:[%s11474_s11 + $0x200] sm:$0xff]  ;;  %9115 = vst [vmem:[%s11470_s10 + $0x258] sm:$0xff] %v9114_v19 }
 0x8ba   : >> { %v9118_v21 = vld [vmem:[%s11474_s11 + $0x220] sm:$0xff]  ;;  %9117 = vst [vmem:[%s11470_s10 + $0x280] sm:$0xff] %v9116_v20 }
 0x8bb   : >> { %9119 = vst [vmem:[%s11470_s10 + $0x2a8] sm:$0xff] %v9118_v21  ;;  %v9120_v22 = vld [vmem:[%s11474_s11 + $0x240] sm:$0xff] }
 0x8bc   : >> { %v9122_v23 = vld [vmem:[%s11474_s11 + $0x260] sm:$0xff]  ;;  %9121 = vst [vmem:[%s11470_s10 + $0x2d0] sm:$0xff] %v9120_v22 }
 0x8bd   : >> { %v9124_v24 = vld [vmem:[%s11474_s11 + $0x280] sm:$0xff]  ;;  %9123 = vst [vmem:[%s11470_s10 + $0x2f8] sm:$0xff] %v9122_v23 }
 0x8be   : >> { %9125 = vst [vmem:[%s11470_s10 + $0x320] sm:$0xff] %v9124_v24  ;;  %v9126_v25 = vld [vmem:[%s11474_s11 + $0x2a0] sm:$0xff] }
 0x8bf   : >> { %v9128_v26 = vld [vmem:[%s11474_s11 + $0x2c0] sm:$0xff]  ;;  %9127 = vst [vmem:[%s11470_s10 + $0x348] sm:$0xff] %v9126_v25 }
 0x8c0   : >> { %v9130_v27 = vld [vmem:[%s11474_s11 + $0x2e0] sm:$0xff]  ;;  %9129 = vst [vmem:[%s11470_s10 + $0x370] sm:$0xff] %v9128_v26 }
 0x8c1   : >> { %9131 = vst [vmem:[%s11470_s10 + $0x398] sm:$0xff] %v9130_v27  ;;  %v9132_v28 = vld [vmem:[%s11474_s11 + $0x300] sm:$0xff] }
 0x8c2   : >> { %v9134_v29 = vld [vmem:[%s11474_s11 + $0x320] sm:$0xff]  ;;  %9133 = vst [vmem:[%s11470_s10 + $0x3c0] sm:$0xff] %v9132_v28 }
 0x8c3   : >> { %v9136_v30 = vld [vmem:[%s11474_s11 + $0x340] sm:$0xff]  ;;  %9135 = vst [vmem:[%s11470_s10 + $0x3e8] sm:$0xff] %v9134_v29  ;;  %9080 = sbr.rel (!%p9077_p4) target bundleno = 2217 (0x8a9), region = 246 }
 0x8c4   : >> { %9137 = vst [vmem:[%s11470_s10 + $0x410] sm:$0xff] %v9136_v30  ;;  %v9138_v31 = vld [vmem:[%s11474_s11 + $0x360] sm:$0xff] }
 0x8c5   : >> { %v9140_v32 = vld [vmem:[%s11474_s11 + $0x380] sm:$0xff]  ;;  %9139 = vst [vmem:[%s11470_s10 + $0x438] sm:$0xff] %v9138_v31 }
 0x8c6   : >> { %v9142_v33 = vld [vmem:[%s11474_s11 + $0x3a0] sm:$0xff]  ;;  %9141 = vst [vmem:[%s11470_s10 + $0x460] sm:$0xff] %v9140_v32 }
 0x8c7   : >> { %9143 = vst [vmem:[%s11470_s10 + $0x488] sm:$0xff] %v9142_v33  ;;  %v9144_v34 = vld [vmem:[%s11474_s11 + $0x3c0] sm:$0xff] }
 0x8c8   : >> { %v9146_v35 = vld [vmem:[%s11474_s11 + $0x3e0] sm:$0xff]  ;;  %9145 = vst [vmem:[%s11470_s10 + $0x4b0] sm:$0xff] %v9144_v34  ;;  %s17750_s11 = smov %s17100_s25 }
 0x8c9   : >> { %9147 = vst [vmem:[%s11470_s10 + $0x4d8] sm:$0xff] %v9146_v35  ;;  %s17749_s10 = smov %s9154_s26 }
 0x8ca PF: > { %9157 = sbr.rel (%p8912_p11) target bundleno = 2375 (0x947), region = 129  ;;  %s9159_s28 = ssub.s32 (!%p8912_p11), %s16839_s5, %s16843_s14 }
 0x8cb   : > { %s9163_s12 = sshrl.u32 (!%p8912_p11), %s16839_s5, 3  ;;  %s17146_s21 = scalar_lea.vmem (!%p8912_p11), %s16700_s4, %s9159_s28 [#allocation3] }
 0x8cc   : > { %s17149_s7 = scalar_lea.vmem (!%p8912_p11), %s16837_s9, %s9159_s28  ;;  %s17153_s8 = sshrl.u32 (!%p8912_p11), %s9163_s12, 1 }
 0x8cd   : > { %p9969_p5 = scmp.le.s32.totalorder (!%p8912_p11), %s17153_s8, 0 }
 0x8d1   : > { %9619 = sbr.rel (%p9969_p5) target bundleno = 2297 (0x8f9), region = 251  ;;  %s17752_s6 = smov (!%p9969_p5), %s16837_s9 }
 0x8d2   : > { %s17753_s29 = smov (!%p9969_p5), %s16700_s4  ;;  %s17162_s24 = smov (!%p9969_p5), 0  }
 0x8d3   : > { %s17164_s10 = smov (!%p9969_p5), 0  }
 0x8d8 LB: >> { %v9176_v36 = vld [vmem:[%s11490_s29] sm:$0xff]  ;;  %v9178_v37 = vld [vmem:[%s11490_s29 + $0x8] sm:$0xff]  ;;  %s9304_s11 = sadd.s32 1, %s11494_s24  ;;  %s9170_s10 = sadd.s32 1, %s11498_s10   ;;  %s11498_s10 = sphi %s17164_s10, %s9170_s10   ;;  %s11494_s24 = sphi %s17162_s24, %s17756_s24   ;;  %s11490_s29 = sphi %s17753_s29, %s17755_s29   ;;  %s11486_s6 = sphi %s17752_s6, %s17754_s6  }
 0x8d9   : >> { %v9180_v38 = vld [vmem:[%s11490_s29 + $0x20] sm:$0xff]  ;;  %9177 = vst [vmem:[%s11486_s6] sm:$0xff] %v9176_v36  ;;  %9179 = vst [vmem:[%s11486_s6 + $0x8] sm:$0xff] %v9178_v37  ;;  %v9182_v39 = vld [vmem:[%s11490_s29 + $0x28] sm:$0xff]  ;;  %p9305_p7 = scmp.ge.s32.totalorder %s9304_s11, %s17153_s8  ;;  %p9169_p8 = scmp.ge.s32.totalorder %s9170_s10, %s17153_s8 }
 0x8da   : >> { %9181 = vst [vmem:[%s11486_s6 + $0x28] sm:$0xff] %v9180_v38  ;;  %v9184_v40 = vld [vmem:[%s11490_s29 + $0x40] sm:$0xff]  ;;  %v9186_v2 = vld [vmem:[%s11490_s29 + $0x48] sm:$0xff]  ;;  %9183 = vst [vmem:[%s11486_s6 + $0x30] sm:$0xff] %v9182_v39 }
 0x8db   : >> { %9185 = vst [vmem:[%s11486_s6 + $0x50] sm:$0xff] %v9184_v40  ;;  %9187 = vst [vmem:[%s11486_s6 + $0x58] sm:$0xff] %v9186_v2  ;;  %v9188_v41 = vld [vmem:[%s11490_s29 + $0x60] sm:$0xff]  ;;  %v9190_v42 = vld [vmem:[%s11490_s29 + $0x68] sm:$0xff]  ;;  %s17787_s11 = smov (%p9305_p7, %s9304_s11), 0 }
 0x8dc   : >> { %v9192_v43 = vld [vmem:[%s11490_s29 + $0x80] sm:$0xff]  ;;  %9189 = vst [vmem:[%s11486_s6 + $0x78] sm:$0xff] %v9188_v41  ;;  %9191 = vst [vmem:[%s11486_s6 + $0x80] sm:$0xff] %v9190_v42  ;;  %v9194_v44 = vld [vmem:[%s11490_s29 + $0x88] sm:$0xff]  ;;  %s9970_s30 = sshll.u32 %s17787_s11, 4  ;;  %s17756_s24 = smov %s17787_s11 }
 0x8dd   : >> { %9193 = vst [vmem:[%s11486_s6 + $0xa0] sm:$0xff] %v9192_v43  ;;  %v9196_v45 = vld [vmem:[%s11490_s29 + $0xa0] sm:$0xff]  ;;  %v9198_v46 = vld [vmem:[%s11490_s29 + $0xa8] sm:$0xff]  ;;  %9195 = vst [vmem:[%s11486_s6 + $0xa8] sm:$0xff] %v9194_v44  ;;  %s17220_s22 = scalar_lea.vmem %s16700_s4, %s9970_s30 [#allocation3]   ;;  %s17223_s15 = scalar_lea.vmem %s16837_s9, %s9970_s30  }
 0x8de   : >> { %9197 = vst [vmem:[%s11486_s6 + $0xc8] sm:$0xff] %v9196_v45  ;;  %9199 = vst [vmem:[%s11486_s6 + $0xd0] sm:$0xff] %v9198_v46  ;;  %v9200_v47 = vld [vmem:[%s11490_s29 + $0xc0] sm:$0xff]  ;;  %v9202_v48 = vld [vmem:[%s11490_s29 + $0xc8] sm:$0xff] }
 0x8df   : >> { %v9204_v49 = vld [vmem:[%s11490_s29 + $0xe0] sm:$0xff]  ;;  %9201 = vst [vmem:[%s11486_s6 + $0xf0] sm:$0xff] %v9200_v47  ;;  %9203 = vst [vmem:[%s11486_s6 + $0xf8] sm:$0xff] %v9202_v48  ;;  %v9206_v50 = vld [vmem:[%s11490_s29 + $0xe8] sm:$0xff] }
 0x8e0   : >> { %9205 = vst [vmem:[%s11486_s6 + $0x118] sm:$0xff] %v9204_v49  ;;  %v9208_v51 = vld [vmem:[%s11490_s29 + $0x100] sm:$0xff]  ;;  %v9210_v52 = vld [vmem:[%s11490_s29 + $0x108] sm:$0xff]  ;;  %9207 = vst [vmem:[%s11486_s6 + $0x120] sm:$0xff] %v9206_v50 }
 0x8e1   : >> { %9209 = vst [vmem:[%s11486_s6 + $0x140] sm:$0xff] %v9208_v51  ;;  %9211 = vst [vmem:[%s11486_s6 + $0x148] sm:$0xff] %v9210_v52  ;;  %v9212_v53 = vld [vmem:[%s11490_s29 + $0x120] sm:$0xff]  ;;  %v9214_v54 = vld [vmem:[%s11490_s29 + $0x128] sm:$0xff] }
 0x8e2   : >> { %v9216_v55 = vld [vmem:[%s11490_s29 + $0x140] sm:$0xff]  ;;  %9213 = vst [vmem:[%s11486_s6 + $0x168] sm:$0xff] %v9212_v53  ;;  %9215 = vst [vmem:[%s11486_s6 + $0x170] sm:$0xff] %v9214_v54  ;;  %v9218_v56 = vld [vmem:[%s11490_s29 + $0x148] sm:$0xff] }
 0x8e3   : >> { %9217 = vst [vmem:[%s11486_s6 + $0x190] sm:$0xff] %v9216_v55  ;;  %v9220_v57 = vld [vmem:[%s11490_s29 + $0x160] sm:$0xff]  ;;  %v9222_v58 = vld [vmem:[%s11490_s29 + $0x168] sm:$0xff]  ;;  %9219 = vst [vmem:[%s11486_s6 + $0x198] sm:$0xff] %v9218_v56 }
 0x8e4   : >> { %9221 = vst [vmem:[%s11486_s6 + $0x1b8] sm:$0xff] %v9220_v57  ;;  %9223 = vst [vmem:[%s11486_s6 + $0x1c0] sm:$0xff] %v9222_v58  ;;  %v9224_v59 = vld [vmem:[%s11490_s29 + $0x180] sm:$0xff]  ;;  %v9226_v60 = vld [vmem:[%s11490_s29 + $0x188] sm:$0xff] }
 0x8e5   : >> { %v9228_v61 = vld [vmem:[%s11490_s29 + $0x1a0] sm:$0xff]  ;;  %9225 = vst [vmem:[%s11486_s6 + $0x1e0] sm:$0xff] %v9224_v59  ;;  %9227 = vst [vmem:[%s11486_s6 + $0x1e8] sm:$0xff] %v9226_v60  ;;  %v9230_v62 = vld [vmem:[%s11490_s29 + $0x1a8] sm:$0xff] }
 0x8e6   : >> { %9229 = vst [vmem:[%s11486_s6 + $0x208] sm:$0xff] %v9228_v61  ;;  %v9232_v63 = vld [vmem:[%s11490_s29 + $0x1c0] sm:$0xff]  ;;  %v9234_v0 = vld [vmem:[%s11490_s29 + $0x1c8] sm:$0xff]  ;;  %9231 = vst [vmem:[%s11486_s6 + $0x210] sm:$0xff] %v9230_v62 }
 0x8e7   : >> { %9233 = vst [vmem:[%s11486_s6 + $0x230] sm:$0xff] %v9232_v63  ;;  %9235 = vst [vmem:[%s11486_s6 + $0x238] sm:$0xff] %v9234_v0  ;;  %v9236_v1 = vld [vmem:[%s11490_s29 + $0x1e0] sm:$0xff]  ;;  %v9238_v3 = vld [vmem:[%s11490_s29 + $0x1e8] sm:$0xff] }
 0x8e8   : >> { %v9240_v4 = vld [vmem:[%s11490_s29 + $0x200] sm:$0xff]  ;;  %9237 = vst [vmem:[%s11486_s6 + $0x258] sm:$0xff] %v9236_v1  ;;  %9239 = vst [vmem:[%s11486_s6 + $0x260] sm:$0xff] %v9238_v3  ;;  %v9242_v5 = vld [vmem:[%s11490_s29 + $0x208] sm:$0xff] }
 0x8e9   : >> { %9241 = vst [vmem:[%s11486_s6 + $0x280] sm:$0xff] %v9240_v4  ;;  %v9244_v6 = vld [vmem:[%s11490_s29 + $0x220] sm:$0xff]  ;;  %v9246_v7 = vld [vmem:[%s11490_s29 + $0x228] sm:$0xff]  ;;  %9243 = vst [vmem:[%s11486_s6 + $0x288] sm:$0xff] %v9242_v5 }
 0x8ea   : >> { %9245 = vst [vmem:[%s11486_s6 + $0x2a8] sm:$0xff] %v9244_v6  ;;  %9247 = vst [vmem:[%s11486_s6 + $0x2b0] sm:$0xff] %v9246_v7  ;;  %v9248_v8 = vld [vmem:[%s11490_s29 + $0x240] sm:$0xff]  ;;  %v9250_v9 = vld [vmem:[%s11490_s29 + $0x248] sm:$0xff] }
 0x8eb   : >> { %v9252_v10 = vld [vmem:[%s11490_s29 + $0x260] sm:$0xff]  ;;  %9249 = vst [vmem:[%s11486_s6 + $0x2d0] sm:$0xff] %v9248_v8  ;;  %9251 = vst [vmem:[%s11486_s6 + $0x2d8] sm:$0xff] %v9250_v9  ;;  %v9254_v11 = vld [vmem:[%s11490_s29 + $0x268] sm:$0xff] }
 0x8ec   : >> { %9253 = vst [vmem:[%s11486_s6 + $0x2f8] sm:$0xff] %v9252_v10  ;;  %v9256_v12 = vld [vmem:[%s11490_s29 + $0x280] sm:$0xff]  ;;  %v9258_v13 = vld [vmem:[%s11490_s29 + $0x288] sm:$0xff]  ;;  %9255 = vst [vmem:[%s11486_s6 + $0x300] sm:$0xff] %v9254_v11 }
 0x8ed   : >> { %9257 = vst [vmem:[%s11486_s6 + $0x320] sm:$0xff] %v9256_v12  ;;  %9259 = vst [vmem:[%s11486_s6 + $0x328] sm:$0xff] %v9258_v13  ;;  %v9260_v14 = vld [vmem:[%s11490_s29 + $0x2a0] sm:$0xff]  ;;  %v9262_v15 = vld [vmem:[%s11490_s29 + $0x2a8] sm:$0xff] }
 0x8ee   : >> { %v9264_v16 = vld [vmem:[%s11490_s29 + $0x2c0] sm:$0xff]  ;;  %9261 = vst [vmem:[%s11486_s6 + $0x348] sm:$0xff] %v9260_v14  ;;  %9263 = vst [vmem:[%s11486_s6 + $0x350] sm:$0xff] %v9262_v15  ;;  %v9266_v17 = vld [vmem:[%s11490_s29 + $0x2c8] sm:$0xff] }
 0x8ef   : >> { %9265 = vst [vmem:[%s11486_s6 + $0x370] sm:$0xff] %v9264_v16  ;;  %v9268_v18 = vld [vmem:[%s11490_s29 + $0x2e0] sm:$0xff]  ;;  %v9270_v19 = vld [vmem:[%s11490_s29 + $0x2e8] sm:$0xff]  ;;  %9267 = vst [vmem:[%s11486_s6 + $0x378] sm:$0xff] %v9266_v17 }
 0x8f0   : >> { %9269 = vst [vmem:[%s11486_s6 + $0x398] sm:$0xff] %v9268_v18  ;;  %9271 = vst [vmem:[%s11486_s6 + $0x3a0] sm:$0xff] %v9270_v19  ;;  %v9272_v20 = vld [vmem:[%s11490_s29 + $0x300] sm:$0xff]  ;;  %v9274_v21 = vld [vmem:[%s11490_s29 + $0x308] sm:$0xff] }
 0x8f1   : >> { %v9276_v22 = vld [vmem:[%s11490_s29 + $0x320] sm:$0xff]  ;;  %9273 = vst [vmem:[%s11486_s6 + $0x3c0] sm:$0xff] %v9272_v20  ;;  %9275 = vst [vmem:[%s11486_s6 + $0x3c8] sm:$0xff] %v9274_v21  ;;  %v9278_v23 = vld [vmem:[%s11490_s29 + $0x328] sm:$0xff] }
 0x8f2   : >> { %9277 = vst [vmem:[%s11486_s6 + $0x3e8] sm:$0xff] %v9276_v22  ;;  %v9280_v24 = vld [vmem:[%s11490_s29 + $0x340] sm:$0xff]  ;;  %v9282_v25 = vld [vmem:[%s11490_s29 + $0x348] sm:$0xff]  ;;  %9279 = vst [vmem:[%s11486_s6 + $0x3f0] sm:$0xff] %v9278_v23  ;;  %9172 = sbr.rel (!%p9169_p8) target bundleno = 2264 (0x8d8), region = 257 }
 0x8f3   : >> { %9281 = vst [vmem:[%s11486_s6 + $0x410] sm:$0xff] %v9280_v24  ;;  %9283 = vst [vmem:[%s11486_s6 + $0x418] sm:$0xff] %v9282_v25  ;;  %v9284_v26 = vld [vmem:[%s11490_s29 + $0x360] sm:$0xff]  ;;  %v9286_v27 = vld [vmem:[%s11490_s29 + $0x368] sm:$0xff] }
 0x8f4   : >> { %v9288_v28 = vld [vmem:[%s11490_s29 + $0x380] sm:$0xff]  ;;  %9285 = vst [vmem:[%s11486_s6 + $0x438] sm:$0xff] %v9284_v26  ;;  %9287 = vst [vmem:[%s11486_s6 + $0x440] sm:$0xff] %v9286_v27  ;;  %v9290_v29 = vld [vmem:[%s11490_s29 + $0x388] sm:$0xff] }
 0x8f5   : >> { %9289 = vst [vmem:[%s11486_s6 + $0x460] sm:$0xff] %v9288_v28  ;;  %v9292_v30 = vld [vmem:[%s11490_s29 + $0x3a0] sm:$0xff]  ;;  %v9294_v31 = vld [vmem:[%s11490_s29 + $0x3a8] sm:$0xff]  ;;  %9291 = vst [vmem:[%s11486_s6 + $0x468] sm:$0xff] %v9290_v29 }
 0x8f6   : >> { %9293 = vst [vmem:[%s11486_s6 + $0x488] sm:$0xff] %v9292_v30  ;;  %9295 = vst [vmem:[%s11486_s6 + $0x490] sm:$0xff] %v9294_v31  ;;  %v9296_v32 = vld [vmem:[%s11490_s29 + $0x3c0] sm:$0xff]  ;;  %v9298_v33 = vld [vmem:[%s11490_s29 + $0x3c8] sm:$0xff] }
 0x8f7   : >> { %v9300_v34 = vld [vmem:[%s11490_s29 + $0x3e0] sm:$0xff]  ;;  %9297 = vst [vmem:[%s11486_s6 + $0x4b0] sm:$0xff] %v9296_v32  ;;  %9299 = vst [vmem:[%s11486_s6 + $0x4b8] sm:$0xff] %v9298_v33  ;;  %v9302_v35 = vld [vmem:[%s11490_s29 + $0x3e8] sm:$0xff]  ;;  %s17755_s29 = smov %s17220_s22 }
 0x8f8   : >> { %9301 = vst [vmem:[%s11486_s6 + $0x4d8] sm:$0xff] %v9300_v34  ;;  %9303 = vst [vmem:[%s11486_s6 + $0x4e0] sm:$0xff] %v9302_v35  ;;  %s17754_s6 = smov %s17223_s15 }
 0x8f9 PF: > { %s17329_s23 = sand.u32 1, %s9163_s12   ;;  %s9983_s25 = sshll.u32 %s17153_s8, 8 }
 0x8fa   : > { %s9315_s26 = sshra.s32 %s9983_s25, 4  ;;  %p9975_p9 = scmp.le.s32.totalorder %s17329_s23, 0 }
 0x8fb   : > { %s17333_s28 = scalar_lea.vmem %s16700_s4, %s9315_s26 [#allocation3]   ;;  %s17336_s30 = scalar_lea.vmem %s16837_s9, %s9315_s26  }
 0x8fc   : > { %9633 = sbr.rel (%p9975_p9) target bundleno = 2340 (0x924), region = 262  ;;  %s17757_s6 = smov (!%p9975_p9), %s17336_s30 }
 0x8fd   : > { %s17758_s29 = smov (!%p9975_p9), %s17333_s28  ;;  %s17345_s24 = smov (!%p9975_p9), 0  }
 0x8fe   : > { %s17347_s10 = smov (!%p9975_p9), 0  }
 0x903 LB: >> { %v9331_v36 = vld [vmem:[%s11506_s29] sm:$0xff]  ;;  %s9395_s12 = sadd.s32 1, %s11510_s24  ;;  %s9325_s10 = sadd.s32 1, %s11514_s10   ;;  %s11514_s10 = sphi %s17347_s10, %s9325_s10   ;;  %s11510_s24 = sphi %s17345_s24, %s17761_s24   ;;  %s11506_s29 = sphi %s17758_s29, %s17760_s29   ;;  %s11502_s6 = sphi %s17757_s6, %s17759_s6  }
 0x904   : >> { %v9333_v37 = vld [vmem:[%s11506_s29 + $0x20] sm:$0xff]  ;;  %9332 = vst [vmem:[%s11502_s6] sm:$0xff] %v9331_v36  ;;  %p9396_p10 = scmp.ge.s32.totalorder %s9395_s12, %s17329_s23  ;;  %p9324_p6 = scmp.ge.s32.totalorder %s9325_s10, %s17329_s23 }
 0x905   : >> { %v9335_v38 = vld [vmem:[%s11506_s29 + $0x40] sm:$0xff]  ;;  %9334 = vst [vmem:[%s11502_s6 + $0x28] sm:$0xff] %v9333_v37 }
 0x906   : >> { %9336 = vst [vmem:[%s11502_s6 + $0x50] sm:$0xff] %v9335_v38  ;;  %v9337_v39 = vld [vmem:[%s11506_s29 + $0x60] sm:$0xff]  ;;  %s17789_s12 = smov (%p9396_p10, %s9395_s12), 0 }
 0x907   : >> { %v9339_v40 = vld [vmem:[%s11506_s29 + $0x80] sm:$0xff]  ;;  %9338 = vst [vmem:[%s11502_s6 + $0x78] sm:$0xff] %v9337_v39  ;;  %s9976_s8 = sshll.u32 %s17789_s12, 3  ;;  %s17761_s24 = smov %s17789_s12 }
 0x908   : >> { %v9341_v2 = vld [vmem:[%s11506_s29 + $0xa0] sm:$0xff]  ;;  %9340 = vst [vmem:[%s11502_s6 + $0xa0] sm:$0xff] %v9339_v40  ;;  %s17403_s11 = scalar_lea.vmem %s17333_s28, %s9976_s8 [#allocation3]   ;;  %s9401_s22 = scalar_lea.vmem %s17336_s30, %s9976_s8  }
 0x909   : >> { %9342 = vst [vmem:[%s11502_s6 + $0xc8] sm:$0xff] %v9341_v2  ;;  %v9343_v41 = vld [vmem:[%s11506_s29 + $0xc0] sm:$0xff] }
 0x90a   : >> { %v9345_v42 = vld [vmem:[%s11506_s29 + $0xe0] sm:$0xff]  ;;  %9344 = vst [vmem:[%s11502_s6 + $0xf0] sm:$0xff] %v9343_v41 }
 0x90b   : >> { %v9347_v43 = vld [vmem:[%s11506_s29 + $0x100] sm:$0xff]  ;;  %9346 = vst [vmem:[%s11502_s6 + $0x118] sm:$0xff] %v9345_v42 }
 0x90c   : >> { %9348 = vst [vmem:[%s11502_s6 + $0x140] sm:$0xff] %v9347_v43  ;;  %v9349_v44 = vld [vmem:[%s11506_s29 + $0x120] sm:$0xff] }
 0x90d   : >> { %v9351_v45 = vld [vmem:[%s11506_s29 + $0x140] sm:$0xff]  ;;  %9350 = vst [vmem:[%s11502_s6 + $0x168] sm:$0xff] %v9349_v44 }
 0x90e   : >> { %v9353_v46 = vld [vmem:[%s11506_s29 + $0x160] sm:$0xff]  ;;  %9352 = vst [vmem:[%s11502_s6 + $0x190] sm:$0xff] %v9351_v45 }
 0x90f   : >> { %9354 = vst [vmem:[%s11502_s6 + $0x1b8] sm:$0xff] %v9353_v46  ;;  %v9355_v47 = vld [vmem:[%s11506_s29 + $0x180] sm:$0xff] }
 0x910   : >> { %v9357_v48 = vld [vmem:[%s11506_s29 + $0x1a0] sm:$0xff]  ;;  %9356 = vst [vmem:[%s11502_s6 + $0x1e0] sm:$0xff] %v9355_v47 }
 0x911   : >> { %v9359_v49 = vld [vmem:[%s11506_s29 + $0x1c0] sm:$0xff]  ;;  %9358 = vst [vmem:[%s11502_s6 + $0x208] sm:$0xff] %v9357_v48 }
 0x912   : >> { %9360 = vst [vmem:[%s11502_s6 + $0x230] sm:$0xff] %v9359_v49  ;;  %v9361_v50 = vld [vmem:[%s11506_s29 + $0x1e0] sm:$0xff] }
 0x913   : >> { %v9363_v51 = vld [vmem:[%s11506_s29 + $0x200] sm:$0xff]  ;;  %9362 = vst [vmem:[%s11502_s6 + $0x258] sm:$0xff] %v9361_v50 }
 0x914   : >> { %v9365_v52 = vld [vmem:[%s11506_s29 + $0x220] sm:$0xff]  ;;  %9364 = vst [vmem:[%s11502_s6 + $0x280] sm:$0xff] %v9363_v51 }
 0x915   : >> { %9366 = vst [vmem:[%s11502_s6 + $0x2a8] sm:$0xff] %v9365_v52  ;;  %v9367_v53 = vld [vmem:[%s11506_s29 + $0x240] sm:$0xff] }
 0x916   : >> { %v9369_v54 = vld [vmem:[%s11506_s29 + $0x260] sm:$0xff]  ;;  %9368 = vst [vmem:[%s11502_s6 + $0x2d0] sm:$0xff] %v9367_v53 }
 0x917   : >> { %v9371_v55 = vld [vmem:[%s11506_s29 + $0x280] sm:$0xff]  ;;  %9370 = vst [vmem:[%s11502_s6 + $0x2f8] sm:$0xff] %v9369_v54 }
 0x918   : >> { %9372 = vst [vmem:[%s11502_s6 + $0x320] sm:$0xff] %v9371_v55  ;;  %v9373_v56 = vld [vmem:[%s11506_s29 + $0x2a0] sm:$0xff] }
 0x919   : >> { %v9375_v57 = vld [vmem:[%s11506_s29 + $0x2c0] sm:$0xff]  ;;  %9374 = vst [vmem:[%s11502_s6 + $0x348] sm:$0xff] %v9373_v56 }
 0x91a   : >> { %v9377_v58 = vld [vmem:[%s11506_s29 + $0x2e0] sm:$0xff]  ;;  %9376 = vst [vmem:[%s11502_s6 + $0x370] sm:$0xff] %v9375_v57 }
 0x91b   : >> { %9378 = vst [vmem:[%s11502_s6 + $0x398] sm:$0xff] %v9377_v58  ;;  %v9379_v59 = vld [vmem:[%s11506_s29 + $0x300] sm:$0xff] }
 0x91c   : >> { %v9381_v60 = vld [vmem:[%s11506_s29 + $0x320] sm:$0xff]  ;;  %9380 = vst [vmem:[%s11502_s6 + $0x3c0] sm:$0xff] %v9379_v59 }
 0x91d   : >> { %v9383_v61 = vld [vmem:[%s11506_s29 + $0x340] sm:$0xff]  ;;  %9382 = vst [vmem:[%s11502_s6 + $0x3e8] sm:$0xff] %v9381_v60  ;;  %9327 = sbr.rel (!%p9324_p6) target bundleno = 2307 (0x903), region = 268 }
 0x91e   : >> { %9384 = vst [vmem:[%s11502_s6 + $0x410] sm:$0xff] %v9383_v61  ;;  %v9385_v62 = vld [vmem:[%s11506_s29 + $0x360] sm:$0xff] }
 0x91f   : >> { %v9387_v63 = vld [vmem:[%s11506_s29 + $0x380] sm:$0xff]  ;;  %9386 = vst [vmem:[%s11502_s6 + $0x438] sm:$0xff] %v9385_v62 }
 0x920   : >> { %v9389_v0 = vld [vmem:[%s11506_s29 + $0x3a0] sm:$0xff]  ;;  %9388 = vst [vmem:[%s11502_s6 + $0x460] sm:$0xff] %v9387_v63 }
 0x921   : >> { %9390 = vst [vmem:[%s11502_s6 + $0x488] sm:$0xff] %v9389_v0  ;;  %v9391_v1 = vld [vmem:[%s11506_s29 + $0x3c0] sm:$0xff] }
 0x922   : >> { %v9393_v3 = vld [vmem:[%s11506_s29 + $0x3e0] sm:$0xff]  ;;  %9392 = vst [vmem:[%s11502_s6 + $0x4b0] sm:$0xff] %v9391_v1  ;;  %s17760_s29 = smov %s17403_s11 }
 0x923   : >> { %9394 = vst [vmem:[%s11502_s6 + $0x4d8] sm:$0xff] %v9393_v3  ;;  %s17759_s6 = smov %s9401_s22 }
 0x924 PF: > { %s11519_s15 = smov 0  }
 0x925   : > { %s17444_s25 = sshllo.u32 %s11519_s15, %s16843_s14 }
 0x926   : > { %v9411_v4 = vld [vmem:[%s17146_s21] sm:%s17444_s25] }
 0x927   : > { %v9413_v5 = vld [vmem:[%s17146_s21 + $0x20] sm:%s17444_s25]  ;;  %9412 = vst [vmem:[%s17149_s7] sm:%s17444_s25] %v9411_v4 }
 0x928   : > { %9414 = vst [vmem:[%s17149_s7 + $0x28] sm:%s17444_s25] %v9413_v5  ;;  %v9415_v6 = vld [vmem:[%s17146_s21 + $0x40] sm:%s17444_s25] }
 0x929   : > { %v9417_v7 = vld [vmem:[%s17146_s21 + $0x60] sm:%s17444_s25]  ;;  %9416 = vst [vmem:[%s17149_s7 + $0x50] sm:%s17444_s25] %v9415_v6 }
 0x92a   : > { %9418 = vst [vmem:[%s17149_s7 + $0x78] sm:%s17444_s25] %v9417_v7  ;;  %v9419_v8 = vld [vmem:[%s17146_s21 + $0x80] sm:%s17444_s25] }
 0x92b   : > { %v9421_v9 = vld [vmem:[%s17146_s21 + $0xa0] sm:%s17444_s25]  ;;  %9420 = vst [vmem:[%s17149_s7 + $0xa0] sm:%s17444_s25] %v9419_v8 }
 0x92c   : > { %9422 = vst [vmem:[%s17149_s7 + $0xc8] sm:%s17444_s25] %v9421_v9  ;;  %v9423_v10 = vld [vmem:[%s17146_s21 + $0xc0] sm:%s17444_s25] }
 0x92d   : > { %v9425_v11 = vld [vmem:[%s17146_s21 + $0xe0] sm:%s17444_s25]  ;;  %9424 = vst [vmem:[%s17149_s7 + $0xf0] sm:%s17444_s25] %v9423_v10 }
 0x92e   : > { %9426 = vst [vmem:[%s17149_s7 + $0x118] sm:%s17444_s25] %v9425_v11  ;;  %v9427_v12 = vld [vmem:[%s17146_s21 + $0x100] sm:%s17444_s25] }
 0x92f   : > { %v9429_v13 = vld [vmem:[%s17146_s21 + $0x120] sm:%s17444_s25]  ;;  %9428 = vst [vmem:[%s17149_s7 + $0x140] sm:%s17444_s25] %v9427_v12 }
 0x930   : > { %9430 = vst [vmem:[%s17149_s7 + $0x168] sm:%s17444_s25] %v9429_v13  ;;  %v9431_v14 = vld [vmem:[%s17146_s21 + $0x140] sm:%s17444_s25] }
 0x931   : > { %v9433_v15 = vld [vmem:[%s17146_s21 + $0x160] sm:%s17444_s25]  ;;  %9432 = vst [vmem:[%s17149_s7 + $0x190] sm:%s17444_s25] %v9431_v14 }
 0x932   : > { %9434 = vst [vmem:[%s17149_s7 + $0x1b8] sm:%s17444_s25] %v9433_v15  ;;  %v9435_v16 = vld [vmem:[%s17146_s21 + $0x180] sm:%s17444_s25] }
 0x933   : > { %v9437_v17 = vld [vmem:[%s17146_s21 + $0x1a0] sm:%s17444_s25]  ;;  %9436 = vst [vmem:[%s17149_s7 + $0x1e0] sm:%s17444_s25] %v9435_v16 }
 0x934   : > { %9438 = vst [vmem:[%s17149_s7 + $0x208] sm:%s17444_s25] %v9437_v17  ;;  %v9439_v18 = vld [vmem:[%s17146_s21 + $0x1c0] sm:%s17444_s25] }
 0x935   : > { %v9441_v19 = vld [vmem:[%s17146_s21 + $0x1e0] sm:%s17444_s25]  ;;  %9440 = vst [vmem:[%s17149_s7 + $0x230] sm:%s17444_s25] %v9439_v18 }
 0x936   : > { %9442 = vst [vmem:[%s17149_s7 + $0x258] sm:%s17444_s25] %v9441_v19  ;;  %v9443_v20 = vld [vmem:[%s17146_s21 + $0x200] sm:%s17444_s25] }
 0x937   : > { %v9445_v21 = vld [vmem:[%s17146_s21 + $0x220] sm:%s17444_s25]  ;;  %9444 = vst [vmem:[%s17149_s7 + $0x280] sm:%s17444_s25] %v9443_v20 }
 0x938   : > { %9446 = vst [vmem:[%s17149_s7 + $0x2a8] sm:%s17444_s25] %v9445_v21  ;;  %v9447_v22 = vld [vmem:[%s17146_s21 + $0x240] sm:%s17444_s25] }
 0x939   : > { %v9449_v23 = vld [vmem:[%s17146_s21 + $0x260] sm:%s17444_s25]  ;;  %9448 = vst [vmem:[%s17149_s7 + $0x2d0] sm:%s17444_s25] %v9447_v22 }
 0x93a   : > { %9450 = vst [vmem:[%s17149_s7 + $0x2f8] sm:%s17444_s25] %v9449_v23  ;;  %v9451_v24 = vld [vmem:[%s17146_s21 + $0x280] sm:%s17444_s25] }
 0x93b   : > { %v9453_v25 = vld [vmem:[%s17146_s21 + $0x2a0] sm:%s17444_s25]  ;;  %9452 = vst [vmem:[%s17149_s7 + $0x320] sm:%s17444_s25] %v9451_v24 }
 0x93c   : > { %9454 = vst [vmem:[%s17149_s7 + $0x348] sm:%s17444_s25] %v9453_v25  ;;  %v9455_v26 = vld [vmem:[%s17146_s21 + $0x2c0] sm:%s17444_s25] }
 0x93d   : > { %v9457_v27 = vld [vmem:[%s17146_s21 + $0x2e0] sm:%s17444_s25]  ;;  %9456 = vst [vmem:[%s17149_s7 + $0x370] sm:%s17444_s25] %v9455_v26 }
 0x93e   : > { %9458 = vst [vmem:[%s17149_s7 + $0x398] sm:%s17444_s25] %v9457_v27  ;;  %v9459_v28 = vld [vmem:[%s17146_s21 + $0x300] sm:%s17444_s25] }
 0x93f   : > { %v9461_v29 = vld [vmem:[%s17146_s21 + $0x320] sm:%s17444_s25]  ;;  %9460 = vst [vmem:[%s17149_s7 + $0x3c0] sm:%s17444_s25] %v9459_v28 }
 0x940   : > { %9462 = vst [vmem:[%s17149_s7 + $0x3e8] sm:%s17444_s25] %v9461_v29  ;;  %v9463_v30 = vld [vmem:[%s17146_s21 + $0x340] sm:%s17444_s25] }
 0x941   : > { %v9465_v31 = vld [vmem:[%s17146_s21 + $0x360] sm:%s17444_s25]  ;;  %9464 = vst [vmem:[%s17149_s7 + $0x410] sm:%s17444_s25] %v9463_v30 }
 0x942   : > { %9466 = vst [vmem:[%s17149_s7 + $0x438] sm:%s17444_s25] %v9465_v31  ;;  %v9467_v32 = vld [vmem:[%s17146_s21 + $0x380] sm:%s17444_s25] }
 0x943   : > { %v9469_v33 = vld [vmem:[%s17146_s21 + $0x3a0] sm:%s17444_s25]  ;;  %9468 = vst [vmem:[%s17149_s7 + $0x460] sm:%s17444_s25] %v9467_v32 }
 0x944   : > { %9470 = vst [vmem:[%s17149_s7 + $0x488] sm:%s17444_s25] %v9469_v33  ;;  %v9471_v34 = vld [vmem:[%s17146_s21 + $0x3c0] sm:%s17444_s25] }
 0x945   : > { %v9473_v35 = vld [vmem:[%s17146_s21 + $0x3e0] sm:%s17444_s25]  ;;  %9472 = vst [vmem:[%s17149_s7 + $0x4b0] sm:%s17444_s25] %v9471_v34 }
 0x946   : > { %9474 = vst [vmem:[%s17149_s7 + $0x4d8] sm:%s17444_s25] %v9473_v35 }
 0x947 PF: > { %p9978_p11 = scmp.ge.u32.totalorder %s16839_s5, 8 }
 0x948   : > { %s11520_s14 = smov (!%p9978_p11), 0  }
 0x949   : > { %8837 = sbr.rel (%p9978_p11) target bundleno = 2411 (0x96b), region = 100  ;;  %s17576_s21 = sshllo.u32 (!%p9978_p11), %s11520_s14, %s16839_s5 }
 0x94a   : > { %v8847_v36 = vld [vmem:[%s16700_s4] sm:%s17576_s21] (!%p9978_p11) }
 0x94b   : > { %v8849_v37 = vld [vmem:[%s16700_s4 + $0x20] sm:%s17576_s21] (!%p9978_p11)  ;;  %8848 = vst [vmem:[%s16837_s9] sm:%s17576_s21] (!%p9978_p11), %v8847_v36 }
 0x94c   : > { %8850 = vst [vmem:[%s16837_s9 + $0x28] sm:%s17576_s21] (!%p9978_p11), %v8849_v37  ;;  %v8851_v38 = vld [vmem:[%s16700_s4 + $0x40] sm:%s17576_s21] (!%p9978_p11) }
 0x94d   : > { %v8853_v39 = vld [vmem:[%s16700_s4 + $0x60] sm:%s17576_s21] (!%p9978_p11)  ;;  %8852 = vst [vmem:[%s16837_s9 + $0x50] sm:%s17576_s21] (!%p9978_p11), %v8851_v38 }
 0x94e   : > { %8854 = vst [vmem:[%s16837_s9 + $0x78] sm:%s17576_s21] (!%p9978_p11), %v8853_v39  ;;  %v8855_v40 = vld [vmem:[%s16700_s4 + $0x80] sm:%s17576_s21] (!%p9978_p11) }
 0x94f   : > { %v8857_v2 = vld [vmem:[%s16700_s4 + $0xa0] sm:%s17576_s21] (!%p9978_p11)  ;;  %8856 = vst [vmem:[%s16837_s9 + $0xa0] sm:%s17576_s21] (!%p9978_p11), %v8855_v40 }
 0x950   : > { %8858 = vst [vmem:[%s16837_s9 + $0xc8] sm:%s17576_s21] %v8857_v2  ;;  %v8859_v41 = vld [vmem:[%s16700_s4 + $0xc0] sm:%s17576_s21] }
 0x951   : > { %v8861_v42 = vld [vmem:[%s16700_s4 + $0xe0] sm:%s17576_s21]  ;;  %8860 = vst [vmem:[%s16837_s9 + $0xf0] sm:%s17576_s21] %v8859_v41 }
 0x952   : > { %8862 = vst [vmem:[%s16837_s9 + $0x118] sm:%s17576_s21] %v8861_v42  ;;  %v8863_v43 = vld [vmem:[%s16700_s4 + $0x100] sm:%s17576_s21] }
 0x953   : > { %v8865_v44 = vld [vmem:[%s16700_s4 + $0x120] sm:%s17576_s21]  ;;  %8864 = vst [vmem:[%s16837_s9 + $0x140] sm:%s17576_s21] %v8863_v43 }
 0x954   : > { %8866 = vst [vmem:[%s16837_s9 + $0x168] sm:%s17576_s21] %v8865_v44  ;;  %v8867_v45 = vld [vmem:[%s16700_s4 + $0x140] sm:%s17576_s21] }
 0x955   : > { %v8869_v46 = vld [vmem:[%s16700_s4 + $0x160] sm:%s17576_s21]  ;;  %8868 = vst [vmem:[%s16837_s9 + $0x190] sm:%s17576_s21] %v8867_v45 }
 0x956   : > { %8870 = vst [vmem:[%s16837_s9 + $0x1b8] sm:%s17576_s21] %v8869_v46  ;;  %v8871_v47 = vld [vmem:[%s16700_s4 + $0x180] sm:%s17576_s21] }
 0x957   : > { %v8873_v48 = vld [vmem:[%s16700_s4 + $0x1a0] sm:%s17576_s21]  ;;  %8872 = vst [vmem:[%s16837_s9 + $0x1e0] sm:%s17576_s21] %v8871_v47 }
 0x958   : > { %8874 = vst [vmem:[%s16837_s9 + $0x208] sm:%s17576_s21] %v8873_v48  ;;  %v8875_v49 = vld [vmem:[%s16700_s4 + $0x1c0] sm:%s17576_s21] }
 0x959   : > { %v8877_v50 = vld [vmem:[%s16700_s4 + $0x1e0] sm:%s17576_s21]  ;;  %8876 = vst [vmem:[%s16837_s9 + $0x230] sm:%s17576_s21] %v8875_v49 }
 0x95a   : > { %8878 = vst [vmem:[%s16837_s9 + $0x258] sm:%s17576_s21] %v8877_v50  ;;  %v8879_v51 = vld [vmem:[%s16700_s4 + $0x200] sm:%s17576_s21] }
 0x95b   : > { %v8881_v52 = vld [vmem:[%s16700_s4 + $0x220] sm:%s17576_s21]  ;;  %8880 = vst [vmem:[%s16837_s9 + $0x280] sm:%s17576_s21] %v8879_v51 }
 0x95c   : > { %8882 = vst [vmem:[%s16837_s9 + $0x2a8] sm:%s17576_s21] %v8881_v52  ;;  %v8883_v53 = vld [vmem:[%s16700_s4 + $0x240] sm:%s17576_s21] }
 0x95d   : > { %v8885_v54 = vld [vmem:[%s16700_s4 + $0x260] sm:%s17576_s21]  ;;  %8884 = vst [vmem:[%s16837_s9 + $0x2d0] sm:%s17576_s21] %v8883_v53 }
 0x95e   : > { %8886 = vst [vmem:[%s16837_s9 + $0x2f8] sm:%s17576_s21] %v8885_v54  ;;  %v8887_v55 = vld [vmem:[%s16700_s4 + $0x280] sm:%s17576_s21] }
 0x95f   : > { %v8889_v56 = vld [vmem:[%s16700_s4 + $0x2a0] sm:%s17576_s21]  ;;  %8888 = vst [vmem:[%s16837_s9 + $0x320] sm:%s17576_s21] %v8887_v55 }
 0x960   : > { %8890 = vst [vmem:[%s16837_s9 + $0x348] sm:%s17576_s21] %v8889_v56  ;;  %v8891_v57 = vld [vmem:[%s16700_s4 + $0x2c0] sm:%s17576_s21] }
 0x961   : > { %v8893_v58 = vld [vmem:[%s16700_s4 + $0x2e0] sm:%s17576_s21]  ;;  %8892 = vst [vmem:[%s16837_s9 + $0x370] sm:%s17576_s21] %v8891_v57 }
 0x962   : > { %8894 = vst [vmem:[%s16837_s9 + $0x398] sm:%s17576_s21] %v8893_v58  ;;  %v8895_v59 = vld [vmem:[%s16700_s4 + $0x300] sm:%s17576_s21] }
 0x963   : > { %v8897_v60 = vld [vmem:[%s16700_s4 + $0x320] sm:%s17576_s21]  ;;  %8896 = vst [vmem:[%s16837_s9 + $0x3c0] sm:%s17576_s21] %v8895_v59 }
 0x964   : > { %8898 = vst [vmem:[%s16837_s9 + $0x3e8] sm:%s17576_s21] %v8897_v60  ;;  %v8899_v61 = vld [vmem:[%s16700_s4 + $0x340] sm:%s17576_s21] }
 0x965   : > { %v8901_v62 = vld [vmem:[%s16700_s4 + $0x360] sm:%s17576_s21]  ;;  %8900 = vst [vmem:[%s16837_s9 + $0x410] sm:%s17576_s21] %v8899_v61 }
 0x966   : > { %8902 = vst [vmem:[%s16837_s9 + $0x438] sm:%s17576_s21] %v8901_v62  ;;  %v8903_v63 = vld [vmem:[%s16700_s4 + $0x380] sm:%s17576_s21] }
 0x967   : > { %v8905_v0 = vld [vmem:[%s16700_s4 + $0x3a0] sm:%s17576_s21]  ;;  %8904 = vst [vmem:[%s16837_s9 + $0x460] sm:%s17576_s21] %v8903_v63 }
 0x968   : > { %8906 = vst [vmem:[%s16837_s9 + $0x488] sm:%s17576_s21] %v8905_v0  ;;  %v8907_v1 = vld [vmem:[%s16700_s4 + $0x3c0] sm:%s17576_s21] }
 0x969   : > { %v8909_v3 = vld [vmem:[%s16700_s4 + $0x3e0] sm:%s17576_s21]  ;;  %8908 = vst [vmem:[%s16837_s9 + $0x4b0] sm:%s17576_s21] %v8907_v1 }
 0x96a   : > { %8910 = vst [vmem:[%s16837_s9 + $0x4d8] sm:%s17576_s21] %v8909_v3 }
 0x96b PF: > { %s13_s18 = sadd.s32 1, %s11418_s18   ;;  %s17762_s12 = smov %s11398_s13 }
 0x96c   : > { %p10_p12 = scmp.ge.s32.totalorder %s13_s18, 6   ;;  %s17763_s13 = smov %s11597_s27 }
 0x96d   : > { %s17764_s14 = smov %s11410_s16  ;;  %s17765_s15 = smov %s11414_s17 }
 0x96e   : > { %s17766_s16 = smov %s17769_s19  ;;  %s17767_s17 = smov %s17773_s20 }
 0x96f   :  { %12 = sbr.rel (!%p10_p12) target bundleno = 4 (0x4), region = 279 }

</bundles_post_ra>
